<compile_context>
chip_gen: v7x
topology: tpu7x:2x2x1
jax: 0.10.0
libtpu: 0.0.40
codegen_flags: <defaults>
</compile_context>

<pallas_src>
import functools
import math

import jax
import jax.numpy as jnp
from jax import lax
from jax.experimental import pallas as pl
from jax.experimental.pallas import tpu as pltpu


def _round_up(n, m):
    return ((n + m - 1) // m) * m


# ----------------------------------------------------------------------------
# Fused kernel: fc1+ReLU -> fc2+ReLU -> RFF cos -> GP linear [-> softmax]
# ----------------------------------------------------------------------------
def _sngp_fused_kernel(x_ref, w1_ref, b1_ref, w2_ref, b2_ref, wf_ref, bf_ref,
                       wo_ref, o_ref, *, n_classes, apply_softmax):
    # Layer 1: bf16 matmul on MXU, f32 accumulate, bias + ReLU on VPU.
    h1 = jnp.dot(x_ref[...], w1_ref[...], preferred_element_type=jnp.float32)
    h1 = jnp.maximum(h1 + b1_ref[...], 0.0).astype(jnp.bfloat16)

    # Layer 2.
    h2 = jnp.dot(h1, w2_ref[...], preferred_element_type=jnp.float32)
    h2 = jnp.maximum(h2 + b2_ref[...], 0.0).astype(jnp.bfloat16)

    # Random Fourier features. 1/lengthscale already folded into wf; the
    # outputscale*sqrt(2/rank) post-cos scale is folded into wo.
    f = jnp.dot(h2, wf_ref[...], preferred_element_type=jnp.float32) + bf_ref[...]
    f = jnp.cos(f).astype(jnp.bfloat16)

    # GP output layer (no bias).
    logits = jnp.dot(f, wo_ref[...], preferred_element_type=jnp.float32)

    if apply_softmax:
        # Mask the padded class lanes, then a standard stable softmax.
        col = lax.broadcasted_iota(jnp.int32, logits.shape, 1)
        logits = jnp.where(col < n_classes, logits, -1e30)
        m = jnp.max(logits, axis=-1, keepdims=True)
        e = jnp.exp(logits - m)                      # EUP
        s = jnp.sum(e, axis=-1, keepdims=True)       # XLU reduce
        out = e * pl.reciprocal(s, approx=True)      # EUP reciprocal, no divide
    else:
        out = logits

    o_ref[...] = out.astype(o_ref.dtype)


def _fused_forward(x, kp, *, apply_softmax):
    """Run the fused SNGP forward. Returns (B, n_classes) float32."""
    B, IN = x.shape
    INp, Hp = kp["w1"].shape
    Rp = kp["wf"].shape[1]
    Cp = kp["wo"].shape[1]
    C = kp["n_classes"]

    # Batch tile: lane-dense features, sublane-aligned batch.
    TB = min(128, _round_up(B, 8))
    Bp = _round_up(B, TB)

    xp = jnp.zeros((Bp, INp), jnp.bfloat16).at[:B, :IN].set(x.astype(jnp.bfloat16))

    grid = (Bp // TB,)
    kernel = functools.partial(_sngp_fused_kernel, n_classes=C,
                               apply_softmax=apply_softmax)

    flops = 2 * Bp * (INp * Hp + Hp * Hp + Hp * Rp + Rp * Cp)
    transcendentals = Bp * Rp + (Bp * Cp if apply_softmax else 0)
    weight_bytes = (INp * Hp + Hp * Hp + Hp * Rp + Rp * Cp) * 2 + (Hp + Hp + Rp) * 4
    bytes_accessed = Bp * INp * 2 + weight_bytes + Bp * Cp * 4

    out = pl.pallas_call(
        kernel,
        out_shape=jax.ShapeDtypeStruct((Bp, Cp), jnp.float32),
        grid=grid,
        in_specs=[
            # x: one batch tile per grid step (double-buffered by Pallas).
            pl.BlockSpec((TB, INp), lambda i: (i, 0)),
            # Weights / biases: constant block index -> fetched once, VMEM resident.
            pl.BlockSpec((INp, Hp), lambda i: (0, 0)),
            pl.BlockSpec((1, Hp), lambda i: (0, 0)),
            pl.BlockSpec((Hp, Hp), lambda i: (0, 0)),
            pl.BlockSpec((1, Hp), lambda i: (0, 0)),
            pl.BlockSpec((Hp, Rp), lambda i: (0, 0)),
            pl.BlockSpec((1, Rp), lambda i: (0, 0)),
            pl.BlockSpec((Rp, Cp), lambda i: (0, 0)),
        ],
        out_specs=pl.BlockSpec((TB, Cp), lambda i: (i, 0)),
        compiler_params=pltpu.CompilerParams(
            dimension_semantics=("parallel",),   # batch tiles are independent
        ),
        cost_estimate=pl.CostEstimate(
            flops=flops,
            transcendentals=transcendentals,
            bytes_accessed=bytes_accessed,
        ),
    )(xp, kp["w1"], kp["b1"], kp["w2"], kp["b2"], kp["wf"], kp["bf"], kp["wo"])

    return out[:B, :C]


def sngp_forward(x, kp):
    """Equivalent of SNGPThreeLayerDNN.forward(x) -> logits."""
    return _fused_forward(x, kp, apply_softmax=False)


def sngp_standard_proba(x, kp):
    """Equivalent of SNGPThreeLayerDNN.standard_proba(x) -> softmax(logits)."""
    return _fused_forward(x, kp, apply_softmax=True)


# ----------------------------------------------------------------------------
# Parameter construction (matches PyTorch defaults) and one-time kernel prep
# ----------------------------------------------------------------------------
def init_raw_params(key, in_features, hidden_size, out_features, rank):
    ks = jax.random.split(key, 7)

    def linear_init(kw, kb, fan_in, fan_out):
        bound = 1.0 / math.sqrt(fan_in)
        w = jax.random.uniform(kw, (fan_in, fan_out), jnp.float32, -bound, bound)
        b = jax.random.uniform(kb, (fan_out,), jnp.float32, -bound, bound)
        return w, b

    w1, b1 = linear_init(ks[0], ks[1], in_features, hidden_size)
    w2, b2 = linear_init(ks[2], ks[3], hidden_size, hidden_size)
    # RFF buffers: feature_weight ~ N(0,1)  (stored here as (H, R) = torch (R, H).T),
    # feature_bias ~ U(0, 2*pi).
    fw = jax.random.normal(ks[4], (hidden_size, rank), jnp.float32)
    fb = 2.0 * math.pi * jax.random.uniform(ks[5], (rank,), jnp.float32)
    # gp.linear: Linear(rank, out_features, bias=False), stored as (R, C).
    bound = 1.0 / math.sqrt(rank)
    wo = jax.random.uniform(ks[6], (rank, out_features), jnp.float32, -bound, bound)
    return dict(w1=w1, b1=b1, w2=w2, b2=b2, fw=fw, fb=fb, wo=wo)


def prepare_kernel_params(raw, *, lengthscale, outputscale, rank, out_features):
    """One-time prep: pad feature dims to 128, fold scales, cast weights to bf16."""
    IN, H = raw["w1"].shape
    R, C = rank, out_features
    INp, Hp, Rp, Cp = (_round_up(d, 128) for d in (IN, H, R, C))

    def pad2(a, r, c):
        return jnp.zeros((r, c), a.dtype).at[: a.shape[0], : a.shape[1]].set(a)

    def pad_row(a, c):
        return jnp.zeros((1, c), a.dtype).at[0, : a.shape[0]].set(a)

    # softplus(log(expm1(v))) == v, so effective lengthscale/outputscale are the raw values.
    feat_scale = outputscale * math.sqrt(2.0 / rank)
    return dict(
        w1=pad2(raw["w1"], INp, Hp).astype(jnp.bfloat16),
        b1=pad_row(raw["b1"], Hp),                                   # f32
        w2=pad2(raw["w2"], Hp, Hp).astype(jnp.bfloat16),
        b2=pad_row(raw["b2"], Hp),                                   # f32
        wf=pad2(raw["fw"] / lengthscale, Hp, Rp).astype(jnp.bfloat16),
        bf=pad_row(raw["fb"], Rp),                                   # f32
        wo=pad2(raw["wo"] * feat_scale, Rp, Cp).astype(jnp.bfloat16),
        n_classes=C,
    )


# ----------------------------------------------------------------------------
# Pure-JAX reference with identical dtype handling (bf16 matmuls, f32 accum)
# ----------------------------------------------------------------------------
def reference_forward(x, kp, *, apply_softmax=False):
    B, IN = x.shape
    INp = kp["w1"].shape[0]
    xp = jnp.zeros((B, INp), jnp.bfloat16).at[:, :IN].set(x.astype(jnp.bfloat16))
    h1 = jnp.maximum(
        jnp.dot(xp, kp["w1"], preferred_element_type=jnp.float32) + kp["b1"], 0.0
    ).astype(jnp.bfloat16)
    h2 = jnp.maximum(
        jnp.dot(h1, kp["w2"], preferred_element_type=jnp.float32) + kp["b2"], 0.0
    ).astype(jnp.bfloat16)
    f = jnp.cos(
        jnp.dot(h2, kp["wf"], preferred_element_type=jnp.float32) + kp["bf"]
    ).astype(jnp.bfloat16)
    logits = jnp.dot(f, kp["wo"], preferred_element_type=jnp.float32)[:, : kp["n_classes"]]
    if apply_softmax:
        return jax.nn.softmax(logits, axis=-1)
    return logits


if __name__ == "__main__":
    key = jax.random.PRNGKey(0)
    k_x, k_p = jax.random.split(key)

    # Small-but-tileable sizes consistent with the module defaults.
    batch = 256
    in_features = 32
    hidden_size = 64
    out_features = 10
    rank = 256
    lengthscale = math.sqrt(20.0)
    outputscale = 1.0

    x = jax.random.normal(k_x, (batch, in_features), jnp.float32)
    raw = init_raw_params(k_p, in_features, hidden_size, out_features, rank)
    kp = prepare_kernel_params(raw, lengthscale=lengthscale, outputscale=outputscale,
                               rank=rank, out_features=out_features)

    # forward -> logits
    logits = jax.block_until_ready(sngp_forward(x, kp))
    ref_logits = reference_forward(x, kp, apply_softmax=False)
    assert logits.shape == (batch, out_features)
    assert jnp.allclose(logits, ref_logits, atol=1e-2, rtol=1e-2)

    # standard_proba -> softmax(logits), fused in the kernel epilogue
    probs = jax.block_until_ready(sngp_standard_proba(x, kp))
    ref_probs = reference_forward(x, kp, apply_softmax=True)
    assert probs.shape == (batch, out_features)
    assert jnp.allclose(probs, ref_probs, atol=2e-2, rtol=2e-2)
    assert jnp.allclose(jnp.sum(probs, axis=1), 1.0, atol=2e-2)

    print("KERNEL_OK")
</pallas_src>

<mosaic_0001>
module attributes {stable_mosaic.version = 11 : i64} {
  func.func @_sngp_fused_kernel(%arg0: i32, %arg1: memref<128x128xbf16, #tpu.memory_space<vmem>>, %arg2: memref<128x128xbf16, #tpu.memory_space<vmem>>, %arg3: memref<1x128xf32, #tpu.memory_space<vmem>>, %arg4: memref<128x128xbf16, #tpu.memory_space<vmem>>, %arg5: memref<1x128xf32, #tpu.memory_space<vmem>>, %arg6: memref<128x256xbf16, #tpu.memory_space<vmem>>, %arg7: memref<1x256xf32, #tpu.memory_space<vmem>>, %arg8: memref<256x128xbf16, #tpu.memory_space<vmem>>, %arg9: memref<128x128xf32, #tpu.memory_space<vmem>>) attributes {dimension_semantics = [#tpu.dimension_semantics<parallel>], iteration_bounds = array<i64: 2>, scalar_prefetch = 0 : i64, scratch_operands = 0 : i64, tpu.core_type = #tpu.core_type<tc>, window_params = [{transform_indices = @transform_0, window_bounds = array<i64: 128, 128>}, {pipeline_mode = #tpu.pipeline_mode<synchronous>, transform_indices = @transform_1, window_bounds = array<i64: 128, 128>}, {pipeline_mode = #tpu.pipeline_mode<synchronous>, transform_indices = @transform_2, window_bounds = array<i64: 1, 128>}, {pipeline_mode = #tpu.pipeline_mode<synchronous>, transform_indices = @transform_3, window_bounds = array<i64: 128, 128>}, {pipeline_mode = #tpu.pipeline_mode<synchronous>, transform_indices = @transform_4, window_bounds = array<i64: 1, 128>}, {pipeline_mode = #tpu.pipeline_mode<synchronous>, transform_indices = @transform_5, window_bounds = array<i64: 128, 256>}, {pipeline_mode = #tpu.pipeline_mode<synchronous>, transform_indices = @transform_6, window_bounds = array<i64: 1, 256>}, {pipeline_mode = #tpu.pipeline_mode<synchronous>, transform_indices = @transform_7, window_bounds = array<i64: 256, 128>}, {transform_indices = @transform_8, window_bounds = array<i64: 128, 128>}]} {
    %c0 = arith.constant 0 : index
    %c0_0 = arith.constant 0 : index
    %0 = vector.load %arg1[%c0, %c0_0] : memref<128x128xbf16, #tpu.memory_space<vmem>>, vector<128x128xbf16>
    %c0_1 = arith.constant 0 : index
    %c0_2 = arith.constant 0 : index
    %1 = vector.load %arg2[%c0_1, %c0_2] : memref<128x128xbf16, #tpu.memory_space<vmem>>, vector<128x128xbf16>
    %cst = arith.constant dense<0.000000e+00> : vector<128x128xf32>
    %2 = tpu.matmul %0, %1, %cst {dimension_numbers = #tpu.dot_dimension_numbers<[1], [0], [0], [1], [0, 0, 1, 1], [], []>} : vector<128x128xbf16>, vector<128x128xbf16>, vector<128x128xf32> -> vector<128x128xf32>
    %c0_3 = arith.constant 0 : index
    %c0_4 = arith.constant 0 : index
    %3 = vector.load %arg3[%c0_3, %c0_4] : memref<1x128xf32, #tpu.memory_space<vmem>>, vector<1x128xf32>
    %4 = vector.broadcast %3 : vector<1x128xf32> to vector<128x128xf32>
    %5 = arith.addf %2, %4 : vector<128x128xf32>
    %cst_5 = arith.constant 0.000000e+00 : f32
    %6 = vector.broadcast %cst_5 : f32 to vector<128x128xf32>
    %7 = arith.maximumf %5, %6 : vector<128x128xf32>
    %8 = arith.truncf %7 : vector<128x128xf32> to vector<128x128xbf16>
    %c0_6 = arith.constant 0 : index
    %c0_7 = arith.constant 0 : index
    %9 = vector.load %arg4[%c0_6, %c0_7] : memref<128x128xbf16, #tpu.memory_space<vmem>>, vector<128x128xbf16>
    %cst_8 = arith.constant dense<0.000000e+00> : vector<128x128xf32>
    %10 = tpu.matmul %8, %9, %cst_8 {dimension_numbers = #tpu.dot_dimension_numbers<[1], [0], [0], [1], [0, 0, 1, 1], [], []>} : vector<128x128xbf16>, vector<128x128xbf16>, vector<128x128xf32> -> vector<128x128xf32>
    %c0_9 = arith.constant 0 : index
    %c0_10 = arith.constant 0 : index
    %11 = vector.load %arg5[%c0_9, %c0_10] : memref<1x128xf32, #tpu.memory_space<vmem>>, vector<1x128xf32>
    %12 = vector.broadcast %11 : vector<1x128xf32> to vector<128x128xf32>
    %13 = arith.addf %10, %12 : vector<128x128xf32>
    %cst_11 = arith.constant 0.000000e+00 : f32
    %14 = vector.broadcast %cst_11 : f32 to vector<128x128xf32>
    %15 = arith.maximumf %13, %14 : vector<128x128xf32>
    %16 = arith.truncf %15 : vector<128x128xf32> to vector<128x128xbf16>
    %c0_12 = arith.constant 0 : index
    %c0_13 = arith.constant 0 : index
    %17 = vector.load %arg6[%c0_12, %c0_13] : memref<128x256xbf16, #tpu.memory_space<vmem>>, vector<128x256xbf16>
    %cst_14 = arith.constant dense<0.000000e+00> : vector<128x256xf32>
    %18 = tpu.matmul %16, %17, %cst_14 {dimension_numbers = #tpu.dot_dimension_numbers<[1], [0], [0], [1], [0, 0, 1, 1], [], []>} : vector<128x128xbf16>, vector<128x256xbf16>, vector<128x256xf32> -> vector<128x256xf32>
    %c0_15 = arith.constant 0 : index
    %c0_16 = arith.constant 0 : index
    %19 = vector.load %arg7[%c0_15, %c0_16] : memref<1x256xf32, #tpu.memory_space<vmem>>, vector<1x256xf32>
    %20 = vector.broadcast %19 : vector<1x256xf32> to vector<128x256xf32>
    %21 = arith.addf %18, %20 : vector<128x256xf32>
    %22 = math.cos %21 : vector<128x256xf32>
    %23 = arith.truncf %22 : vector<128x256xf32> to vector<128x256xbf16>
    %c0_17 = arith.constant 0 : index
    %c0_18 = arith.constant 0 : index
    %24 = vector.load %arg8[%c0_17, %c0_18] : memref<256x128xbf16, #tpu.memory_space<vmem>>, vector<256x128xbf16>
    %cst_19 = arith.constant dense<0.000000e+00> : vector<128x128xf32>
    %25 = tpu.matmul %23, %24, %cst_19 {dimension_numbers = #tpu.dot_dimension_numbers<[1], [0], [0], [1], [0, 0, 1, 1], [], []>} : vector<128x256xbf16>, vector<256x128xbf16>, vector<128x128xf32> -> vector<128x128xf32>
    %c0_20 = arith.constant 0 : index
    %c0_21 = arith.constant 0 : index
    %26 = vector.load %arg9[%c0_20, %c0_21] : memref<128x128xf32, #tpu.memory_space<vmem>>, vector<128x128xf32>
    tpu.vector_store %arg9[%c0_20, %c0_21], %25 {strides = array<i32>} : memref<128x128xf32, #tpu.memory_space<vmem>>, vector<128x128xf32>,
    return
  }
  func.func @transform_0(%arg0: i32) -> (i32, i32) {
    %c0_i32 = arith.constant 0 : i32
    %c0_i32_0 = arith.constant 0 : i32
    return %arg0, %c0_i32 : i32, i32
  }
  func.func @transform_1(%arg0: i32) -> (i32, i32) {
    %c0_i32 = arith.constant 0 : i32
    %c0_i32_0 = arith.constant 0 : i32
    %c0_i32_1 = arith.constant 0 : i32
    return %c0_i32, %c0_i32_0 : i32, i32
  }
  func.func @transform_2(%arg0: i32) -> (i32, i32) {
    %c0_i32 = arith.constant 0 : i32
    %c0_i32_0 = arith.constant 0 : i32
    %c0_i32_1 = arith.constant 0 : i32
    return %c0_i32, %c0_i32_0 : i32, i32
  }
  func.func @transform_3(%arg0: i32) -> (i32, i32) {
    %c0_i32 = arith.constant 0 : i32
    %c0_i32_0 = arith.constant 0 : i32
    %c0_i32_1 = arith.constant 0 : i32
    return %c0_i32, %c0_i32_0 : i32, i32
  }
  func.func @transform_4(%arg0: i32) -> (i32, i32) {
    %c0_i32 = arith.constant 0 : i32
    %c0_i32_0 = arith.constant 0 : i32
    %c0_i32_1 = arith.constant 0 : i32
    return %c0_i32, %c0_i32_0 : i32, i32
  }
  func.func @transform_5(%arg0: i32) -> (i32, i32) {
    %c0_i32 = arith.constant 0 : i32
    %c0_i32_0 = arith.constant 0 : i32
    %c0_i32_1 = arith.constant 0 : i32
    return %c0_i32, %c0_i32_0 : i32, i32
  }
  func.func @transform_6(%arg0: i32) -> (i32, i32) {
    %c0_i32 = arith.constant 0 : i32
    %c0_i32_0 = arith.constant 0 : i32
    %c0_i32_1 = arith.constant 0 : i32
    return %c0_i32, %c0_i32_0 : i32, i32
  }
  func.func @transform_7(%arg0: i32) -> (i32, i32) {
    %c0_i32 = arith.constant 0 : i32
    %c0_i32_0 = arith.constant 0 : i32
    %c0_i32_1 = arith.constant 0 : i32
    return %c0_i32, %c0_i32_0 : i32, i32
  }
  func.func @transform_8(%arg0: i32) -> (i32, i32) {
    %c0_i32 = arith.constant 0 : i32
    %c0_i32_0 = arith.constant 0 : i32
    return %arg0, %c0_i32 : i32, i32
  }
}

</mosaic_0001>

<bundles_post_ra>
// kernel: tpu_custom_call.1
= control target key start
LH: loop header
LB: loop body
LE: loop exit
PB: predicated region body
PF: predicated region fallthrough
CT: control target
= control target key end

     0   :  { %s9201_s0 = inlined_call_operand.hbm [shape: bf16[256,128], index: 0, kind: input, shape index: {}]   ;;  %s9202_s1 = inlined_call_operand.hbm [shape: bf16[128,128], index: 1, kind: input, shape index: {}]   ;;  %s9203_s2 = inlined_call_operand.vmem [shape: f32[1,128], index: 2, kind: input, shape index: {}]   ;;  %s9204_s3 = inlined_call_operand.hbm [shape: bf16[128,128], index: 3, kind: input, shape index: {}]   ;;  %s9205_s4 = inlined_call_operand.vmem [shape: f32[1,128], index: 4, kind: input, shape index: {}]   ;;  %s9206_s5 = inlined_call_operand.hbm [shape: bf16[128,256], index: 5, kind: input, shape index: {}]   ;;  %s9207_s6 = inlined_call_operand.vmem [shape: f32[1,256], index: 6, kind: input, shape index: {}]   ;;  %s9208_s7 = inlined_call_operand.hbm [shape: bf16[256,128], index: 7, kind: input, shape index: {}]   ;;  %s9209_s8 = inlined_call_operand.hbm [shape: f32[256,128], index: 8, kind: output, shape index: {}]  }
   0x1   :  { %9458 = sst [smem:[#allocation136_spill]] %s9202_s1 }
   0x2   :  { %13 = vsyncpa [#allocation3], 0 }
   0x3   :  { %15 = vsyncpa [#allocation3 + $0x1], 0 }
   0x4   :  { %16 = vsyncpa [#allocation6], 0 }
   0x5   :  { %17 = vsyncpa [#allocation9], 0 }
   0x6   :  { %18 = vsyncpa [#allocation4], 0 }
   0x7   :  { %20 = vsyncpa [#allocation4 + $0x1], 0  ;;  %s5804_s27 = smov 0   ;;  %s5806_s28 = smov 0  }
   0x8   :  { %s5808_s29 = smov 0   ;;  %s5810_s30 = smov 0  }
   0x9 LB: > { %s5825_s9 = sadd.s32 4294967295, %s5738_s30   ;;  %s4732_s10 = sadd.s32 4294967294, %s5738_s30   ;;  %s5738_s30 = sphi %s5810_s30, %s9920_s30   ;;  %s5734_s29 = sphi %s5808_s29, %s9919_s29   ;;  %s5730_s28 = sphi %s5806_s28, %s9918_s28   ;;  %s5726_s27 = sphi %s5804_s27, %s9917_s27  }
   0xa   : > { %p46_p0 = scmp.ne.s32.totalorder %s5730_s28, %s5726_s27  ;;  %p9210_p1 = scmp.eq.s32.totalorder %s5825_s9, 0 }
   0xb   : > { %p223_p3 = scmp.eq.s32.totalorder %s4732_s10, 1  ;;  %p4733_p5 = scmp.ge.s32.totalorder %s5738_s30, 1 }
   0xc   : > { %p5834_p4 = por %p9210_p1, %p46_p0  ;;  %p230_p7 = scmp.lt.s32.totalorder %s5738_s30, 3 }
   0xd   : > { %p5839_p6 = por %p223_p3, %p46_p0  ;;  %s5740_s14 = smov [#allocation5]  }
   0xe   : > { %s9459_s11 = scalar_select %p5834_p4, 1, 0 }
   0xf   : > { %s9460_s12 = scalar_select %p5839_p6, 1, 0 }
  0x10   : > { %p5844_p8 = pnand %p4733_p5, %p230_p7  ;;  %s242_s15 = sshll.u32 %s5740_s14, 4  ;;  %s5848_s15 = int_to_ptr.vmem [resolvable:$true] %s242_s15 }
  0x11   : > { %9461 = sst [smem:[#allocation16_spill]] %s9460_s12  ;;  %s5741_s17 = smov [#allocation8]  }
  0x12   : > { %s9462_s13 = scalar_select %p5844_p8, 1, 0 }
  0x13   : > { %p5250_p9 = pneg %p5844_p8  ;;  %s274_s18 = sshll.u32 %s5741_s17, 4  ;;  %s5859_s18 = int_to_ptr.vmem [resolvable:$true] %s274_s18 }
  0x14   : > { %s9464_s1 = sld [smem:[#allocation136_spill]] }
  0x15   : > { %p5855_p11 = pnand %p5250_p9, %p9210_p1 }
  0x17   : > { %p5869_p13 = pneg %p5855_p11 }
  0x1a   : > { %s5522_s21 = scalar_lea.hbm %s9464_s1, 1024 }
  0x1b   : > { %p5523_p12 = scmp.ne.s32.totalorder %s9464_s1, %s5522_s21  ;;  %p5529_p5 = scmp.lt.u32.totalorder %s5522_s21, %s9464_s1 }
  0x1d   : > { %p5525_p0 = pnand %p5869_p13, %p5523_p12 }
  0x1f   : > { %p5526_p3 = pneg %p5525_p0 }
  0x21   : > { %p5531_p7 = pnand %p5529_p5, %p5526_p3 }
  0x23   : > { %5534 = shalt.err (!%p5531_p7)
}
  0x24   : > { %s5535_s10 = scalar_lea.vmem %s5848_s15, 1024  ;;  %p5543_p2 = scmp.lt.s32.totalorder %s5848_s15, %s5848_s15 }
  0x25   : > { %p5536_p9 = scmp.ne.s32.totalorder %s5848_s15, %s5535_s10  ;;  %p5544_p6 = scmp.lt.s32.totalorder %s5535_s10, %s5535_s10 }
  0x27   : > { %p5538_p10 = pnand %p5536_p9, %p5869_p13  ;;  %p5545_p12 = por %p5544_p6, %p5543_p2 }
  0x29   : > { %p5539_p1 = pneg %p5538_p10 }
  0x2b   : > { %p5546_p0 = pnand %p5545_p12, %p5539_p1 }
  0x2d   : > { %5549 = shalt.err (!%p5546_p0)
}
  0x2e   : > { %s9212_s14 = smov 64   ;;  %s9214_s17 = smov 4  }
  0x2f   : > { %5253 = dma.hbm_to_vmem [thread:$0]  (!%p5855_p11), %s9464_s1, 1024, %s5848_s15, [#allocation6], %s9212_s14, %s9212_s14, %s9214_s17  }
  0x30   : > { %s5550_s23 = scalar_lea.hbm %s9206_s5, 2048 }
  0x31   : > { %p5551_p1 = scmp.ne.s32.totalorder %s9206_s5, %s5550_s23  ;;  %p5557_p10 = scmp.lt.u32.totalorder %s5550_s23, %s9206_s5 }
  0x33   : > { %p5553_p2 = pnand %p5551_p1, %p5869_p13 }
  0x35   : > { %p5554_p6 = pneg %p5553_p2 }
  0x37   : > { %p5559_p3 = pnand %p5557_p10, %p5554_p6 }
  0x39   : > { %5562 = shalt.err (!%p5559_p3)
}
  0x3a   : > { %s5563_s15 = scalar_lea.vmem %s5859_s18, 2048  ;;  %p5571_p12 = scmp.lt.s32.totalorder %s5859_s18, %s5859_s18 }
  0x3b   : > { %p5564_p5 = scmp.ne.s32.totalorder %s5859_s18, %s5563_s15  ;;  %p5572_p0 = scmp.lt.s32.totalorder %s5563_s15, %s5563_s15 }
  0x3d   : > { %p5566_p7 = pnand %p5564_p5, %p5869_p13  ;;  %p5573_p1 = por %p5572_p0, %p5571_p12 }
  0x3f   : > { %p5567_p9 = pneg %p5566_p7 }
  0x41   : > { %p5574_p2 = pnand %p5573_p1, %p5567_p9 }
  0x43   : > { %5577 = shalt.err (!%p5574_p2)
}
  0x44   : > { %s5744_s19 = smov 128   ;;  %s5745_s12 = smov 8  }
  0x45   : > { %5259 = dma.hbm_to_vmem [thread:$0]  (!%p5855_p11), %s9206_s5, 2048, %s5859_s18, [#allocation9], %s5744_s19, %s5744_s19, %s5745_s12  }
  0x46   : > { %s5746_s22 = smov [#allocation7]   ;;  %s5747_s25 = smov [#allocation10]  }
  0x47   : > { %s258_s23 = sshll.u32 %s5746_s22, 4  ;;  %s290_s26 = sshll.u32 %s5747_s25, 4  ;;  %s259_s23 = int_to_ptr.vmem [resolvable:$true] %s258_s23  ;;  %s5916_s26 = int_to_ptr.vmem [resolvable:$true] %s290_s26 }
  0x48   : > { %s5578_s14 = scalar_lea.hbm %s9204_s3, 1024 }
  0x49   : > { %p5579_p6 = scmp.ne.s32.totalorder %s9204_s3, %s5578_s14  ;;  %p5585_p5 = scmp.lt.u32.totalorder %s5578_s14, %s9204_s3 }
  0x4b   : > { %p5581_p10 = pnand %p5579_p6, %p5869_p13 }
  0x4d   : > { %p5582_p3 = pneg %p5581_p10 }
  0x4f   : > { %p5587_p7 = pnand %p5585_p5, %p5582_p3 }
  0x51   : > { %5590 = shalt.err (!%p5587_p7)
}
  0x52   : > { %s5591_s19 = scalar_lea.vmem %s259_s23, 1024  ;;  %p5599_p1 = scmp.lt.s32.totalorder %s259_s23, %s259_s23 }
  0x53   : > { %p5592_p9 = scmp.ne.s32.totalorder %s259_s23, %s5591_s19  ;;  %p5600_p2 = scmp.lt.s32.totalorder %s5591_s19, %s5591_s19 }
  0x55   : > { %p5594_p12 = pnand %p5592_p9, %p5869_p13  ;;  %p5601_p4 = por %p5600_p2, %p5599_p1 }
  0x57   : > { %p5595_p0 = pneg %p5594_p12 }
  0x59   : > { %p5602_p8 = pnand %p5601_p4, %p5595_p0 }
  0x5b   : > { %5605 = shalt.err (!%p5602_p8)
}
  0x5c   : > { %s9466_s1 = smov 4   ;;  %s9467_s17 = smov 64  }
  0x5d   : > { %5256 = dma.hbm_to_vmem [thread:$0]  (!%p5855_p11), %s9204_s3, 1024, %s259_s23, [#allocation6], %s9467_s17, %s9467_s17, %s9466_s1  }
  0x5e   : > { %s5606_s25 = scalar_lea.hbm %s9208_s7, 2048 }
  0x5f   : > { %p5607_p6 = scmp.ne.s32.totalorder %s9208_s7, %s5606_s25  ;;  %p5613_p10 = scmp.lt.u32.totalorder %s5606_s25, %s9208_s7 }
  0x61   : > { %p5609_p4 = pnand %p5607_p6, %p5869_p13 }
  0x63   : > { %p5610_p8 = pneg %p5609_p4 }
  0x65   : > { %p5615_p3 = pnand %p5613_p10, %p5610_p8 }
  0x67   : > { %5618 = shalt.err (!%p5615_p3)
}
  0x68   : > { %s5619_s23 = scalar_lea.vmem %s5916_s26, 2048  ;;  %p5627_p12 = scmp.lt.s32.totalorder %s5916_s26, %s5916_s26 }
  0x69   : > { %p5620_p5 = scmp.ne.s32.totalorder %s5916_s26, %s5619_s23  ;;  %p5628_p0 = scmp.lt.s32.totalorder %s5619_s23, %s5619_s23 }
  0x6b   : > { %p5622_p7 = pnand %p5620_p5, %p5869_p13  ;;  %p5629_p1 = por %p5628_p0, %p5627_p12 }
  0x6d   : > { %p5623_p9 = pneg %p5622_p7 }
  0x6f   : > { %p5630_p2 = pnand %p5629_p1, %p5623_p9 }
  0x71   : > { %5633 = shalt.err (!%p5630_p2)
}
  0x72   : > { %5262 = dma.hbm_to_vmem [thread:$0]  (!%p5855_p11), %s9208_s7, 2048, %s5916_s26, [#allocation9], %s9467_s17, %s9467_s17, %s9466_s1  }
  0x73   : > { %s5966_s16 = sadd.s32 1, %s5738_s30   ;;  %s33_s14 = sadd.s32 1, %s5734_s29 }
  0x74   : > { %s30_s24 = ssub.s32 %s5738_s30, %s5966_s16  ;;  %p40_p6 = scmp.ne.s32.totalorder %s5734_s29, %s5730_s28 }
  0x75   : > { %p31_p13 = scmp.eq.s32.totalorder %s30_s24, 0  ;;  %p41_p4 = scmp.eq.s32.totalorder %s5738_s30, 0 }
  0x76   : > { %p9468_p10 = scmp.eq.s32.totalorder %s5825_s9, 1  ;;  %p5275_p5 = scmp.lt.s32.totalorder %s5738_s30, 2 }
  0x77   : > { %s5975_s21 = scalar_select %p31_p13, %s5734_s29, %s33_s14  }
  0x78   : > { %p42_p8 = por %p41_p4, %p40_p6  ;;  %p5979_p3 = por %p9468_p10, %p40_p6 }
  0x79   : > { %s304_s25 = sand.u32 1, %s5734_s29   ;;  %s4940_s26 = sshll.u32 %s5738_s30, 10 }
  0x7a   : > { %s4739_s10 = sshll.u32 %s304_s25, 6  ;;  %s5989_s18 = scalar_lea.hbm %s9201_s0, %s4940_s26 }
  0x7b   : > { %s308_s23 = scalar_lea.vmem [#allocation2], %s4739_s10  ;;  %p5993_p11 = pnand %p5275_p5, %p42_p8 }
  0x7c   : > { %s315_s19 = sshll.u32 %s308_s23, 4  ;;  %s5997_s24 = scalar_lea.sflag [#allocation3], %s304_s25  ;;  %s5991_s19 = int_to_ptr.vmem [resolvable:$true] %s315_s19 }
  0x7d   : > { %s5634_s14 = scalar_lea.hbm %s5989_s18, 1024  ;;  %p5636_p9 = pneg %p5993_p11 }
  0x7e   : > { %p5635_p7 = scmp.ne.s32.totalorder %s5989_s18, %s5634_s14  ;;  %s5639_s15 = scalar_lea.hbm %s9201_s0, 2048 }
  0x7f   : > { %p5640_p1 = scmp.lt.u32.totalorder %s5989_s18, %s9201_s0  ;;  %p5641_p2 = scmp.lt.u32.totalorder %s5639_s15, %s5634_s14 }
  0x80   : > { %p5637_p12 = pnand %p5636_p9, %p5635_p7  ;;  %p5643_p6 = scmp.lt.u32.totalorder %s5634_s14, %s5989_s18 }
  0x81   : > { %p5642_p13 = por %p5641_p2, %p5640_p1 }
  0x82   : > { %p5638_p0 = pneg %p5637_p12 }
  0x83   : > { %p5644_p4 = por %p5643_p6, %p5642_p13 }
  0x85   : > { %p5645_p8 = pnand %p5644_p4, %p5638_p0 }
  0x87   : > { %5648 = shalt.err (!%p5645_p8)
}
  0x88   : > { %s5649_s25 = scalar_lea.vmem %s5991_s19, 1024  ;;  %s5748_s10 = smov [#allocation2]  }
  0x89   : > { %p5650_p10 = scmp.ne.s32.totalorder %s5991_s19, %s5649_s25  ;;  %s5654_s26 = sshll.u32 %s5748_s10, 4  ;;  %s5655_s26 = int_to_ptr.vmem [resolvable:$false] %s5654_s26 }
  0x8a   : > { %s5656_s20 = scalar_lea.vmem %s5655_s26, 2048  ;;  %p5657_p12 = scmp.lt.s32.totalorder %s5991_s19, %s5655_s26 }
  0x8b   : > { %p5652_p5 = pnand %p5650_p10, %p5636_p9  ;;  %p5658_p1 = scmp.lt.s32.totalorder %s5656_s20, %s5649_s25 }
  0x8d   : > { %p5653_p7 = pneg %p5652_p5  ;;  %p5659_p2 = por %p5658_p1, %p5657_p12 }
  0x8f   : > { %p5660_p13 = pnand %p5659_p2, %p5653_p7 }
  0x91   : > { %5663 = shalt.err (!%p5660_p13)
}
  0x92   : > { %5266 = dma.hbm_to_vmem [thread:$0]  (!%p5993_p11), %s5989_s18, 1024, %s5991_s19, %s5997_s24, %s9467_s17, %s9467_s17, %s9466_s1  }
  0x93   : > { %p9471_p9 = scmp.ne.s32.totalorder %s9462_s13, 0 }
  0x95   : > { %327 = sbr.rel (%p9471_p9) target bundleno = 1921 (0x781), region = 52 }
  0x9c   : > { %s6031_s14 = sand.u32 1, %s5730_s28   ;;  %p9472_p0 = scmp.ne.s32.totalorder %s9459_s11, 0 }
  0x9d   : > { %s4743_s15 = sshll.u32 %s6031_s14, 6  ;;  %s330_s23 = scalar_lea.sflag [#allocation3], %s6031_s14 }
  0x9e   : > { %s6035_s25 = scalar_lea.vmem [#allocation2], %s4743_s15 }
  0x9f   : > { %5709 = dma.done.wait (%p9472_p0), %s330_s23, 1024  }
  0xa0   : > { %5711 = vsyncadd (%p9472_p0), %s330_s23, 4294966272  ;;  %p9473_p11 = scmp.eq.s32.totalorder %s5825_s9, 0 }
  0xa2   : > { %5713 = dma.done.wait (%p9473_p11), [#allocation6], 2048   ;;  %p9474_p6 = pmov %p9473_p11 }
  0xa4   : > { %5715 = vsyncadd (%p9474_p6), [#allocation6], 4294965248  ;;  %p9475_p4 = pmov %p9474_p6 }
  0xa6   : > { %5717 = dma.done.wait (%p9475_p4), [#allocation9], 4096   ;;  %p9476_p8 = pmov %p9475_p4 }
  0xa7   : > { %v5330_v0 = vld [vmem:[#allocation5] sm:$0xff]   ;;  %v5331_v1 = vld [vmem:[#allocation5 + $0x8] sm:$0xff]   ;;  %v5332_v2 = vld [vmem:[#allocation5 + $0x10] sm:$0xff]   ;;  %s4748_s12 = sshll.u32 %s6031_s14, 7  ;;  %s4941_s10 = sshll.u32 %s5825_s9, 11 }
  0xa8   : > { %5719 = vsyncadd (%p9476_p8), [#allocation9], 4294963200  ;;  %5038 = vmatprep.subr.bf16.mxu0 %v5330_v0  ;;  %v5333_v3 = vld [vmem:[#allocation5 + $0x18] sm:$0xff]   ;;  %v5338_v4 = vld [vmem:[%s6035_s25] sm:$0xff]   ;;  %s9132_s24 = scalar_lea.vmem [#allocation11], %s4748_s12  ;;  %s9153_s23 = scalar_lea.hbm %s9209_s8, %s4941_s10 }
  0xa9   : > { %5039 = vmatpush3.bf16.msra.mxu0 %v5330_v0  ;;  %5054 = vmatprep.mubr.bf16.mxu0 %v5338_v4  ;;  %v5334_v5 = vld [vmem:[#allocation5 + $0x20] sm:$0xff]   ;;  %v5335_v6 = vld [vmem:[#allocation5 + $0x28] sm:$0xff]   ;;  %v5336_v9 = vld [vmem:[#allocation5 + $0x30] sm:$0xff]   ;;  %s4621_s26 = sshll.u32 %s9132_s24, 4  ;;  %s5756_s11 = smov [#allocation11]   ;;  %s9155_s26 = int_to_ptr.vmem [resolvable:$true] %s4621_s26 }
  0xaa   : > { %5040 = vmatprep.subr.bf16.mxu0 %v5331_v1  ;;  %v5346_v7 = vld [vmem:[#allocation7] sm:$0xff]   ;;  %v5347_v8 = vld [vmem:[#allocation7 + $0x8] sm:$0xff]   ;;  %v5348_v10 = vld [vmem:[#allocation7 + $0x10] sm:$0xff]   ;;  %s5664_s9 = scalar_lea.vmem %s9155_s26, 2048  ;;  %s5668_s13 = sshll.u32 %s5756_s11, 4  ;;  %s5669_s13 = int_to_ptr.vmem [resolvable:$false] %s5668_s13 }
  0xab   : > { %5070 = vmatprep.subr.bf16.mxu1 %v5346_v7  ;;  %v5337_v11 = vld [vmem:[#allocation5 + $0x38] sm:$0xff]   ;;  %v5350_v13 = vld [vmem:[#allocation7 + $0x20] sm:$0xff]   ;;  %v5339_v14 = vld [vmem:[%s6035_s25 + $0x8] sm:$0xff]   ;;  %p5665_p10 = scmp.ne.s32.totalorder %s9155_s26, %s5664_s9  ;;  %s5670_s1 = scalar_lea.vmem %s5669_s13, 4096 }
  0xac   : > { %5071 = vmatpush3.bf16.msra.mxu1 %v5346_v7  ;;  %v5349_v12 = vld [vmem:[#allocation7 + $0x18] sm:$0xff]   ;;  %v5340_v15 = vld [vmem:[%s6035_s25 + $0x10] sm:$0xff]   ;;  %v5351_v16 = vld [vmem:[#allocation7 + $0x28] sm:$0xff]   ;;  %p5671_p12 = scmp.lt.s32.totalorder %s9155_s26, %s5669_s13  ;;  %p5672_p1 = scmp.lt.s32.totalorder %s5670_s1, %s5664_s9 }
  0xad   : > { %5041 = vmatpush3.bf16.msra.mxu0 %v5331_v1  ;;  %5072 = vmatprep.subr.bf16.mxu1 %v5347_v8  ;;  %v5341_v17 = vld [vmem:[%s6035_s25 + $0x18] sm:$0xff]   ;;  %v5342_v18 = vld [vmem:[%s6035_s25 + $0x20] sm:$0xff]   ;;  %v5343_v19 = vld [vmem:[%s6035_s25 + $0x28] sm:$0xff]   ;;  %p5666_p5 = pnand %p5665_p10, %p5979_p3 }
  0xae   : > { %5042 = vmatprep.subr.bf16.mxu0 %v5332_v2  ;;  %v5344_v20 = vld [vmem:[%s6035_s25 + $0x30] sm:$0xff]   ;;  %v5345_v21 = vld [vmem:[%s6035_s25 + $0x38] sm:$0xff]   ;;  %v5354_v24 = vld [vmem:[#allocation8] ss:$8 sps:$4 sm:$0xff]   ;;  %s4608_s25 = scalar_lea.sflag [#allocation4], %s6031_s14  ;;  %p5673_p2 = por %p5672_p1, %p5671_p12 }
  0xaf   : > { %v5352_v22 = vld [vmem:[#allocation7 + $0x30] sm:$0xff]   ;;  %v5353_v23 = vld [vmem:[#allocation7 + $0x38] sm:$0xff]   ;;  %v5356_v25 = vld [vmem:[#allocation8 + $0x4] ss:$8 sps:$4 sm:$0xff]   ;;  %p5667_p7 = pneg %p5666_p5 }
  0xb0   : > { %5073 = vmatpush3.bf16.msra.mxu1 %v5347_v8  ;;  %v5359_v26 = vld [vmem:[#allocation8 + $0x14] ss:$8 sps:$4 sm:$0xff]   ;;  %v5357_v27 = vld [vmem:[#allocation8 + $0x10] ss:$8 sps:$4 sm:$0xff]   ;;  %v5362_v28 = vld [vmem:[#allocation8 + $0x24] ss:$8 sps:$4 sm:$0xff]  }
  0xb1   : > { %5043 = vmatpush3.bf16.msra.mxu0 %v5332_v2  ;;  %5074 = vmatprep.subr.bf16.mxu1 %v5348_v10  ;;  %v5360_v29 = vld [vmem:[#allocation8 + $0x20] ss:$8 sps:$4 sm:$0xff]   ;;  %v5365_v30 = vld [vmem:[#allocation8 + $0x34] ss:$8 sps:$4 sm:$0xff]   ;;  %v5363_v31 = vld [vmem:[#allocation8 + $0x30] ss:$8 sps:$4 sm:$0xff]   ;;  %p5674_p13 = pnand %p5673_p2, %p5667_p7 }
  0xb2   : > { %5044 = vmatprep.subr.bf16.mxu0 %v5333_v3  ;;  %v5368_v32 = vld [vmem:[#allocation8 + $0x44] ss:$8 sps:$4 sm:$0xff]   ;;  %v5366_v33 = vld [vmem:[#allocation8 + $0x40] ss:$8 sps:$4 sm:$0xff]   ;;  %v5371_v34 = vld [vmem:[#allocation8 + $0x54] ss:$8 sps:$4 sm:$0xff]  }
  0xb3   : > { %v5369_v35 = vld [vmem:[#allocation8 + $0x50] ss:$8 sps:$4 sm:$0xff]   ;;  %v4749_v36 = vld [vmem:[%s9203_s2] ss:$0 sm:$0xff] }
  0xb4   : > { %5075 = vmatpush3.bf16.msra.mxu1 %v5348_v10 }
  0xb5   : > { %5045 = vmatpush3.bf16.msra.mxu0 %v5333_v3  ;;  %5076 = vmatprep.subr.bf16.mxu1 %v5349_v12 }
  0xb6   : > { %5046 = vmatprep.subr.bf16.mxu0 %v5334_v5 }
  0xb8   : > { %5077 = vmatpush3.bf16.msra.mxu1 %v5349_v12 }
  0xb9   : > { %5047 = vmatpush3.bf16.msra.mxu0 %v5334_v5  ;;  %5078 = vmatprep.subr.bf16.mxu1 %v5350_v13 }
  0xba   : > { %5048 = vmatprep.subr.bf16.mxu0 %v5335_v6 }
  0xbc   : > { %5079 = vmatpush3.bf16.msra.mxu1 %v5350_v13 }
  0xbd   : > { %5049 = vmatpush3.bf16.msra.mxu0 %v5335_v6  ;;  %5080 = vmatprep.subr.bf16.mxu1 %v5351_v16 }
  0xbe   : > { %5050 = vmatprep.subr.bf16.mxu0 %v5336_v9 }
  0xc0   : > { %5081 = vmatpush3.bf16.msra.mxu1 %v5351_v16 }
  0xc1   : > { %5051 = vmatpush3.bf16.msra.mxu0 %v5336_v9  ;;  %5082 = vmatprep.subr.bf16.mxu1 %v5352_v22 }
  0xc2   : > { %5052 = vmatprep.subr.bf16.mxu0 %v5337_v11 }
  0xc4   : > { %5083 = vmatpush3.bf16.msra.mxu1 %v5352_v22 }
  0xc5   : > { %5053 = vmatpush3.bf16.msra.mxu0 %v5337_v11  ;;  %5084 = vmatprep.subr.bf16.mxu1 %v5353_v23 }
  0xc6   : > { %941 = vmatprep.subr.bf16.mxu0 %v5356_v25 }
  0xc8   : > { %5055 = vmatmul.mubr.bf16.vlgmr.msra.gmra.mrb[0].mxu0 %v5339_v14  ;;  %5085 = vmatpush3.bf16.msra.mxu1 %v5353_v23 }
  0xc9   : > { %5058 = vmatprep.mubr.bf16.mxu0 %v5340_v15  ;;  %942 = vmatpush1.bf16.msra.mxu0 %v5354_v24 }
  0xca   : > { %943 = vmatprep.subr.bf16.mxu0 %v5359_v26 }
  0xcd   : > { %944 = vmatpush1.bf16.msra.mxu0 %v5357_v27 }
  0xce   : > { %945 = vmatprep.subr.bf16.mxu0 %v5362_v28 }
  0xd0   : > { %5059 = vmatmul.mubr.bf16.gmra.mrb[4].mxu0 %v5341_v17 }
  0xd1   : > { %5062 = vmatprep.mubr.bf16.mxu0 %v5342_v18  ;;  %946 = vmatpush1.bf16.msra.mxu0 %v5360_v29  ;;  %v5374_v29 = vld [vmem:[#allocation8 + $0x64] ss:$8 sps:$4 sm:$0xff]  }
  0xd2   : > { %947 = vmatprep.subr.bf16.mxu0 %v5365_v30  ;;  %v5372_v30 = vld [vmem:[#allocation8 + $0x60] ss:$8 sps:$4 sm:$0xff]  }
  0xd5   : > { %948 = vmatpush1.bf16.msra.mxu0 %v5363_v31  ;;  %v5377_v31 = vld [vmem:[#allocation8 + $0x74] ss:$8 sps:$4 sm:$0xff]  }
  0xd6   : > { %949 = vmatprep.subr.bf16.mxu0 %v5368_v32  ;;  %v5375_v32 = vld [vmem:[#allocation8 + $0x70] ss:$8 sps:$4 sm:$0xff]  }
  0xd8   : > { %5063 = vmatmul.mubr.bf16.gmra.mrb[8].mxu0 %v5343_v19 }
  0xd9   : > { %5066 = vmatprep.mubr.bf16.mxu0 %v5344_v20  ;;  %950 = vmatpush1.bf16.msra.mxu0 %v5366_v33  ;;  %v5749_v33 = vmov 0  }
  0xda   : > { %951 = vmatprep.subr.bf16.mxu0 %v5371_v34  ;;  %v4766_v34 = vld [vmem:[%s9205_s4] ss:$0 sm:$0xff] }
  0xdd   : > { %952 = vmatpush1.bf16.msra.mxu0 %v5369_v35 }
  0xde   : > { %953 = vmatprep.subr.bf16.mxu0 %v5374_v29 }
  0xe0   : > { %5067 = vmatmul.mubr.bf16.gmra.mrb[12].mxu0 %v5345_v21 }
  0xe1   : > { %954 = vmatpush1.bf16.msra.mxu0 %v5372_v30  ;;  %973 = vmatprep.mubr.bf16.mxu0 %v5749_v33  ;;  %v849_v30 = vld [vmem:[%s9207_s6] sm:$0x3] }
  0xe2   : > { %955 = vmatprep.subr.bf16.mxu0 %v5377_v31 }
  0xe5   : > { %956 = vmatpush1.bf16.msra.mxu0 %v5375_v32 }
 0x19b   : > { %v5056_v37 = vpop.f32.mrb[0].mxu0 }
 0x19c   : > { %v563_v38 = vadd.f32 %v5056_v37, %v4749_v36  ;;  %v554_v39 = vpop.f32.mrb[1].mxu0 }
 0x19d   : > { %v555_v40 = vadd.f32 %v4749_v36, %v554_v39  ;;  %v5057_v41 = vpop.f32.mrb[2].mxu0 }
 0x19e   : > { %v566_v42 = vadd.f32 %v5057_v41, %v4749_v36  ;;  %v557_v43 = vpop.f32.mrb[3].mxu0  ;;  %v619_v45 = vmax.f32 %v563_v38, 0.0 }
 0x19f   : > { %v558_v44 = vadd.f32 %v4749_v36, %v557_v43  ;;  %v617_v47 = vmax.f32 %v555_v40, 0.0 }
 0x1a0   : > { %v620_v46 = vmax.f32 %v566_v42, 0.0 }
 0x1a1   : > { %v618_v48 = vmax.f32 %v558_v44, 0.0 }
 0x1a2   : > { %v634_v49 = vpack.c.bf16 %v620_v46, %v619_v45 }
 0x1a3   : > { %v5060_v50 = vpop.f32.mrb[4].mxu0  ;;  %v633_v51 = vpack.c.bf16 %v618_v48, %v617_v47 }
 0x1a4   : > { %v579_v52 = vadd.f32 %v5060_v50, %v4749_v36  ;;  %v570_v53 = vpop.f32.mrb[5].mxu0 }
 0x1a5   : > { %v571_v54 = vadd.f32 %v4749_v36, %v570_v53  ;;  %5086 = vmatprep.mubr.bf16.mxu1 %v633_v51  ;;  %v5061_v55 = vpop.f32.mrb[6].mxu0 }
 0x1a6   : > { %v623_v56 = vmax.f32 %v579_v52, 0.0  ;;  %v582_v57 = vadd.f32 %v5061_v55, %v4749_v36  ;;  %5087 = vmatmul.mubr.bf16.vlgmr.msra.gmra.mrb[0].mxu1 %v634_v49  ;;  %v573_v58 = vpop.f32.mrb[7].mxu0 }
 0x1a7   : > { %v621_v59 = vmax.f32 %v571_v54, 0.0  ;;  %v574_v60 = vadd.f32 %v4749_v36, %v573_v58 }
 0x1a8   : > { %v624_v61 = vmax.f32 %v582_v57, 0.0 }
 0x1a9   : > { %v622_v62 = vmax.f32 %v574_v60, 0.0 }
 0x1aa   : > { %v636_v63 = vpack.c.bf16 %v624_v61, %v623_v56 }
 0x1ab   : > { %v635_v0 = vpack.c.bf16 %v622_v62, %v621_v59  ;;  %v5064_v1 = vpop.f32.mrb[8].mxu0 }
 0x1ac   : > { %v595_v2 = vadd.f32 %v5064_v1, %v4749_v36  ;;  %v586_v3 = vpop.f32.mrb[9].mxu0 }
 0x1ad   : > { %5090 = vmatprep.mubr.bf16.mxu1 %v635_v0  ;;  %v587_v4 = vadd.f32 %v4749_v36, %v586_v3  ;;  %v5065_v5 = vpop.f32.mrb[10].mxu0 }
 0x1ae   : > { %5091 = vmatmul.mubr.bf16.gmra.mrb[4].mxu1 %v636_v63  ;;  %v627_v6 = vmax.f32 %v595_v2, 0.0  ;;  %v598_v7 = vadd.f32 %v5065_v5, %v4749_v36  ;;  %v589_v8 = vpop.f32.mrb[11].mxu0 }
 0x1af   : > { %v625_v9 = vmax.f32 %v587_v4, 0.0  ;;  %v590_v10 = vadd.f32 %v4749_v36, %v589_v8 }
 0x1b0   : > { %v628_v11 = vmax.f32 %v598_v7, 0.0 }
 0x1b1   : > { %v626_v12 = vmax.f32 %v590_v10, 0.0 }
 0x1b2   : > { %v638_v13 = vpack.c.bf16 %v628_v11, %v627_v6 }
 0x1b3   : > { %v637_v14 = vpack.c.bf16 %v626_v12, %v625_v9  ;;  %v5068_v15 = vpop.f32.mrb[12].mxu0 }
 0x1b4   : > { %v611_v16 = vadd.f32 %v5068_v15, %v4749_v36  ;;  %v602_v17 = vpop.f32.mrb[13].mxu0 }
 0x1b5   : > { %5094 = vmatprep.mubr.bf16.mxu1 %v637_v14  ;;  %v603_v18 = vadd.f32 %v4749_v36, %v602_v17  ;;  %v5069_v19 = vpop.f32.mrb[14].mxu0 }
 0x1b6   : > { %5095 = vmatmul.mubr.bf16.gmra.mrb[8].mxu1 %v638_v13  ;;  %v631_v20 = vmax.f32 %v611_v16, 0.0  ;;  %v614_v21 = vadd.f32 %v5069_v19, %v4749_v36  ;;  %v605_v22 = vpop.f32.mrb[15].mxu0 }
 0x1b7   : > { %v629_v23 = vmax.f32 %v603_v18, 0.0  ;;  %v606_v24 = vadd.f32 %v4749_v36, %v605_v22 }
 0x1b8   : > { %v632_v25 = vmax.f32 %v614_v21, 0.0 }
 0x1b9   : > { %v630_v26 = vmax.f32 %v606_v24, 0.0 }
 0x1ba   : > { %v640_v27 = vpack.c.bf16 %v632_v25, %v631_v20 }
 0x1bb   : > { %v639_v28 = vpack.c.bf16 %v630_v26, %v629_v23 }
 0x1bd   : > { %5098 = vmatprep.mubr.bf16.mxu1 %v639_v28 }
 0x1be   : > { %5099 = vmatmul.mubr.bf16.gmra.mrb[12].mxu1 %v640_v27  ;;  %v851_v27 = vlaneseq }
 0x1c0   : > { %v852_v28 = vshrl.u32 %v851_v27, 7 }
 0x1c2   : > { %v853_v29 = vsub.s32 0, %v852_v28  ;;  %v857_v31 = vsub.s32 1, %v852_v28 }
 0x1c4   : > { %v6074_v32 = vrot.slane %v849_v30, %v853_v29 }
 0x279   : > { %v5088_v35 = vpop.f32.mrb[0].mxu1 }
 0x27a   : > { %v755_v36 = vadd.f32 %v5088_v35, %v4766_v34  ;;  %v746_v37 = vpop.f32.mrb[1].mxu1 }
 0x27b   : > { %v747_v38 = vadd.f32 %v4766_v34, %v746_v37  ;;  %v5089_v39 = vpop.f32.mrb[2].mxu1 }
 0x27c   : > { %v758_v40 = vadd.f32 %v5089_v39, %v4766_v34  ;;  %v749_v41 = vpop.f32.mrb[3].mxu1  ;;  %v811_v43 = vmax.f32 %v755_v36, 0.0 }
 0x27d   : > { %v750_v42 = vadd.f32 %v4766_v34, %v749_v41  ;;  %v809_v45 = vmax.f32 %v747_v38, 0.0 }
 0x27e   : > { %v812_v44 = vmax.f32 %v758_v40, 0.0 }
 0x27f   : > { %v810_v46 = vmax.f32 %v750_v42, 0.0 }
 0x280   : > { %v826_v47 = vpack.c.bf16 %v812_v44, %v811_v43 }
 0x281   : > { %v825_v48 = vpack.c.bf16 %v810_v46, %v809_v45  ;;  %v5092_v49 = vpop.f32.mrb[4].mxu1 }
 0x282   : > { %v771_v50 = vadd.f32 %v5092_v49, %v4766_v34  ;;  %v762_v51 = vpop.f32.mrb[5].mxu1 }
 0x283   : > { %v763_v52 = vadd.f32 %v4766_v34, %v762_v51  ;;  %974 = vmatmul.mubr.bf16.vlgmr.msra.gmra.mrb[16].mxu0 %v825_v48  ;;  %v5093_v53 = vpop.f32.mrb[6].mxu1 }
 0x284   : > { %v815_v54 = vmax.f32 %v771_v50, 0.0  ;;  %v774_v55 = vadd.f32 %v5093_v53, %v4766_v34  ;;  %v765_v56 = vpop.f32.mrb[7].mxu1  ;;  %983 = vmatprep.mubr.bf16.mxu0 %v5749_v33 }
 0x285   : > { %v813_v57 = vmax.f32 %v763_v52, 0.0  ;;  %v766_v58 = vadd.f32 %v4766_v34, %v765_v56 }
 0x286   : > { %v816_v59 = vmax.f32 %v774_v55, 0.0 }
 0x287   : > { %v814_v60 = vmax.f32 %v766_v58, 0.0 }
 0x288   : > { %v828_v61 = vpack.c.bf16 %v816_v59, %v815_v54 }
 0x289   : > { %v827_v62 = vpack.c.bf16 %v814_v60, %v813_v57  ;;  %v5096_v63 = vpop.f32.mrb[8].mxu1 }
 0x28a   : > { %v787_v0 = vadd.f32 %v5096_v63, %v4766_v34  ;;  %v778_v1 = vpop.f32.mrb[9].mxu1 }
 0x28b   : > { %984 = vmatmul.mubr.bf16.gmra.mrb[20].mxu0 %v826_v47  ;;  %v779_v2 = vadd.f32 %v4766_v34, %v778_v1  ;;  %v5097_v3 = vpop.f32.mrb[10].mxu1 }
 0x28c   : > { %v819_v4 = vmax.f32 %v787_v0, 0.0  ;;  %993 = vmatprep.mubr.bf16.mxu0 %v5749_v33  ;;  %v790_v5 = vadd.f32 %v5097_v3, %v4766_v34  ;;  %v781_v6 = vpop.f32.mrb[11].mxu1 }
 0x28d   : > { %v817_v7 = vmax.f32 %v779_v2, 0.0  ;;  %v782_v8 = vadd.f32 %v4766_v34, %v781_v6 }
 0x28e   : > { %v820_v9 = vmax.f32 %v790_v5, 0.0 }
 0x28f   : > { %v818_v10 = vmax.f32 %v782_v8, 0.0 }
 0x290   : > { %v830_v11 = vpack.c.bf16 %v820_v9, %v819_v4  ;;  %v9230_v9 = vmov 683565275  }
 0x291   : > { %v829_v12 = vpack.c.bf16 %v818_v10, %v817_v7  ;;  %v5100_v13 = vpop.f32.mrb[12].mxu1 }
 0x292   : > { %v803_v14 = vadd.f32 %v5100_v13, %v4766_v34  ;;  %v794_v15 = vpop.f32.mrb[13].mxu1  ;;  %v9228_v13 = vmov 2475754826  }
 0x293   : > { %994 = vmatmul.mubr.bf16.gmra.mrb[24].mxu0 %v827_v62  ;;  %v795_v16 = vadd.f32 %v4766_v34, %v794_v15  ;;  %v5101_v17 = vpop.f32.mrb[14].mxu1  ;;  %v9223_v15 = vmov 2131351028  }
 0x294   : > { %1003 = vmatprep.mubr.bf16.mxu0 %v5749_v33  ;;  %v823_v18 = vmax.f32 %v803_v14, 0.0  ;;  %v806_v19 = vadd.f32 %v5101_v17, %v4766_v34  ;;  %v797_v20 = vpop.f32.mrb[15].mxu1  ;;  %v9232_v17 = vmov 2102212464  }
 0x295   : > { %v821_v21 = vmax.f32 %v795_v16, 0.0  ;;  %v798_v22 = vadd.f32 %v4766_v34, %v797_v20  ;;  %v6076_v34 = vrot.slane %v849_v30, %v857_v31 }
 0x296   : > { %v824_v23 = vmax.f32 %v806_v19, 0.0  ;;  %v9234_v19 = vmov 920167782  }
 0x297   : > { %v822_v24 = vmax.f32 %v798_v22, 0.0 }
 0x298   : > { %v832_v25 = vpack.c.bf16 %v824_v23, %v823_v18 }
 0x299   : > { %v831_v26 = vpack.c.bf16 %v822_v24, %v821_v21 }
 0x29b   : > { %1004 = vmatmul.mubr.bf16.gmra.mrb[28].mxu0 %v828_v61 }
 0x29c   : > { %1013 = vmatprep.mubr.bf16.mxu0 %v5749_v33 }
 0x2a3   : > { %1014 = vmatmul.mubr.bf16.gmra.mrb[32].mxu0 %v829_v12 }
 0x2a4   : > { %1023 = vmatprep.mubr.bf16.mxu0 %v5749_v33 }
 0x2ab   : > { %1024 = vmatmul.mubr.bf16.gmra.mrb[36].mxu0 %v830_v11 }
 0x2ac   : > { %1033 = vmatprep.mubr.bf16.mxu0 %v5749_v33 }
 0x2b3   : > { %1034 = vmatmul.mubr.bf16.gmra.mrb[40].mxu0 %v831_v26  ;;  %v9225_v26 = vmov 1326507024  }
 0x2b4   : > { %1043 = vmatprep.mubr.bf16.mxu0 %v5749_v33 }
 0x2bb   : > { %1044 = vmatmul.mubr.bf16.gmra.mrb[44].mxu0 %v832_v25 }
 0x356   : > { %v975_v35 = vpop.f32.mrb[16].mxu0 }
 0x357   : > { %v6079_v36 = vadd.f32 %v975_v35, %v6074_v32  ;;  %v977_v37 = vpop.f32.mrb[17].mxu0 }
 0x358   : > { %v6082_v33 = vadd.f32 %v977_v37, %v6076_v34  ;;  %v979_v38 = vpop.f32.mrb[18].mxu0 }
 0x359   : > { %9477 = vst [vmem:[#allocation17_spill] sm:$0xff] %v6079_v36  ;;  %v1054_v39 = vand.u32 2147483647, %v6079_v36  ;;  %v1057_v40 = vand.u32 2139095040, %v6079_v36  ;;  %v981_v41 = vpop.f32.mrb[19].mxu0  ;;  %v6089_v44 = vadd.f32 %v979_v38, %v6074_v32 }
 0x35a   : > { %9478 = vst [vmem:[#allocation18_spill] sm:$0xff] %v6082_v33  ;;  %v9222_v42 = vand.u32 2147483647, %v6082_v33  ;;  %v1160_v43 = vand.u32 2139095040, %v6082_v33  ;;  %v6106_v3 = vadd.f32 %v981_v41, %v6076_v34 }
 0x35b   : > { %9479 = vst [vmem:[#allocation19_spill] sm:$0xff] %v6089_v44  ;;  %v1058_v45 = vshrl.u32 %v1057_v40, 23  ;;  %v1061_v46 = vand.u32 8388607, %v1054_v39  ;;  %v1263_v50 = vand.u32 2139095040, %v6089_v44 }
 0x35c   : > { %v1161_v47 = vshrl.u32 %v1160_v43, 23  ;;  %v1164_v48 = vand.u32 8388607, %v9222_v42  ;;  %v9220_v59 = vand.u32 2147483647, %v6089_v44 }
 0x35d   : > { %v4791_v49 = vadd.s32 4294967169, %v1058_v45  ;;  %v1264_v54 = vshrl.u32 %v1263_v50, 23  ;;  %v1062_v56 = vor.u32 8388608, %v1061_v46 }
 0x35e   : > { %v4795_v51 = vadd.s32 4294967169, %v1161_v47  ;;  %v6096_v52 = vpop.f32.mrb[20].mxu0  ;;  %v1165_v57 = vor.u32 8388608, %v1164_v48  ;;  %v6114_v6 = vand.u32 8388607, %v9220_v59 }
 0x35f   : > { %v1064_v53 = vadd.s32 1, %v4791_v49  ;;  %v6098_v55 = vpop.f32.mrb[21].mxu0  ;;  %v4799_v60 = vadd.s32 4294967169, %v1264_v54  ;;  %v6108_v4 = vshll.u32 %v1062_v56, 8 }
 0x360   : > { %v1167_v58 = vadd.s32 1, %v4795_v51  ;;  %v6101_v61 = vpop.f32.mrb[22].mxu0  ;;  %v6110_v5 = vshll.u32 %v1165_v57, 8 }
 0x361   : > { %vm1065_vm0 = vcmp.gt.s32.totalorder %v1064_v53, 0  ;;  %v6103_v63 = vpop.f32.mrb[23].mxu0  ;;  %v6116_v7 = vadd.s32 1, %v4799_v60 }
 0x362   : > { %v1066_v62 = vsel %vm1065_vm0, %v1064_v53, 0  ;;  %vm1168_vm1 = vcmp.gt.s32.totalorder %v1167_v58, 0 }
 0x363   : > { %v1067_v0 = vshrl.u32 %v1066_v62, 5  ;;  %v1068_v1 = vand.u32 31, %v1066_v62  ;;  %v1169_v2 = vsel %vm1168_vm1, %v1167_v58, 0  ;;  %vm1271_vm11 = vcmp.gt.s32.totalorder %v6116_v7, 0 }
 0x364   : > { %v6119_v11 = vshrl.u32 %v1169_v2, 5  ;;  %v1171_v12 = vand.u32 31, %v1169_v2 }
 0x365   : > { %v1069_v8 = vsub.s32 32, %v1068_v1  ;;  %v1071_v10 = vshll.u32 %v9230_v9, %v1068_v1  ;;  %v1074_v14 = vshll.u32 %v9228_v13, %v1068_v1  ;;  %v1077_v16 = vshll.u32 %v9223_v15, %v1068_v1 }
 0x366   : > { %v1080_v18 = vshll.u32 %v9232_v17, %v1068_v1  ;;  %v1083_v20 = vshll.u32 %v9234_v19, %v1068_v1  ;;  %vm1086_vm2 = vcmp.lt.s32.totalorder %v1067_v0, 1  ;;  %vm1087_vm3 = vcmp.lt.s32.totalorder %v1067_v0, 2  ;;  %v6131_v38 = vpop.f32.mrb[24].mxu0 }
 0x367   : > { %v1072_v21 = vshrl.u32 %v9228_v13, %v1069_v8  ;;  %v1075_v22 = vshrl.u32 %v9223_v15, %v1069_v8  ;;  %v1078_v23 = vshrl.u32 %v9232_v17, %v1069_v8  ;;  %v1070_v24 = vshrl.u32 %v9230_v9, %v1069_v8 }
 0x368   : > { %v1081_v25 = vshrl.u32 %v9234_v19, %v1069_v8  ;;  %v1084_v27 = vshrl.u32 %v9225_v26, %v1069_v8  ;;  %v1172_v31 = vsub.s32 32, %v1171_v12  ;;  %vm1088_vm4 = vcmp.lt.s32.totalorder %v1067_v0, 3 }
 0x369   : > { %v1073_v28 = vor.u32 %v1072_v21, %v1071_v10  ;;  %v1076_v29 = vor.u32 %v1075_v22, %v1074_v14  ;;  %v1079_v30 = vor.u32 %v1078_v23, %v1077_v16  ;;  %vm1089_vm5 = vcmp.lt.s32.totalorder %v1067_v0, 4 }
 0x36a   : > { %v1082_v35 = vor.u32 %v1081_v25, %v1080_v18  ;;  %v1085_v37 = vor.u32 %v1084_v27, %v1083_v20  ;;  %v1174_v49 = vshll.u32 %v9230_v9, %v1171_v12  ;;  %v1175_v53 = vshrl.u32 %v9228_v13, %v1172_v31 }
 0x36b   : > { %v1090_v40 = vsel %vm1086_vm2, %v1070_v24, %v1073_v28  ;;  %v1091_v41 = vsel %vm1089_vm5, %v1079_v30, 2102212464  ;;  %v1094_v43 = vsel %vm1086_vm2, %v1073_v28, %v1076_v29  ;;  %v1098_v45 = vsel %vm1086_vm2, %v1076_v29, %v1079_v30 }
 0x36c   : > { %v1092_v46 = vsel %vm1088_vm4, %v1076_v29, %v1091_v41  ;;  %v1095_v47 = vsel %vm1089_vm5, %v1082_v35, 920167782  ;;  %v1099_v48 = vsel %vm1089_vm5, %v1085_v37, 1326507024  ;;  %v1177_v54 = vshll.u32 %v9228_v13, %v1171_v12 }
 0x36d   : > { %v1096_v50 = vsel %vm1088_vm4, %v1079_v30, %v1095_v47  ;;  %v1100_v51 = vsel %vm1088_vm4, %v1082_v35, %v1099_v48  ;;  %v1093_v56 = vsel %vm1087_vm3, %v1090_v40, %v1092_v46  ;;  %v1178_v60 = vshrl.u32 %v9223_v15, %v1172_v31  ;;  %v6169_v48 = vpop.f32.mrb[25].mxu0 }
 0x36e   : > { %v1097_v57 = vsel %vm1087_vm3, %v1094_v43, %v1096_v50  ;;  %v1101_v58 = vsel %vm1087_vm3, %v1098_v45, %v1100_v51  ;;  %v1176_v10 = vor.u32 %v1175_v53, %v1174_v49  ;;  %v1180_v16 = vshll.u32 %v9223_v15, %v1171_v12 }
 0x36f   : > { %v6144_v62 = vmul.u32.u64.low %v6108_v4, %v1101_v58  ;;  %v6145_v1 = vmul.u32.u64.high %v6108_v4, %v1101_v58, %v6144_v62  ;;  %v6148_v2 = vmul.u32.u64.low %v6108_v4, %v1097_v57  ;;  %v6149_v8 = vmul.u32.u64.high %v6108_v4, %v1097_v57, %v6148_v2 }
 0x370   : > { %v1179_v14 = vor.u32 %v1178_v60, %v1177_v54  ;;  %v1181_v18 = vshrl.u32 %v9232_v17, %v1172_v31  ;;  %v1173_v20 = vshrl.u32 %v9230_v9, %v1172_v31  ;;  %v1183_v0 = vshll.u32 %v9232_v17, %v1171_v12 }
 0x371   : > { %v1184_v21 = vshrl.u32 %v9234_v19, %v1172_v31  ;;  %v1187_v22 = vshrl.u32 %v9225_v26, %v1172_v31  ;;  %v1109_v23 = vmul.u32 %v6108_v4, %v1093_v56  ;;  %v1186_v25 = vshll.u32 %v9234_v19, %v1171_v12 }
 0x372   : > { %v1182_v24 = vor.u32 %v1181_v18, %v1180_v16  ;;  %vm1189_vm6 = vcmp.lt.s32.totalorder %v6119_v11, 1  ;;  %vm1111_vm7 = vc.u32 %v6145_v1, %v6148_v2  ;;  %v1112_v27 = vadd.s32 1, %v6149_v8 }
 0x373   : > { %v1185_v28 = vor.u32 %v1184_v21, %v1183_v0  ;;  %vm1190_vm8 = vcmp.lt.s32.totalorder %v6119_v11, 2  ;;  %v1188_v29 = vor.u32 %v1187_v22, %v1186_v25  ;;  %vm1191_vm9 = vcmp.lt.s32.totalorder %v6119_v11, 3 }
 0x374   : > { %vm1192_vm10 = vcmp.lt.s32.totalorder %v6119_v11, 4  ;;  %v1197_v30 = vsel %vm1189_vm6, %v1176_v10, %v1179_v14  ;;  %v1113_v4 = vsel %vm1111_vm7, %v1112_v27, %v6149_v8  ;;  %v1201_v12 = vsel %vm1189_vm6, %v1179_v14, %v1182_v24 }
 0x375   : > { %v1194_v31 = vsel %vm1192_vm10, %v1182_v24, 2102212464  ;;  %v1198_v35 = vsel %vm1192_vm10, %v1185_v28, 920167782  ;;  %v1114_v37 = vadd.s32 %v1113_v4, %v1109_v23  ;;  %v1193_v40 = vsel %vm1189_vm6, %v1173_v20, %v1176_v10 }
 0x376   : > { %v1199_v41 = vsel %vm1191_vm9, %v1182_v24, %v1198_v35  ;;  %v1202_v43 = vsel %vm1192_vm10, %v1188_v29, 1326507024  ;;  %v1195_v45 = vsel %vm1191_vm9, %v1179_v14, %v1194_v31  ;;  %v1272_v57 = vsel %vm1271_vm11, %v6116_v7, 0 }
 0x377   : > { %v1200_v46 = vsel %vm1190_vm8, %v1197_v30, %v1199_v41  ;;  %v1203_v47 = vsel %vm1191_vm9, %v1185_v28, %v1202_v43  ;;  %v1115_v49 = vadd.s32 536870912, %v1114_v37  ;;  %v1366_v58 = vand.u32 2139095040, %v6106_v3 }
 0x378   : > { %v1204_v50 = vsel %vm1190_vm8, %v1201_v12, %v1203_v47  ;;  %v6174_v51 = vmul.u32.u64.low %v6110_v5, %v1200_v46  ;;  %v6175_v53 = vmul.u32.u64.high %v6110_v5, %v1200_v46, %v6174_v51  ;;  %v1196_v62 = vsel %vm1190_vm8, %v1193_v40, %v1195_v45 }
 0x379   : > { %v6179_v54 = vmul.u32.u64.low %v6110_v5, %v1204_v50  ;;  %v6180_v56 = vmul.u32.u64.high %v6110_v5, %v1204_v50, %v6179_v54  ;;  %v6184_v60 = vshrl.u32 %v1115_v49, 30  ;;  %v1268_v8 = vor.u32 8388608, %v6114_v6 }
 0x37a   : > { %v1274_v10 = vand.u32 31, %v1272_v57  ;;  %v1215_v16 = vadd.s32 1, %v6175_v53  ;;  %v1212_v20 = vmul.u32 %v6110_v5, %v1196_v62  ;;  %v1367_v7 = vshrl.u32 %v1366_v58, 23 }
 0x37b   : > { %v1117_v14 = vshll.u32 %v6184_v60, 30  ;;  %vm1214_vm12 = vc.u32 %v6180_v56, %v6174_v51  ;;  %v1110_v0 = vadd.s32 %v6148_v2, %v6145_v1  ;;  %v6196_v22 = vshll.u32 %v1268_v8, 8 }
 0x37c   : > { %v1275_v18 = vsub.s32 32, %v1274_v10  ;;  %v1216_v11 = vsel %vm1214_vm12, %v1215_v16, %v6175_v53  ;;  %v1277_v23 = vshll.u32 %v9230_v9, %v1274_v10  ;;  %v1273_v5 = vshrl.u32 %v1272_v57, 5 }
 0x37d   : > { %v1118_v21 = vsub.s32 %v1114_v37, %v1117_v14  ;;  %v1217_v6 = vadd.s32 %v1216_v11, %v1212_v20  ;;  %v1280_v28 = vshll.u32 %v9228_v13, %v1274_v10  ;;  %v1283_v2 = vshll.u32 %v9223_v15, %v1274_v10 }
 0x37e   : > { %v1278_v24 = vshrl.u32 %v9228_v13, %v1275_v18  ;;  %v1281_v25 = vshrl.u32 %v9223_v15, %v1275_v18  ;;  %v1284_v29 = vshrl.u32 %v9232_v17, %v1275_v18  ;;  %v4803_v4 = vadd.s32 4294967169, %v1367_v7 }
 0x37f   : > { %v1120_v27 = vsub.s32 0, %v1118_v21  ;;  %v1218_v30 = vadd.s32 536870912, %v1217_v6  ;;  %v1286_v12 = vshll.u32 %v9232_v17, %v1274_v10  ;;  %v1287_v37 = vshrl.u32 %v9234_v19, %v1275_v18 }
 0x380   : > { %v1279_v1 = vor.u32 %v1278_v24, %v1277_v23  ;;  %v1282_v35 = vor.u32 %v1281_v25, %v1280_v28  ;;  %v1285_v41 = vor.u32 %v1284_v29, %v1283_v2  ;;  %v1289_v43 = vshll.u32 %v9234_v19, %v1274_v10 }
 0x381   : > { %v4792_v31 = vmin.u32 %v1120_v27, %v1118_v21  ;;  %v6206_v40 = vshrl.u32 %v1218_v30, 30  ;;  %v1290_v45 = vshrl.u32 %v9225_v26, %v1275_v18  ;;  %v1276_v47 = vshrl.u32 %v9230_v9, %v1275_v18 }
 0x382   : > { %v1288_v49 = vor.u32 %v1287_v37, %v1286_v12  ;;  %vm1292_vm13 = vcmp.lt.s32.totalorder %v1273_v5, 1  ;;  %vm1293_vm14 = vcmp.lt.s32.totalorder %v1273_v5, 2  ;;  %vm1295_vm15 = vcmp.lt.s32.totalorder %v1273_v5, 4 }
 0x383   : > { %9480 = vst [vmem:[#allocation20_spill] sm:$0xff] %v6206_v40  ;;  %v1122_v46 = vclz %v4792_v31  ;;  %v1220_v50 = vshll.u32 %v6206_v40, 30  ;;  %v1291_v53 = vor.u32 %v1290_v45, %v1289_v43  ;;  %vm1294_vm0 = vcmp.lt.s32.totalorder %v1273_v5, 3 }
 0x384   : > { %v1300_v57 = vsel %vm1292_vm13, %v1279_v1, %v1282_v35  ;;  %v1301_v58 = vsel %vm1295_vm15, %v1288_v49, 920167782  ;;  %v1297_v8 = vsel %vm1295_vm15, %v1285_v41, 2102212464  ;;  %v1304_v14 = vsel %vm1292_vm13, %v1282_v35, %v1285_v41 }
 0x385   : > { %v4793_v54 = vadd.s32 4294967294, %v1122_v46  ;;  %v6212_v62 = vsub.s32 %v1217_v6, %v1220_v50  ;;  %v1302_v10 = vsel %vm1294_vm0, %v1285_v41, %v1301_v58  ;;  %v1296_v16 = vsel %vm1292_vm13, %v1276_v47, %v1279_v1  ;;  %v6232_v47 = vpop.f32.mrb[26].mxu0 }
 0x386   : > { %v1303_v18 = vsel %vm1293_vm14, %v1300_v57, %v1302_v10  ;;  %v1305_v20 = vsel %vm1295_vm15, %v1291_v53, 1326507024  ;;  %v1373_v24 = vadd.s32 1, %v4803_v4  ;;  %v1298_v6 = vsel %vm1294_vm0, %v1282_v35, %v1297_v8 }
 0x387   : > { %vm4794_vm1 = vcmp.lt.s32.totalorder %v4793_v54, 0  ;;  %v1223_v11 = vsub.s32 0, %v6212_v62  ;;  %v1306_v23 = vsel %vm1294_vm0, %v1288_v49, %v1305_v20  ;;  %v9219_v41 = vand.u32 2147483647, %v6106_v3 }
 0x388   : > { %v1125_v7 = vsel %vm4794_vm1, 0, %v4793_v54  ;;  %v1307_v28 = vsel %vm1293_vm14, %v1304_v14, %v1306_v23  ;;  %vm1374_vm2 = vcmp.gt.s32.totalorder %v1373_v24, 0  ;;  %vm1056_vm4 = vcmp.lt.s32.totalorder %v6079_v36, 0 }
 0x389   : > { %v1126_v25 = vsub.s32 32, %v1125_v7  ;;  %v1130_v27 = vsub.s32 4294967266, %v1125_v7  ;;  %v1127_v29 = vshll.u32 %v1118_v21, %v1125_v7  ;;  %v4796_v4 = vmin.u32 %v1223_v11, %v6212_v62 }
 0x38a   : > { %v6221_v30 = vmul.u32.u64.low %v6196_v22, %v1307_v28  ;;  %v6222_v2 = vmul.u32.u64.high %v6196_v22, %v1307_v28, %v6221_v30  ;;  %v6225_v12 = vmul.u32.u64.low %v6196_v22, %v1303_v18  ;;  %v6226_v37 = vmul.u32.u64.high %v6196_v22, %v1303_v18, %v6225_v12 }
 0x38b   : > { %v1128_v1 = vshrl.u32 %v1110_v0, %v1126_v25  ;;  %v1131_v31 = vadd.s32 127, %v1130_v27  ;;  %v1375_v35 = vsel %vm1374_vm2, %v1373_v24, 0  ;;  %v1299_v21 = vsel %vm1293_vm14, %v1296_v16, %v1298_v6 }
 0x38c   : > { %v1377_v46 = vand.u32 31, %v1375_v35  ;;  %vm1317_vm3 = vc.u32 %v6222_v2, %v6225_v12  ;;  %v1318_v49 = vadd.s32 1, %v6226_v37  ;;  %v1225_v50 = vclz %v4796_v4 }
 0x38d   : > { %v1129_v43 = vor.u32 %v1128_v1, %v1127_v29  ;;  %v1132_v45 = vshll.u32 %v1131_v31, 23  ;;  %v1315_v53 = vmul.u32 %v6196_v22, %v1299_v21  ;;  %v1370_v54 = vand.u32 8388607, %v9219_v41 }
 0x38e   : > { %v1319_v5 = vsel %vm1317_vm3, %v1318_v49, %v6226_v37  ;;  %v1378_v8 = vsub.s32 32, %v1377_v46  ;;  %vm6244_vm5 = vcmp.le.f32.partialorder %v1054_v39, 0.7853982  ;;  %v4797_v18 = vadd.s32 4294967294, %v1225_v50 }
 0x38f   : > { %v1133_v0 = vor.u32 4788187, %v1132_v45  ;;  %v1136_v58 = vcvt.s32.f32 %v1129_v43  ;;  %v1320_v10 = vadd.s32 %v1319_v5, %v1315_v53  ;;  %v1371_v20 = vor.u32 8388608, %v1370_v54 }
 0x390   : > { %v1376_v11 = vshrl.u32 %v1375_v35, 5  ;;  %v1381_v23 = vshrl.u32 %v9228_v13, %v1378_v8  ;;  %v1384_v24 = vshrl.u32 %v9223_v15, %v1378_v8  ;;  %v1380_v27 = vshll.u32 %v9230_v9, %v1377_v46 }
 0x391   : > { %v1134_v57 = vand.u32 2147483647, %v1133_v0  ;;  %v1321_v22 = vadd.s32 536870912, %v1320_v10  ;;  %v1387_v6 = vshrl.u32 %v9232_v17, %v1378_v8  ;;  %v1390_v39 = vshrl.u32 %v9234_v19, %v1378_v8 }
 0x392   : > { %v1383_v29 = vshll.u32 %v9228_v13, %v1377_v46  ;;  %v1389_v30 = vshll.u32 %v9232_v17, %v1377_v46  ;;  %v1393_v1 = vshrl.u32 %v9225_v26, %v1378_v8  ;;  %vm4798_vm6 = vcmp.lt.s32.totalorder %v4797_v18, 0 }
 0x393   : > { %v1137_v14 = vmul.f32 %v1136_v58, %v1134_v57  ;;  %v6250_v25 = vshrl.u32 %v1321_v22, 30  ;;  %v1386_v4 = vshll.u32 %v9223_v15, %v1377_v46  ;;  %v1382_v35 = vor.u32 %v1381_v23, %v1380_v27 }
 0x394   : > { %v1385_v43 = vor.u32 %v1384_v24, %v1383_v29  ;;  %v1391_v45 = vor.u32 %v1390_v39, %v1389_v30  ;;  %v1392_v21 = vshll.u32 %v9234_v19, %v1377_v46  ;;  %v1228_v50 = vsel %vm4798_vm6, 0, %v4797_v18 }
 0x395   : > { %v1138_v7 = vxor.u32 2147483648, %v1137_v14  ;;  %v1323_v37 = vshll.u32 %v6250_v25, 30  ;;  %v1388_v49 = vor.u32 %v1387_v6, %v1386_v4  ;;  %v6272_v54 = vadd.f32 %v6096_v52, %v6074_v32 }
 0x396   : > { %v1394_v53 = vor.u32 %v1393_v1, %v1392_v21  ;;  %vm1395_vm7 = vcmp.lt.s32.totalorder %v1376_v11, 1  ;;  %vm1398_vm8 = vcmp.lt.s32.totalorder %v1376_v11, 4  ;;  %v1411_v58 = vshll.u32 %v1371_v20, 8 }
 0x397   : > { %v1139_v28 = vsel %vm1056_vm4, %v1138_v7, %v1137_v14  ;;  %v6268_v0 = vsub.s32 %v1320_v10, %v1323_v37  ;;  %9483 = vst [vmem:[#allocation21_spill] sm:$0xff] %v6272_v54  ;;  %v1379_v5 = vshrl.u32 %v9230_v9, %v1378_v8  ;;  %vm1397_vm9 = vcmp.lt.s32.totalorder %v1376_v11, 3 }
 0x398   : > { %v6263_v31 = vsel %vm6244_vm5, %v6079_v36, %v1139_v28  ;;  %v1403_v14 = vsel %vm1395_vm7, %v1382_v35, %v1385_v43  ;;  %v1404_v22 = vsel %vm1398_vm8, %v1391_v45, 920167782  ;;  %v1233_v46 = vsub.s32 4294967266, %v1228_v50 }
 0x399   : > { %v1326_v57 = vsub.s32 0, %v6268_v0  ;;  %vm1396_vm10 = vcmp.lt.s32.totalorder %v1376_v11, 2  ;;  %v1400_v10 = vsel %vm1398_vm8, %v1388_v49, 2102212464  ;;  %v1405_v7 = vsel %vm1397_vm9, %v1388_v49, %v1404_v22 }
 0x39a   : > { %v1406_v23 = vsel %vm1396_vm10, %v1403_v14, %v1405_v7  ;;  %v1407_v52 = vsel %vm1395_vm7, %v1385_v43, %v1388_v49  ;;  %v1408_v24 = vsel %vm1398_vm8, %v1394_v53, 1326507024  ;;  %v1399_v27 = vsel %vm1395_vm7, %v1379_v5, %v1382_v35 }
 0x39b   : > { %v4800_v18 = vmin.u32 %v1326_v57, %v6268_v0  ;;  %v1409_v6 = vsel %vm1397_vm9, %v1391_v45, %v1408_v24  ;;  %v6280_v20 = vadd.f32 %v6098_v55, %v6076_v34  ;;  %v1401_v8 = vsel %vm1397_vm9, %v1385_v43, %v1400_v10  ;;  %v6291_v45 = vpop.f32.mrb[27].mxu0 }
 0x39c   : > { %v1410_v39 = vsel %vm1396_vm10, %v1407_v52, %v1409_v6  ;;  %v6283_v28 = vmul.u32.u64.low %v1411_v58, %v1406_v23  ;;  %v6284_v29 = vmul.u32.u64.high %v1411_v58, %v1406_v23, %v6283_v28  ;;  %v1229_v30 = vsub.s32 32, %v1228_v50 }
 0x39d   : > { %9484 = vst [vmem:[#allocation22_spill] sm:$0xff] %v6280_v20  ;;  %v1234_v1 = vadd.s32 127, %v1233_v46  ;;  %v6287_v37 = vmul.u32.u64.low %v1411_v58, %v1410_v39  ;;  %v6288_v4 = vmul.u32.u64.high %v1411_v58, %v1410_v39, %v6287_v37  ;;  %v1328_v21 = vclz %v4800_v18 }
 0x39e   : > { %v1469_v35 = vand.u32 2139095040, %v6272_v54  ;;  %v1213_v55 = vadd.s32 %v6174_v51, %v6180_v56  ;;  %v1402_v43 = vsel %vm1396_vm10, %v1399_v27, %v1401_v8  ;;  %v1572_v49 = vand.u32 2139095040, %v6280_v20 }
 0x39f   : > { %v1421_v53 = vadd.s32 1, %v6284_v29  ;;  %v1235_v14 = vshll.u32 %v1234_v1, 23  ;;  %v9218_v22 = vand.u32 2147483647, %v6272_v54  ;;  %v4801_v46 = vadd.s32 4294967294, %v1328_v21 }
 0x3a0   : > { %v1470_v57 = vshrl.u32 %v1469_v35, 23  ;;  %v1231_v5 = vshrl.u32 %v1213_v55, %v1229_v30  ;;  %v1418_v10 = vmul.u32 %v1411_v58, %v1402_v43  ;;  %vm1420_vm11 = vc.u32 %v6288_v4, %v6283_v28 }
 0x3a1   : > { %v1230_v18 = vshll.u32 %v6212_v62, %v1228_v50  ;;  %v1422_v51 = vsel %vm1420_vm11, %v1421_v53, %v6284_v29  ;;  %v1573_v56 = vshrl.u32 %v1572_v49, 23  ;;  %v1236_v24 = vor.u32 4788187, %v1235_v14 }
 0x3a2   : > { %v4807_v7 = vadd.s32 4294967169, %v1470_v57  ;;  %v1423_v11 = vadd.s32 %v1422_v51, %v1418_v10  ;;  %v1473_v27 = vand.u32 8388607, %v9218_v22  ;;  %vm4802_vm12 = vcmp.lt.s32.totalorder %v4801_v46, 0 }
 0x3a3   : > { %v1232_v52 = vor.u32 %v1231_v5, %v1230_v18  ;;  %v4811_v58 = vadd.s32 4294967169, %v1573_v56  ;;  %v1237_v1 = vand.u32 2147483647, %v1236_v24  ;;  %v6307_v50 = vsel %vm4802_vm12, 0, %v4801_v46 }
 0x3a4   : > { %v1476_v23 = vadd.s32 1, %v4807_v7  ;;  %v1424_v6 = vadd.s32 536870912, %v1423_v11  ;;  %v1474_v37 = vor.u32 8388608, %v1473_v27  ;;  %vm9331_vm12 = vcmp.lt.s32.totalorder %v6082_v33, 0 }
 0x3a5   : > { %v1239_v62 = vcvt.s32.f32 %v1232_v52  ;;  %v1579_v35 = vadd.s32 1, %v4811_v58  ;;  %5394 = vcosq.f32 %v6263_v31 }
 0x3a6   : > { %vm1477_vm13 = vcmp.gt.s32.totalorder %v1476_v23, 0  ;;  %v6305_v39 = vshrl.u32 %v1424_v6, 30  ;;  %5396 = vsinq.f32 %v6263_v31 }
 0x3a7   : > { %v1478_v8 = vsel %vm1477_vm13, %v1476_v23, 0  ;;  %v6327_v24 = vmul.f32 %v1239_v62, %v1237_v1  ;;  %vm1580_vm0 = vcmp.gt.s32.totalorder %v1579_v35, 0 }
 0x3a8   : > { %9485 = vst [vmem:[#allocation23_spill] sm:$0xff] %v6305_v39  ;;  %v1480_v30 = vand.u32 31, %v1478_v8  ;;  %v1426_v29 = vshll.u32 %v6305_v39, 30  ;;  %v1479_v55 = vshrl.u32 %v1478_v8, 5  ;;  %v1336_v8 = vsub.s32 4294967266, %v6307_v50 }
 0x3aa   : > { %v1481_v21 = vsub.s32 32, %v1480_v30  ;;  %v1483_v43 = vshll.u32 %v9230_v9, %v1480_v30  ;;  %v1486_v49 = vshll.u32 %v9228_v13, %v1480_v30  ;;  %v1489_v53 = vshll.u32 %v9223_v15, %v1480_v30 }
 0x3ab   : > { %v6313_v57 = vsub.s32 %v1423_v11, %v1426_v29  ;;  %v1492_v46 = vshll.u32 %v9232_v17, %v1480_v30  ;;  %v1495_v18 = vshll.u32 %v9234_v19, %v1480_v30  ;;  %v6325_v11 = vadd.f32 %v6101_v61, %v6074_v32 }
 0x3ac   : > { %v1484_v5 = vshrl.u32 %v9228_v13, %v1481_v21  ;;  %v1487_v14 = vshrl.u32 %v9223_v15, %v1481_v21  ;;  %v1490_v10 = vshrl.u32 %v9232_v17, %v1481_v21  ;;  %v1493_v7 = vshrl.u32 %v9234_v19, %v1481_v21 }
 0x3ad   : > { %v1496_v51 = vshrl.u32 %v9225_v26, %v1481_v21  ;;  %v1429_v56 = vsub.s32 0, %v6313_v57  ;;  %9486 = vst [vmem:[#allocation24_spill] sm:$0xff] %v6325_v11  ;;  %vm1498_vm14 = vcmp.lt.s32.totalorder %v1479_v55, 1  ;;  %v1514_v29 = vshll.u32 %v1474_v37, 8 }
 0x3ae   : > { %v1485_v23 = vor.u32 %v1484_v5, %v1483_v43  ;;  %v1488_v52 = vor.u32 %v1487_v14, %v1486_v49  ;;  %v1491_v27 = vor.u32 %v1490_v10, %v1489_v53  ;;  %v1494_v6 = vor.u32 %v1493_v7, %v1492_v46 }
 0x3af   : > { %v1497_v58 = vor.u32 %v1496_v51, %v1495_v18  ;;  %v9221_v30 = vand.u32 2147483647, %v6280_v20  ;;  %v1482_v22 = vshrl.u32 %v9230_v9, %v1481_v21  ;;  %vm1501_vm15 = vcmp.lt.s32.totalorder %v1479_v55, 4 }
 0x3b0   : > { %v1506_v43 = vsel %vm1498_vm14, %v1485_v23, %v1488_v52  ;;  %v4804_v49 = vmin.u32 %v1429_v56, %v6313_v57  ;;  %vm1500_vm1 = vcmp.lt.s32.totalorder %v1479_v55, 3  ;;  %v1503_v61 = vsel %vm1501_vm15, %v1491_v27, 2102212464  ;;  %v6340_v56 = vpop.f32.mrb[28].mxu0 }
 0x3b1   : > { %v1507_v1 = vsel %vm1501_vm15, %v1494_v6, 920167782  ;;  %vm1499_vm2 = vcmp.lt.s32.totalorder %v1479_v55, 2  ;;  %v1510_v53 = vsel %vm1498_vm14, %v1488_v52, %v1491_v27  ;;  %v1511_v5 = vsel %vm1501_vm15, %v1497_v58, 1326507024 }
 0x3b2   : > { %v1508_v62 = vsel %vm1500_vm1, %v1491_v27, %v1507_v1  ;;  %v1502_v14 = vsel %vm1498_vm14, %v1482_v22, %v1485_v23  ;;  %v1504_v46 = vsel %vm1500_vm1, %v1488_v52, %v1503_v61  ;;  %v1512_v10 = vsel %vm1500_vm1, %v1494_v6, %v1511_v5 }
 0x3b3   : > { %v1509_v37 = vsel %vm1499_vm2, %v1506_v43, %v1508_v62  ;;  %v1332_v7 = vsub.s32 32, %v6307_v50  ;;  %v1513_v21 = vsel %vm1499_vm2, %v1510_v53, %v1512_v10  ;;  %v1337_v41 = vadd.s32 127, %v1336_v8 }
 0x3b4   : > { %v6336_v18 = vmul.u32.u64.low %v1514_v29, %v1509_v37  ;;  %v6337_v51 = vmul.u32.u64.high %v1514_v29, %v1509_v37, %v6336_v18  ;;  %v6342_v59 = vmul.u32.u64.low %v1514_v29, %v1513_v21  ;;  %v6343_v1 = vmul.u32.u64.high %v1514_v29, %v1513_v21, %v6342_v59 }
 0x3b5   : > { %v1581_v22 = vsel %vm1580_vm0, %v1579_v35, 0  ;;  %v1140_v23 = vsub.s32 4, %v6184_v60  ;;  %v1316_v52 = vadd.s32 %v6225_v12, %v6222_v2  ;;  %v1505_v27 = vsel %vm1499_vm2, %v1502_v14, %v1504_v46 }
 0x3b6   : > { %v1583_v6 = vand.u32 31, %v1581_v22  ;;  %v1241_v58 = vxor.u32 2147483648, %v6327_v24  ;;  %v1431_v43 = vclz %v4804_v49  ;;  %v9227_v61 = vand.u32 2147483647, %v6325_v11 }
 0x3b7   : > { %v1675_v8 = vand.u32 2139095040, %v6325_v11  ;;  %v1333_v59 = vshll.u32 %v6268_v0, %v6307_v50  ;;  %v1334_v62 = vshrl.u32 %v1316_v52, %v1332_v7  ;;  %v1524_v35 = vadd.s32 1, %v6337_v51 }
 0x3b8   : > { %v1584_v53 = vsub.s32 32, %v1583_v6  ;;  %v1338_v5 = vshll.u32 %v1337_v41, 23  ;;  %v1521_v37 = vmul.u32 %v1514_v29, %v1505_v27  ;;  %vm1523_vm3 = vc.u32 %v6343_v1, %v6336_v18 }
 0x3b9   : > { %v1576_v2 = vand.u32 8388607, %v9221_v30  ;;  %v1525_v12 = vsel %vm1523_vm3, %v1524_v35, %v6337_v51  ;;  %v1586_v55 = vshll.u32 %v9230_v9, %v1583_v6  ;;  %v4805_v50 = vadd.s32 4294967294, %v1431_v43 }
 0x3ba   : > { %v1587_v49 = vshrl.u32 %v9228_v13, %v1584_v53  ;;  %v1590_v0 = vshrl.u32 %v9223_v15, %v1584_v53  ;;  %v1526_v14 = vadd.s32 %v1525_v12, %v1521_v37  ;;  %v1589_v46 = vshll.u32 %v9228_v13, %v1583_v6 }
 0x3bb   : > { %v1676_v41 = vshrl.u32 %v1675_v8, 23  ;;  %v1582_v29 = vshrl.u32 %v1581_v22, 5  ;;  %v1592_v7 = vshll.u32 %v9223_v15, %v1583_v6  ;;  %v1593_v21 = vshrl.u32 %v9232_v17, %v1584_v53 }
 0x3bc   : > { %v1588_v10 = vor.u32 %v1587_v49, %v1586_v55  ;;  %v1527_v52 = vadd.s32 536870912, %v1526_v14  ;;  %v1591_v27 = vor.u32 %v1590_v0, %v1589_v46  ;;  %v1595_v51 = vshll.u32 %v9232_v17, %v1583_v6 }
 0x3bd   : > { %v1596_v35 = vshrl.u32 %v9234_v19, %v1584_v53  ;;  %v1335_v30 = vor.u32 %v1334_v62, %v1333_v59  ;;  %v1594_v42 = vor.u32 %v1593_v21, %v1592_v7  ;;  %v1598_v43 = vshll.u32 %v9234_v19, %v1583_v6 }
 0x3be   : > { %v1599_v37 = vshrl.u32 %v9225_v26, %v1584_v53  ;;  %v1339_v12 = vor.u32 4788187, %v1338_v5  ;;  %v6371_v8 = vshrl.u32 %v1527_v52, 30  ;;  %v1577_v22 = vor.u32 8388608, %v1576_v2 }
 0x3bf   : > { %v1597_v55 = vor.u32 %v1596_v35, %v1595_v51  ;;  %vm4806_vm6 = vcmp.lt.s32.totalorder %v4805_v50, 0  ;;  %vm1601_vm7 = vcmp.lt.s32.totalorder %v1582_v29, 1  ;;  %v4815_v15 = vadd.s32 4294967169, %v1676_v41 }
 0x3c0   : > { %9487 = vst [vmem:[#allocation25_spill] sm:$0xff] %v6371_v8  ;;  %v1600_v49 = vor.u32 %v1599_v37, %v1598_v43  ;;  %v1529_v0 = vshll.u32 %v6371_v8, 30  ;;  %v1585_v46 = vshrl.u32 %v9230_v9, %v1584_v53  ;;  %vm1604_vm8 = vcmp.lt.s32.totalorder %v1582_v29, 4 }
 0x3c1   : > { %v1609_v59 = vsel %vm1601_vm7, %v1588_v10, %v1591_v27  ;;  %vm1603_vm9 = vcmp.lt.s32.totalorder %v1582_v29, 3  ;;  %v1610_v6 = vsel %vm1604_vm8, %v1597_v55, 920167782  ;;  %v1613_v62 = vsel %vm1601_vm7, %v1591_v27, %v1594_v42 }
 0x3c2   : > { %v1614_v5 = vsel %vm1604_vm8, %v1600_v49, 1326507024  ;;  %v6377_v7 = vsub.s32 %v1526_v14, %v1529_v0  ;;  %vm1602_vm10 = vcmp.lt.s32.totalorder %v1582_v29, 2  ;;  %v1606_v2 = vsel %vm1604_vm8, %v1594_v42, 2102212464 }
 0x3c3   : > { %v1611_v21 = vsel %vm1603_vm9, %v1594_v42, %v1610_v6  ;;  %v1615_v52 = vsel %vm1603_vm9, %v1597_v55, %v1614_v5  ;;  %v1617_v51 = vshll.u32 %v1577_v22, 8  ;;  %v1682_v53 = vadd.s32 1, %v4815_v15  ;;  %v6392_v42 = vpop.f32.mrb[29].mxu0 }
 0x3c4   : > { %v1612_v41 = vsel %vm1602_vm10, %v1609_v59, %v1611_v21  ;;  %v6383_v35 = vsel %vm4806_vm6, 0, %v4805_v50  ;;  %v1532_v43 = vsub.s32 0, %v6377_v7  ;;  %v1605_v37 = vsel %vm1601_vm7, %v1585_v46, %v1588_v10 }
 0x3c5   : > { %v1616_v14 = vsel %vm1602_vm10, %v1613_v62, %v1615_v52  ;;  %v1607_v49 = vsel %vm1603_vm9, %v1591_v27, %v1606_v2  ;;  %vm1683_vm11 = vcmp.gt.s32.totalorder %v1682_v53, 0  ;;  %v1340_v50 = vand.u32 2147483647, %v1339_v12 }
 0x3c6   : > { %v6389_v0 = vmul.u32.u64.low %v1617_v51, %v1616_v14  ;;  %v6390_v26 = vmul.u32.u64.high %v1617_v51, %v1616_v14, %v6389_v0  ;;  %v4808_v22 = vmin.u32 %v1532_v43, %v6377_v7  ;;  %v1679_v10 = vand.u32 8388607, %v9227_v61 }
 0x3c7   : > { %v6395_v15 = vmul.u32.u64.low %v1617_v51, %v1612_v41  ;;  %v6396_v55 = vmul.u32.u64.high %v1617_v51, %v1612_v41, %v6395_v15  ;;  %v1684_v46 = vsel %vm1683_vm11, %v1682_v53, 0  ;;  %v1439_v27 = vsub.s32 4294967266, %v6383_v35 }
 0x3c8   : > { %v1534_v59 = vclz %v4808_v22  ;;  %v1608_v6 = vsel %vm1602_vm10, %v1605_v37, %v1607_v49  ;;  %v1686_v62 = vand.u32 31, %v1684_v46  ;;  %v6409_v5 = vsel %vm1056_vm4, %v1140_v23, %v6184_v60 }
 0x3c9   : > { %v6416_v12 = vsel %vm9331_vm12, %v1241_v58, %v6327_v24  ;;  %v1342_v2 = vcvt.s32.f32 %v1335_v30  ;;  %vm1626_vm13 = vc.u32 %v6390_v26, %v6395_v15  ;;  %v1419_v29 = vadd.s32 %v6283_v28, %v6288_v4 }
 0x3ca   : > { %v4809_v21 = vadd.s32 4294967294, %v1534_v59  ;;  %v1627_v41 = vadd.s32 1, %v6396_v55  ;;  %v1687_v52 = vsub.s32 32, %v1686_v62  ;;  %v1435_v23 = vsub.s32 32, %v6383_v35 }
 0x3cb   : > { %v6423_v60 = vmul.f32 %v1342_v2, %v1340_v50  ;;  %v1624_v53 = vmul.u32 %v1617_v51, %v1608_v6  ;;  %v1680_v43 = vor.u32 8388608, %v1679_v10  ;;  %v1440_v37 = vadd.s32 127, %v1439_v27 }
 0x3cc   : > { %v1628_v24 = vsel %vm1626_vm13, %v1627_v41, %v6396_v55  ;;  %v1689_v30 = vshll.u32 %v9230_v9, %v1686_v62  ;;  %v1690_v58 = vshrl.u32 %v9228_v13, %v1687_v52  ;;  %v1692_v28 = vshll.u32 %v9228_v13, %v1686_v62 }
 0x3cd   : > { %v1629_v14 = vadd.s32 %v1628_v24, %v1624_v53  ;;  %v9488_v4 = vmov 2131351028   ;;  %v1696_v0 = vshrl.u32 %v9232_v17, %v1687_v52  ;;  %vm4810_vm4 = vcmp.lt.s32.totalorder %v4809_v21, 0 }
 0x3ce   : > { %v1693_v49 = vshrl.u32 %v9488_v4, %v1687_v52  ;;  %v1685_v22 = vshrl.u32 %v1684_v46, 5  ;;  %v1695_v50 = vshll.u32 %v9488_v4, %v1686_v62  ;;  %v1698_v51 = vshll.u32 %v9232_v17, %v1686_v62 }
 0x3cf   : > { %v1630_v10 = vadd.s32 536870912, %v1629_v14  ;;  %v1691_v27 = vor.u32 %v1690_v58, %v1689_v30  ;;  %v1699_v59 = vshrl.u32 %v9234_v19, %v1687_v52  ;;  %v1436_v6 = vshll.u32 %v6313_v57, %v6383_v35 }
 0x3d0   : > { %v1694_v55 = vor.u32 %v1693_v49, %v1692_v28  ;;  %v1697_v2 = vor.u32 %v1696_v0, %v1695_v50  ;;  %v1701_v41 = vshll.u32 %v9234_v19, %v1686_v62  ;;  %v9489_v53 = vmov 1326507024  }
 0x3d1   : > { %v1702_v24 = vshrl.u32 %v9489_v53, %v1687_v52  ;;  %v1437_v61 = vshrl.u32 %v1419_v29, %v1435_v23  ;;  %v1441_v13 = vshll.u32 %v1440_v37, 23  ;;  %v6439_v46 = vshrl.u32 %v1630_v10, 30 }
 0x3d2   : > { %v1700_v9 = vor.u32 %v1699_v59, %v1698_v51  ;;  %v9491_v17 = vand.u32 2147483647, %v6082_v33  ;;  %v9492_v30 = vmov 0  ;;  %v6448_v58 = vsel %vm4810_vm4, 0, %v4809_v21 }
 0x3d3   : > { %9490 = vst [vmem:[#allocation26_spill] sm:$0xff] %v6439_v46  ;;  %v1703_v57 = vor.u32 %v1702_v24, %v1701_v41  ;;  %vm1704_vm15 = vcmp.lt.s32.totalorder %v1685_v22, 1  ;;  %v1720_v35 = vshll.u32 %v1680_v43, 8  ;;  %v1632_v62 = vshll.u32 %v6439_v46, 30 }
 0x3d4   : > { %vm6443_vm14 = vcmp.le.f32.partialorder %v9491_v17, 0.7853982  ;;  %vm1707_vm0 = vcmp.lt.s32.totalorder %v1685_v22, 4  ;;  %v1712_v29 = vsel %vm1704_vm15, %v1691_v27, %v1694_v55  ;;  %v6453_v23 = vadd.f32 %v6103_v63, %v6076_v34 }
 0x3d5   : > { %v9493_v30 = vsel %vm6443_vm14, 4294967295, %v9492_v30  ;;  %v9496_v37 = vmov 683565275   ;;  %vm1706_vm1 = vcmp.lt.s32.totalorder %v1685_v22, 3  ;;  %v1709_v17 = vsel %vm1707_vm0, %v1697_v2, 2102212464 }
 0x3d6   : > { %9494 = vst [vmem:[#allocation27_spill] sm:$0xff] %v9493_v30  ;;  %9495 = vst [vmem:[#allocation28_spill] sm:$0xff] %v6453_v23  ;;  %v1688_v28 = vshrl.u32 %v9496_v37, %v1687_v52  ;;  %v1713_v49 = vsel %vm1707_vm0, %v1700_v9, 920167782  ;;  %v1542_v0 = vsub.s32 4294967266, %v6448_v58  ;;  %vm1705_vm2 = vcmp.lt.s32.totalorder %v1685_v22, 2 }
 0x3d7   : > { %v1714_v21 = vsel %vm1706_vm1, %v1697_v2, %v1713_v49  ;;  %v1716_v50 = vsel %vm1704_vm15, %v1694_v55, %v1697_v2  ;;  %v6457_v51 = vsub.s32 %v1629_v14, %v1632_v62  ;;  %v1717_v59 = vsel %vm1707_vm0, %v1703_v57, 1326507024  ;;  %v6467_v14 = vpop.f32.mrb[30].mxu0 }
 0x3d8   : > { %v1708_v43 = vsel %vm1704_vm15, %v1688_v28, %v1691_v27  ;;  %v1715_v10 = vsel %vm1705_vm2, %v1712_v29, %v1714_v21  ;;  %vm1262_vm3 = vcmp.lt.s32.totalorder %v6089_v44, 0  ;;  %v1710_v63 = vsel %vm1706_vm1, %v1694_v55, %v1709_v17  ;;  %9497 = vst [vmem:[#allocation29_spill] sm:$0xff] %v6467_v14 }
 0x3d9   : > { %v1718_v41 = vsel %vm1706_vm1, %v1700_v9, %v1717_v59  ;;  %v6461_v24 = vmul.u32.u64.low %v1720_v35, %v1715_v10  ;;  %v6462_v52 = vmul.u32.u64.high %v1720_v35, %v1715_v10, %v6461_v24  ;;  %v1438_v19 = vor.u32 %v1437_v61, %v1436_v6 }
 0x3da   : > { %v1442_v8 = vor.u32 4788187, %v1441_v13  ;;  %v1719_v46 = vsel %vm1705_vm2, %v1716_v50, %v1718_v41  ;;  %v1778_v2 = vand.u32 2139095040, %v6453_v23  ;;  %v1543_v57 = vadd.s32 127, %v1542_v0 }
 0x3db   : > { %v6472_v62 = vmul.u32.u64.low %v1720_v35, %v1719_v46  ;;  %v6473_v55 = vmul.u32.u64.high %v1720_v35, %v1719_v46, %v6472_v62  ;;  %v1635_v9 = vsub.s32 0, %v6457_v51  ;;  %v1711_v29 = vsel %vm1705_vm2, %v1708_v43, %v1710_v63 }
 0x3dc   : > { %v1779_v61 = vshrl.u32 %v1778_v2, 23  ;;  %v6479_v13 = vadd.f32 %v6131_v38, %v6074_v32  ;;  %v1245_v6 = vsel %vm6443_vm14, %v6082_v33, %v6416_v12  ;;  %v9499_v28 = vand.u32 2147483647, %v6089_v44 }
 0x3dd   : > { %v1344_v22 = vxor.u32 2147483648, %v6423_v60  ;;  %v1730_v17 = vadd.s32 1, %v6462_v52  ;;  %v1443_v49 = vand.u32 2147483647, %v1442_v8  ;;  %v1445_v38 = vcvt.s32.f32 %v1438_v19 }
 0x3de   : > { %9498 = vst [vmem:[#allocation30_spill] sm:$0xff] %v6479_v13  ;;  %vm6488_vm6 = vcmp.le.f32.partialorder %v9499_v28, 0.7853982  ;;  %v9241_v0 = vand.u32 2147483647, %v6453_v23  ;;  %v4819_v21 = vadd.s32 4294967169, %v1779_v61  ;;  %v1727_v10 = vmul.u32 %v1720_v35, %v1711_v29 }
 0x3df   : > { %v1538_v50 = vsub.s32 32, %v6448_v58  ;;  %v1544_v43 = vshll.u32 %v1543_v57, 23  ;;  %vm1729_vm7 = vc.u32 %v6473_v55, %v6461_v24  ;;  %v4812_v12 = vmin.u32 %v1635_v9, %v6457_v51 }
 0x3e0   : > { %v1731_v59 = vsel %vm1729_vm7, %v1730_v17, %v6462_v52  ;;  %v1785_v63 = vadd.s32 1, %v4819_v21  ;;  %v1881_v41 = vand.u32 2139095040, %v6479_v13  ;;  %v1346_v19 = vsub.s32 4, %v6250_v25  ;;  %v6534_v21 = vpop.eup %5394 }
 0x3e1   : > { %v1522_v8 = vadd.s32 %v6336_v18, %v6343_v1  ;;  %v1732_v2 = vadd.s32 %v1731_v59, %v1727_v10  ;;  %5398 = vcosq.f32 %v1245_v6  ;;  %v1345_v35 = vsel %vm1262_vm3, %v1344_v22, %v6423_v60  ;;  %9504 = vst [vmem:[#allocation33_spill] sm:$0xff] %v6534_v21 }
 0x3e2   : > { %v6508_v57 = vmul.f32 %v1445_v38, %v1443_v49  ;;  %vm1786_vm8 = vcmp.gt.s32.totalorder %v1785_v63, 0  ;;  %v6510_v62 = vor.u32 4788187, %v1544_v43  ;;  %v1782_v31 = vand.u32 8388607, %v9241_v0 }
 0x3e3   : > { %v1540_v52 = vshrl.u32 %v1522_v8, %v1538_v50  ;;  %v1733_v9 = vadd.s32 536870912, %v1732_v2  ;;  %v1637_v29 = vclz %v4812_v12  ;;  %v1787_v61 = vsel %vm1786_vm8, %v1785_v63, 0 }
 0x3e4   : > { %v9240_v18 = vand.u32 2147483647, %v6479_v13  ;;  %v1882_v1 = vshrl.u32 %v1881_v41, 23  ;;  %5400 = vsinq.f32 %v1245_v6  ;;  %v6518_v60 = vsel %vm1262_vm3, %v1346_v19, %v6250_v25 }
 0x3e5   : > { %v1539_v28 = vshll.u32 %v6377_v7, %v6448_v58  ;;  %v6522_v22 = vshrl.u32 %v1733_v9, 30  ;;  %v6527_v17 = vsel %vm6488_vm6, %v6089_v44, %v1345_v35  ;;  %v1789_v38 = vand.u32 31, %v1787_v61 }
 0x3e6   : > { %v6532_v6 = vadd.f32 %v6169_v48, %v6076_v34  ;;  %v1783_v50 = vor.u32 8388608, %v1782_v31  ;;  %v4813_v43 = vadd.s32 4294967294, %v1637_v29  ;;  %v4823_v12 = vadd.s32 4294967169, %v1882_v1 }
 0x3e7   : > { %9502 = vst [vmem:[#allocation31_spill] sm:$0xff] %v6522_v22  ;;  %v6536_v25 = vor.u32 %v1540_v52, %v1539_v28  ;;  %v1735_v58 = vshll.u32 %v6522_v22, 30  ;;  %v1790_v10 = vsub.s32 32, %v1789_v38  ;;  %v1885_v59 = vand.u32 8388607, %v9240_v18  ;;  %v6550_v28 = vpop.eup %5396 }
 0x3e8   : > { %9503 = vst [vmem:[#allocation32_spill] sm:$0xff] %v6532_v6  ;;  %v1788_v41 = vshrl.u32 %v1787_v61, 5  ;;  %v1792_v48 = vshll.u32 %v9496_v37, %v1789_v38  ;;  %v9505_v19 = vmov 2475754826   ;;  %v1798_v9 = vshll.u32 %v9488_v4, %v1789_v38  ;;  %9507 = vst [vmem:[#allocation34_spill] sm:$0xff] %v6550_v28 }
 0x3e9   : > { %v6542_v63 = vsub.s32 %v1732_v2, %v1735_v58  ;;  %v1795_v8 = vshll.u32 %v9505_v19, %v1789_v38  ;;  %v1793_v35 = vshrl.u32 %v9505_v19, %v1790_v10  ;;  %v1796_v52 = vshrl.u32 %v9488_v4, %v1790_v10 }
 0x3ea   : > { %v9506_v31 = vmov 2102212464   ;;  %v9508_v58 = vmov 920167782   ;;  %v1805_v22 = vshrl.u32 %v9489_v53, %v1790_v10  ;;  %vm4814_vm9 = vcmp.lt.s32.totalorder %v4813_v43, 0 }
 0x3eb   : > { %v1799_v29 = vshrl.u32 %v9506_v31, %v1790_v10  ;;  %v1738_v1 = vsub.s32 0, %v6542_v63  ;;  %v1801_v2 = vshll.u32 %v9506_v31, %v1789_v38  ;;  %v1802_v61 = vshrl.u32 %v9508_v58, %v1790_v10  ;;  %v6556_v0 = vpop.eup %5398 }
 0x3ec   : > { %v1804_v18 = vshll.u32 %v9508_v58, %v1789_v38  ;;  %9509 = vst [vmem:[#allocation35_spill] sm:$0xff] %v6556_v0  ;;  %v1794_v27 = vor.u32 %v1793_v35, %v1792_v48  ;;  %v1797_v49 = vor.u32 %v1796_v52, %v1795_v8  ;;  %v6560_v28 = vshll.u32 %v1783_v50, 8 }
 0x3ed   : > { %v1800_v7 = vor.u32 %v1799_v29, %v1798_v9  ;;  %v4816_v21 = vmin.u32 %v1738_v1, %v6542_v63  ;;  %v1803_v44 = vor.u32 %v1802_v61, %v1801_v2  ;;  %vm1807_vm10 = vcmp.lt.s32.totalorder %v1788_v41, 1 }
 0x3ee   : > { %v1806_v36 = vor.u32 %v1805_v22, %v1804_v18  ;;  %vm1810_vm11 = vcmp.lt.s32.totalorder %v1788_v41, 4  ;;  %v1888_v39 = vadd.s32 1, %v4823_v12  ;;  %v6562_v30 = vpop.eup %5400  ;;  %v1791_v0 = vshrl.u32 %v9496_v37, %v1790_v10  ;;  %v6570_v12 = vpop.f32.mrb[31].mxu0 }
 0x3ef   : > { %9510 = vst [vmem:[#allocation36_spill] sm:$0xff] %v6562_v30  ;;  %v1740_v38 = vclz %v4816_v21  ;;  %vm1809_vm13 = vcmp.lt.s32.totalorder %v1788_v41, 3  ;;  %v1812_v48 = vsel %vm1810_vm11, %v1800_v7, 2102212464  ;;  %v1815_v8 = vsel %vm1807_vm10, %v1794_v27, %v1797_v49  ;;  %9511 = vst [vmem:[#allocation37_spill] sm:$0xff] %v6570_v12 }
 0x3f0   : > { %v1816_v35 = vsel %vm1810_vm11, %v1803_v44, 920167782  ;;  %v1819_v52 = vsel %vm1807_vm10, %v1797_v49, %v1800_v7  ;;  %v1820_v9 = vsel %vm1810_vm11, %v1806_v36, 1326507024  ;;  %v6568_v50 = vsel %vm4814_vm9, 0, %v4813_v43 }
 0x3f1   : > { %v4817_v18 = vadd.s32 4294967294, %v1740_v38  ;;  %v1817_v22 = vsel %vm1809_vm13, %v1800_v7, %v1816_v35  ;;  %v1886_v29 = vor.u32 8388608, %v1885_v59  ;;  %vm1808_vm4 = vcmp.lt.s32.totalorder %v1788_v41, 2 }
 0x3f2   : > { %v1811_v21 = vsel %vm1807_vm10, %v1791_v0, %v1794_v27  ;;  %v1813_v10 = vsel %vm1809_vm13, %v1797_v49, %v1812_v48  ;;  %v1821_v1 = vsel %vm1809_vm13, %v1803_v44, %v1820_v9  ;;  %v1818_v2 = vsel %vm1808_vm4, %v1815_v8, %v1817_v22 }
 0x3f3   : > { %vm4818_vm15 = vcmp.lt.s32.totalorder %v4817_v18, 0  ;;  %v1822_v61 = vsel %vm1808_vm4, %v1819_v52, %v1821_v1  ;;  %vm1889_vm0 = vcmp.gt.s32.totalorder %v1888_v39, 0  ;;  %v1641_v30 = vsub.s32 32, %v6568_v50 }
 0x3f4   : > { %v1645_v36 = vsub.s32 4294967266, %v6568_v50  ;;  %v6576_v43 = vmul.u32.u64.low %v6560_v28, %v1822_v61  ;;  %v6577_v38 = vmul.u32.u64.high %v6560_v28, %v1822_v61, %v6576_v43  ;;  %v1548_v7 = vcvt.s32.f32 %v6536_v25 }
 0x3f5   : > { %v1625_v59 = vadd.s32 %v6395_v15, %v6390_v26  ;;  %v1814_v27 = vsel %vm1808_vm4, %v1811_v21, %v1813_v10  ;;  %v1890_v0 = vsel %vm1889_vm0, %v1888_v39, 0  ;;  %v6582_v44 = vsel %vm4818_vm15, 0, %v4817_v18 }
 0x3f6   : > { %v6585_v49 = vmul.u32.u64.low %v6560_v28, %v1818_v2  ;;  %v6586_v41 = vmul.u32.u64.high %v6560_v28, %v1818_v2, %v6585_v49  ;;  %v1892_v48 = vand.u32 31, %v1890_v0  ;;  %v9512_v8 = vand.u32 2147483647, %v6510_v62 }
 0x3f7   : > { %v1728_v25 = vadd.s32 %v6461_v24, %v6473_v55  ;;  %v6595_v52 = vshll.u32 %v1886_v29, 8  ;;  %v6598_v39 = vshrl.u32 %v1625_v59, %v1641_v30  ;;  %v1646_v15 = vadd.s32 127, %v1645_v36 }
 0x3f8   : > { %v6591_v35 = vmul.f32 %v1548_v7, %v9512_v8  ;;  %v1893_v9 = vsub.s32 32, %v1892_v48  ;;  %v1984_v18 = vand.u32 2139095040, %v6532_v6  ;;  %v1748_v22 = vsub.s32 4294967266, %v6582_v44 }
 0x3f9   : > { %v1830_v21 = vmul.u32 %v6560_v28, %v1814_v27  ;;  %vm1832_vm1 = vc.u32 %v6577_v38, %v6585_v49  ;;  %v1895_v62 = vshll.u32 %v9496_v37, %v1892_v48  ;;  %v1833_v24 = vadd.s32 1, %v6586_v41 }
 0x3fa   : > { %v1896_v55 = vshrl.u32 %v9505_v19, %v1893_v9  ;;  %v1898_v30 = vshll.u32 %v9505_v19, %v1892_v48  ;;  %v1899_v29 = vshrl.u32 %v9488_v4, %v1893_v9  ;;  %v1891_v10 = vshrl.u32 %v1890_v0, 5 }
 0x3fb   : > { %v1901_v1 = vshll.u32 %v9488_v4, %v1892_v48  ;;  %v1902_v2 = vshrl.u32 %v9506_v31, %v1893_v9  ;;  %v1904_v28 = vshll.u32 %v9506_v31, %v1892_v48  ;;  %v1834_v61 = vsel %vm1832_vm1, %v1833_v24, %v6586_v41 }
 0x3fc   : > { %v1897_v36 = vor.u32 %v1896_v55, %v1895_v62  ;;  %v1900_v43 = vor.u32 %v1899_v29, %v1898_v30  ;;  %v1905_v7 = vshrl.u32 %v9508_v58, %v1893_v9  ;;  %v1647_v59 = vshll.u32 %v1646_v15, 23 }
 0x3fd   : > { %v1744_v27 = vsub.s32 32, %v6582_v44  ;;  %v1835_v8 = vadd.s32 %v1834_v61, %v1830_v21  ;;  %v1903_v26 = vor.u32 %v1902_v2, %v1901_v1  ;;  %vm9314_vm2 = vcmp.lt.s32.totalorder %v6106_v3, 0 }
 0x3fe   : > { %v1749_v0 = vadd.s32 127, %v1748_v22  ;;  %v1906_v33 = vor.u32 %v1905_v7, %v1904_v28  ;;  %v1907_v40 = vshll.u32 %v9508_v58, %v1892_v48  ;;  %v1908_v12 = vshrl.u32 %v9489_v53, %v1893_v9 }
 0x3ff   : > { %v1836_v14 = vadd.s32 536870912, %v1835_v8  ;;  %vm1910_vm3 = vcmp.lt.s32.totalorder %v1891_v10, 1  ;;  %vm1913_vm7 = vcmp.lt.s32.totalorder %v1891_v10, 4  ;;  %v1985_v41 = vshrl.u32 %v1984_v18, 23 }
 0x400   : > { %v1894_v62 = vshrl.u32 %v9496_v37, %v1893_v9  ;;  %v1909_v24 = vor.u32 %v1908_v12, %v1907_v40  ;;  %v1915_v15 = vsel %vm1913_vm7, %v1903_v26, 2102212464  ;;  %v1918_v55 = vsel %vm1910_vm3, %v1897_v36, %v1900_v43 }
 0x401   : > { %v6620_v30 = vshrl.u32 %v1836_v14, 30  ;;  %vm1911_vm8 = vcmp.lt.s32.totalorder %v1891_v10, 2  ;;  %vm1912_vm9 = vcmp.lt.s32.totalorder %v1891_v10, 3  ;;  %v1919_v21 = vsel %vm1913_vm7, %v1906_v33, 920167782 }
 0x402   : > { %v1914_v22 = vsel %vm1910_vm3, %v1894_v62, %v1897_v36  ;;  %v1920_v29 = vsel %vm1912_vm9, %v1903_v26, %v1919_v21  ;;  %v1922_v1 = vsel %vm1910_vm3, %v1900_v43, %v1903_v26  ;;  %v1923_v48 = vsel %vm1913_vm7, %v1909_v24, 1326507024 }
 0x403   : > { %9513 = vst [vmem:[#allocation38_spill] sm:$0xff] %v6620_v30  ;;  %v1838_v2 = vshll.u32 %v6620_v30, 30  ;;  %v1916_v28 = vsel %vm1912_vm9, %v1900_v43, %v1915_v15  ;;  %v1921_v61 = vsel %vm1911_vm8, %v1918_v55, %v1920_v29  ;;  %v1924_v18 = vsel %vm1912_vm9, %v1906_v33, %v1923_v48 }
 0x404   : > { %v9514_v9 = vand.u32 2147483647, %v6106_v3  ;;  %v9515_v40 = vmov 0  ;;  %v1648_v14 = vor.u32 4788187, %v1647_v59  ;;  %v1925_v12 = vsel %vm1911_vm8, %v1922_v1, %v1924_v18 }
 0x405   : > { %v6632_v36 = vmul.u32.u64.low %v6595_v52, %v1921_v61  ;;  %v6633_v7 = vmul.u32.u64.high %v6595_v52, %v1921_v61, %v6632_v36  ;;  %v1642_v26 = vshll.u32 %v6457_v51, %v6568_v50  ;;  %v6638_v43 = vsub.s32 %v1835_v8, %v1838_v2 }
 0x406   : > { %vm6626_vm10 = vcmp.le.f32.partialorder %v9514_v9, 0.7853982  ;;  %v6641_v33 = vmul.u32.u64.low %v6595_v52, %v1925_v12  ;;  %v6642_v62 = vmul.u32.u64.high %v6595_v52, %v1925_v12, %v6641_v33  ;;  %v1746_v24 = vshrl.u32 %v1728_v25, %v1744_v27 }
 0x407   : > { %v9516_v40 = vsel %vm6626_vm10, 4294967295, %v9515_v40  ;;  %v1750_v15 = vshll.u32 %v1749_v0, 23  ;;  %v1917_v59 = vsel %vm1911_vm8, %v1914_v22, %v1916_v28  ;;  %v4827_v55 = vadd.s32 4294967169, %v1985_v41 }
 0x408   : > { %9517 = vst [vmem:[#allocation39_spill] sm:$0xff] %v9516_v40  ;;  %v9518_v21 = vxor.u32 2147483648, %v6508_v57  ;;  %v1550_v1 = vxor.u32 2147483648, %v6591_v35  ;;  %v1644_v51 = vor.u32 %v6598_v39, %v1642_v26  ;;  %v1841_v50 = vsub.s32 0, %v6638_v43  ;;  %v6662_v39 = vpop.f32.mrb[32].mxu0 }
 0x409   : > { %v1649_v8 = vand.u32 2147483647, %v1648_v14  ;;  %v1745_v25 = vshll.u32 %v6542_v63, %v6582_v44  ;;  %v1936_v10 = vadd.s32 1, %v6633_v7  ;;  %v1991_v27 = vadd.s32 1, %v4827_v55 }
 0x40a   : > { %v1448_v29 = vsel %vm9314_vm2, %v9518_v21, %v6508_v57  ;;  %v4820_v0 = vmin.u32 %v1841_v50, %v6638_v43  ;;  %v1933_v41 = vmul.u32 %v6595_v52, %v1917_v59  ;;  %vm1935_vm11 = vc.u32 %v6642_v62, %v6632_v36 }
 0x40b   : > { %v9519_v57 = vand.u32 2147483647, %v6532_v6  ;;  %v1747_v48 = vor.u32 %v1746_v24, %v1745_v25  ;;  %v1751_v2 = vor.u32 4788187, %v1750_v15  ;;  %v1937_v28 = vsel %vm1935_vm11, %v1936_v10, %v6633_v7 }
 0x40c   : > { %vm1992_vm13 = vcmp.gt.s32.totalorder %v1991_v27, 0  ;;  %v1843_v63 = vclz %v4820_v0  ;;  %v1938_v44 = vadd.s32 %v1937_v28, %v1933_v41  ;;  %v6667_v18 = vadd.f32 %v6232_v47, %v6074_v32 }
 0x40d   : > { %v1988_v22 = vand.u32 8388607, %v9519_v57  ;;  %v1993_v61 = vsel %vm1992_vm13, %v1991_v27, 0  ;;  %5402 = vcosq.f32 %v6527_v17  ;;  %vm9290_vm4 = vcmp.lt.s32.totalorder %v6272_v54, 0 }
 0x40e   : > { %9520 = vst [vmem:[#allocation40_spill] sm:$0xff] %v6667_v18  ;;  %v1651_v52 = vcvt.s32.f32 %v1644_v51  ;;  %v1995_v9 = vand.u32 31, %v1993_v61  ;;  %v6674_v14 = vsel %vm6626_vm10, %v6106_v3, %v1448_v29  ;;  %v6679_v12 = vsel %vm9290_vm4, %v1550_v1, %v6591_v35 }
 0x40f   : > { %v4821_v7 = vadd.s32 4294967294, %v1843_v63  ;;  %v1939_v26 = vadd.s32 536870912, %v1938_v44  ;;  %v1752_v33 = vand.u32 2147483647, %v1751_v2  ;;  %v1754_v24 = vcvt.s32.f32 %v1747_v48 }
 0x410   : > { %v6681_v47 = vmul.f32 %v1651_v52, %v1649_v8  ;;  %v1996_v15 = vsub.s32 32, %v1995_v9  ;;  %v1989_v55 = vor.u32 8388608, %v1988_v22  ;;  %v2087_v21 = vand.u32 2139095040, %v6667_v18 }
 0x411   : > { %vm4822_vm15 = vcmp.lt.s32.totalorder %v4821_v7, 0  ;;  %v6683_v59 = vshrl.u32 %v1939_v26, 30  ;;  %v6686_v29 = vshrl.u32 %v1993_v61, 5  ;;  %v1998_v51 = vshll.u32 %v9496_v37, %v1995_v9 }
 0x412   : > { %v1999_v35 = vshrl.u32 %v9505_v19, %v1996_v15  ;;  %v2002_v1 = vshrl.u32 %v9488_v4, %v1996_v15  ;;  %v2001_v8 = vshll.u32 %v9505_v19, %v1995_v9  ;;  %v2004_v25 = vshll.u32 %v9488_v4, %v1995_v9 }
 0x413   : > { %9521 = vst [vmem:[#allocation41_spill] sm:$0xff] %v6683_v59  ;;  %v1941_v50 = vshll.u32 %v6683_v59, 30  ;;  %v2007_v10 = vshll.u32 %v9506_v31, %v1995_v9  ;;  %v6695_v27 = vsel %vm4822_vm15, 0, %v4821_v7  ;;  %v2005_v0 = vshrl.u32 %v9506_v31, %v1996_v15 }
 0x414   : > { %v2008_v41 = vshrl.u32 %v9508_v58, %v1996_v15  ;;  %v2010_v57 = vshll.u32 %v9508_v58, %v1995_v9  ;;  %v2000_v48 = vor.u32 %v1999_v35, %v1998_v51  ;;  %v2003_v2 = vor.u32 %v2002_v1, %v2001_v8 }
 0x415   : > { %v6700_v22 = vsub.s32 %v1938_v44, %v1941_v50  ;;  %v2011_v28 = vshrl.u32 %v9489_v53, %v1996_v15  ;;  %v1653_v63 = vxor.u32 2147483648, %v6681_v47  ;;  %v1831_v61 = vadd.s32 %v6585_v49, %v6577_v38 }
 0x416   : > { %v2006_v52 = vor.u32 %v2005_v0, %v2004_v25  ;;  %v2009_v7 = vor.u32 %v2008_v41, %v2007_v10  ;;  %v6706_v26 = vmul.f32 %v1754_v24, %v1752_v33  ;;  %v2029_v40 = vshll.u32 %v1989_v55, 8 }
 0x417   : > { %v1944_v59 = vsub.s32 0, %v6700_v22  ;;  %v2012_v30 = vor.u32 %v2011_v28, %v2010_v57  ;;  %v6709_v9 = vpop.eup %5402  ;;  %v9523_v44 = vand.u32 2147483647, %v6272_v54  ;;  %v9524_v51 = vmov 0 }
 0x418   : > { %9522 = vst [vmem:[#allocation42_spill] sm:$0xff] %v6709_v9  ;;  %vm9301_vm1 = vcmp.lt.s32.totalorder %v6280_v20, 0  ;;  %v1847_v38 = vsub.s32 32, %v6695_v27  ;;  %v1997_v49 = vshrl.u32 %v9496_v37, %v1996_v15  ;;  %vm2013_vm3 = vcmp.lt.s32.totalorder %v6686_v29, 1 }
 0x419   : > { %vm6713_vm0 = vcmp.le.f32.partialorder %v9523_v44, 0.7853982  ;;  %v2088_v33 = vshrl.u32 %v2087_v21, 23  ;;  %v4824_v24 = vmin.u32 %v1944_v59, %v6700_v22  ;;  %vm2015_vm7 = vcmp.lt.s32.totalorder %v6686_v29, 3 }
 0x41a   : > { %v9525_v51 = vsel %vm6713_vm0, 4294967295, %v9524_v51  ;;  %vm2016_vm8 = vcmp.lt.s32.totalorder %v6686_v29, 4  ;;  %v2021_v55 = vsel %vm2013_vm3, %v2000_v48, %v2003_v2  ;;  %v2025_v50 = vsel %vm2013_vm3, %v2003_v2, %v2006_v52 }
 0x41b   : > { %9526 = vst [vmem:[#allocation43_spill] sm:$0xff] %v9525_v51  ;;  %v2018_v35 = vsel %vm2016_vm8, %v2006_v52, 2102212464  ;;  %v2022_v1 = vsel %vm2016_vm8, %v2009_v7, 920167782  ;;  %v1851_v15 = vsub.s32 4294967266, %v6695_v27  ;;  %v1946_v25 = vclz %v4824_v24 }
 0x41c   : > { %v2026_v8 = vsel %vm2016_vm8, %v2012_v30, 1326507024  ;;  %vm2014_vm9 = vcmp.lt.s32.totalorder %v6686_v29, 2  ;;  %v2023_v59 = vsel %vm2015_vm7, %v2006_v52, %v2022_v1  ;;  %v9527_v21 = vand.u32 2147483647, %v6280_v20 }
 0x41d   : > { %v9528_v10 = vmov 0  ;;  %v2024_v0 = vsel %vm2014_vm9, %v2021_v55, %v2023_v59  ;;  %v2027_v30 = vsel %vm2015_vm7, %v2009_v7, %v2026_v8  ;;  %v9264_v41 = vand.u32 2147483647, %v6667_v18  ;;  %v6756_v7 = vpop.f32.mrb[33].mxu0 }
 0x41e   : > { %vm6734_vm11 = vcmp.le.f32.partialorder %v9527_v21, 0.7853982  ;;  %v4831_v57 = vadd.s32 4294967169, %v2088_v33  ;;  %v4825_v28 = vadd.s32 4294967294, %v1946_v25  ;;  %v2017_v44 = vsel %vm2013_vm3, %v1997_v49, %v2000_v48 }
 0x41f   : > { %v9529_v10 = vsel %vm6734_vm11, 4294967295, %v9528_v10  ;;  %v2019_v52 = vsel %vm2015_vm7, %v2003_v2, %v2018_v35  ;;  %v2028_v24 = vsel %vm2014_vm9, %v2025_v50, %v2027_v30  ;;  %5404 = vsinq.f32 %v6527_v17 }
 0x420   : > { %9530 = vst [vmem:[#allocation44_spill] sm:$0xff] %v9529_v10  ;;  %v6749_v1 = vmul.u32.u64.low %v2029_v40, %v2028_v24  ;;  %v6750_v21 = vmul.u32.u64.high %v2029_v40, %v2028_v24, %v6749_v1  ;;  %v6752_v55 = vmul.u32.u64.low %v2029_v40, %v2024_v0  ;;  %v6753_v59 = vmul.u32.u64.high %v2029_v40, %v2024_v0, %v6752_v55 }
 0x421   : > { %v1849_v33 = vshrl.u32 %v1831_v61, %v1847_v38  ;;  %v1852_v8 = vadd.s32 127, %v1851_v15  ;;  %v2094_v48 = vadd.s32 1, %v4831_v57  ;;  %5406 = vcosq.f32 %v6674_v14 }
 0x422   : > { %vm9276_vm13 = vcmp.lt.s32.totalorder %v6325_v11, 0  ;;  %v2020_v2 = vsel %vm2014_vm9, %v2017_v44, %v2019_v52  ;;  %v6765_v49 = vadd.f32 %v6291_v45, %v6076_v34  ;;  %v6771_v35 = vsel %vm6713_vm0, %v6272_v54, %v6679_v12 }
 0x423   : > { %v1654_v17 = vsel %vm9301_vm1, %v1653_v63, %v6681_v47  ;;  %v1756_v61 = vxor.u32 2147483648, %v6706_v26  ;;  %v1848_v29 = vshll.u32 %v6638_v43, %v6695_v27  ;;  %vm4826_vm15 = vcmp.lt.s32.totalorder %v4825_v28, 0 }
 0x424   : > { %9531 = vst [vmem:[#allocation45_spill] sm:$0xff] %v6765_v49  ;;  %vm2038_vm3 = vc.u32 %v6750_v21, %v6752_v55  ;;  %v2039_v45 = vadd.s32 1, %v6753_v59  ;;  %v2091_v38 = vand.u32 8388607, %v9264_v41  ;;  %v1853_v50 = vshll.u32 %v1852_v8, 23 }
 0x425   : > { %v6784_v12 = vor.u32 %v1849_v33, %v1848_v29  ;;  %v2036_v15 = vmul.u32 %v2029_v40, %v2020_v2  ;;  %vm2095_vm7 = vcmp.gt.s32.totalorder %v2094_v48, 0  ;;  %5408 = vsinq.f32 %v6674_v14 }
 0x426   : > { %v2040_v47 = vsel %vm2038_vm3, %v2039_v45, %v6753_v59  ;;  %v2096_v63 = vsel %vm2095_vm7, %v2094_v48, 0  ;;  %v2190_v43 = vand.u32 2139095040, %v6765_v49  ;;  %5410 = vcosq.f32 %v6771_v35 }
 0x427   : > { %v6793_v27 = vsel %vm6734_vm11, %v6280_v20, %v1654_v17  ;;  %v6795_v25 = vsel %vm4826_vm15, 0, %v4825_v28  ;;  %v2041_v0 = vadd.s32 %v2040_v47, %v2036_v15  ;;  %v6800_v40 = vsel %vm9276_vm13, %v1756_v61, %v6706_v26 }
 0x428   : > { %v1934_v14 = vadd.s32 %v6632_v36, %v6642_v62  ;;  %v2098_v30 = vand.u32 31, %v2096_v63  ;;  %v1854_v44 = vor.u32 4788187, %v1853_v50  ;;  %v1857_v52 = vcvt.s32.f32 %v6784_v12 }
 0x429   : > { %v2042_v24 = vadd.s32 536870912, %v2041_v0  ;;  %v2092_v1 = vor.u32 8388608, %v2091_v38  ;;  %v1950_v28 = vsub.s32 32, %v6795_v25  ;;  %v1954_v59 = vsub.s32 4294967266, %v6795_v25  ;;  %v6808_v48 = vpop.eup %5404 }
 0x42a   : > { %v2099_v33 = vsub.s32 32, %v2098_v30  ;;  %v2191_v8 = vshrl.u32 %v2190_v43, 23  ;;  %9532 = vst [vmem:[#allocation46_spill] sm:$0xff] %v6808_v48  ;;  %v2097_v2 = vshrl.u32 %v2096_v63, 5  ;;  %v2101_v36 = vshll.u32 %v9496_v37, %v2098_v30 }
 0x42b   : > { %v6810_v26 = vshrl.u32 %v2042_v24, 30  ;;  %v2104_v62 = vshll.u32 %v9505_v19, %v2098_v30  ;;  %v6814_v17 = vpop.eup %5406  ;;  %v2107_v45 = vshll.u32 %v9488_v4, %v2098_v30  ;;  %v2110_v50 = vshll.u32 %v9506_v31, %v2098_v30 }
 0x42c   : > { %9534 = vst [vmem:[#allocation48_spill] sm:$0xff] %v6814_v17  ;;  %v2102_v61 = vshrl.u32 %v9505_v19, %v2099_v33  ;;  %v2105_v29 = vshrl.u32 %v9488_v4, %v2099_v33  ;;  %v2108_v38 = vshrl.u32 %v9506_v31, %v2099_v33  ;;  %v2111_v15 = vshrl.u32 %v9508_v58, %v2099_v33 }
 0x42d   : > { %9533 = vst [vmem:[#allocation47_spill] sm:$0xff] %v6810_v26  ;;  %v2044_v12 = vshll.u32 %v6810_v26, 30  ;;  %v2114_v47 = vshrl.u32 %v9489_v53, %v2099_v33  ;;  %v2113_v41 = vshll.u32 %v9508_v58, %v2098_v30  ;;  %v1855_v57 = vand.u32 2147483647, %v1854_v44 }
 0x42e   : > { %v2103_v63 = vor.u32 %v2102_v61, %v2101_v36  ;;  %v2106_v43 = vor.u32 %v2105_v29, %v2104_v62  ;;  %v2109_v24 = vor.u32 %v2108_v38, %v2107_v45  ;;  %v2112_v54 = vor.u32 %v2111_v15, %v2110_v50  ;;  %v6839_v38 = vpop.f32.mrb[34].mxu0 }
 0x42f   : > { %v6825_v51 = vsub.s32 %v2041_v0, %v2044_v12  ;;  %vm2116_vm8 = vcmp.lt.s32.totalorder %v2097_v2, 1  ;;  %v6827_v10 = vpop.eup %5408  ;;  %v2115_v20 = vor.u32 %v2114_v47, %v2113_v41  ;;  %vm2119_vm9 = vcmp.lt.s32.totalorder %v2097_v2, 4 }
 0x430   : > { %v2124_v26 = vsel %vm2116_vm8, %v2103_v63, %v2106_v43  ;;  %v2132_v9 = vshll.u32 %v2092_v1, 8  ;;  %v6830_v48 = vpop.eup %5410  ;;  %vm2118_vm15 = vcmp.lt.s32.totalorder %v2097_v2, 3  ;;  %v2125_v62 = vsel %vm2119_vm9, %v2112_v54, 920167782 }
 0x431   : > { %9535 = vst [vmem:[#allocation49_spill] sm:$0xff] %v6830_v48  ;;  %v2047_v36 = vsub.s32 0, %v6825_v51  ;;  %v4835_v30 = vadd.s32 4294967169, %v2191_v8  ;;  %v1952_v44 = vshrl.u32 %v1934_v14, %v1950_v28  ;;  %v1955_v0 = vadd.s32 127, %v1954_v59 }
 0x432   : > { %vm2117_vm3 = vcmp.lt.s32.totalorder %v2097_v2, 2  ;;  %v2126_v61 = vsel %vm2118_vm15, %v2109_v24, %v2125_v62  ;;  %v2121_v41 = vsel %vm2119_vm9, %v2109_v24, 2102212464  ;;  %v2128_v1 = vsel %vm2116_vm8, %v2106_v43, %v2109_v24 }
 0x433   : > { %v4828_v29 = vmin.u32 %v2047_v36, %v6825_v51  ;;  %v2127_v45 = vsel %vm2117_vm3, %v2124_v26, %v2126_v61  ;;  %v2100_v12 = vshrl.u32 %v9496_v37, %v2099_v33  ;;  %v2129_v50 = vsel %vm2119_vm9, %v2115_v20, 1326507024 }
 0x434   : > { %v6843_v8 = vmul.u32.u64.low %v2132_v9, %v2127_v45  ;;  %v6844_v14 = vmul.u32.u64.high %v2132_v9, %v2127_v45, %v6843_v8  ;;  %v6847_v28 = vmul.f32 %v1857_v52, %v1855_v57  ;;  %v2130_v15 = vsel %vm2118_vm15, %v2112_v54, %v2129_v50 }
 0x435   : > { %v2049_v59 = vclz %v4828_v29  ;;  %v2197_v47 = vadd.s32 1, %v4835_v30  ;;  %v1951_v26 = vshll.u32 %v6700_v22, %v6795_v25  ;;  %v2120_v24 = vsel %vm2116_vm8, %v2100_v12, %v2103_v63 }
 0x436   : > { %v2122_v36 = vsel %vm2118_vm15, %v2106_v43, %v2121_v41  ;;  %v2131_v33 = vsel %vm2117_vm3, %v2128_v1, %v2130_v15  ;;  %v9536_v61 = vand.u32 2147483647, %v6765_v49  ;;  %v1956_v54 = vshll.u32 %v1955_v0, 23 }
 0x437   : > { %v6855_v20 = vmul.u32.u64.low %v2132_v9, %v2131_v33  ;;  %v6856_v62 = vmul.u32.u64.high %v2132_v9, %v2131_v33, %v6855_v20  ;;  %vm2198_vm7 = vcmp.gt.s32.totalorder %v2197_v47, 0  ;;  %v6860_v52 = vor.u32 %v1952_v44, %v1951_v26 }
 0x438   : > { %v2194_v57 = vand.u32 8388607, %v9536_v61  ;;  %v2199_v30 = vsel %vm2198_vm7, %v2197_v47, 0  ;;  %v6864_v22 = vadd.f32 %v6340_v56, %v6074_v32  ;;  %v4829_v25 = vadd.s32 4294967294, %v2049_v59 }
 0x439   : > { %v2123_v63 = vsel %vm2117_vm3, %v2120_v24, %v2122_v36  ;;  %v2142_v43 = vadd.s32 1, %v6844_v14  ;;  %v2201_v29 = vand.u32 31, %v2199_v30  ;;  %v9538_v41 = vsel %vm6244_vm5, 0, %v6409_v5 }
 0x43a   : > { %9537 = vst [vmem:[#allocation50_spill] sm:$0xff] %v6864_v22  ;;  %v6872_v45 = vand.u32 3, %v9538_v41  ;;  %5412 = vsinq.f32 %v6771_v35  ;;  %v9540_v56 = vand.u32 2147483647, %v6325_v11  ;;  %v9541_v2 = vmov 0 }
 0x43b   : > { %5414 = vcosq.f32 %v6793_v27  ;;  %v2195_v0 = vor.u32 8388608, %v2194_v57  ;;  %v1957_v1 = vor.u32 4788187, %v1956_v54  ;;  %v2139_v12 = vmul.u32 %v2132_v9, %v2123_v63 }
 0x43c   : > { %9539 = vst [vmem:[#allocation51_spill] sm:$0xff] %v6872_v45  ;;  %vm6880_vm8 = vcmp.le.f32.partialorder %v9540_v56, 0.7853982  ;;  %vm2141_vm5 = vc.u32 %v6856_v62, %v6843_v8  ;;  %v2202_v35 = vsub.s32 32, %v2201_v29  ;;  %v1960_v50 = vcvt.s32.f32 %v6860_v52 }
 0x43d   : > { %v9542_v2 = vsel %vm6880_vm8, 4294967295, %v9541_v2  ;;  %v6889_v16 = vsel %vm6880_vm8, %v6325_v11, %v6800_v40  ;;  %vm4830_vm9 = vcmp.lt.s32.totalorder %v4829_v25, 0  ;;  %v2143_v59 = vsel %vm2141_vm5, %v2142_v43, %v6844_v14 }
 0x43e   : > { %9543 = vst [vmem:[#allocation52_spill] sm:$0xff] %v9542_v2  ;;  %v2293_v15 = vand.u32 2139095040, %v6864_v22  ;;  %v2144_v47 = vadd.s32 %v2143_v59, %v2139_v12  ;;  %v2200_v26 = vshrl.u32 %v2199_v30, 5  ;;  %v2205_v40 = vshrl.u32 %v9505_v19, %v2202_v35 }
 0x43f   : > { %v2208_v24 = vshrl.u32 %v9488_v4, %v2202_v35  ;;  %v2204_v36 = vshll.u32 %v9496_v37, %v2201_v29  ;;  %v2207_v9 = vshll.u32 %v9505_v19, %v2201_v29  ;;  %v2210_v33 = vshll.u32 %v9488_v4, %v2201_v29 }
 0x440   : > { %v2211_v20 = vshrl.u32 %v9506_v31, %v2202_v35  ;;  %v6903_v61 = vsel %vm4830_vm9, 0, %v4829_v25  ;;  %v2145_v57 = vadd.s32 536870912, %v2144_v47  ;;  %v2213_v14 = vshll.u32 %v9506_v31, %v2201_v29 }
 0x441   : > { %v2214_v52 = vshrl.u32 %v9508_v58, %v2202_v35  ;;  %v1958_v54 = vand.u32 2147483647, %v1957_v1  ;;  %v2206_v30 = vor.u32 %v2205_v40, %v2204_v36  ;;  %v2209_v63 = vor.u32 %v2208_v24, %v2207_v9 }
 0x442   : > { %v2212_v43 = vor.u32 %v2211_v20, %v2210_v33  ;;  %v6907_v41 = vshrl.u32 %v2145_v57, 30  ;;  %v2216_v12 = vshll.u32 %v9508_v58, %v2201_v29  ;;  %v2217_v59 = vshrl.u32 %v9489_v53, %v2202_v35 }
 0x443   : > { %v2215_v56 = vor.u32 %v2214_v52, %v2213_v14  ;;  %vm9298_vm15 = vcmp.lt.s32.totalorder %v6453_v23, 0  ;;  %v2057_v25 = vsub.s32 4294967266, %v6903_v61  ;;  %vm2222_vm3 = vcmp.lt.s32.totalorder %v2200_v26, 4 }
 0x444   : > { %9544 = vst [vmem:[#allocation53_spill] sm:$0xff] %v6907_v41  ;;  %v2235_v44 = vshll.u32 %v2195_v0, 8  ;;  %v2294_v5 = vshrl.u32 %v2293_v15, 23  ;;  %v6913_v2 = vpop.eup %5412  ;;  %v2147_v1 = vshll.u32 %v6907_v41, 30  ;;  %v2218_v40 = vor.u32 %v2217_v59, %v2216_v12 }
 0x445   : > { %9545 = vst [vmem:[#allocation54_spill] sm:$0xff] %v6913_v2  ;;  %vm2219_vm7 = vcmp.lt.s32.totalorder %v2200_v26, 1  ;;  %v2224_v24 = vsel %vm2222_vm3, %v2212_v43, 2102212464  ;;  %v6917_v36 = vpop.eup %5414  ;;  %v2203_v29 = vshrl.u32 %v9496_v37, %v2202_v35  ;;  %vm2221_vm5 = vcmp.lt.s32.totalorder %v2200_v26, 3  ;;  %v6938_v2 = vpop.f32.mrb[35].mxu0 }
 0x446   : > { %9546 = vst [vmem:[#allocation55_spill] sm:$0xff] %v6917_v36  ;;  %v2227_v9 = vsel %vm2219_vm7, %v2206_v30, %v2209_v63  ;;  %v2228_v33 = vsel %vm2222_vm3, %v2215_v56, 920167782  ;;  %v6921_v20 = vsub.s32 %v2144_v47, %v2147_v1  ;;  %vm2220_vm9 = vcmp.lt.s32.totalorder %v2200_v26, 2 }
 0x447   : > { %v2229_v0 = vsel %vm2221_vm5, %v2212_v43, %v2228_v33  ;;  %v2231_v15 = vsel %vm2219_vm7, %v2209_v63, %v2212_v43  ;;  %v9547_v57 = vand.u32 2147483647, %v6453_v23  ;;  %v9548_v14 = vmov 0 }
 0x448   : > { %v2223_v52 = vsel %vm2219_vm7, %v2203_v29, %v2206_v30  ;;  %v2225_v12 = vsel %vm2221_vm5, %v2209_v63, %v2224_v24  ;;  %v2230_v59 = vsel %vm2220_vm9, %v2227_v9, %v2229_v0  ;;  %v2232_v35 = vsel %vm2222_vm3, %v2218_v40, 1326507024 }
 0x449   : > { %vm6925_vm13 = vcmp.le.f32.partialorder %v9547_v57, 0.7853982  ;;  %v2150_v41 = vsub.s32 0, %v6921_v20  ;;  %v2233_v11 = vsel %vm2221_vm5, %v2215_v56, %v2232_v35  ;;  %v1961_v43 = vmul.f32 %v1960_v50, %v1958_v54 }
 0x44a   : > { %v9549_v14 = vsel %vm6925_vm13, 4294967295, %v9548_v14  ;;  %v6932_v47 = vmul.u32.u64.low %v2235_v44, %v2230_v59  ;;  %v6933_v1 = vmul.u32.u64.high %v2235_v44, %v2230_v59, %v6932_v47  ;;  %v2234_v33 = vsel %vm2220_vm9, %v2231_v15, %v2233_v11 }
 0x44b   : > { %9550 = vst [vmem:[#allocation56_spill] sm:$0xff] %v9549_v14  ;;  %v9283_v57 = vand.u32 2147483647, %v6864_v22  ;;  %v4839_v48 = vadd.s32 4294967169, %v2294_v5  ;;  %5416 = vsinq.f32 %v6793_v27  ;;  %v4832_v30 = vmin.u32 %v2150_v41, %v6921_v20 }
 0x44c   : > { %v6942_v63 = vmul.u32.u64.low %v2235_v44, %v2234_v33  ;;  %v6943_v40 = vmul.u32.u64.high %v2235_v44, %v2234_v33, %v6942_v63  ;;  %v2058_v56 = vadd.s32 127, %v2057_v25  ;;  %v2226_v24 = vsel %vm2220_vm9, %v2223_v52, %v2225_v12 }
 0x44d   : > { %v2300_v29 = vadd.s32 1, %v4839_v48  ;;  %v6948_v50 = vadd.f32 %v6392_v42, %v6076_v34  ;;  %5418 = vcosq.f32 %v6889_v16  ;;  %v9552_v11 = vxor.u32 2147483648, %v6847_v28 }
 0x44e   : > { %vm9289_vm3 = vcmp.lt.s32.totalorder %v6479_v13, 0  ;;  %v2245_v5 = vadd.s32 1, %v6933_v1  ;;  %v1962_v54 = vxor.u32 2147483648, %v1961_v43  ;;  %v2053_v26 = vsub.s32 32, %v6903_v61 }
 0x44f   : > { %9551 = vst [vmem:[#allocation57_spill] sm:$0xff] %v6948_v50  ;;  %v1860_v27 = vsel %vm9298_vm15, %v9552_v11, %v6847_v28  ;;  %v2297_v48 = vand.u32 8388607, %v9283_v57  ;;  %vm2301_vm7 = vcmp.gt.s32.totalorder %v2300_v29, 0  ;;  %v2152_v42 = vclz %v4832_v30 }
 0x450   : > { %v2242_v41 = vmul.u32 %v2235_v44, %v2226_v24  ;;  %vm2244_vm5 = vc.u32 %v6943_v40, %v6932_v47  ;;  %v2302_v25 = vsel %vm2301_vm7, %v2300_v29, 0  ;;  %v2059_v9 = vshll.u32 %v2058_v56, 23 }
 0x451   : > { %v2246_v28 = vsel %vm2244_vm5, %v2245_v5, %v6933_v1  ;;  %v2304_v0 = vand.u32 31, %v2302_v25  ;;  %v2396_v15 = vand.u32 2139095040, %v6948_v50  ;;  %5420 = vsinq.f32 %v6889_v16 }
 0x452   : > { %v6969_v52 = vsel %vm6925_vm13, %v6453_v23, %v1860_v27  ;;  %v2037_v44 = vadd.s32 %v6752_v55, %v6750_v21  ;;  %v2247_v12 = vadd.s32 %v2246_v28, %v2242_v41  ;;  %v6975_v59 = vsel %vm9289_vm3, %v1962_v54, %v1961_v43 }
 0x453   : > { %v2298_v35 = vor.u32 8388608, %v2297_v48  ;;  %v2305_v1 = vsub.s32 32, %v2304_v0  ;;  %v2054_v16 = vshll.u32 %v6825_v51, %v6903_v61  ;;  %v4833_v63 = vadd.s32 4294967294, %v2152_v42 }
 0x454   : > { %v2055_v30 = vshrl.u32 %v2037_v44, %v2053_v26  ;;  %v2248_v56 = vadd.s32 536870912, %v2247_v12  ;;  %v6980_v24 = vor.u32 4788187, %v2059_v9  ;;  %v2397_v55 = vshrl.u32 %v2396_v15, 23 }
 0x455   : > { %v2308_v29 = vshrl.u32 %v9505_v19, %v2305_v1  ;;  %v2311_v21 = vshrl.u32 %v9488_v4, %v2305_v1  ;;  %v6984_v11 = vpop.eup %5416  ;;  %v2307_v27 = vshll.u32 %v9496_v37, %v2304_v0  ;;  %v2310_v5 = vshll.u32 %v9505_v19, %v2304_v0 }
 0x456   : > { %9553 = vst [vmem:[#allocation58_spill] sm:$0xff] %v6984_v11  ;;  %v6986_v43 = vshrl.u32 %v2248_v56, 30  ;;  %v2314_v51 = vshrl.u32 %v9506_v31, %v2305_v1  ;;  %v2303_v61 = vshrl.u32 %v2302_v25, 5  ;;  %v2313_v54 = vshll.u32 %v9488_v4, %v2304_v0 }
 0x457   : > { %v2316_v26 = vshll.u32 %v9506_v31, %v2304_v0  ;;  %v2317_v48 = vshrl.u32 %v9508_v58, %v2305_v1  ;;  %v6994_v42 = vpop.eup %5418  ;;  %vm4834_vm9 = vcmp.lt.s32.totalorder %v4833_v63, 0  ;;  %v2309_v9 = vor.u32 %v2308_v29, %v2307_v27 }
 0x458   : > { %9554 = vst [vmem:[#allocation59_spill] sm:$0xff] %v6986_v43  ;;  %9555 = vst [vmem:[#allocation60_spill] sm:$0xff] %v6994_v42  ;;  %v2250_v41 = vshll.u32 %v6986_v43, 30  ;;  %v2312_v28 = vor.u32 %v2311_v21, %v2310_v5  ;;  %v9556_v15 = vand.u32 2147483647, %v6479_v13  ;;  %v9557_v44 = vmov 0 }
 0x459   : > { %v2315_v25 = vor.u32 %v2314_v51, %v2313_v54  ;;  %v2318_v56 = vor.u32 %v2317_v48, %v2316_v26  ;;  %v2319_v57 = vshll.u32 %v9508_v58, %v2304_v0  ;;  %v2320_v33 = vshrl.u32 %v9489_v53, %v2305_v1 }
 0x45a   : > { %vm6999_vm7 = vcmp.le.f32.partialorder %v9556_v15, 0.7853982  ;;  %v2056_v14 = vor.u32 %v2055_v30, %v2054_v16  ;;  %v2061_v42 = vand.u32 2147483647, %v6980_v24  ;;  %v7006_v36 = vsub.s32 %v2247_v12, %v2250_v41 }
 0x45b   : > { %v9558_v44 = vsel %vm6999_vm7, 4294967295, %v9557_v44  ;;  %v2338_v43 = vshll.u32 %v2298_v35, 8  ;;  %v7008_v29 = vsel %vm4834_vm9, 0, %v4833_v63  ;;  %v2321_v21 = vor.u32 %v2320_v33, %v2319_v57  ;;  %v7010_v5 = vpop.eup %5420 }
 0x45c   : > { %9559 = vst [vmem:[#allocation61_spill] sm:$0xff] %v9558_v44  ;;  %vm2322_vm5 = vcmp.lt.s32.totalorder %v2303_v61, 1  ;;  %v4843_v27 = vadd.s32 4294967169, %v2397_v55  ;;  %9560 = vst [vmem:[#allocation62_spill] sm:$0xff] %v7010_v5  ;;  %v2253_v51 = vsub.s32 0, %v7006_v36  ;;  %vm2324_vm3 = vcmp.lt.s32.totalorder %v2303_v61, 3 }
 0x45d   : > { %vm2325_vm4 = vcmp.lt.s32.totalorder %v2303_v61, 4  ;;  %v2330_v0 = vsel %vm2322_vm5, %v2309_v9, %v2312_v28  ;;  %v2334_v30 = vsel %vm2322_vm5, %v2312_v28, %v2315_v25  ;;  %v2306_v63 = vshrl.u32 %v9496_v37, %v2305_v1 }
 0x45e   : > { %v2327_v54 = vsel %vm2325_vm4, %v2315_v25, 2102212464  ;;  %v2331_v16 = vsel %vm2325_vm4, %v2318_v56, 920167782  ;;  %v2335_v12 = vsel %vm2325_vm4, %v2321_v21, 1326507024  ;;  %v4836_v35 = vmin.u32 %v2253_v51, %v7006_v36 }
 0x45f   : > { %vm2323_vm9 = vcmp.lt.s32.totalorder %v2303_v61, 2  ;;  %v2332_v57 = vsel %vm2324_vm3, %v2315_v25, %v2331_v16  ;;  %v2160_v33 = vsub.s32 4294967266, %v7008_v29  ;;  %v2336_v55 = vsel %vm2324_vm3, %v2318_v56, %v2335_v12 }
 0x460   : > { %v2333_v24 = vsel %vm2323_vm9, %v2330_v0, %v2332_v57  ;;  %v2403_v26 = vadd.s32 1, %v4843_v27  ;;  %v2255_v48 = vclz %v4836_v35  ;;  %v2326_v41 = vsel %vm2322_vm5, %v2306_v63, %v2309_v9  ;;  %v7043_v63 = vpop.f32.mrb[36].mxu0 }
 0x461   : > { %v2328_v15 = vsel %vm2324_vm3, %v2312_v28, %v2327_v54  ;;  %v2337_v21 = vsel %vm2323_vm9, %v2334_v30, %v2336_v55  ;;  %v7027_v1 = vmul.u32.u64.low %v2338_v43, %v2333_v24  ;;  %v7028_v23 = vmul.u32.u64.high %v2338_v43, %v2333_v24, %v7027_v1 }
 0x462   : > { %v7024_v51 = vmul.u32.u64.low %v2338_v43, %v2337_v21  ;;  %v7025_v5 = vmul.u32.u64.high %v2338_v43, %v2337_v21, %v7024_v51  ;;  %v7035_v25 = vsel %vm6999_vm7, %v6479_v13, %v6975_v59  ;;  %v4837_v56 = vadd.s32 4294967294, %v2255_v48 }
 0x463   : > { %v9561_v9 = vand.u32 2147483647, %v6948_v50  ;;  %vm2404_vm4 = vcmp.gt.s32.totalorder %v2403_v26, 0  ;;  %v2063_v28 = vcvt.s32.f32 %v2056_v14  ;;  %v2156_v0 = vsub.s32 32, %v7008_v29  ;;  %v9562_v14 = vld [vmem:[#allocation29_spill] sm:$0xff] }
 0x464   : > { %v2161_v54 = vadd.s32 127, %v2160_v33  ;;  %v2405_v16 = vsel %vm2404_vm4, %v2403_v26, 0  ;;  %v2140_v30 = vadd.s32 %v6843_v8, %v6856_v62  ;;  %vm4838_vm3 = vcmp.lt.s32.totalorder %v4837_v56, 0 }
 0x465   : > { %v2400_v27 = vand.u32 8388607, %v9561_v9  ;;  %v2329_v12 = vsel %vm2323_vm9, %v2326_v41, %v2328_v15  ;;  %v2407_v35 = vand.u32 31, %v2405_v16  ;;  %v7045_v59 = vmul.f32 %v2063_v28, %v2061_v42 }
 0x466   : > { %v7047_v57 = vsel %vm4838_vm3, 0, %v4837_v56  ;;  %vm2347_vm5 = vc.u32 %v7025_v5, %v7027_v1  ;;  %v7053_v33 = vadd.f32 %v9562_v14, %v6074_v32  ;;  %v2157_v8 = vshll.u32 %v6921_v20, %v7008_v29 }
 0x467   : > { %v2243_v62 = vadd.s32 %v6932_v47, %v6943_v40  ;;  %v2348_v61 = vadd.s32 1, %v7028_v23  ;;  %v2401_v24 = vor.u32 8388608, %v2400_v27  ;;  %v2158_v42 = vshrl.u32 %v2140_v30, %v2156_v0 }
 0x468   : > { %9563 = vst [vmem:[#allocation29_spill] sm:$0xff] %v7053_v33  ;;  %v2162_v55 = vshll.u32 %v2161_v54, 23  ;;  %v2345_v26 = vmul.u32 %v2338_v43, %v2329_v12  ;;  %v2408_v48 = vsub.s32 32, %v2407_v35  ;;  %v2263_v41 = vsub.s32 4294967266, %v7047_v57 }
 0x469   : > { %v2349_v15 = vsel %vm2347_vm5, %v2348_v61, %v7028_v23  ;;  %v2406_v21 = vshrl.u32 %v2405_v16, 5  ;;  %v2410_v51 = vshll.u32 %v9496_v37, %v2407_v35  ;;  %v2413_v29 = vshll.u32 %v9505_v19, %v2407_v35 }
 0x46a   : > { %v2350_v56 = vadd.s32 %v2349_v15, %v2345_v26  ;;  %v2411_v20 = vshrl.u32 %v9505_v19, %v2408_v48  ;;  %v2414_v47 = vshrl.u32 %v9488_v4, %v2408_v48  ;;  %v2416_v40 = vshll.u32 %v9488_v4, %v2407_v35 }
 0x46b   : > { %v2417_v9 = vshrl.u32 %v9506_v31, %v2408_v48  ;;  %v2419_v43 = vshll.u32 %v9506_v31, %v2407_v35  ;;  %v2420_v27 = vshrl.u32 %v9508_v58, %v2408_v48  ;;  %v2159_v28 = vor.u32 %v2158_v42, %v2157_v8 }
 0x46c   : > { %v2351_v23 = vadd.s32 536870912, %v2350_v56  ;;  %v2412_v0 = vor.u32 %v2411_v20, %v2410_v51  ;;  %v2415_v54 = vor.u32 %v2414_v47, %v2413_v29  ;;  %v2163_v16 = vor.u32 4788187, %v2162_v55 }
 0x46d   : > { %v2418_v30 = vor.u32 %v2417_v9, %v2416_v40  ;;  %v2421_v12 = vor.u32 %v2420_v27, %v2419_v43  ;;  %v2441_v14 = vshll.u32 %v2401_v24, 8  ;;  %v2422_v26 = vshll.u32 %v9508_v58, %v2407_v35 }
 0x46e   : > { %v7070_v61 = vshrl.u32 %v2351_v23, 30  ;;  %v2423_v15 = vshrl.u32 %v9489_v53, %v2408_v48  ;;  %v2499_v44 = vand.u32 2139095040, %v7053_v33  ;;  %v2259_v13 = vsub.s32 32, %v7047_v57 }
 0x46f   : > { %v2264_v11 = vadd.s32 127, %v2263_v41  ;;  %vm2425_vm9 = vcmp.lt.s32.totalorder %v2406_v21, 1  ;;  %vm2428_vm4 = vcmp.lt.s32.totalorder %v2406_v21, 4  ;;  %vm9313_vm3 = vcmp.lt.s32.totalorder %v6532_v6, 0 }
 0x470   : > { %9564 = vst [vmem:[#allocation63_spill] sm:$0xff] %v7070_v61  ;;  %v2353_v8 = vshll.u32 %v7070_v61, 30  ;;  %v2424_v42 = vor.u32 %v2423_v15, %v2422_v26  ;;  %v2430_v55 = vsel %vm2428_vm4, %v2418_v30, 2102212464  ;;  %v2433_v24 = vsel %vm2425_vm9, %v2412_v0, %v2415_v54 }
 0x471   : > { %v2409_v51 = vshrl.u32 %v9496_v37, %v2408_v48  ;;  %vm2427_vm5 = vcmp.lt.s32.totalorder %v2406_v21, 3  ;;  %v2434_v35 = vsel %vm2428_vm4, %v2421_v12, 920167782  ;;  %v2437_v20 = vsel %vm2425_vm9, %v2415_v54, %v2418_v30 }
 0x472   : > { %v7079_v29 = vsub.s32 %v2350_v56, %v2353_v8  ;;  %vm2426_vm15 = vcmp.lt.s32.totalorder %v2406_v21, 2  ;;  %v2435_v47 = vsel %vm2427_vm5, %v2418_v30, %v2434_v35  ;;  %v2438_v40 = vsel %vm2428_vm4, %v2424_v42, 1326507024  ;;  %v7098_v8 = vpop.f32.mrb[37].mxu0 }
 0x473   : > { %v2429_v41 = vsel %vm2425_vm9, %v2409_v51, %v2412_v0  ;;  %v2431_v9 = vsel %vm2427_vm5, %v2415_v54, %v2430_v55  ;;  %v2436_v43 = vsel %vm2426_vm15, %v2433_v24, %v2435_v47  ;;  %v2439_v27 = vsel %vm2427_vm5, %v2421_v12, %v2438_v40  ;;  %v9569_v40 = vld [vmem:[#allocation37_spill] sm:$0xff] }
 0x474   : > { %v2356_v23 = vsub.s32 0, %v7079_v29  ;;  %v2440_v26 = vsel %vm2426_vm15, %v2437_v20, %v2439_v27  ;;  %v7084_v15 = vmul.u32.u64.low %v2441_v14, %v2436_v43  ;;  %v7085_v61 = vmul.u32.u64.high %v2441_v14, %v2436_v43, %v7084_v15 }
 0x475   : > { %v9565_v48 = vand.u32 2147483647, %v6532_v6  ;;  %v9566_v56 = vmov 0  ;;  %v2065_v0 = vxor.u32 2147483648, %v7045_v59  ;;  %v2500_v12 = vshrl.u32 %v2499_v44, 23 }
 0x476   : > { %v7095_v54 = vmul.u32.u64.low %v2441_v14, %v2440_v26  ;;  %v7096_v30 = vmul.u32.u64.high %v2441_v14, %v2440_v26, %v7095_v54  ;;  %v2164_v42 = vand.u32 2147483647, %v2163_v16  ;;  %v2261_v55 = vshrl.u32 %v2243_v62, %v2259_v13 }
 0x477   : > { %vm7090_vm1 = vcmp.le.f32.partialorder %v9565_v48, 0.7853982  ;;  %v4840_v24 = vmin.u32 %v2356_v23, %v7079_v29  ;;  %v2432_v51 = vsel %vm2426_vm15, %v2429_v41, %v2431_v9  ;;  %v2265_v35 = vshll.u32 %v2264_v11, 23 }
 0x478   : > { %v9567_v56 = vsel %vm7090_vm1, 4294967295, %v9566_v56  ;;  %v9302_v20 = vand.u32 2147483647, %v7053_v33  ;;  %v4847_v47 = vadd.s32 4294967169, %v2500_v12  ;;  %v7105_v43 = vadd.f32 %v9569_v40, %v6076_v34 }
 0x479   : > { %9568 = vst [vmem:[#allocation64_spill] sm:$0xff] %v9567_v56  ;;  %v2166_v27 = vcvt.s32.f32 %v2159_v28  ;;  %v2260_v44 = vshll.u32 %v7006_v36, %v7047_v57  ;;  %v2358_v26 = vclz %v4840_v24  ;;  %v2451_v16 = vadd.s32 1, %v7085_v61 }
 0x47a   : > { %9570 = vst [vmem:[#allocation37_spill] sm:$0xff] %v7105_v43  ;;  %v2066_v13 = vsel %vm9313_vm3, %v2065_v0, %v7045_v59  ;;  %v2448_v62 = vmul.u32 %v2441_v14, %v2432_v51  ;;  %vm2450_vm15 = vc.u32 %v7096_v30, %v7084_v15  ;;  %v2506_v11 = vadd.s32 1, %v4847_v47 }
 0x47b   : > { %v7115_v21 = vmul.f32 %v2166_v27, %v2164_v42  ;;  %v2262_v41 = vor.u32 %v2261_v55, %v2260_v44  ;;  %v4841_v9 = vadd.s32 4294967294, %v2358_v26  ;;  %v2452_v28 = vsel %vm2450_vm15, %v2451_v16, %v7085_v61 }
 0x47c   : > { %v2266_v23 = vor.u32 4788187, %v2265_v35  ;;  %v2453_v36 = vadd.s32 %v2452_v28, %v2448_v62  ;;  %v2503_v57 = vand.u32 8388607, %v9302_v20  ;;  %vm2507_vm9 = vcmp.gt.s32.totalorder %v2506_v11, 0 }
 0x47d   : > { %5422 = vcosq.f32 %v6969_v52  ;;  %vm4842_vm4 = vcmp.lt.s32.totalorder %v4841_v9, 0  ;;  %v2508_v59 = vsel %vm2507_vm9, %v2506_v11, 0  ;;  %v2602_v14 = vand.u32 2139095040, %v7105_v43 }
 0x47e   : > { %5424 = vsinq.f32 %v6969_v52  ;;  %v7123_v48 = vsel %vm4842_vm4, 0, %v4841_v9  ;;  %v2454_v0 = vadd.s32 536870912, %v2453_v36  ;;  %v2510_v54 = vand.u32 31, %v2508_v59 }
 0x47f   : > { %5426 = vcosq.f32 %v7035_v25  ;;  %v7129_v61 = vsel %vm7090_vm1, %v6532_v6, %v2066_v13  ;;  %v2269_v42 = vcvt.s32.f32 %v2262_v41  ;;  %v2267_v55 = vand.u32 2147483647, %v2266_v23 }
 0x480   : > { %v7132_v24 = vshrl.u32 %v2454_v0, 30  ;;  %v2504_v51 = vor.u32 8388608, %v2503_v57  ;;  %v2511_v35 = vsub.s32 32, %v2510_v54  ;;  %v2366_v52 = vsub.s32 4294967266, %v7123_v48 }
 0x481   : > { %v2509_v47 = vshrl.u32 %v2508_v59, 5  ;;  %v2513_v40 = vshll.u32 %v9496_v37, %v2510_v54  ;;  %v2603_v27 = vshrl.u32 %v2602_v14, 23  ;;  %v2516_v16 = vshll.u32 %v9505_v19, %v2510_v54 }
 0x482   : > { %9571 = vst [vmem:[#allocation65_spill] sm:$0xff] %v7132_v24  ;;  %v2456_v44 = vshll.u32 %v7132_v24, 30  ;;  %v2514_v26 = vshrl.u32 %v9505_v19, %v2511_v35  ;;  %v2517_v13 = vshrl.u32 %v9488_v4, %v2511_v35  ;;  %v2519_v62 = vshll.u32 %v9488_v4, %v2510_v54 }
 0x483   : > { %v2520_v11 = vshrl.u32 %v9506_v31, %v2511_v35  ;;  %v2522_v41 = vshll.u32 %v9506_v31, %v2510_v54  ;;  %v2523_v9 = vshrl.u32 %v9508_v58, %v2511_v35  ;;  %v7144_v28 = vmul.f32 %v2269_v42, %v2267_v55 }
 0x484   : > { %v7146_v23 = vsub.s32 %v2453_v36, %v2456_v44  ;;  %v2515_v57 = vor.u32 %v2514_v26, %v2513_v40  ;;  %v2518_v59 = vor.u32 %v2517_v13, %v2516_v16  ;;  %v7148_v20 = vshll.u32 %v2504_v51, 8 }
 0x485   : > { %v2521_v14 = vor.u32 %v2520_v11, %v2519_v62  ;;  %v2524_v0 = vor.u32 %v2523_v9, %v2522_v41  ;;  %v2525_v56 = vshll.u32 %v9508_v58, %v2510_v54  ;;  %v2526_v6 = vshrl.u32 %v9489_v53, %v2511_v35 }
 0x486   : > { %v2459_v24 = vsub.s32 0, %v7146_v23  ;;  %v4851_v45 = vadd.s32 4294967169, %v2603_v27  ;;  %v2362_v36 = vsub.s32 32, %v7123_v48  ;;  %v2367_v42 = vadd.s32 127, %v2366_v52 }
 0x487   : > { %v7154_v17 = vpop.eup %5422  ;;  %vm2528_vm5 = vcmp.lt.s32.totalorder %v2509_v47, 1  ;;  %vm2531_vm15 = vcmp.lt.s32.totalorder %v2509_v47, 4  ;;  %v2527_v40 = vor.u32 %v2526_v6, %v2525_v56  ;;  %v2512_v54 = vshrl.u32 %v9496_v37, %v2511_v35 }
 0x488   : > { %9572 = vst [vmem:[#allocation66_spill] sm:$0xff] %v7154_v17  ;;  %v7157_v55 = vpop.eup %5424  ;;  %v4844_v51 = vmin.u32 %v2459_v24, %v7146_v23  ;;  %v2533_v44 = vsel %vm2531_vm15, %v2521_v14, 2102212464  ;;  %v2536_v26 = vsel %vm2528_vm5, %v2515_v57, %v2518_v59  ;;  %vm2530_vm9 = vcmp.lt.s32.totalorder %v2509_v47, 3 }
 0x489   : > { %9573 = vst [vmem:[#allocation67_spill] sm:$0xff] %v7157_v55  ;;  %v7161_v16 = vpop.eup %5426  ;;  %v2537_v27 = vsel %vm2531_vm15, %v2524_v0, 920167782  ;;  %v2540_v13 = vsel %vm2528_vm5, %v2518_v59, %v2521_v14  ;;  %vm2529_vm4 = vcmp.lt.s32.totalorder %v2509_v47, 2  ;;  %v2541_v11 = vsel %vm2531_vm15, %v2527_v40, 1326507024 }
 0x48a   : > { %9574 = vst [vmem:[#allocation68_spill] sm:$0xff] %v7161_v16  ;;  %v2461_v62 = vclz %v4844_v51  ;;  %v2538_v52 = vsel %vm2530_vm9, %v2521_v14, %v2537_v27  ;;  %v2532_v41 = vsel %vm2528_vm5, %v2512_v54, %v2515_v57  ;;  %v2534_v9 = vsel %vm2530_vm9, %v2518_v59, %v2533_v44  ;;  %v7177_v40 = vpop.f32.mrb[38].mxu0 }
 0x48b   : > { %v2539_v6 = vsel %vm2529_vm4, %v2536_v26, %v2538_v52  ;;  %v2542_v56 = vsel %vm2530_vm9, %v2524_v0, %v2541_v11  ;;  %v2368_v17 = vshll.u32 %v2367_v42, 23  ;;  %v2609_v14 = vadd.s32 1, %v4851_v45 }
 0x48c   : > { %v4845_v24 = vadd.s32 4294967294, %v2461_v62  ;;  %v2543_v12 = vsel %vm2529_vm4, %v2540_v13, %v2542_v56  ;;  %v7169_v16 = vmul.u32.u64.low %v7148_v20, %v2539_v6  ;;  %v7170_v35 = vmul.u32.u64.high %v7148_v20, %v2539_v6, %v7169_v16 }
 0x48d   : > { %v7174_v51 = vmul.u32.u64.low %v7148_v20, %v2543_v12  ;;  %v7175_v55 = vmul.u32.u64.high %v7148_v20, %v2543_v12, %v7174_v51  ;;  %5428 = vsinq.f32 %v7035_v25  ;;  %vm9315_vm5 = vcmp.lt.s32.totalorder %v6667_v18, 0 }
 0x48e   : > { %vm9316_vm15 = vcmp.lt.s32.totalorder %v6765_v49, 0  ;;  %v2346_v57 = vadd.s32 %v7027_v1, %v7025_v5  ;;  %v2271_v59 = vxor.u32 2147483648, %v7144_v28  ;;  %vm4846_vm9 = vcmp.lt.s32.totalorder %v4845_v24, 0 }
 0x48f   : > { %v2535_v0 = vsel %vm2529_vm4, %v2532_v41, %v2534_v9  ;;  %vm2610_vm3 = vcmp.gt.s32.totalorder %v2609_v14, 0  ;;  %5430 = vcosq.f32 %v7129_v61  ;;  %v9575_v45 = vxor.u32 2147483648, %v7115_v21 }
 0x490   : > { %v2364_v12 = vshrl.u32 %v2346_v57, %v2362_v36  ;;  %v9576_v42 = vand.u32 2147483647, %v7105_v43  ;;  %v2369_v5 = vor.u32 4788187, %v2368_v17  ;;  %vm2553_vm2 = vc.u32 %v7175_v55, %v7169_v16 }
 0x491   : > { %v7192_v25 = vsel %vm9315_vm5, %v9575_v45, %v7115_v21  ;;  %v2554_v1 = vadd.s32 1, %v7170_v35  ;;  %v2611_v47 = vsel %vm2610_vm3, %v2609_v14, 0  ;;  %v2363_v26 = vshll.u32 %v7079_v29, %v7123_v48 }
 0x492   : > { %v2606_v44 = vand.u32 8388607, %v9576_v42  ;;  %v7201_v54 = vsel %vm4846_vm9, 0, %v4845_v24  ;;  %v2551_v27 = vmul.u32 %v7148_v20, %v2535_v0  ;;  %v2613_v21 = vand.u32 31, %v2611_v47 }
 0x493   : > { %v7207_v36 = vsel %vm9316_vm15, %v2271_v59, %v7144_v28  ;;  %v2449_v17 = vadd.s32 %v7084_v15, %v7096_v30  ;;  %v2555_v13 = vsel %vm2553_vm2, %v2554_v1, %v7170_v35  ;;  %v7214_v62 = vadd.f32 %v6662_v39, %v6074_v32 }
 0x494   : > { %v2365_v29 = vor.u32 %v2364_v12, %v2363_v26  ;;  %v2556_v48 = vadd.s32 %v2555_v13, %v2551_v27  ;;  %v2607_v52 = vor.u32 8388608, %v2606_v44  ;;  %v2614_v11 = vsub.s32 32, %v2613_v21 }
 0x495   : > { %9577 = vst [vmem:[#allocation69_spill] sm:$0xff] %v7214_v62  ;;  %v2370_v20 = vand.u32 2147483647, %v2369_v5  ;;  %v2469_v41 = vsub.s32 4294967266, %v7201_v54  ;;  %v7217_v9 = vshrl.u32 %v2611_v47, 5  ;;  %v2616_v28 = vshll.u32 %v9496_v37, %v2613_v21 }
 0x496   : > { %v2557_v6 = vadd.s32 536870912, %v2556_v48  ;;  %v2619_v15 = vshll.u32 %v9505_v19, %v2613_v21  ;;  %v2622_v30 = vshll.u32 %v9488_v4, %v2613_v21  ;;  %v2625_v56 = vshll.u32 %v9506_v31, %v2613_v21 }
 0x497   : > { %v2617_v39 = vshrl.u32 %v9505_v19, %v2614_v11  ;;  %v2620_v24 = vshrl.u32 %v9488_v4, %v2614_v11  ;;  %v2623_v35 = vshrl.u32 %v9506_v31, %v2614_v11  ;;  %v2626_v51 = vshrl.u32 %v9508_v58, %v2614_v11  ;;  %v7227_v14 = vpop.eup %5428 }
 0x498   : > { %9578 = vst [vmem:[#allocation70_spill] sm:$0xff] %v7227_v14  ;;  %v2372_v57 = vcvt.s32.f32 %v2365_v29  ;;  %v7229_v59 = vshrl.u32 %v2557_v6, 30  ;;  %v2628_v0 = vshll.u32 %v9508_v58, %v2613_v21  ;;  %v2629_v45 = vshrl.u32 %v9489_v53, %v2614_v11 }
 0x499   : > { %v2618_v12 = vor.u32 %v2617_v39, %v2616_v28  ;;  %v2621_v42 = vor.u32 %v2620_v24, %v2619_v15  ;;  %v2624_v44 = vor.u32 %v2623_v35, %v2622_v30  ;;  %v2627_v5 = vor.u32 %v2626_v51, %v2625_v56  ;;  %v7233_v1 = vpop.eup %5430 }
 0x49a   : > { %9579 = vst [vmem:[#allocation71_spill] sm:$0xff] %v7229_v59  ;;  %9580 = vst [vmem:[#allocation72_spill] sm:$0xff] %v7233_v1  ;;  %v7235_v47 = vmul.f32 %v2372_v57, %v2370_v20  ;;  %v2559_v26 = vshll.u32 %v7229_v59, 30  ;;  %v2630_v27 = vor.u32 %v2629_v45, %v2628_v0  ;;  %v7238_v13 = vshll.u32 %v2607_v52, 8  ;;  %v7268_v0 = vpop.f32.mrb[39].mxu0 }
 0x49b   : > { %v9581_v29 = vand.u32 2147483647, %v6667_v18  ;;  %v9582_v6 = vmov 0  ;;  %v2465_v21 = vsub.s32 32, %v7201_v54  ;;  %v2470_v28 = vadd.s32 127, %v2469_v41 }
 0x49c   : > { %vm2631_vm3 = vcmp.lt.s32.totalorder %v7217_v9, 1  ;;  %v9585_v20 = vand.u32 2147483647, %v6765_v49  ;;  %v9586_v30 = vmov 0  ;;  %v7255_v52 = vsub.s32 %v2556_v48, %v2559_v26 }
 0x49d   : > { %vm7242_vm2 = vcmp.le.f32.partialorder %v9581_v29, 0.7853982  ;;  %vm2634_vm9 = vcmp.lt.s32.totalorder %v7217_v9, 4  ;;  %v2639_v56 = vsel %vm2631_vm3, %v2618_v12, %v2621_v42  ;;  %v2705_v39 = vand.u32 2139095040, %v7214_v62 }
 0x49e   : > { %v9583_v6 = vsel %vm7242_vm2, 4294967295, %v9582_v6  ;;  %vm7251_vm4 = vcmp.le.f32.partialorder %v9585_v20, 0.7853982  ;;  %vm2633_vm5 = vcmp.lt.s32.totalorder %v7217_v9, 3  ;;  %v2640_v41 = vsel %vm2634_vm9, %v2627_v5, 920167782 }
 0x49f   : > { %9584 = vst [vmem:[#allocation73_spill] sm:$0xff] %v9583_v6  ;;  %v9587_v30 = vsel %vm7251_vm4, 4294967295, %v9586_v30  ;;  %v2643_v24 = vsel %vm2631_vm3, %v2621_v42, %v2624_v44  ;;  %v2644_v35 = vsel %vm2634_vm9, %v2630_v27, 1326507024  ;;  %v2562_v51 = vsub.s32 0, %v7255_v52 }
 0x4a0   : > { %9588 = vst [vmem:[#allocation74_spill] sm:$0xff] %v9587_v30  ;;  %vm2632_vm15 = vcmp.lt.s32.totalorder %v7217_v9, 2  ;;  %v2636_v48 = vsel %vm2634_vm9, %v2624_v44, 2102212464  ;;  %v2641_v57 = vsel %vm2633_vm5, %v2624_v44, %v2640_v41  ;;  %v2467_v45 = vshrl.u32 %v2449_v17, %v2465_v21 }
 0x4a1   : > { %v2615_v26 = vshrl.u32 %v9496_v37, %v2614_v11  ;;  %v2642_v29 = vsel %vm2632_vm15, %v2639_v56, %v2641_v57  ;;  %v2645_v20 = vsel %vm2633_vm5, %v2627_v5, %v2644_v35  ;;  %v2471_v27 = vshll.u32 %v2470_v28, 23 }
 0x4a2   : > { %v4848_v15 = vmin.u32 %v2562_v51, %v7255_v52  ;;  %v2646_v59 = vsel %vm2632_vm15, %v2643_v24, %v2645_v20  ;;  %v2706_v14 = vshrl.u32 %v2705_v39, 23  ;;  %v2637_v17 = vsel %vm2633_vm5, %v2621_v42, %v2636_v48 }
 0x4a3   : > { %v2635_v44 = vsel %vm2631_vm3, %v2615_v26, %v2618_v12  ;;  %v7283_v11 = vmul.u32.u64.low %v7238_v13, %v2646_v59  ;;  %v7284_v21 = vmul.u32.u64.high %v7238_v13, %v2646_v59, %v7283_v11  ;;  %5432 = vsinq.f32 %v7129_v61 }
 0x4a4   : > { %v2564_v56 = vclz %v4848_v15  ;;  %v7287_v5 = vmul.u32.u64.low %v7238_v13, %v2642_v29  ;;  %v7288_v28 = vmul.u32.u64.high %v7238_v13, %v2642_v29, %v7287_v5  ;;  %v4855_v41 = vadd.s32 4294967169, %v2706_v14 }
 0x4a5   : > { %v2466_v39 = vshll.u32 %v7146_v23, %v7201_v54  ;;  %v9589_v12 = vand.u32 2147483647, %v7214_v62  ;;  %v7298_v42 = vadd.f32 %v6756_v7, %v6076_v34  ;;  %v2172_v59 = vsel %vm7242_vm2, %v6667_v18, %v7192_v25 }
 0x4a6   : > { %v4849_v15 = vadd.s32 4294967294, %v2564_v56  ;;  %v2638_v14 = vsel %vm2632_vm15, %v2635_v44, %v2637_v17  ;;  %v2712_v61 = vadd.s32 1, %v4855_v41  ;;  %v7310_v23 = vsel %vm7251_vm4, %v6765_v49, %v7207_v36 }
 0x4a7   : > { %v2709_v24 = vand.u32 8388607, %v9589_v12  ;;  %v2374_v54 = vxor.u32 2147483648, %v7235_v47  ;;  %v7313_v7 = vor.u32 %v2467_v45, %v2466_v39  ;;  %vm2656_vm5 = vc.u32 %v7284_v21, %v7287_v5 }
 0x4a8   : > { %v7317_v35 = vor.u32 4788187, %v2471_v27  ;;  %vm4850_vm3 = vcmp.lt.s32.totalorder %v4849_v15, 0  ;;  %v2657_v25 = vadd.s32 1, %v7288_v28  ;;  %vm2713_vm15 = vcmp.gt.s32.totalorder %v2712_v61, 0 }
 0x4a9   : > { %v2654_v9 = vmul.u32 %v7238_v13, %v2638_v14  ;;  %v2710_v51 = vor.u32 8388608, %v2709_v24  ;;  %v2714_v48 = vsel %vm2713_vm15, %v2712_v61, 0  ;;  %v2808_v36 = vand.u32 2139095040, %v7298_v42 }
 0x4aa   : > { %v9590_v57 = vsel %vm6488_vm6, 0, %v6518_v60  ;;  %5434 = vcosq.f32 %v2172_v59  ;;  %vm9330_vm9 = vcmp.lt.s32.totalorder %v6864_v22, 0  ;;  %v2658_v26 = vsel %vm2656_vm5, %v2657_v25, %v7288_v28 }
 0x4ab   : > { %v7326_v45 = vand.u32 3, %v9590_v57  ;;  %5436 = vsinq.f32 %v2172_v59  ;;  %v7330_v29 = vsel %vm4850_vm3, 0, %v4849_v15  ;;  %v2659_v20 = vadd.s32 %v2658_v26, %v2654_v9 }
 0x4ac   : > { %v2716_v13 = vand.u32 31, %v2714_v48  ;;  %5438 = vcosq.f32 %v7310_v23  ;;  %v7336_v46 = vsel %vm9330_vm9, %v2374_v54, %v7235_v47  ;;  %v2473_v60 = vand.u32 2147483647, %v7317_v35 }
 0x4ad   : > { %v2475_v27 = vcvt.s32.f32 %v7313_v7  ;;  %v2660_v44 = vadd.s32 536870912, %v2659_v20  ;;  %v7340_v11 = vshll.u32 %v2710_v51, 8  ;;  %v2809_v56 = vshrl.u32 %v2808_v36, 23  ;;  %v7345_v24 = vpop.eup %5432 }
 0x4ae   : > { %v2717_v17 = vsub.s32 32, %v2716_v13  ;;  %v2572_v28 = vsub.s32 4294967266, %v7330_v29  ;;  %v2715_v41 = vshrl.u32 %v2714_v48, 5  ;;  %v2719_v39 = vshll.u32 %v9496_v37, %v2716_v13 }
 0x4af   : > { %v7347_v47 = vshrl.u32 %v2660_v44, 30  ;;  %v2722_v15 = vshll.u32 %v9505_v19, %v2716_v13  ;;  %v2725_v61 = vshll.u32 %v9488_v4, %v2716_v13  ;;  %v2728_v7 = vshll.u32 %v9506_v31, %v2716_v13 }
 0x4b0   : > { %v2720_v59 = vshrl.u32 %v9505_v19, %v2717_v17  ;;  %v2723_v14 = vshrl.u32 %v9488_v4, %v2717_v17  ;;  %v2726_v54 = vshrl.u32 %v9506_v31, %v2717_v17  ;;  %v2729_v35 = vshrl.u32 %v9508_v58, %v2717_v17 }
 0x4b1   : > { %9591 = vst [vmem:[#allocation75_spill] sm:$0xff] %v7347_v47  ;;  %v2662_v25 = vshll.u32 %v7347_v47, 30  ;;  %v4859_v48 = vadd.s32 4294967169, %v2809_v56  ;;  %v2731_v26 = vshll.u32 %v9508_v58, %v2716_v13  ;;  %v2732_v44 = vshrl.u32 %v9489_v53, %v2717_v17 }
 0x4b2   : > { %v2721_v9 = vor.u32 %v2720_v59, %v2719_v39  ;;  %v2724_v51 = vor.u32 %v2723_v14, %v2722_v15  ;;  %v2727_v36 = vor.u32 %v2726_v54, %v2725_v61  ;;  %v2730_v57 = vor.u32 %v2729_v35, %v2728_v7 }
 0x4b3   : > { %v2568_v12 = vsub.s32 32, %v7330_v29  ;;  %v2573_v6 = vadd.s32 127, %v2572_v28  ;;  %v7360_v18 = vsub.s32 %v2659_v20, %v2662_v25  ;;  %v2718_v30 = vshrl.u32 %v9496_v37, %v2717_v17 }
 0x4b4   : > { %v7363_v49 = vpop.eup %5434  ;;  %v2733_v1 = vor.u32 %v2732_v44, %v2731_v26  ;;  %vm2734_vm6 = vcmp.lt.s32.totalorder %v2715_v41, 1  ;;  %vm2736_vm5 = vcmp.lt.s32.totalorder %v2715_v41, 3  ;;  %vm2737_vm3 = vcmp.lt.s32.totalorder %v2715_v41, 4 }
 0x4b5   : > { %9592 = vst [vmem:[#allocation76_spill] sm:$0xff] %v7363_v49  ;;  %v7365_v56 = vpop.eup %5436  ;;  %v2665_v39 = vsub.s32 0, %v7360_v18  ;;  %v2739_v13 = vsel %vm2737_vm3, %v2727_v36, 2102212464  ;;  %v2742_v59 = vsel %vm2734_vm6, %v2721_v9, %v2724_v51  ;;  %v2743_v15 = vsel %vm2737_vm3, %v2730_v57, 920167782 }
 0x4b6   : > { %9593 = vst [vmem:[#allocation77_spill] sm:$0xff] %v7365_v56  ;;  %v7368_v14 = vpop.eup %5438  ;;  %vm2735_vm15 = vcmp.lt.s32.totalorder %v2715_v41, 2  ;;  %v2744_v20 = vsel %vm2736_vm5, %v2727_v36, %v2743_v15  ;;  %v2746_v28 = vsel %vm2734_vm6, %v2724_v51, %v2727_v36  ;;  %v2815_v17 = vadd.s32 1, %v4859_v48 }
 0x4b7   : > { %9594 = vst [vmem:[#allocation78_spill] sm:$0xff] %v7368_v14  ;;  %v4852_v61 = vmin.u32 %v2665_v39, %v7360_v18  ;;  %v2738_v54 = vsel %vm2734_vm6, %v2718_v30, %v2721_v9  ;;  %v2745_v7 = vsel %vm2735_vm15, %v2742_v59, %v2744_v20  ;;  %v2747_v35 = vsel %vm2737_vm3, %v2733_v1, 1326507024 }
 0x4b8   : > { %v2740_v25 = vsel %vm2736_vm5, %v2724_v51, %v2739_v13  ;;  %v2748_v26 = vsel %vm2736_vm5, %v2730_v57, %v2747_v35  ;;  %v7376_v44 = vmul.u32.u64.low %v7340_v11, %v2745_v7  ;;  %v7377_v47 = vmul.u32.u64.high %v7340_v11, %v2745_v7, %v7376_v44 }
 0x4b9   : > { %v7380_v49 = vmul.f32 %v2475_v27, %v2473_v60  ;;  %v2574_v15 = vshll.u32 %v2573_v6, 23  ;;  %v2667_v36 = vclz %v4852_v61  ;;  %v2749_v48 = vsel %vm2735_vm15, %v2746_v28, %v2748_v26  ;;  %v7407_v61 = vpop.f32.mrb[40].mxu0 }
 0x4ba   : > { %v2552_v30 = vadd.s32 %v7169_v16, %v7175_v55  ;;  %v7386_v1 = vmul.u32.u64.low %v7340_v11, %v2749_v48  ;;  %v7387_v9 = vmul.u32.u64.high %v7340_v11, %v2749_v48, %v7386_v1  ;;  %vm2816_vm6 = vcmp.gt.s32.totalorder %v2815_v17, 0 }
 0x4bb   : > { %v4853_v51 = vadd.s32 4294967294, %v2667_v36  ;;  %v2741_v57 = vsel %vm2735_vm15, %v2738_v54, %v2740_v25  ;;  %v9595_v39 = vand.u32 2147483647, %v7298_v42  ;;  %v2817_v60 = vsel %vm2816_vm6, %v2815_v17, 0 }
 0x4bc   : > { %v2570_v27 = vshrl.u32 %v2552_v30, %v2568_v12  ;;  %v2760_v6 = vadd.s32 1, %v7377_v47  ;;  %v2819_v59 = vand.u32 31, %v2817_v60  ;;  %v7395_v20 = vadd.f32 %v6839_v38, %v6074_v32 }
 0x4bd   : > { %v2812_v13 = vand.u32 8388607, %v9595_v39  ;;  %v2569_v16 = vshll.u32 %v7255_v52, %v7330_v29  ;;  %v7400_v28 = vor.u32 4788187, %v2574_v15  ;;  %vm4854_vm5 = vcmp.lt.s32.totalorder %v4853_v51, 0 }
 0x4be   : > { %9596 = vst [vmem:[#allocation79_spill] sm:$0xff] %v7395_v20  ;;  %v7402_v41 = vsel %vm4854_vm5, 0, %v4853_v51  ;;  %v2757_v17 = vmul.u32 %v7340_v11, %v2741_v57  ;;  %vm2759_vm3 = vc.u32 %v7387_v9, %v7376_v44  ;;  %v2820_v12 = vsub.s32 32, %v2819_v59 }
 0x4bf   : > { %v2655_v38 = vadd.s32 %v7287_v5, %v7284_v21  ;;  %v2761_v54 = vsel %vm2759_vm3, %v2760_v6, %v7377_v47  ;;  %v2813_v7 = vor.u32 8388608, %v2812_v13  ;;  %v7414_v52 = vadd.f32 %v6938_v2, %v6076_v34 }
 0x4c0   : > { %v7416_v29 = vor.u32 %v2570_v27, %v2569_v16  ;;  %v2762_v35 = vadd.s32 %v2761_v54, %v2757_v17  ;;  %v2823_v11 = vshrl.u32 %v9505_v19, %v2820_v12  ;;  %v2675_v26 = vsub.s32 4294967266, %v7402_v41 }
 0x4c1   : > { %9597 = vst [vmem:[#allocation80_spill] sm:$0xff] %v7414_v52  ;;  %v2822_v15 = vshll.u32 %v9496_v37, %v2819_v59  ;;  %v2825_v21 = vshll.u32 %v9505_v19, %v2819_v59  ;;  %v2826_v5 = vshrl.u32 %v9488_v4, %v2820_v12  ;;  %v2828_v2 = vshll.u32 %v9488_v4, %v2819_v59 }
 0x4c2   : > { %v2763_v36 = vadd.s32 536870912, %v2762_v35  ;;  %v2829_v48 = vshrl.u32 %v9506_v31, %v2820_v12  ;;  %v2818_v30 = vshrl.u32 %v2817_v60, 5  ;;  %v7427_v57 = vshll.u32 %v2813_v7, 8 }
 0x4c3   : > { %v2824_v1 = vor.u32 %v2823_v11, %v2822_v15  ;;  %v2827_v51 = vor.u32 %v2826_v5, %v2825_v21  ;;  %v2831_v27 = vshll.u32 %v9506_v31, %v2819_v59  ;;  %v2832_v6 = vshrl.u32 %v9508_v58, %v2820_v12 }
 0x4c4   : > { %v7429_v39 = vshrl.u32 %v2763_v36, 30  ;;  %v2830_v13 = vor.u32 %v2829_v48, %v2828_v2  ;;  %v2676_v16 = vadd.s32 127, %v2675_v26  ;;  %v2834_v17 = vshll.u32 %v9508_v58, %v2819_v59 }
 0x4c5   : > { %v2835_v54 = vshrl.u32 %v9489_v53, %v2820_v12  ;;  %v2911_v47 = vand.u32 2139095040, %v7395_v20  ;;  %v9599_v60 = vand.u32 2147483647, %v6864_v22  ;;  %v9600_v11 = vmov 0 }
 0x4c6   : > { %9598 = vst [vmem:[#allocation81_spill] sm:$0xff] %v7429_v39  ;;  %v2671_v7 = vsub.s32 32, %v7402_v41  ;;  %v2765_v15 = vshll.u32 %v7429_v39, 30  ;;  %v2821_v26 = vshrl.u32 %v9496_v37, %v2820_v12  ;;  %v2833_v21 = vor.u32 %v2832_v6, %v2831_v27 }
 0x4c7   : > { %vm7438_vm15 = vcmp.le.f32.partialorder %v9599_v60, 0.7853982  ;;  %v2836_v59 = vor.u32 %v2835_v54, %v2834_v17  ;;  %vm2837_vm5 = vcmp.lt.s32.totalorder %v2818_v30, 1  ;;  %vm2839_vm3 = vcmp.lt.s32.totalorder %v2818_v30, 3 }
 0x4c8   : > { %v9601_v11 = vsel %vm7438_vm15, 4294967295, %v9600_v11  ;;  %vm2840_vm9 = vcmp.lt.s32.totalorder %v2818_v30, 4  ;;  %v7446_v5 = vsub.s32 %v2762_v35, %v2765_v15  ;;  %v2845_v2 = vsel %vm2837_vm5, %v2824_v1, %v2827_v51 }
 0x4c9   : > { %9602 = vst [vmem:[#allocation82_spill] sm:$0xff] %v9601_v11  ;;  %v2842_v36 = vsel %vm2840_vm9, %v2830_v13, 2102212464  ;;  %v2846_v48 = vsel %vm2840_vm9, %v2833_v21, 920167782  ;;  %v2677_v60 = vshll.u32 %v2676_v16, 23  ;;  %v2849_v25 = vsel %vm2837_vm5, %v2827_v51, %v2830_v13 }
 0x4ca   : > { %vm2838_vm12 = vcmp.lt.s32.totalorder %v2818_v30, 2  ;;  %v2847_v55 = vsel %vm2839_vm3, %v2830_v13, %v2846_v48  ;;  %v2768_v56 = vsub.s32 0, %v7446_v5  ;;  %v2841_v14 = vsel %vm2837_vm5, %v2821_v26, %v2824_v1  ;;  %v7463_v26 = vpop.f32.mrb[41].mxu0 }
 0x4cb   : > { %v2848_v39 = vsel %vm2838_vm12, %v2845_v2, %v2847_v55  ;;  %v2850_v12 = vsel %vm2840_vm9, %v2836_v59, 1326507024  ;;  %v2843_v27 = vsel %vm2839_vm3, %v2827_v51, %v2842_v36  ;;  %v9603_v35 = vand.u32 2147483647, %v6948_v50 }
 0x4cc   : > { %v2851_v6 = vsel %vm2839_vm3, %v2833_v21, %v2850_v12  ;;  %v7451_v17 = vmul.u32.u64.low %v7427_v57, %v2848_v39  ;;  %v7452_v54 = vmul.u32.u64.high %v7427_v57, %v2848_v39, %v7451_v17  ;;  %v9604_v16 = vmov 0 }
 0x4cd   : > { %vm7457_vm6 = vcmp.le.f32.partialorder %v9603_v35, 0.7853982  ;;  %v2673_v13 = vshrl.u32 %v2655_v38, %v2671_v7  ;;  %v4856_v15 = vmin.u32 %v2768_v56, %v7446_v5  ;;  %v2852_v1 = vsel %vm2838_vm12, %v2849_v25, %v2851_v6 }
 0x4ce   : > { %v9605_v16 = vsel %vm7457_vm6, 4294967295, %v9604_v16  ;;  %v2912_v55 = vshrl.u32 %v2911_v47, 23  ;;  %v2678_v51 = vor.u32 4788187, %v2677_v60  ;;  %v9607_v59 = vand.u32 2147483647, %v7395_v20 }
 0x4cf   : > { %9606 = vst [vmem:[#allocation83_spill] sm:$0xff] %v9605_v16  ;;  %v7466_v21 = vmul.u32.u64.low %v7427_v57, %v2852_v1  ;;  %v7467_v39 = vmul.u32.u64.high %v7427_v57, %v2852_v1, %v7466_v21  ;;  %v2672_v2 = vshll.u32 %v7360_v18, %v7402_v41  ;;  %v2770_v48 = vclz %v4856_v15 }
 0x4d0   : > { %v2915_v36 = vand.u32 8388607, %v9607_v59  ;;  %v2844_v38 = vsel %vm2838_vm12, %v2841_v14, %v2843_v27  ;;  %v4863_v56 = vadd.s32 4294967169, %v2912_v55  ;;  %v7478_v25 = vsel %vm7438_vm15, %v6864_v22, %v7336_v46 }
 0x4d1   : > { %v9608_v47 = vxor.u32 2147483648, %v7380_v49  ;;  %vm9609_vm9 = vcmp.lt.s32.totalorder %v6948_v50, 0  ;;  %v2578_v60 = vcvt.s32.f32 %v7416_v29  ;;  %v2863_v18 = vadd.s32 1, %v7452_v54 }
 0x4d2   : > { %v2674_v41 = vor.u32 %v2673_v13, %v2672_v2  ;;  %v4857_v30 = vadd.s32 4294967294, %v2770_v48  ;;  %v2918_v14 = vadd.s32 1, %v4863_v56  ;;  %v3014_v12 = vand.u32 2139095040, %v7414_v52 }
 0x4d3   : > { %v2478_v7 = vsel %vm9609_vm9, %v9608_v47, %v7380_v49  ;;  %v9610_v27 = vand.u32 2147483647, %v7400_v28  ;;  %v2679_v46 = vand.u32 2147483647, %v2678_v51  ;;  %v2860_v35 = vmul.u32 %v7427_v57, %v2844_v38 }
 0x4d4   : > { %vm2862_vm12 = vc.u32 %v7467_v39, %v7451_v17  ;;  %vm4858_vm5 = vcmp.lt.s32.totalorder %v4857_v30, 0  ;;  %v2916_v29 = vor.u32 8388608, %v2915_v36  ;;  %vm2919_vm3 = vcmp.gt.s32.totalorder %v2918_v14, 0 }
 0x4d5   : > { %v7490_v6 = vmul.f32 %v2578_v60, %v9610_v27  ;;  %v2864_v49 = vsel %vm2862_vm12, %v2863_v18, %v7452_v54  ;;  %v7496_v13 = vsel %vm4858_vm5, 0, %v4857_v30  ;;  %v2920_v1 = vsel %vm2919_vm3, %v2918_v14, 0 }
 0x4d6   : > { %v2865_v15 = vadd.s32 %v2864_v49, %v2860_v35  ;;  %v9336_v55 = vand.u32 2147483647, %v7414_v52  ;;  %5440 = vsinq.f32 %v7310_v23  ;;  %v2681_v28 = vcvt.s32.f32 %v2674_v41 }
 0x4d7   : > { %v2778_v51 = vsub.s32 4294967266, %v7496_v13  ;;  %v3015_v57 = vshrl.u32 %v3014_v12, 23  ;;  %5442 = vcosq.f32 %v7478_v25  ;;  %v7505_v54 = vsel %vm7457_vm6, %v6948_v50, %v2478_v7 }
 0x4d8   : > { %v2866_v21 = vadd.s32 536870912, %v2865_v15  ;;  %v2922_v59 = vand.u32 31, %v2920_v1  ;;  %v7508_v2 = vmul.f32 %v2681_v28, %v2679_v46  ;;  %v2758_v23 = vadd.s32 %v7376_v44, %v7387_v9 }
 0x4d9   : > { %v7512_v48 = vshll.u32 %v2916_v29, 8  ;;  %v2774_v38 = vsub.s32 32, %v7496_v13  ;;  %v7519_v7 = vand.u32 8388607, %v9336_v55  ;;  %v2779_v60 = vadd.s32 127, %v2778_v51 }
 0x4da   : > { %v7515_v56 = vshrl.u32 %v2866_v21, 30  ;;  %v2923_v47 = vsub.s32 32, %v2922_v59  ;;  %v2921_v18 = vshrl.u32 %v2920_v1, 5  ;;  %v2925_v41 = vshll.u32 %v9496_v37, %v2922_v59 }
 0x4db   : > { %v4867_v30 = vadd.s32 4294967169, %v3015_v57  ;;  %v2928_v9 = vshll.u32 %v9505_v19, %v2922_v59  ;;  %v2931_v27 = vshll.u32 %v9488_v4, %v2922_v59  ;;  %v2934_v35 = vshll.u32 %v9506_v31, %v2922_v59 }
 0x4dc   : > { %9611 = vst [vmem:[#allocation84_spill] sm:$0xff] %v7515_v56  ;;  %v2868_v14 = vshll.u32 %v7515_v56, 30  ;;  %v2926_v44 = vshrl.u32 %v9505_v19, %v2923_v47  ;;  %v2929_v12 = vshrl.u32 %v9488_v4, %v2923_v47  ;;  %v2932_v46 = vshrl.u32 %v9506_v31, %v2923_v47 }
 0x4dd   : > { %v2935_v49 = vshrl.u32 %v9508_v58, %v2923_v47  ;;  %v2776_v29 = vshrl.u32 %v2758_v23, %v2774_v38  ;;  %v2937_v55 = vshll.u32 %v9508_v58, %v2922_v59  ;;  %v2938_v36 = vshrl.u32 %v9489_v53, %v2923_v47 }
 0x4de   : > { %v7530_v1 = vsub.s32 %v2865_v15, %v2868_v14  ;;  %v2927_v28 = vor.u32 %v2926_v44, %v2925_v41  ;;  %v2930_v51 = vor.u32 %v2929_v12, %v2928_v9  ;;  %v2933_v57 = vor.u32 %v2932_v46, %v2931_v27 }
 0x4df   : > { %v2936_v21 = vor.u32 %v2935_v49, %v2934_v35  ;;  %v2780_v56 = vshll.u32 %v2779_v60, 23  ;;  %vm2940_vm12 = vcmp.lt.s32.totalorder %v2921_v18, 1  ;;  %vm2943_vm5 = vcmp.lt.s32.totalorder %v2921_v18, 4  ;;  %v7550_v49 = vpop.f32.mrb[42].mxu0 }
 0x4e0   : > { %v2871_v11 = vsub.s32 0, %v7530_v1  ;;  %v7536_v22 = vpop.eup %5440  ;;  %v2924_v15 = vshrl.u32 %v9496_v37, %v2923_v47  ;;  %v2939_v23 = vor.u32 %v2938_v36, %v2937_v55  ;;  %v2945_v38 = vsel %vm2943_vm5, %v2933_v57, 2102212464 }
 0x4e1   : > { %v2948_v41 = vsel %vm2940_vm12, %v2927_v28, %v2930_v51  ;;  %v7539_v14 = vpop.eup %5442  ;;  %vm2942_vm3 = vcmp.lt.s32.totalorder %v2921_v18, 3  ;;  %v2949_v59 = vsel %vm2943_vm5, %v2936_v21, 920167782  ;;  %v2952_v9 = vsel %vm2940_vm12, %v2930_v51, %v2933_v57 }
 0x4e2   : > { %9612 = vst [vmem:[#allocation85_spill] sm:$0xff] %v7539_v14  ;;  %v4860_v44 = vmin.u32 %v2871_v11, %v7530_v1  ;;  %v9613_v60 = vand.u32 2147483647, %v7053_v33  ;;  %v9614_v12 = vmov 0  ;;  %vm2941_vm15 = vcmp.lt.s32.totalorder %v2921_v18, 2 }
 0x4e3   : > { %v2944_v27 = vsel %vm2940_vm12, %v2924_v15, %v2927_v28  ;;  %v2950_v46 = vsel %vm2942_vm3, %v2933_v57, %v2949_v59  ;;  %v2953_v47 = vsel %vm2943_vm5, %v2939_v23, 1326507024  ;;  %vm9352_vm6 = vcmp.lt.s32.totalorder %v7105_v43, 0 }
 0x4e4   : > { %vm7544_vm9 = vcmp.le.f32.partialorder %v9613_v60, 0.7853982  ;;  %v2873_v55 = vclz %v4860_v44  ;;  %v2946_v36 = vsel %vm2942_vm3, %v2930_v51, %v2945_v38  ;;  %v2951_v35 = vsel %vm2941_vm15, %v2948_v41, %v2950_v46 }
 0x4e5   : > { %v9615_v12 = vsel %vm7544_vm9, 4294967295, %v9614_v12  ;;  %v2954_v11 = vsel %vm2942_vm3, %v2936_v21, %v2953_v47  ;;  %v2775_v14 = vshll.u32 %v7446_v5, %v7496_v13  ;;  %v2781_v28 = vor.u32 4788187, %v2780_v56 }
 0x4e6   : > { %9616 = vst [vmem:[#allocation86_spill] sm:$0xff] %v9615_v12  ;;  %v2955_v60 = vsel %vm2941_vm15, %v2952_v9, %v2954_v11  ;;  %v7556_v16 = vmul.u32.u64.low %v7512_v48, %v2951_v35  ;;  %v7557_v50 = vmul.u32.u64.high %v7512_v48, %v2951_v35, %v7556_v16  ;;  %v4861_v57 = vadd.s32 4294967294, %v2873_v55 }
 0x4e7   : > { %v7561_v15 = vmul.u32.u64.low %v7512_v48, %v2955_v60  ;;  %v7562_v51 = vmul.u32.u64.high %v7512_v48, %v2955_v60, %v7561_v15  ;;  %5444 = vsinq.f32 %v7478_v25  ;;  %v2947_v21 = vsel %vm2941_vm15, %v2944_v27, %v2946_v36 }
 0x4e8   : > { %v3021_v23 = vadd.s32 1, %v4867_v30  ;;  %v7568_v5 = vadd.f32 %v7043_v63, %v6074_v32  ;;  %5446 = vcosq.f32 %v7505_v54  ;;  %v9618_v13 = vxor.u32 2147483648, %v7490_v6 }
 0x4e9   : > { %vm9619_vm12 = vcmp.lt.s32.totalorder %v7053_v33, 0  ;;  %v2777_v38 = vor.u32 %v2776_v29, %v2775_v14  ;;  %vm4862_vm5 = vcmp.lt.s32.totalorder %v4861_v57, 0  ;;  %v2683_v41 = vxor.u32 2147483648, %v7508_v2 }
 0x4ea   : > { %9617 = vst [vmem:[#allocation87_spill] sm:$0xff] %v7568_v5  ;;  %v2581_v56 = vsel %vm9619_vm12, %v9618_v13, %v7490_v6  ;;  %v7577_v25 = vsel %vm4862_vm5, 0, %v4861_v57  ;;  %v2966_v18 = vadd.s32 1, %v7557_v50  ;;  %vm3022_vm15 = vcmp.gt.s32.totalorder %v3021_v23, 0 }
 0x4eb   : > { %5448 = vsinq.f32 %v7505_v54  ;;  %v2782_v63 = vand.u32 2147483647, %v2781_v28  ;;  %v2963_v30 = vmul.u32 %v7512_v48, %v2947_v21  ;;  %v3019_v44 = vor.u32 8388608, %v7519_v7 }
 0x4ec   : > { %vm2965_vm3 = vc.u32 %v7562_v51, %v7556_v16  ;;  %v3023_v6 = vsel %vm3022_vm15, %v3021_v23, 0  ;;  %v9348_v29 = vand.u32 2147483647, %v7568_v5  ;;  %v3117_v14 = vand.u32 2139095040, %v7568_v5 }
 0x4ed   : > { %v7590_v59 = vsel %vm7544_vm9, %v7053_v33, %v2581_v56  ;;  %v2784_v9 = vcvt.s32.f32 %v2777_v38  ;;  %v2881_v54 = vsub.s32 4294967266, %v7577_v25  ;;  %v2967_v48 = vsel %vm2965_vm3, %v2966_v18, %v7557_v50 }
 0x4ee   : > { %v7597_v7 = vsel %vm9352_vm6, %v2683_v41, %v7508_v2  ;;  %v2861_v27 = vadd.s32 %v7451_v17, %v7467_v39  ;;  %v2968_v46 = vadd.s32 %v2967_v48, %v2963_v30  ;;  %v3025_v47 = vand.u32 31, %v3023_v6 }
 0x4ef   : > { %v7601_v55 = vmul.f32 %v2784_v9, %v2782_v63  ;;  %v2877_v36 = vsub.s32 32, %v7577_v25  ;;  %v2878_v35 = vshll.u32 %v7530_v1, %v7577_v25  ;;  %v7606_v11 = vshll.u32 %v3019_v44, 8 }
 0x4f0   : > { %v2969_v50 = vadd.s32 536870912, %v2968_v46  ;;  %v3026_v60 = vsub.s32 32, %v3025_v47  ;;  %v3118_v28 = vshrl.u32 %v3117_v14, 23  ;;  %v7610_v2 = vand.u32 8388607, %v9348_v29 }
 0x4f1   : > { %v2882_v57 = vadd.s32 127, %v2881_v54  ;;  %v3024_v17 = vshrl.u32 %v3023_v6, 5  ;;  %v3028_v39 = vshll.u32 %v9496_v37, %v3025_v47  ;;  %v3031_v15 = vshll.u32 %v9505_v19, %v3025_v47  ;;  %v7614_v21 = vpop.eup %5444 }
 0x4f2   : > { %9620 = vst [vmem:[#allocation88_spill] sm:$0xff] %v7614_v21  ;;  %v7616_v23 = vshrl.u32 %v2969_v50, 30  ;;  %v3029_v1 = vshrl.u32 %v9505_v19, %v3026_v60  ;;  %v3032_v13 = vshrl.u32 %v9488_v4, %v3026_v60  ;;  %v3034_v56 = vshll.u32 %v9488_v4, %v3025_v47  ;;  %v7621_v38 = vpop.eup %5446 }
 0x4f3   : > { %9622 = vst [vmem:[#allocation90_spill] sm:$0xff] %v7621_v38  ;;  %v3035_v41 = vshrl.u32 %v9506_v31, %v3026_v60  ;;  %v3037_v25 = vshll.u32 %v9506_v31, %v3025_v47  ;;  %v3038_v18 = vshrl.u32 %v9508_v58, %v3026_v60  ;;  %v3040_v63 = vshll.u32 %v9508_v58, %v3025_v47 }
 0x4f4   : > { %9621 = vst [vmem:[#allocation89_spill] sm:$0xff] %v7616_v23  ;;  %v2971_v30 = vshll.u32 %v7616_v23, 30  ;;  %v3030_v44 = vor.u32 %v3029_v1, %v3028_v39  ;;  %v3033_v6 = vor.u32 %v3032_v13, %v3031_v15  ;;  %v3041_v14 = vshrl.u32 %v9489_v53, %v3026_v60 }
 0x4f5   : > { %v7629_v9 = vpop.eup %5448  ;;  %v9623_v54 = vand.u32 2147483647, %v7105_v43  ;;  %v9624_v48 = vmov 0  ;;  %v2883_v50 = vshll.u32 %v2882_v57, 23  ;;  %v3036_v29 = vor.u32 %v3035_v41, %v3034_v56 }
 0x4f6   : > { %v3039_v12 = vor.u32 %v3038_v18, %v3037_v25  ;;  %vm3043_vm5 = vcmp.lt.s32.totalorder %v3024_v17, 1  ;;  %v7637_v33 = vsub.s32 %v2968_v46, %v2971_v30  ;;  %v3042_v47 = vor.u32 %v3041_v14, %v3040_v63 }
 0x4f7   : > { %vm7633_vm12 = vcmp.le.f32.partialorder %v9623_v54, 0.7853982  ;;  %vm3044_vm15 = vcmp.lt.s32.totalorder %v3024_v17, 2  ;;  %vm3046_vm3 = vcmp.lt.s32.totalorder %v3024_v17, 4  ;;  %vm3045_vm6 = vcmp.lt.s32.totalorder %v3024_v17, 3 }
 0x4f8   : > { %v9625_v48 = vsel %vm7633_vm12, 4294967295, %v9624_v48  ;;  %v3048_v39 = vsel %vm3046_vm3, %v3036_v29, 2102212464  ;;  %v3051_v15 = vsel %vm3043_vm5, %v3030_v44, %v3033_v6  ;;  %v3052_v1 = vsel %vm3046_vm3, %v3039_v12, 920167782 }
 0x4f9   : > { %9626 = vst [vmem:[#allocation91_spill] sm:$0xff] %v9625_v48  ;;  %v2974_v13 = vsub.s32 0, %v7637_v33  ;;  %v3027_v54 = vshrl.u32 %v9496_v37, %v3026_v60  ;;  %v3053_v23 = vsel %vm3045_vm6, %v3036_v29, %v3052_v1  ;;  %v3055_v57 = vsel %vm3043_vm5, %v3033_v6, %v3036_v29 }
 0x4fa   : > { %vm9359_vm9 = vcmp.lt.s32.totalorder %v7214_v62, 0  ;;  %v2879_v46 = vshrl.u32 %v2861_v27, %v2877_v36  ;;  %v3054_v56 = vsel %vm3044_vm15, %v3051_v15, %v3053_v23  ;;  %v3056_v41 = vsel %vm3046_vm3, %v3042_v47, 1326507024  ;;  %v7661_v23 = vpop.f32.mrb[43].mxu0 }
 0x4fb   : > { %v4871_v25 = vadd.s32 4294967169, %v3118_v28  ;;  %v4864_v18 = vmin.u32 %v2974_v13, %v7637_v33  ;;  %v3047_v63 = vsel %vm3043_vm5, %v3027_v54, %v3030_v44  ;;  %v3049_v30 = vsel %vm3045_vm6, %v3033_v6, %v3048_v39 }
 0x4fc   : > { %v3057_v14 = vsel %vm3045_vm6, %v3039_v12, %v3056_v41  ;;  %v2884_v60 = vor.u32 4788187, %v2883_v50  ;;  %v7652_v29 = vmul.u32.u64.low %v7606_v11, %v3054_v56  ;;  %v7653_v21 = vmul.u32.u64.high %v7606_v11, %v3054_v56, %v7652_v29 }
 0x4fd   : > { %v3058_v1 = vsel %vm3044_vm15, %v3055_v57, %v3057_v14  ;;  %5450 = vcosq.f32 %v7590_v59  ;;  %v2976_v27 = vclz %v4864_v18  ;;  %v2880_v12 = vor.u32 %v2879_v46, %v2878_v35 }
 0x4fe   : > { %v7658_v36 = vmul.u32.u64.low %v7606_v11, %v3058_v1  ;;  %v7659_v28 = vmul.u32.u64.high %v7606_v11, %v3058_v1, %v7658_v36  ;;  %5452 = vsinq.f32 %v7590_v59  ;;  %v3050_v44 = vsel %vm3044_vm15, %v3047_v63, %v3049_v30 }
 0x4ff   : > { %v3124_v6 = vadd.s32 1, %v4871_v25  ;;  %v7669_v50 = vsel %vm7633_vm12, %v7105_v43, %v7597_v7  ;;  %v2786_v47 = vxor.u32 2147483648, %v7601_v55  ;;  %v4865_v39 = vadd.s32 4294967294, %v2976_v27 }
 0x500   : > { %v7674_v15 = vadd.f32 %v7098_v8, %v6076_v34  ;;  %v2885_v13 = vand.u32 2147483647, %v2884_v60  ;;  %v3069_v59 = vadd.s32 1, %v7653_v21  ;;  %v3122_v35 = vor.u32 8388608, %v7610_v2 }
 0x501   : > { %vm3125_vm6 = vcmp.gt.s32.totalorder %v3124_v6, 0  ;;  %vm4866_vm5 = vcmp.lt.s32.totalorder %v4865_v39, 0  ;;  %v3066_v17 = vmul.u32 %v7606_v11, %v3050_v44  ;;  %vm3068_vm15 = vc.u32 %v7659_v28, %v7652_v29 }
 0x502   : > { %v3126_v7 = vsel %vm3125_vm6, %v3124_v6, 0  ;;  %v2887_v54 = vcvt.s32.f32 %v2880_v12  ;;  %v7681_v57 = vsel %vm4866_vm5, 0, %v4865_v39  ;;  %v3070_v46 = vsel %vm3068_vm15, %v3069_v59, %v7653_v21 }
 0x503   : > { %v3128_v8 = vand.u32 31, %v3126_v7  ;;  %5454 = vcosq.f32 %v7669_v50  ;;  %v7688_v2 = vsel %vm9359_vm9, %v2786_v47, %v7601_v55  ;;  %v2964_v11 = vadd.s32 %v7556_v16, %v7562_v51 }
 0x504   : > { %v3071_v56 = vadd.s32 %v3070_v46, %v3066_v17  ;;  %v7692_v41 = vmul.f32 %v2887_v54, %v2885_v13  ;;  %v7694_v18 = vshll.u32 %v3122_v35, 8  ;;  %v2984_v21 = vsub.s32 4294967266, %v7681_v57 }
 0x505   : > { %v3129_v25 = vsub.s32 32, %v3128_v8  ;;  %v3131_v14 = vshll.u32 %v9496_v37, %v3128_v8  ;;  %v3134_v60 = vshll.u32 %v9505_v19, %v3128_v8  ;;  %v3137_v16 = vshll.u32 %v9488_v4, %v3128_v8 }
 0x506   : > { %v3072_v30 = vadd.s32 536870912, %v3071_v56  ;;  %v3127_v12 = vshrl.u32 %v3126_v7, 5  ;;  %v3140_v44 = vshll.u32 %v9506_v31, %v3128_v8  ;;  %v3220_v35 = vand.u32 2139095040, %v7674_v15 }
 0x507   : > { %v3132_v55 = vshrl.u32 %v9505_v19, %v3129_v25  ;;  %v3135_v1 = vshrl.u32 %v9488_v4, %v3129_v25  ;;  %v3138_v51 = vshrl.u32 %v9506_v31, %v3129_v25  ;;  %v7704_v27 = vpop.eup %5450  ;;  %v3141_v6 = vshrl.u32 %v9508_v58, %v3129_v25 }
 0x508   : > { %9627 = vst [vmem:[#allocation92_spill] sm:$0xff] %v7704_v27  ;;  %v7706_v36 = vshrl.u32 %v3072_v30, 30  ;;  %v7710_v47 = vpop.eup %5452  ;;  %v2985_v17 = vadd.s32 127, %v2984_v21  ;;  %v7716_v30 = vadd.f32 %v7177_v40, %v6074_v32  ;;  %v9631_v7 = vand.u32 2147483647, %v7214_v62 }
 0x509   : > { %9629 = vst [vmem:[#allocation94_spill] sm:$0xff] %v7710_v47  ;;  %v3133_v39 = vor.u32 %v3132_v55, %v3131_v14  ;;  %v3136_v13 = vor.u32 %v3135_v1, %v3134_v60  ;;  %v3139_v59 = vor.u32 %v3138_v51, %v3137_v16  ;;  %v3142_v46 = vor.u32 %v3141_v6, %v3140_v44 }
 0x50a   : > { %9628 = vst [vmem:[#allocation93_spill] sm:$0xff] %v7706_v36  ;;  %v3074_v54 = vshll.u32 %v7706_v36, 30  ;;  %9630 = vst [vmem:[#allocation95_spill] sm:$0xff] %v7716_v30  ;;  %vm7720_vm3 = vcmp.le.f32.partialorder %v9631_v7, 0.7853982  ;;  %v9632_v63 = vmov 0  ;;  %v3130_v60 = vshrl.u32 %v9496_v37, %v3129_v25 }
 0x50b   : > { %v9633_v63 = vsel %vm7720_vm3, 4294967295, %v9632_v63  ;;  %v2980_v14 = vsub.s32 32, %v7681_v57  ;;  %v3143_v55 = vshll.u32 %v9508_v58, %v3128_v8  ;;  %v3144_v21 = vshrl.u32 %v9489_v53, %v3129_v25 }
 0x50c   : > { %9634 = vst [vmem:[#allocation96_spill] sm:$0xff] %v9633_v63  ;;  %v7728_v1 = vsub.s32 %v3071_v56, %v3074_v54  ;;  %vm3146_vm6 = vcmp.lt.s32.totalorder %v3127_v12, 1  ;;  %vm3148_vm5 = vcmp.lt.s32.totalorder %v3127_v12, 3  ;;  %vm3149_vm15 = vcmp.lt.s32.totalorder %v3127_v12, 4 }
 0x50d   : > { %v3145_v40 = vor.u32 %v3144_v21, %v3143_v55  ;;  %v3151_v16 = vsel %vm3149_vm15, %v3139_v59, 2102212464  ;;  %v3154_v51 = vsel %vm3146_vm6, %v3133_v39, %v3136_v13  ;;  %v3155_v44 = vsel %vm3149_vm15, %v3142_v46, 920167782  ;;  %v7731_v6 = vpop.eup %5454 }
 0x50e   : > { %9635 = vst [vmem:[#allocation97_spill] sm:$0xff] %v7731_v6  ;;  %v2986_v7 = vshll.u32 %v2985_v17, 23  ;;  %v3077_v36 = vsub.s32 0, %v7728_v1  ;;  %vm3147_vm9 = vcmp.lt.s32.totalorder %v3127_v12, 2  ;;  %v3156_v8 = vsel %vm3148_vm5, %v3139_v59, %v3155_v44 }
 0x50f   : > { %v2982_v27 = vshrl.u32 %v2964_v11, %v2980_v14  ;;  %v3157_v56 = vsel %vm3147_vm9, %v3154_v51, %v3156_v8  ;;  %v3158_v25 = vsel %vm3146_vm6, %v3136_v13, %v3139_v59  ;;  %v3159_v54 = vsel %vm3149_vm15, %v3145_v40, 1326507024 }
 0x510   : > { %v4868_v55 = vmin.u32 %v3077_v36, %v7728_v1  ;;  %v3150_v21 = vsel %vm3146_vm6, %v3130_v60, %v3133_v39  ;;  %v3152_v47 = vsel %vm3148_vm5, %v3136_v13, %v3151_v16  ;;  %v3160_v6 = vsel %vm3148_vm5, %v3142_v46, %v3159_v54 }
 0x511   : > { %vm9372_vm12 = vcmp.lt.s32.totalorder %v7298_v42, 0  ;;  %v3161_v17 = vsel %vm3147_vm9, %v3158_v25, %v3160_v6  ;;  %v7744_v44 = vmul.u32.u64.low %v7694_v18, %v3157_v56  ;;  %v7745_v11 = vmul.u32.u64.high %v7694_v18, %v3157_v56, %v7744_v44 }
 0x512   : > { %v3221_v14 = vshrl.u32 %v3220_v35, 23  ;;  %v2987_v59 = vor.u32 4788187, %v2986_v7  ;;  %v3079_v40 = vclz %v4868_v55  ;;  %v2981_v39 = vshll.u32 %v7637_v33, %v7681_v57 }
 0x513   : > { %v7749_v36 = vmul.u32.u64.low %v7694_v18, %v3161_v17  ;;  %v7750_v51 = vmul.u32.u64.high %v7694_v18, %v3161_v17, %v7749_v36  ;;  %v3153_v13 = vsel %vm3147_vm9, %v3150_v21, %v3152_v47  ;;  %v9636_v60 = vand.u32 2147483647, %v7674_v15  ;;  %v7767_v47 = vpop.f32.mrb[44].mxu0 }
 0x514   : > { %v4875_v46 = vadd.s32 4294967169, %v3221_v14  ;;  %5456 = vsinq.f32 %v7669_v50  ;;  %v7762_v35 = vsel %vm7720_vm3, %v7214_v62, %v7688_v2  ;;  %v4869_v6 = vadd.s32 4294967294, %v3079_v40 }
 0x515   : > { %v3224_v16 = vand.u32 8388607, %v9636_v60  ;;  %v3323_v7 = vand.u32 2139095040, %v7716_v30  ;;  %v2889_v8 = vxor.u32 2147483648, %v7692_v41  ;;  %v2983_v33 = vor.u32 %v2982_v27, %v2981_v39 }
 0x516   : > { %v3172_v57 = vadd.s32 1, %v7745_v11  ;;  %v3227_v12 = vadd.s32 1, %v4875_v46  ;;  %v2988_v56 = vand.u32 2147483647, %v2987_v59  ;;  %vm4870_vm9 = vcmp.lt.s32.totalorder %v4869_v6, 0 }
 0x517   : > { %v3169_v50 = vmul.u32 %v7694_v18, %v3153_v13  ;;  %vm3171_vm6 = vc.u32 %v7750_v51, %v7744_v44  ;;  %v3082_v2 = vsel %vm4870_vm9, 0, %v4869_v6  ;;  %v3225_v54 = vor.u32 8388608, %v3224_v16 }
 0x518   : > { %v3173_v25 = vsel %vm3171_vm6, %v3172_v57, %v7745_v11  ;;  %vm3228_vm5 = vcmp.gt.s32.totalorder %v3227_v12, 0  ;;  %5458 = vcosq.f32 %v7762_v35  ;;  %v3087_v27 = vsub.s32 4294967266, %v3082_v2 }
 0x519   : > { %v3174_v55 = vadd.s32 %v3173_v25, %v3169_v50  ;;  %v3324_v21 = vshrl.u32 %v3323_v7, 23  ;;  %v2990_v17 = vcvt.s32.f32 %v2983_v33  ;;  %v3083_v14 = vsub.s32 32, %v3082_v2 }
 0x51a   : > { %v3229_v40 = vsel %vm3228_vm5, %v3227_v12, 0  ;;  %v9364_v59 = vand.u32 2147483647, %v7716_v30  ;;  %v7778_v18 = vsel %vm9372_vm12, %v2889_v8, %v7692_v41  ;;  %v3088_v36 = vadd.s32 127, %v3087_v27 }
 0x51b   : > { %v3175_v39 = vadd.s32 536870912, %v3174_v55  ;;  %v7782_v11 = vadd.f32 %v7268_v0, %v6076_v34  ;;  %v7784_v13 = vmul.f32 %v2990_v17, %v2988_v56  ;;  %v3067_v46 = vadd.s32 %v7652_v29, %v7659_v28 }
 0x51c   : > { %v3231_v60 = vand.u32 31, %v3229_v40  ;;  %v7788_v16 = vshll.u32 %v3225_v54, 8  ;;  %v3084_v6 = vshll.u32 %v7728_v1, %v3082_v2  ;;  %v3089_v7 = vshll.u32 %v3088_v36, 23 }
 0x51d   : > { %v7791_v33 = vshrl.u32 %v3175_v39, 30  ;;  %v4879_v41 = vadd.s32 4294967169, %v3324_v21  ;;  %v3085_v8 = vshrl.u32 %v3067_v46, %v3083_v14  ;;  %v3230_v57 = vshrl.u32 %v3229_v40, 5 }
 0x51e   : > { %v3232_v12 = vsub.s32 32, %v3231_v60  ;;  %v7795_v0 = vand.u32 8388607, %v9364_v59  ;;  %v7797_v56 = vpop.eup %5456  ;;  %v3234_v28 = vshll.u32 %v9496_v37, %v3231_v60  ;;  %v3237_v50 = vshll.u32 %v9505_v19, %v3231_v60 }
 0x51f   : > { %9637 = vst [vmem:[#allocation98_spill] sm:$0xff] %v7791_v33  ;;  %9638 = vst [vmem:[#allocation99_spill] sm:$0xff] %v7797_v56  ;;  %v3177_v29 = vshll.u32 %v7791_v33, 30  ;;  %v3240_v1 = vshll.u32 %v9488_v4, %v3231_v60  ;;  %v3090_v2 = vor.u32 4788187, %v3089_v7  ;;  %v3243_v17 = vshll.u32 %v9506_v31, %v3231_v60 }
 0x520   : > { %v3235_v25 = vshrl.u32 %v9505_v19, %v3232_v12  ;;  %v3238_v54 = vshrl.u32 %v9488_v4, %v3232_v12  ;;  %v3241_v27 = vshrl.u32 %v9506_v31, %v3232_v12  ;;  %v3244_v14 = vshrl.u32 %v9508_v58, %v3232_v12 }
 0x521   : > { %v7806_v21 = vsub.s32 %v3174_v55, %v3177_v29  ;;  %v3246_v40 = vshll.u32 %v9508_v58, %v3231_v60  ;;  %v3247_v59 = vshrl.u32 %v9489_v53, %v3232_v12  ;;  %v3086_v33 = vor.u32 %v3085_v8, %v3084_v6 }
 0x522   : > { %v3236_v36 = vor.u32 %v3235_v25, %v3234_v28  ;;  %v3239_v39 = vor.u32 %v3238_v54, %v3237_v50  ;;  %v3242_v46 = vor.u32 %v3241_v27, %v3240_v1  ;;  %v7812_v7 = vpop.eup %5458  ;;  %v3245_v62 = vor.u32 %v3244_v14, %v3243_v17 }
 0x523   : > { %9639 = vst [vmem:[#allocation100_spill] sm:$0xff] %v7812_v7  ;;  %v3180_v63 = vsub.s32 0, %v7806_v21  ;;  %v3330_v56 = vadd.s32 1, %v4879_v41  ;;  %v3233_v55 = vshrl.u32 %v9496_v37, %v3232_v12  ;;  %v3248_v29 = vor.u32 %v3247_v59, %v3246_v40 }
 0x524   : > { %vm3249_vm15 = vcmp.lt.s32.totalorder %v3230_v57, 1  ;;  %vm3252_vm9 = vcmp.lt.s32.totalorder %v3230_v57, 4  ;;  %v3091_v48 = vand.u32 2147483647, %v3090_v2  ;;  %vm3251_vm6 = vcmp.lt.s32.totalorder %v3230_v57, 3 }
 0x525   : > { %v4872_v60 = vmin.u32 %v3180_v63, %v7806_v21  ;;  %v3254_v28 = vsel %vm3252_vm9, %v3242_v46, 2102212464  ;;  %v3257_v50 = vsel %vm3249_vm15, %v3236_v36, %v3239_v39  ;;  %v3258_v1 = vsel %vm3252_vm9, %v3245_v62, 920167782  ;;  %v5378_v63 = vld [vmem:[#allocation10 + $0x40] sm:$0xff]  }
 0x526   : > { %v3261_v25 = vsel %vm3249_vm15, %v3239_v39, %v3242_v46  ;;  %v3262_v54 = vsel %vm3252_vm9, %v3248_v29, 1326507024  ;;  %v3093_v27 = vcvt.s32.f32 %v3086_v33  ;;  %vm3250_vm5 = vcmp.lt.s32.totalorder %v3230_v57, 2  ;;  %4974 = vmatprep.subr.bf16.mxu1 %v5378_v63 }
 0x527   : > { %v3182_v6 = vclz %v4872_v60  ;;  %v3259_v8 = vsel %vm3251_vm6, %v3242_v46, %v3258_v1  ;;  %v3253_v17 = vsel %vm3249_vm15, %v3233_v55, %v3236_v36  ;;  %v3255_v41 = vsel %vm3251_vm6, %v3239_v39, %v3254_v28 }
 0x528   : > { %v3260_v14 = vsel %vm3250_vm5, %v3257_v50, %v3259_v8  ;;  %v3263_v12 = vsel %vm3251_vm6, %v3245_v62, %v3262_v54  ;;  %v7817_v59 = vmul.f32 %v3093_v27, %v3091_v48  ;;  %vm3331_vm12 = vcmp.gt.s32.totalorder %v3330_v56, 0  ;;  %v7829_v62 = vpop.f32.mrb[45].mxu0 }
 0x529   : > { %v4873_v40 = vadd.s32 4294967294, %v3182_v6  ;;  %v3264_v2 = vsel %vm3250_vm5, %v3261_v25, %v3263_v12  ;;  %v2992_v7 = vxor.u32 2147483648, %v7784_v13  ;;  %v3332_v33 = vsel %vm3331_vm12, %v3330_v56, 0 }
 0x52a   : > { %v7821_v43 = vmul.u32.u64.low %v7788_v16, %v3264_v2  ;;  %v7822_v38 = vmul.u32.u64.high %v7788_v16, %v3264_v2, %v7821_v43  ;;  %v3256_v57 = vsel %vm3250_vm5, %v3253_v17, %v3255_v41  ;;  %v3170_v48 = vadd.s32 %v7744_v44, %v7750_v51 }
 0x52b   : > { %vm4874_vm9 = vcmp.lt.s32.totalorder %v4873_v40, 0  ;;  %v7825_v36 = vmul.u32.u64.low %v7788_v16, %v3260_v14  ;;  %v7826_v39 = vmul.u32.u64.high %v7788_v16, %v3260_v14, %v7825_v36  ;;  %v3334_v55 = vand.u32 31, %v3332_v33 }
 0x52c   : > { %v3185_v46 = vsel %vm4874_vm9, 0, %v4873_v40  ;;  %v3095_v43 = vxor.u32 2147483648, %v7817_v59  ;;  %v3328_v28 = vor.u32 8388608, %v7795_v0  ;;  %v3272_v50 = vmul.u32 %v7788_v16, %v3256_v57 }
 0x52d   : > { %v3186_v56 = vsub.s32 32, %v3185_v46  ;;  %v3190_v60 = vsub.s32 4294967266, %v3185_v46  ;;  %vm3274_vm12 = vc.u32 %v7822_v38, %v7825_v36  ;;  %v7839_v1 = vshrl.u32 %v3332_v33, 5 }
 0x52e   : > { %v3335_v25 = vsub.s32 32, %v3334_v55  ;;  %v3187_v44 = vshll.u32 %v7806_v21, %v3185_v46  ;;  %v3275_v27 = vadd.s32 1, %v7826_v39  ;;  %v3337_v6 = vshll.u32 %v9496_v37, %v3334_v55 }
 0x52f   : > { %v3188_v51 = vshrl.u32 %v3170_v48, %v3186_v56  ;;  %v3191_v54 = vadd.s32 127, %v3190_v60  ;;  %v3340_v0 = vshll.u32 %v9505_v19, %v3334_v55  ;;  %v3343_v14 = vshll.u32 %v9488_v4, %v3334_v55 }
 0x530   : > { %v3338_v8 = vshrl.u32 %v9505_v19, %v3335_v25  ;;  %v3341_v16 = vshrl.u32 %v9488_v4, %v3335_v25  ;;  %v3276_v41 = vsel %vm3274_vm12, %v3275_v27, %v7826_v39  ;;  %v3344_v12 = vshrl.u32 %v9506_v31, %v3335_v25 }
 0x531   : > { %v3192_v17 = vshll.u32 %v3191_v54, 23  ;;  %v3189_v21 = vor.u32 %v3188_v51, %v3187_v44  ;;  %v3277_v40 = vadd.s32 %v3276_v41, %v3272_v50  ;;  %v3346_v48 = vshll.u32 %v9506_v31, %v3334_v55 }
 0x532   : > { %v3339_v2 = vor.u32 %v3338_v8, %v3337_v6  ;;  %v3342_v63 = vor.u32 %v3341_v16, %v3340_v0  ;;  %v3345_v57 = vor.u32 %v3344_v12, %v3343_v14  ;;  %v3347_v46 = vshrl.u32 %v9508_v58, %v3335_v25 }
 0x533   : > { %v3193_v33 = vor.u32 4788187, %v3192_v17  ;;  %v9640_v56 = vand.u32 2147483647, %v7298_v42  ;;  %v9641_v39 = vmov 0  ;;  %v3278_v60 = vadd.s32 536870912, %v3277_v40 }
 0x534   : > { %v3349_v44 = vshll.u32 %v9508_v58, %v3334_v55  ;;  %v3350_v50 = vshrl.u32 %v9489_v53, %v3335_v25  ;;  %v7861_v51 = vshll.u32 %v3328_v28, 8  ;;  %v3336_v54 = vshrl.u32 %v9496_v37, %v3335_v25 }
 0x535   : > { %vm7855_vm6 = vcmp.le.f32.partialorder %v9640_v56, 0.7853982  ;;  %v3348_v27 = vor.u32 %v3347_v46, %v3346_v48  ;;  %vm3352_vm9 = vcmp.lt.s32.totalorder %v7839_v1, 1  ;;  %vm3355_vm12 = vcmp.lt.s32.totalorder %v7839_v1, 4 }
 0x536   : > { %v9642_v39 = vsel %vm7855_vm6, 4294967295, %v9641_v39  ;;  %v9643_v6 = vand.u32 2147483647, %v7395_v20  ;;  %v9644_v8 = vmov 0  ;;  %v3196_v55 = vcvt.s32.f32 %v3189_v21 }
 0x537   : > { %v7873_v0 = vshrl.u32 %v3278_v60, 30  ;;  %v3351_v28 = vor.u32 %v3350_v50, %v3349_v44  ;;  %v3357_v16 = vsel %vm3355_vm12, %v3345_v57, 2102212464  ;;  %v3194_v17 = vand.u32 2147483647, %v3193_v33  ;;  %v5379_v50 = vld [vmem:[#allocation10] sm:$0xff]  }
 0x538   : > { %vm7869_vm15 = vcmp.le.f32.partialorder %v9643_v6, 0.7853982  ;;  %vm3354_vm5 = vcmp.lt.s32.totalorder %v7839_v1, 3  ;;  %v3360_v25 = vsel %vm3352_vm9, %v3339_v2, %v3342_v63  ;;  %v3361_v41 = vsel %vm3355_vm12, %v3348_v27, 920167782  ;;  %4975 = vmatpush3.bf16.msra.mxu1 %v5379_v50 }
 0x539   : > { %v9645_v8 = vsel %vm7869_vm15, 4294967295, %v9644_v8  ;;  %9647 = vst [vmem:[#allocation102_spill] sm:$0xff] %v7873_v0  ;;  %v9648_v14 = vand.u32 2147483647, %v7414_v52  ;;  %v9649_v12 = vmov 0  ;;  %v3280_v21 = vshll.u32 %v7873_v0, 30 }
 0x53a   : > { %9646 = vst [vmem:[#allocation101_spill] sm:$0xff] %v9645_v8  ;;  %vm3353_vm2 = vcmp.lt.s32.totalorder %v7839_v1, 2  ;;  %v3362_v48 = vsel %vm3354_vm5, %v3345_v57, %v3361_v41  ;;  %v3364_v33 = vsel %vm3352_vm9, %v3342_v63, %v3345_v57  ;;  %v3356_v46 = vsel %vm3352_vm9, %v3336_v54, %v3339_v2  ;;  %v7910_v54 = vpop.f32.mrb[46].mxu0 }
 0x53b   : > { %vm7884_vm3 = vcmp.le.f32.partialorder %v9648_v14, 0.7853982  ;;  %v3358_v56 = vsel %vm3354_vm5, %v3342_v63, %v3357_v16  ;;  %v3363_v60 = vsel %vm3353_vm2, %v3360_v25, %v3362_v48  ;;  %v3365_v44 = vsel %vm3355_vm12, %v3351_v28, 1326507024 }
 0x53c   : > { %v9650_v12 = vsel %vm7884_vm3, 4294967295, %v9649_v12  ;;  %vm9392_vm7 = vcmp.lt.s32.totalorder %v7568_v5, 0  ;;  %v7899_v6 = vsub.s32 %v3277_v40, %v3280_v21  ;;  %v3366_v14 = vsel %vm3354_vm5, %v3348_v27, %v3365_v44 }
 0x53d   : > { %9651 = vst [vmem:[#allocation103_spill] sm:$0xff] %v9650_v12  ;;  %v7902_v41 = vmul.u32.u64.low %v7861_v51, %v3363_v60  ;;  %v7903_v29 = vmul.u32.u64.high %v7861_v51, %v3363_v60, %v7902_v41  ;;  %5460 = vsinq.f32 %v7762_v35  ;;  %v3197_v2 = vmul.f32 %v3196_v55, %v3194_v17 }
 0x53e   : > { %v3367_v63 = vsel %vm3353_vm2, %v3364_v33, %v3366_v14  ;;  %v3426_v57 = vand.u32 2139095040, %v7782_v11  ;;  %vm9652_vm5 = vcmp.lt.s32.totalorder %v7395_v20, 0  ;;  %v3283_v27 = vsub.s32 0, %v7899_v6 }
 0x53f   : > { %v2993_v40 = vsel %vm9652_vm5, %v2992_v7, %v7784_v13  ;;  %v7919_v28 = vmul.u32.u64.low %v7861_v51, %v3367_v63  ;;  %v7920_v35 = vmul.u32.u64.high %v7861_v51, %v3367_v63, %v7919_v28  ;;  %v2893_v55 = vsel %vm7855_vm6, %v7298_v42, %v7778_v18 }
 0x540   : > { %v9653_v16 = vand.u32 2147483647, %v7568_v5  ;;  %v9654_v17 = vmov 0  ;;  %v3359_v13 = vsel %vm3353_vm2, %v3356_v46, %v3358_v56  ;;  %v3427_v7 = vshrl.u32 %v3426_v57, 23 }
 0x541   : > { %vm9657_vm12 = vcmp.lt.s32.totalorder %v7414_v52, 0  ;;  %v4876_v21 = vmin.u32 %v3283_v27, %v7899_v6  ;;  %v3378_v18 = vadd.s32 1, %v7903_v29  ;;  %v9658_v48 = vand.u32 2147483647, %v7782_v11 }
 0x542   : > { %vm7928_vm9 = vcmp.le.f32.partialorder %v9653_v16, 0.7853982  ;;  %v3096_v25 = vsel %vm9657_vm12, %v3095_v43, %v7817_v59  ;;  %v2996_v60 = vsel %vm7869_vm15, %v7395_v20, %v2993_v40  ;;  %v3198_v1 = vxor.u32 2147483648, %v3197_v2 }
 0x543   : > { %v9655_v17 = vsel %vm7928_vm9, 4294967295, %v9654_v17  ;;  %v3430_v33 = vand.u32 8388607, %v9658_v48  ;;  %v4883_v46 = vadd.s32 4294967169, %v3427_v7  ;;  %v7948_v56 = vadd.f32 %v7407_v61, %v6074_v32 }
 0x544   : > { %9656 = vst [vmem:[#allocation104_spill] sm:$0xff] %v9655_v17  ;;  %5462 = vcosq.f32 %v2893_v55  ;;  %v3285_v44 = vclz %v4876_v21  ;;  %v3375_v59 = vmul.u32 %v7861_v51, %v3359_v13  ;;  %vm3377_vm2 = vc.u32 %v7920_v35, %v7902_v41 }
 0x545   : > { %9659 = vst [vmem:[#allocation105_spill] sm:$0xff] %v7948_v56  ;;  %5464 = vsinq.f32 %v2893_v55  ;;  %v3099_v43 = vsel %vm7884_vm3, %v7414_v52, %v3096_v25  ;;  %v3379_v50 = vsel %vm3377_vm2, %v3378_v18, %v7903_v29  ;;  %v3433_v14 = vadd.s32 1, %v4883_v46 }
 0x546   : > { %5466 = vcosq.f32 %v2996_v60  ;;  %v4877_v63 = vadd.s32 4294967294, %v3285_v44  ;;  %v3380_v57 = vadd.s32 %v3379_v50, %v3375_v59  ;;  %v3431_v61 = vor.u32 8388608, %v3430_v33 }
 0x547   : > { %5468 = vsinq.f32 %v2996_v60  ;;  %v3199_v40 = vsel %vm9392_vm7, %v3198_v1, %v3197_v2  ;;  %vm3434_vm5 = vcmp.gt.s32.totalorder %v3433_v14, 0  ;;  %v3529_v51 = vand.u32 2139095040, %v7948_v56  ;;  %v7960_v55 = vpop.eup %5460 }
 0x548   : > { %5470 = vcosq.f32 %v3099_v43  ;;  %vm4878_vm12 = vcmp.lt.s32.totalorder %v4877_v63, 0  ;;  %v3381_v27 = vadd.s32 536870912, %v3380_v57  ;;  %v3435_v28 = vsel %vm3434_vm5, %v3433_v14, 0  ;;  %9660 = vst [vmem:[#allocation106_spill] sm:$0xff] %v7960_v55 }
 0x549   : > { %5472 = vsinq.f32 %v3099_v43  ;;  %v3273_v29 = vadd.s32 %v7825_v36, %v7822_v38  ;;  %v7964_v16 = vsel %vm4878_vm12, 0, %v4877_v63  ;;  %v3437_v13 = vand.u32 31, %v3435_v28 }
 0x54a   : > { %v7969_v2 = vsel %vm7928_vm9, %v7568_v5, %v3199_v40  ;;  %v7971_v7 = vshrl.u32 %v3381_v27, 30  ;;  %v7973_v25 = vshll.u32 %v3431_v61, 8  ;;  %v7977_v21 = vadd.f32 %v7463_v26, %v6076_v34 }
 0x54b   : > { %v3289_v18 = vsub.s32 32, %v7964_v16  ;;  %v3438_v48 = vsub.s32 32, %v3437_v13  ;;  %v3530_v36 = vshrl.u32 %v3529_v51, 23  ;;  %v3293_v33 = vsub.s32 4294967266, %v7964_v16 }
 0x54c   : > { %9661 = vst [vmem:[#allocation107_spill] sm:$0xff] %v7971_v7  ;;  %9662 = vst [vmem:[#allocation108_spill] sm:$0xff] %v7977_v21  ;;  %v3383_v60 = vshll.u32 %v7971_v7, 30  ;;  %v3440_v1 = vshll.u32 %v9496_v37, %v3437_v13  ;;  %v3443_v46 = vshll.u32 %v9505_v19, %v3437_v13  ;;  %v3446_v26 = vshll.u32 %v9488_v4, %v3437_v13 }
 0x54d   : > { %v3441_v44 = vshrl.u32 %v9505_v19, %v3438_v48  ;;  %v3444_v59 = vshrl.u32 %v9488_v4, %v3438_v48  ;;  %v3447_v43 = vshrl.u32 %v9506_v31, %v3438_v48  ;;  %v3436_v63 = vshrl.u32 %v3435_v28, 5 }
 0x54e   : > { %v7989_v50 = vpop.eup %5462  ;;  %v7991_v14 = vsub.s32 %v3380_v57, %v3383_v60  ;;  %v3449_v61 = vshll.u32 %v9506_v31, %v3437_v13  ;;  %v3450_v40 = vshrl.u32 %v9508_v58, %v3438_v48  ;;  %v9664_v17 = vand.u32 2147483647, %v7948_v56 }
 0x54f   : > { %9663 = vst [vmem:[#allocation109_spill] sm:$0xff] %v7989_v50  ;;  %v7995_v51 = vpop.eup %5464  ;;  %v3442_v27 = vor.u32 %v3441_v44, %v3440_v1  ;;  %v3445_v38 = vor.u32 %v3444_v59, %v3443_v46  ;;  %v3448_v7 = vor.u32 %v3447_v43, %v3446_v26  ;;  %v3290_v57 = vshll.u32 %v7899_v6, %v7964_v16 }
 0x550   : > { %v7999_v5 = vand.u32 8388607, %v9664_v17  ;;  %v8001_v0 = vpop.eup %5466  ;;  %v3386_v28 = vsub.s32 0, %v7991_v14  ;;  %v3451_v60 = vor.u32 %v3450_v40, %v3449_v61  ;;  %v4887_v8 = vadd.s32 4294967169, %v3530_v36 }
 0x551   : > { %9665 = vst [vmem:[#allocation110_spill] sm:$0xff] %v8001_v0  ;;  %v8006_v20 = vpop.eup %5468  ;;  %v3291_v55 = vshrl.u32 %v3273_v29, %v3289_v18  ;;  %v3294_v12 = vadd.s32 127, %v3293_v33  ;;  %v3452_v1 = vshll.u32 %v9508_v58, %v3437_v13  ;;  %v3453_v46 = vshrl.u32 %v9489_v53, %v3438_v48  ;;  %v8016_v29 = vpop.f32.mrb[47].mxu0 }
 0x552   : > { %9666 = vst [vmem:[#allocation111_spill] sm:$0xff] %v8006_v20  ;;  %v8010_v44 = vpop.eup %5470  ;;  %v4880_v17 = vmin.u32 %v3386_v28, %v7991_v14  ;;  %vm3455_vm2 = vcmp.lt.s32.totalorder %v3436_v63, 1  ;;  %vm3457_vm5 = vcmp.lt.s32.totalorder %v3436_v63, 3  ;;  %vm3458_vm12 = vcmp.lt.s32.totalorder %v3436_v63, 4 }
 0x553   : > { %9667 = vst [vmem:[#allocation112_spill] sm:$0xff] %v8010_v44  ;;  %v8013_v6 = vpop.eup %5472  ;;  %v3454_v16 = vor.u32 %v3453_v46, %v3452_v1  ;;  %v3460_v59 = vsel %vm3458_vm12, %v3448_v7, 2102212464  ;;  %v3463_v36 = vsel %vm3455_vm2, %v3442_v27, %v3445_v38  ;;  %v3464_v26 = vsel %vm3458_vm12, %v3451_v60, 920167782 }
 0x554   : > { %9668 = vst [vmem:[#allocation113_spill] sm:$0xff] %v8013_v6  ;;  %v3388_v18 = vclz %v4880_v17  ;;  %v3439_v13 = vshrl.u32 %v9496_v37, %v3438_v48  ;;  %vm3456_vm7 = vcmp.lt.s32.totalorder %v3436_v63, 2  ;;  %v3465_v33 = vsel %vm3457_vm5, %v3448_v7, %v3464_v26 }
 0x555   : > { %v3295_v43 = vshll.u32 %v3294_v12, 23  ;;  %v3466_v61 = vsel %vm3456_vm7, %v3463_v36, %v3465_v33  ;;  %v3467_v40 = vsel %vm3455_vm2, %v3445_v38, %v3448_v7  ;;  %v3468_v28 = vsel %vm3458_vm12, %v3454_v16, 1326507024 }
 0x556   : > { %v4881_v0 = vadd.s32 4294967294, %v3388_v18  ;;  %v3459_v1 = vsel %vm3455_vm2, %v3439_v13, %v3442_v27  ;;  %v3461_v46 = vsel %vm3457_vm5, %v3445_v38, %v3460_v59  ;;  %v3469_v20 = vsel %vm3457_vm5, %v3451_v60, %v3468_v28 }
 0x557   : > { %v3470_v17 = vsel %vm3456_vm7, %v3467_v40, %v3469_v20  ;;  %v8027_v48 = vmul.u32.u64.low %v7973_v25, %v3466_v61  ;;  %v8028_v44 = vmul.u32.u64.high %v7973_v25, %v3466_v61, %v8027_v48  ;;  %v3536_v12 = vadd.s32 1, %v4887_v8 }
 0x558   : > { %v3376_v36 = vadd.s32 %v7902_v41, %v7920_v35  ;;  %vm4882_vm9 = vcmp.lt.s32.totalorder %v4881_v0, 0  ;;  %v8034_v7 = vmul.u32.u64.low %v7973_v25, %v3470_v17  ;;  %v8035_v16 = vmul.u32.u64.high %v7973_v25, %v3470_v17, %v8034_v7 }
 0x559   : > { %v3292_v27 = vor.u32 %v3291_v55, %v3290_v57  ;;  %v3391_v38 = vsel %vm4882_vm9, 0, %v4881_v0  ;;  %v3462_v60 = vsel %vm3456_vm7, %v3459_v1, %v3461_v46  ;;  %vm3537_vm2 = vcmp.gt.s32.totalorder %v3536_v12, 0 }
 0x55a   : > { %v3296_v20 = vor.u32 4788187, %v3295_v43  ;;  %v3392_v59 = vsub.s32 32, %v3391_v38  ;;  %v3396_v26 = vsub.s32 4294967266, %v3391_v38  ;;  %v3632_v18 = vand.u32 2139095040, %v7977_v21 }
 0x55b   : > { %v3481_v8 = vadd.s32 1, %v8028_v44  ;;  %v3534_v13 = vor.u32 8388608, %v7999_v5  ;;  %v3538_v41 = vsel %vm3537_vm2, %v3536_v12, 0  ;;  %v3478_v55 = vmul.u32 %v7973_v25, %v3462_v60 }
 0x55c   : > { %v3394_v33 = vshrl.u32 %v3376_v36, %v3392_v59  ;;  %v3397_v61 = vadd.s32 127, %v3396_v26  ;;  %vm3480_vm7 = vc.u32 %v8035_v16, %v8027_v48  ;;  %v3299_v0 = vcvt.s32.f32 %v3292_v27 }
 0x55d   : > { %v3393_v63 = vshll.u32 %v7991_v14, %v3391_v38  ;;  %v3482_v57 = vsel %vm3480_vm7, %v3481_v8, %v8028_v44  ;;  %v3540_v43 = vand.u32 31, %v3538_v41  ;;  %v3297_v40 = vand.u32 2147483647, %v3296_v20 }
 0x55e   : > { %v3398_v28 = vshll.u32 %v3397_v61, 23  ;;  %v3483_v1 = vadd.s32 %v3482_v57, %v3478_v55  ;;  %v3633_v5 = vshrl.u32 %v3632_v18, 23  ;;  %v8047_v17 = vshrl.u32 %v3538_v41, 5 }
 0x55f   : > { %v3395_v46 = vor.u32 %v3394_v33, %v3393_v63  ;;  %v3541_v12 = vsub.s32 32, %v3540_v43  ;;  %v3543_v36 = vshll.u32 %v9496_v37, %v3540_v43  ;;  %v3546_v60 = vshll.u32 %v9505_v19, %v3540_v43 }
 0x560   : > { %v3399_v25 = vor.u32 4788187, %v3398_v28  ;;  %v3484_v7 = vadd.s32 536870912, %v3483_v1  ;;  %v3549_v27 = vshll.u32 %v9488_v4, %v3540_v43  ;;  %v3552_v20 = vshll.u32 %v9506_v31, %v3540_v43 }
 0x561   : > { %v3544_v14 = vshrl.u32 %v9505_v19, %v3541_v12  ;;  %v3547_v44 = vshrl.u32 %v9488_v4, %v3541_v12  ;;  %v3550_v38 = vshrl.u32 %v9506_v31, %v3541_v12  ;;  %v3553_v18 = vshrl.u32 %v9508_v58, %v3541_v12 }
 0x562   : > { %v3400_v59 = vand.u32 2147483647, %v3399_v25  ;;  %v8056_v26 = vshrl.u32 %v3484_v7, 30  ;;  %v3555_v8 = vshll.u32 %v9508_v58, %v3540_v43  ;;  %v3556_v55 = vshrl.u32 %v9489_v53, %v3541_v12 }
 0x563   : > { %v3545_v41 = vor.u32 %v3544_v14, %v3543_v36  ;;  %v3548_v33 = vor.u32 %v3547_v44, %v3546_v60  ;;  %v3551_v61 = vor.u32 %v3550_v38, %v3549_v27  ;;  %v3402_v63 = vcvt.s32.f32 %v3395_v46 }
 0x564   : > { %v3486_v57 = vshll.u32 %v8056_v26, 30  ;;  %v3554_v28 = vor.u32 %v3553_v18, %v3552_v20  ;;  %v8063_v35 = vshll.u32 %v3534_v13, 8  ;;  %v3300_v25 = vmul.f32 %v3299_v0, %v3297_v40 }
 0x565   : > { %v3542_v7 = vshrl.u32 %v9496_v37, %v3541_v12  ;;  %v3557_v6 = vor.u32 %v3556_v55, %v3555_v8  ;;  %v4891_v52 = vadd.s32 4294967169, %v3633_v5  ;;  %v3403_v50 = vmul.f32 %v3402_v63, %v3400_v59  ;;  %v5380_v55 = vld [vmem:[#allocation10 + $0x48] sm:$0xff]  }
 0x566   : > { %v8066_v43 = vsub.s32 %v3483_v1, %v3486_v57  ;;  %vm3558_vm5 = vcmp.lt.s32.totalorder %v8047_v17, 1  ;;  %vm3561_vm12 = vcmp.lt.s32.totalorder %v8047_v17, 4  ;;  %v9669_v36 = vand.u32 2147483647, %v7674_v15  ;;  %4976 = vmatprep.subr.bf16.mxu1 %v5380_v55  ;;  %v5384_v55 = vld [vmem:[#allocation10 + $0x58] sm:$0xff]  }
 0x567   : > { %v9670_v46 = vmov 0  ;;  %vm3560_vm7 = vcmp.lt.s32.totalorder %v8047_v17, 3  ;;  %v3563_v13 = vsel %vm3561_vm12, %v3551_v61, 2102212464  ;;  %v3566_v0 = vsel %vm3558_vm5, %v3545_v41, %v3548_v33 }
 0x568   : > { %vm8072_vm2 = vcmp.le.f32.partialorder %v9669_v36, 0.7853982  ;;  %v3567_v40 = vsel %vm3561_vm12, %v3554_v28, 920167782  ;;  %v3489_v1 = vsub.s32 0, %v8066_v43  ;;  %vm3559_vm9 = vcmp.lt.s32.totalorder %v8047_v17, 2 }
 0x569   : > { %v9671_v46 = vsel %vm8072_vm2, 4294967295, %v9670_v46  ;;  %v3568_v5 = vsel %vm3560_vm7, %v3551_v61, %v3567_v40  ;;  %v3570_v12 = vsel %vm3558_vm5, %v3548_v33, %v3551_v61  ;;  %v3301_v60 = vxor.u32 2147483648, %v3300_v25 }
 0x56a   : > { %v3569_v27 = vsel %vm3559_vm9, %v3566_v0, %v3568_v5  ;;  %v3571_v14 = vsel %vm3561_vm12, %v3557_v6, 1326507024  ;;  %v9672_v44 = vand.u32 2147483647, %v7977_v21  ;;  %v4884_v20 = vmin.u32 %v3489_v1, %v8066_v43  ;;  %v5381_v6 = vld [vmem:[#allocation10 + $0x8] sm:$0xff]  }
 0x56b   : > { %v3562_v59 = vsel %vm3558_vm5, %v3542_v7, %v3545_v41  ;;  %v3564_v18 = vsel %vm3560_vm7, %v3548_v33, %v3563_v13  ;;  %v3572_v8 = vsel %vm3560_vm7, %v3554_v28, %v3571_v14  ;;  %v3404_v63 = vxor.u32 2147483648, %v3403_v50  ;;  %4977 = vmatpush3.bf16.msra.mxu1 %v5381_v6  ;;  %v5382_v13 = vld [vmem:[#allocation10 + $0x50] sm:$0xff]  }
 0x56c   : > { %v3636_v38 = vand.u32 8388607, %v9672_v44  ;;  %v3573_v61 = vsel %vm3559_vm9, %v3570_v12, %v3572_v8  ;;  %v8093_v57 = vmul.u32.u64.low %v8063_v35, %v3569_v27  ;;  %v8094_v36 = vmul.u32.u64.high %v8063_v35, %v3569_v27, %v8093_v57  ;;  %v5383_v27 = vld [vmem:[#allocation10 + $0x10] sm:$0xff]   ;;  %4978 = vmatprep.subr.bf16.mxu1 %v5382_v13 }
 0x56d   : > { %v3491_v0 = vclz %v4884_v20  ;;  %v8098_v40 = vmul.u32.u64.low %v8063_v35, %v3573_v61  ;;  %v8099_v1 = vmul.u32.u64.high %v8063_v35, %v3573_v61, %v8098_v40  ;;  %v3639_v5 = vadd.s32 1, %v4891_v52 }
 0x56e   : > { %5474 = vcosq.f32 %v7969_v2  ;;  %vm9673_vm5 = vcmp.lt.s32.totalorder %v7674_v15, 0  ;;  %vm9406_vm12 = vcmp.lt.s32.totalorder %v7716_v30, 0  ;;  %v3565_v33 = vsel %vm3559_vm9, %v3562_v59, %v3564_v18 }
 0x56f   : > { %v3302_v41 = vsel %vm9673_vm5, %v3301_v60, %v3300_v25  ;;  %5476 = vsinq.f32 %v7969_v2  ;;  %v9674_v28 = vand.u32 2147483647, %v7716_v30  ;;  %v9675_v7 = vmov 0  ;;  %4979 = vmatpush3.bf16.msra.mxu1 %v5383_v27 }
 0x570   : > { %v4885_v52 = vadd.s32 4294967294, %v3491_v0  ;;  %vm3640_vm15 = vcmp.gt.s32.totalorder %v3639_v5, 0  ;;  %v3405_v25 = vsel %vm9406_vm12, %v3404_v63, %v3403_v50  ;;  %v3584_v12 = vadd.s32 1, %v8094_v36  ;;  %4980 = vmatprep.subr.bf16.mxu1 %v5384_v55 }
 0x571   : > { %vm8110_vm7 = vcmp.le.f32.partialorder %v9674_v28, 0.7853982  ;;  %v3637_v60 = vor.u32 8388608, %v3636_v38  ;;  %v3641_v17 = vsel %vm3640_vm15, %v3639_v5, 0  ;;  %v8120_v2 = vsel %vm8072_vm2, %v7674_v15, %v3302_v41 }
 0x572   : > { %v9676_v7 = vsel %vm8110_vm7, 4294967295, %v9675_v7  ;;  %vm4886_vm9 = vcmp.lt.s32.totalorder %v4885_v52, 0  ;;  %v3581_v14 = vmul.u32 %v8063_v35, %v3565_v33  ;;  %vm3583_vm5 = vc.u32 %v8099_v1, %v8093_v57 }
 0x573   : > { %9677 = vst [vmem:[#allocation114_spill] sm:$0xff] %v9676_v7  ;;  %v3479_v50 = vadd.s32 %v8027_v48, %v8035_v16  ;;  %v3494_v44 = vsel %vm4886_vm9, 0, %v4885_v52  ;;  %v3585_v38 = vsel %vm3583_vm5, %v3584_v12, %v8094_v36  ;;  %v3643_v20 = vand.u32 31, %v3641_v17  ;;  %v5385_v16 = vld [vmem:[#allocation10 + $0x18] sm:$0xff]  }
 0x574   : > { %v8131_v59 = vsel %vm8110_vm7, %v7716_v30, %v3405_v25  ;;  %v3495_v18 = vsub.s32 32, %v3494_v44  ;;  %v3499_v8 = vsub.s32 4294967266, %v3494_v44  ;;  %v3586_v35 = vadd.s32 %v3585_v38, %v3581_v14  ;;  %4981 = vmatpush3.bf16.msra.mxu1 %v5385_v16 }
 0x575   : > { %v8133_v63 = vshrl.u32 %v3641_v17, 5  ;;  %v3644_v61 = vsub.s32 32, %v3643_v20  ;;  %v3646_v6 = vshll.u32 %v9496_v37, %v3643_v20  ;;  %v8136_v48 = vshll.u32 %v3637_v60, 8  ;;  %v5386_v17 = vld [vmem:[#allocation10 + $0x60] sm:$0xff]  }
 0x576   : > { %v3500_v36 = vadd.s32 127, %v3499_v8  ;;  %v3587_v0 = vadd.s32 536870912, %v3586_v35  ;;  %v3649_v40 = vshll.u32 %v9505_v19, %v3643_v20  ;;  %v3652_v5 = vshll.u32 %v9488_v4, %v3643_v20  ;;  %v5387_v8 = vld [vmem:[#allocation10 + $0x20] sm:$0xff]   ;;  %4982 = vmatprep.subr.bf16.mxu1 %v5386_v17 }
 0x577   : > { %v3497_v41 = vshrl.u32 %v3479_v50, %v3495_v18  ;;  %v3647_v33 = vshrl.u32 %v9505_v19, %v3644_v61  ;;  %v3650_v28 = vshrl.u32 %v9488_v4, %v3644_v61  ;;  %v3653_v52 = vshrl.u32 %v9506_v31, %v3644_v61 }
 0x578   : > { %v3501_v13 = vshll.u32 %v3500_v36, 23  ;;  %v8143_v25 = vshrl.u32 %v3587_v0, 30  ;;  %v3655_v12 = vshll.u32 %v9506_v31, %v3643_v20  ;;  %v3656_v60 = vshrl.u32 %v9508_v58, %v3644_v61  ;;  %v8147_v27 = vpop.eup %5474  ;;  %4983 = vmatpush3.bf16.msra.mxu1 %v5387_v8 }
 0x579   : > { %9679 = vst [vmem:[#allocation116_spill] sm:$0xff] %v8147_v27  ;;  %v3496_v14 = vshll.u32 %v8066_v43, %v3494_v44  ;;  %v3648_v50 = vor.u32 %v3647_v33, %v3646_v6  ;;  %v3651_v38 = vor.u32 %v3650_v28, %v3649_v40  ;;  %v3654_v18 = vor.u32 %v3653_v52, %v3652_v5  ;;  %v8150_v55 = vpop.eup %5476  ;;  %v5388_v40 = vld [vmem:[#allocation10 + $0x68] sm:$0xff]  }
 0x57a   : > { %9678 = vst [vmem:[#allocation115_spill] sm:$0xff] %v8143_v25  ;;  %9680 = vst [vmem:[#allocation117_spill] sm:$0xff] %v8150_v55  ;;  %v3502_v7 = vor.u32 4788187, %v3501_v13  ;;  %v3589_v16 = vshll.u32 %v8143_v25, 30  ;;  %v3657_v36 = vor.u32 %v3656_v60, %v3655_v12  ;;  %v8155_v0 = vadd.f32 %v7550_v49, %v6074_v32  ;;  %v5389_v28 = vld [vmem:[#allocation10 + $0x28] sm:$0xff]   ;;  %4984 = vmatprep.subr.bf16.mxu1 %v5388_v40 }
 0x57b   : > { %v3498_v30 = vor.u32 %v3497_v41, %v3496_v14  ;;  %v3645_v27 = vshrl.u32 %v9496_v37, %v3644_v61  ;;  %v3658_v43 = vshll.u32 %v9508_v58, %v3643_v20  ;;  %v3659_v44 = vshrl.u32 %v9489_v53, %v3644_v61  ;;  %v5391_v40 = vld [vmem:[#allocation10 + $0x30] sm:$0xff]  }
 0x57c   : > { %v8160_v6 = vsub.s32 %v3586_v35, %v3589_v16  ;;  %vm3661_vm15 = vcmp.lt.s32.totalorder %v8133_v63, 1  ;;  %vm3663_vm9 = vcmp.lt.s32.totalorder %v8133_v63, 3  ;;  %vm3664_vm5 = vcmp.lt.s32.totalorder %v8133_v63, 4  ;;  %4985 = vmatpush3.bf16.msra.mxu1 %v5389_v28 }
 0x57d   : > { %v3660_v49 = vor.u32 %v3659_v44, %v3658_v43  ;;  %v3666_v5 = vsel %vm3664_vm5, %v3654_v18, 2102212464  ;;  %v3669_v41 = vsel %vm3661_vm15, %v3648_v50, %v3651_v38  ;;  %v3670_v33 = vsel %vm3664_vm5, %v3657_v36, 920167782 }
 0x57e   : > { %v3503_v20 = vand.u32 2147483647, %v3502_v7  ;;  %v3592_v61 = vsub.s32 0, %v8160_v6  ;;  %vm3662_vm12 = vcmp.lt.s32.totalorder %v8133_v63, 2  ;;  %v3671_v35 = vsel %vm3663_vm9, %v3654_v18, %v3670_v33 }
 0x57f   : > { %v3505_v52 = vcvt.s32.f32 %v3498_v30  ;;  %v3672_v13 = vsel %vm3662_vm12, %v3669_v41, %v3671_v35  ;;  %v3673_v12 = vsel %vm3661_vm15, %v3651_v38, %v3654_v18  ;;  %v3674_v60 = vsel %vm3664_vm5, %v3660_v49, 1326507024  ;;  %v5390_v30 = vld [vmem:[#allocation10 + $0x70] sm:$0xff]  }
 0x580   : > { %v4888_v17 = vmin.u32 %v3592_v61, %v8160_v6  ;;  %v3665_v7 = vsel %vm3661_vm15, %v3645_v27, %v3648_v50  ;;  %v3667_v14 = vsel %vm3663_vm9, %v3651_v38, %v3666_v5  ;;  %v3675_v8 = vsel %vm3663_vm9, %v3657_v36, %v3674_v60  ;;  %4986 = vmatprep.subr.bf16.mxu1 %v5390_v30 }
 0x581   : > { %v3676_v16 = vsel %vm3662_vm12, %v3673_v12, %v3675_v8  ;;  %v8185_v43 = vmul.u32.u64.low %v8136_v48, %v3672_v13  ;;  %v8186_v18 = vmul.u32.u64.high %v8136_v48, %v3672_v13, %v8185_v43  ;;  %v3735_v44 = vand.u32 2139095040, %v8155_v0  ;;  %4987 = vmatpush3.bf16.msra.mxu1 %v5391_v40 }
 0x582   : > { %v3506_v49 = vmul.f32 %v3505_v52, %v3503_v20  ;;  %v3594_v27 = vclz %v4888_v17  ;;  %v8191_v50 = vmul.u32.u64.low %v8136_v48, %v3676_v16  ;;  %v8192_v38 = vmul.u32.u64.high %v8136_v48, %v3676_v16, %v8191_v50  ;;  %v5392_v20 = vld [vmem:[#allocation10 + $0x78] sm:$0xff]  }
 0x583   : > { %5478 = vcosq.f32 %v8120_v2  ;;  %v3668_v36 = vsel %vm3662_vm12, %v3665_v7, %v3667_v14  ;;  %v9408_v5 = vand.u32 2147483647, %v8155_v0  ;;  %v3736_v41 = vshrl.u32 %v3735_v44, 23  ;;  %v5393_v52 = vld [vmem:[#allocation10 + $0x38] sm:$0xff]   ;;  %4988 = vmatprep.subr.bf16.mxu1 %v5392_v20 }
 0x584   : > { %5480 = vsinq.f32 %v8120_v2  ;;  %vm9416_vm15 = vcmp.lt.s32.totalorder %v7782_v11, 0  ;;  %v4889_v33 = vadd.s32 4294967294, %v3594_v27  ;;  %v8202_v28 = vadd.f32 %v7661_v23, %v6076_v34 }
 0x585   : > { %5482 = vcosq.f32 %v8131_v59  ;;  %v3582_v63 = vadd.s32 %v8093_v57, %v8099_v1  ;;  %v3687_v61 = vadd.s32 1, %v8186_v18  ;;  %v4895_v35 = vadd.s32 4294967169, %v3736_v41  ;;  %4989 = vmatpush3.bf16.msra.mxu1 %v5393_v52 }
 0x586   : > { %v3507_v13 = vxor.u32 2147483648, %v3506_v49  ;;  %vm4890_vm12 = vcmp.lt.s32.totalorder %v4889_v33, 0  ;;  %v3684_v2 = vmul.u32 %v8136_v48, %v3668_v36  ;;  %vm3686_vm9 = vc.u32 %v8192_v38, %v8185_v43 }
 0x587   : > { %v3597_v23 = vsel %vm4890_vm12, 0, %v4889_v33  ;;  %v3688_v12 = vsel %vm3686_vm9, %v3687_v61, %v8186_v18  ;;  %v8214_v60 = vand.u32 8388607, %v9408_v5  ;;  %v3742_v57 = vadd.s32 1, %v4895_v35 }
 0x588   : > { %v3598_v1 = vsub.s32 32, %v3597_v23  ;;  %v3602_v17 = vsub.s32 4294967266, %v3597_v23  ;;  %v3689_v7 = vadd.s32 %v3688_v12, %v3684_v2  ;;  %v3838_v14 = vand.u32 2139095040, %v8202_v28 }
 0x589   : > { %5484 = vsinq.f32 %v8131_v59  ;;  %vm3743_vm5 = vcmp.gt.s32.totalorder %v3742_v57, 0  ;;  %v9407_v48 = vand.u32 2147483647, %v8202_v28  ;;  %v8221_v8 = vadd.f32 %v7767_v47, %v6074_v32 }
 0x58a   : > { %v3600_v30 = vshrl.u32 %v3582_v63, %v3598_v1  ;;  %v3603_v16 = vadd.s32 127, %v3602_v17  ;;  %v3690_v18 = vadd.s32 536870912, %v3689_v7  ;;  %v3744_v44 = vsel %vm3743_vm5, %v3742_v57, 0 }
 0x58b   : > { %9681 = vst [vmem:[#allocation118_spill] sm:$0xff] %v8221_v8  ;;  %v8225_v40 = vsel %vm9416_vm15, %v3507_v13, %v3506_v49  ;;  %v3599_v27 = vshll.u32 %v8160_v6, %v3597_v23  ;;  %v3746_v50 = vand.u32 31, %v3744_v44  ;;  %v8230_v59 = vadd.f32 %v7829_v62, %v6076_v34 }
 0x58c   : > { %v3604_v36 = vshll.u32 %v3603_v16, 23  ;;  %v8232_v41 = vshrl.u32 %v3690_v18, 30  ;;  %v3740_v47 = vor.u32 8388608, %v8214_v60  ;;  %v3839_v33 = vshrl.u32 %v3838_v14, 23 }
 0x58d   : > { %v8235_v20 = vpop.eup %5478  ;;  %v3601_v63 = vor.u32 %v3600_v30, %v3599_v27  ;;  %v3745_v61 = vshrl.u32 %v3744_v44, 5  ;;  %v3747_v35 = vsub.s32 32, %v3746_v50  ;;  %v8239_v49 = vand.u32 8388607, %v9407_v48 }
 0x58e   : > { %9682 = vst [vmem:[#allocation119_spill] sm:$0xff] %v8232_v41  ;;  %9683 = vst [vmem:[#allocation120_spill] sm:$0xff] %v8235_v20  ;;  %v8241_v6 = vpop.eup %5480  ;;  %v3692_v62 = vshll.u32 %v8232_v41, 30  ;;  %v3749_v52 = vshll.u32 %v9496_v37, %v3746_v50  ;;  %v3752_v13 = vshll.u32 %v9505_v19, %v3746_v50  ;;  %v3755_v2 = vshll.u32 %v9488_v4, %v3746_v50 }
 0x58f   : > { %v8247_v23 = vpop.eup %5482  ;;  %v3605_v12 = vor.u32 4788187, %v3604_v36  ;;  %v3750_v60 = vshrl.u32 %v9505_v19, %v3747_v35  ;;  %v3753_v57 = vshrl.u32 %v9488_v4, %v3747_v35  ;;  %v3756_v1 = vshrl.u32 %v9506_v31, %v3747_v35 }
 0x590   : > { %9684 = vst [vmem:[#allocation121_spill] sm:$0xff] %v8247_v23  ;;  %v8252_v17 = vsub.s32 %v3689_v7, %v3692_v62  ;;  %v3758_v14 = vshll.u32 %v9506_v31, %v3746_v50  ;;  %v3759_v30 = vshrl.u32 %v9508_v58, %v3747_v35  ;;  %v3761_v16 = vshll.u32 %v9508_v58, %v3746_v50 }
 0x591   : > { %v3751_v18 = vor.u32 %v3750_v60, %v3749_v52  ;;  %v3754_v44 = vor.u32 %v3753_v57, %v3752_v13  ;;  %v3757_v27 = vor.u32 %v3756_v1, %v3755_v2  ;;  %v3762_v48 = vshrl.u32 %v9489_v53, %v3747_v35 }
 0x592   : > { %v3608_v36 = vcvt.s32.f32 %v3601_v63  ;;  %v3695_v5 = vsub.s32 0, %v8252_v17  ;;  %v3760_v25 = vor.u32 %v3759_v30, %v3758_v14  ;;  %v4899_v23 = vadd.s32 4294967169, %v3839_v33 }
 0x593   : > { %v8259_v41 = vpop.eup %5484  ;;  %v3606_v7 = vand.u32 2147483647, %v3605_v12  ;;  %v3748_v62 = vshrl.u32 %v9496_v37, %v3747_v35  ;;  %v3763_v55 = vor.u32 %v3762_v48, %v3761_v16  ;;  %vm3767_vm12 = vcmp.lt.s32.totalorder %v3745_v61, 4 }
 0x594   : > { %9685 = vst [vmem:[#allocation122_spill] sm:$0xff] %v8259_v41  ;;  %v4892_v20 = vmin.u32 %v3695_v5, %v8252_v17  ;;  %vm3764_vm9 = vcmp.lt.s32.totalorder %v3745_v61, 1  ;;  %vm3765_vm5 = vcmp.lt.s32.totalorder %v3745_v61, 2  ;;  %v3769_v50 = vsel %vm3767_vm12, %v3757_v27, 2102212464 }
 0x595   : > { %vm3766_vm15 = vcmp.lt.s32.totalorder %v3745_v61, 3  ;;  %v3768_v52 = vsel %vm3764_vm9, %v3748_v62, %v3751_v18  ;;  %v3772_v13 = vsel %vm3764_vm9, %v3751_v18, %v3754_v44  ;;  %v3773_v63 = vsel %vm3767_vm12, %v3760_v25, 920167782 }
 0x596   : > { %v3697_v2 = vclz %v4892_v20  ;;  %v3770_v60 = vsel %vm3766_vm15, %v3754_v44, %v3769_v50  ;;  %v3774_v57 = vsel %vm3766_vm15, %v3757_v27, %v3773_v63  ;;  %v3776_v33 = vsel %vm3764_vm9, %v3754_v44, %v3757_v27 }
 0x597   : > { %v3775_v1 = vsel %vm3765_vm5, %v3772_v13, %v3774_v57  ;;  %v3777_v12 = vsel %vm3767_vm12, %v3763_v55, 1326507024  ;;  %v3780_v14 = vshll.u32 %v3740_v47, 8  ;;  %v3843_v48 = vor.u32 8388608, %v8239_v49 }
 0x598   : > { %v8265_v35 = vmul.f32 %v3608_v36, %v3606_v7  ;;  %v4893_v5 = vadd.s32 4294967294, %v3697_v2  ;;  %v3778_v30 = vsel %vm3766_vm15, %v3760_v25, %v3777_v12  ;;  %v3845_v16 = vadd.s32 1, %v4899_v23 }
 0x599   : > { %v3771_v41 = vsel %vm3765_vm5, %v3768_v52, %v3770_v60  ;;  %v3779_v18 = vsel %vm3765_vm5, %v3776_v33, %v3778_v30  ;;  %v8269_v62 = vmul.u32.u64.low %v3780_v14, %v3775_v1  ;;  %v8270_v20 = vmul.u32.u64.high %v3780_v14, %v3775_v1, %v8269_v62 }
 0x59a   : > { %vm4894_vm9 = vcmp.lt.s32.totalorder %v4893_v5, 0  ;;  %v8273_v44 = vmul.u32.u64.low %v3780_v14, %v3779_v18  ;;  %v8274_v27 = vmul.u32.u64.high %v3780_v14, %v3779_v18, %v8273_v44  ;;  %vm3846_vm12 = vcmp.gt.s32.totalorder %v3845_v16, 0 }
 0x59b   : > { %v3685_v55 = vadd.s32 %v8185_v43, %v8192_v38  ;;  %v3700_v47 = vsel %vm4894_vm9, 0, %v4893_v5  ;;  %v3847_v49 = vsel %vm3846_vm12, %v3845_v16, 0  ;;  %v3787_v7 = vmul.u32 %v3780_v14, %v3771_v41 }
 0x59c   : > { %v3701_v61 = vsub.s32 32, %v3700_v47  ;;  %v3705_v36 = vsub.s32 4294967266, %v3700_v47  ;;  %v3702_v50 = vshll.u32 %v8252_v17, %v3700_v47  ;;  %v3790_v52 = vadd.s32 1, %v8270_v20 }
 0x59d   : > { %v3849_v13 = vand.u32 31, %v3847_v49  ;;  %v8282_v63 = vshll.u32 %v3843_v48, 8  ;;  %vm3789_vm15 = vc.u32 %v8274_v27, %v8269_v62  ;;  %v3848_v43 = vshrl.u32 %v3847_v49, 5 }
 0x59e   : > { %v3703_v2 = vshrl.u32 %v3685_v55, %v3701_v61  ;;  %v3706_v60 = vadd.s32 127, %v3705_v36  ;;  %v3791_v38 = vsel %vm3789_vm15, %v3790_v52, %v8270_v20  ;;  %v3941_v41 = vand.u32 2139095040, %v8221_v8 }
 0x59f   : > { %v3850_v57 = vsub.s32 32, %v3849_v13  ;;  %v3852_v33 = vshll.u32 %v9496_v37, %v3849_v13  ;;  %v3792_v12 = vadd.s32 %v3791_v38, %v3787_v7  ;;  %v3855_v14 = vshll.u32 %v9505_v19, %v3849_v13 }
 0x5a0   : > { %v3704_v1 = vor.u32 %v3703_v2, %v3702_v50  ;;  %v3707_v17 = vshll.u32 %v3706_v60, 23  ;;  %v9686_v48 = vand.u32 2147483647, %v7782_v11  ;;  %v9687_v5 = vmov 0 }
 0x5a1   : > { %v3853_v30 = vshrl.u32 %v9505_v19, %v3850_v57  ;;  %v3856_v16 = vshrl.u32 %v9488_v4, %v3850_v57  ;;  %v3858_v18 = vshll.u32 %v9488_v4, %v3849_v13  ;;  %v3859_v20 = vshrl.u32 %v9506_v31, %v3850_v57 }
 0x5a2   : > { %vm8292_vm5 = vcmp.le.f32.partialorder %v9686_v48, 0.7853982  ;;  %v3708_v44 = vor.u32 4788187, %v3707_v17  ;;  %v3711_v55 = vcvt.s32.f32 %v3704_v1  ;;  %v3793_v47 = vadd.s32 536870912, %v3792_v12 }
 0x5a3   : > { %v9688_v5 = vsel %vm8292_vm5, 4294967295, %v9687_v5  ;;  %v3861_v49 = vshll.u32 %v9506_v31, %v3849_v13  ;;  %v3854_v61 = vor.u32 %v3853_v30, %v3852_v33  ;;  %v3857_v36 = vor.u32 %v3856_v16, %v3855_v14 }
 0x5a4   : > { %v3860_v7 = vor.u32 %v3859_v20, %v3858_v18  ;;  %v3862_v50 = vshrl.u32 %v9508_v58, %v3850_v57  ;;  %v3709_v52 = vand.u32 2147483647, %v3708_v44  ;;  %v8304_v2 = vshrl.u32 %v3793_v47, 30 }
 0x5a5   : > { %v3864_v60 = vshll.u32 %v9508_v58, %v3849_v13  ;;  %v3865_v38 = vshrl.u32 %v9489_v53, %v3850_v57  ;;  %v9690_v17 = vand.u32 2147483647, %v7948_v56  ;;  %v9691_v1 = vmov 0 }
 0x5a6   : > { %9689 = vst [vmem:[#allocation123_spill] sm:$0xff] %v8304_v2  ;;  %v3851_v33 = vshrl.u32 %v9496_v37, %v3850_v57  ;;  %v3863_v14 = vor.u32 %v3862_v50, %v3861_v49  ;;  %vm3867_vm9 = vcmp.lt.s32.totalorder %v3848_v43, 1  ;;  %vm9421_vm7 = vcmp.lt.s32.totalorder %v3848_v43, 2 }
 0x5a7   : > { %vm8310_vm15 = vcmp.le.f32.partialorder %v9690_v17, 0.7853982  ;;  %v3712_v48 = vmul.f32 %v3711_v55, %v3709_v52  ;;  %v3795_v30 = vshll.u32 %v8304_v2, 30  ;;  %v3866_v16 = vor.u32 %v3865_v38, %v3864_v60 }
 0x5a8   : > { %v9692_v1 = vsel %vm8310_vm15, 4294967295, %v9691_v1  ;;  %vm3870_vm12 = vcmp.lt.s32.totalorder %v3848_v43, 4  ;;  %v9694_v13 = vand.u32 2147483647, %v7977_v21  ;;  %v9695_v18 = vmov 0 }
 0x5a9   : > { %9693 = vst [vmem:[#allocation124_spill] sm:$0xff] %v9692_v1  ;;  %vm3869_vm3 = vcmp.lt.s32.totalorder %v3848_v43, 3  ;;  %v3872_v20 = vsel %vm3870_vm12, %v3860_v7, 2102212464  ;;  %v3875_v44 = vsel %vm3867_vm9, %v3854_v61, %v3857_v36  ;;  %v3876_v47 = vsel %vm3870_vm12, %v3863_v14, 920167782 }
 0x5aa   : > { %vm8318_vm2 = vcmp.le.f32.partialorder %v9694_v13, 0.7853982  ;;  %v3713_v57 = vxor.u32 2147483648, %v3712_v48  ;;  %v8323_v49 = vsub.s32 %v3792_v12, %v3795_v30  ;;  %v3871_v55 = vsel %vm3867_vm9, %v3851_v33, %v3854_v61 }
 0x5ab   : > { %v9696_v18 = vsel %vm8318_vm2, 4294967295, %v9695_v18  ;;  %v3877_v50 = vsel %vm3869_vm3, %v3860_v7, %v3876_v47  ;;  %v3873_v52 = vsel %vm3869_vm3, %v3857_v36, %v3872_v20  ;;  %v3879_v38 = vsel %vm3867_vm9, %v3857_v36, %v3860_v7 }
 0x5ac   : > { %9697 = vst [vmem:[#allocation125_spill] sm:$0xff] %v9696_v18  ;;  %v3878_v60 = vsel %vm9421_vm7, %v3875_v44, %v3877_v50  ;;  %v3880_v17 = vsel %vm3870_vm12, %v3866_v16, 1326507024  ;;  %v3511_v13 = vsel %vm8292_vm5, %v7782_v11, %v8225_v40  ;;  %v3798_v25 = vsub.s32 0, %v8323_v49 }
 0x5ad   : > { %v3881_v23 = vsel %vm3869_vm3, %v3863_v14, %v3880_v17  ;;  %v8335_v12 = vadd.f32 %v7910_v54, %v6074_v32  ;;  %v9698_v61 = vxor.u32 2147483648, %v8265_v35  ;;  %vm9699_vm7 = vcmp.lt.s32.totalorder %v7948_v56, 0 }
 0x5ae   : > { %vm9700_vm9 = vcmp.lt.s32.totalorder %v3848_v43, 2  ;;  %v8344_v7 = vmul.u32.u64.low %v8282_v63, %v3878_v60  ;;  %v8345_v30 = vmul.u32.u64.high %v8282_v63, %v3878_v60, %v8344_v7  ;;  %v4896_v40 = vmin.u32 %v3798_v25, %v8323_v49 }
 0x5af   : > { %v3611_v33 = vsel %vm9699_vm7, %v9698_v61, %v8265_v35  ;;  %v3882_v36 = vsel %vm9700_vm9, %v3879_v38, %v3881_v23  ;;  %vm9701_vm12 = vmmov %vm9700_vm9  ;;  %5486 = vcosq.f32 %v3511_v13  ;;  %vm9702_vm3 = vcmp.lt.s32.totalorder %v7977_v21, 0 }
 0x5b0   : > { %v3874_v14 = vsel %vm9701_vm12, %v3871_v55, %v3873_v52  ;;  %v8350_v16 = vmul.u32.u64.low %v8282_v63, %v3882_v36  ;;  %v8351_v32 = vmul.u32.u64.high %v8282_v63, %v3882_v36, %v8350_v16  ;;  %v3714_v54 = vsel %vm9702_vm3, %v3713_v57, %v3712_v48 }
 0x5b1   : > { %v3942_v20 = vshrl.u32 %v3941_v41, 23  ;;  %v9703_v35 = vand.u32 2147483647, %v8221_v8  ;;  %5488 = vsinq.f32 %v3511_v13  ;;  %v3614_v44 = vsel %vm8310_vm15, %v7948_v56, %v3611_v33 }
 0x5b2   : > { %v3800_v25 = vclz %v4896_v40  ;;  %v4044_v43 = vand.u32 2139095040, %v8230_v59  ;;  %v3890_v47 = vmul.u32 %v8282_v63, %v3874_v14  ;;  %v3893_v55 = vadd.s32 1, %v8345_v30 }
 0x5b3   : > { %v3945_v23 = vand.u32 8388607, %v9703_v35  ;;  %v4903_v50 = vadd.s32 4294967169, %v3942_v20  ;;  %v9422_v52 = vand.u32 2147483647, %v8230_v59  ;;  %v3717_v41 = vsel %vm8318_vm2, %v7977_v21, %v3714_v54 }
 0x5b4   : > { %v4897_v48 = vadd.s32 4294967294, %v3800_v25  ;;  %vm3892_vm7 = vc.u32 %v8351_v32, %v8344_v7  ;;  %v4045_v57 = vshrl.u32 %v4044_v43, 23  ;;  %5490 = vcosq.f32 %v3614_v44 }
 0x5b5   : > { %v3894_v60 = vsel %vm3892_vm7, %v3893_v55, %v8345_v30  ;;  %v3946_v38 = vor.u32 8388608, %v3945_v23  ;;  %v3948_v17 = vadd.s32 1, %v4903_v50  ;;  %5492 = vsinq.f32 %v3614_v44 }
 0x5b6   : > { %v3788_v63 = vadd.s32 %v8269_v62, %v8274_v27  ;;  %vm4898_vm9 = vcmp.lt.s32.totalorder %v4897_v48, 0  ;;  %v3895_v13 = vadd.s32 %v3894_v60, %v3890_v47  ;;  %5494 = vcosq.f32 %v3717_v41 }
 0x5b7   : > { %v3803_v61 = vsel %vm4898_vm9, 0, %v4897_v48  ;;  %vm3949_vm12 = vcmp.gt.s32.totalorder %v3948_v17, 0  ;;  %v8373_v33 = vand.u32 8388607, %v9422_v52  ;;  %v4907_v16 = vadd.s32 4294967169, %v4045_v57 }
 0x5b8   : > { %v3804_v36 = vsub.s32 32, %v3803_v61  ;;  %v3808_v40 = vsub.s32 4294967266, %v3803_v61  ;;  %v3896_v14 = vadd.s32 536870912, %v3895_v13  ;;  %5496 = vsinq.f32 %v3717_v41 }
 0x5b9   : > { %v3950_v30 = vsel %vm3949_vm12, %v3948_v17, 0  ;;  %v8375_v54 = vshll.u32 %v3946_v38, 8  ;;  %v3805_v62 = vshll.u32 %v8323_v49, %v3803_v61  ;;  %v8381_v44 = vpop.eup %5486  ;;  %v8384_v25 = vadd.s32 %v8344_v7, %v8351_v32 }
 0x5ba   : > { %v3806_v27 = vshrl.u32 %v3788_v63, %v3804_v36  ;;  %v3809_v35 = vadd.s32 127, %v3808_v40  ;;  %v8379_v23 = vshrl.u32 %v3896_v14, 30  ;;  %9705 = vst [vmem:[#allocation127_spill] sm:$0xff] %v8381_v44  ;;  %v3952_v43 = vand.u32 31, %v3950_v30 }
 0x5bb   : > { %v4049_v47 = vor.u32 8388608, %v8373_v33  ;;  %v4147_v55 = vand.u32 2139095040, %v8335_v12  ;;  %v8388_v50 = vpop.eup %5488  ;;  %v4051_v57 = vadd.s32 1, %v4907_v16  ;;  %v3951_v60 = vshrl.u32 %v3950_v30, 5 }
 0x5bc   : > { %9704 = vst [vmem:[#allocation126_spill] sm:$0xff] %v8379_v23  ;;  %9706 = vst [vmem:[#allocation128_spill] sm:$0xff] %v8388_v50  ;;  %v3807_v41 = vor.u32 %v3806_v27, %v3805_v62  ;;  %v3810_v48 = vshll.u32 %v3809_v35, 23  ;;  %v3898_v49 = vshll.u32 %v8379_v23, 30  ;;  %v3953_v38 = vsub.s32 32, %v3952_v43 }
 0x5bd   : > { %v3955_v17 = vshll.u32 %v9496_v37, %v3952_v43  ;;  %v3958_v63 = vshll.u32 %v9505_v19, %v3952_v43  ;;  %v3961_v33 = vshll.u32 %v9488_v4, %v3952_v43  ;;  %v3964_v30 = vshll.u32 %v9506_v31, %v3952_v43 }
 0x5be   : > { %v3811_v7 = vor.u32 4788187, %v3810_v48  ;;  %v3814_v32 = vcvt.s32.f32 %v3807_v41  ;;  %v8393_v61 = vsub.s32 %v3895_v13, %v3898_v49  ;;  %v8396_v36 = vpop.eup %5490  ;;  %v3956_v40 = vshrl.u32 %v9505_v19, %v3953_v38 }
 0x5bf   : > { %9707 = vst [vmem:[#allocation129_spill] sm:$0xff] %v8396_v36  ;;  %v3959_v14 = vshrl.u32 %v9488_v4, %v3953_v38  ;;  %v3962_v16 = vshrl.u32 %v9506_v31, %v3953_v38  ;;  %v8402_v62 = vpop.eup %5492  ;;  %v3965_v13 = vshrl.u32 %v9508_v58, %v3953_v38  ;;  %v3967_v41 = vshll.u32 %v9508_v58, %v3952_v43 }
 0x5c0   : > { %9708 = vst [vmem:[#allocation130_spill] sm:$0xff] %v8402_v62  ;;  %v3812_v27 = vand.u32 2147483647, %v3811_v7  ;;  %v3901_v35 = vsub.s32 0, %v8393_v61  ;;  %v8407_v48 = vpop.eup %5494  ;;  %v3957_v49 = vor.u32 %v3956_v40, %v3955_v17  ;;  %v3968_v1 = vshrl.u32 %v9489_v53, %v3953_v38 }
 0x5c1   : > { %9709 = vst [vmem:[#allocation131_spill] sm:$0xff] %v8407_v48  ;;  %v3960_v52 = vor.u32 %v3959_v14, %v3958_v63  ;;  %v3963_v20 = vor.u32 %v3962_v16, %v3961_v33  ;;  %v3966_v2 = vor.u32 %v3965_v13, %v3964_v30  ;;  %v4148_v36 = vshrl.u32 %v4147_v55, 23 }
 0x5c2   : > { %v4900_v56 = vmin.u32 %v3901_v35, %v8393_v61  ;;  %v8411_v62 = vpop.eup %5496  ;;  %v3815_v7 = vmul.f32 %v3814_v32, %v3812_v27  ;;  %v3969_v23 = vor.u32 %v3968_v1, %v3967_v41  ;;  %vm3970_vm9 = vcmp.lt.s32.totalorder %v3951_v60, 1 }
 0x5c3   : > { %9710 = vst [vmem:[#allocation132_spill] sm:$0xff] %v8411_v62  ;;  %vm3973_vm12 = vcmp.lt.s32.totalorder %v3951_v60, 4  ;;  %v3954_v17 = vshrl.u32 %v9496_v37, %v3953_v38  ;;  %vm3972_vm15 = vcmp.lt.s32.totalorder %v3951_v60, 3  ;;  %v3978_v33 = vsel %vm3970_vm9, %v3957_v49, %v3960_v52 }
 0x5c4   : > { %v3903_v43 = vclz %v4900_v56  ;;  %v3975_v63 = vsel %vm3973_vm12, %v3963_v20, 2102212464  ;;  %v3979_v40 = vsel %vm3973_vm12, %v3966_v2, 920167782  ;;  %v3982_v14 = vsel %vm3970_vm9, %v3960_v52, %v3963_v20 }
 0x5c5   : > { %v3983_v16 = vsel %vm3973_vm12, %v3969_v23, 1326507024  ;;  %vm3971_vm3 = vcmp.lt.s32.totalorder %v3951_v60, 2  ;;  %v3980_v55 = vsel %vm3972_vm15, %v3963_v20, %v3979_v40  ;;  %v8415_v35 = vshll.u32 %v4049_v47, 8 }
 0x5c6   : > { %v4901_v30 = vadd.s32 4294967294, %v3903_v43  ;;  %v3816_v13 = vxor.u32 2147483648, %v3815_v7  ;;  %v3974_v48 = vsel %vm3970_vm9, %v3954_v17, %v3957_v49  ;;  %v3976_v32 = vsel %vm3972_vm15, %v3960_v52, %v3975_v63 }
 0x5c7   : > { %v3984_v1 = vsel %vm3972_vm15, %v3966_v2, %v3983_v16  ;;  %v3981_v56 = vsel %vm3971_vm3, %v3978_v33, %v3980_v55  ;;  %vm9711_vm2 = vcmp.gt.s32.totalorder %v4051_v57, 0  ;;  %v8424_v43 = vadd.s32 4294967169, %v4148_v36 }
 0x5c8   : > { %vm4902_vm7 = vcmp.lt.s32.totalorder %v4901_v30, 0  ;;  %v3985_v38 = vsel %vm3971_vm3, %v3982_v14, %v3984_v1  ;;  %v4053_v27 = vsel %vm9711_vm2, %v4051_v57, 0  ;;  %v3977_v49 = vsel %vm3971_vm3, %v3974_v48, %v3976_v32 }
 0x5c9   : > { %v3906_v41 = vsel %vm4902_vm7, 0, %v4901_v30  ;;  %v8421_v62 = vmul.u32.u64.low %v8375_v54, %v3985_v38  ;;  %v8422_v23 = vmul.u32.u64.high %v8375_v54, %v3985_v38, %v8421_v62  ;;  %v8427_v52 = vshrl.u32 %v4053_v27, 5 }
 0x5ca   : > { %v3907_v20 = vsub.s32 32, %v3906_v41  ;;  %v3911_v47 = vsub.s32 4294967266, %v3906_v41  ;;  %v8430_v2 = vmul.u32.u64.low %v8375_v54, %v3981_v56  ;;  %v8431_v17 = vmul.u32.u64.high %v8375_v54, %v3981_v56, %v8430_v2 }
 0x5cb   : > { %v4055_v63 = vand.u32 31, %v4053_v27  ;;  %v9712_v57 = vand.u32 2147483647, %v8335_v12  ;;  %vm9713_vm2 = vcmp.lt.s32.totalorder %v8155_v0, 0  ;;  %v3908_v62 = vshll.u32 %v8393_v61, %v3906_v41 }
 0x5cc   : > { %v3817_v36 = vsel %vm9713_vm2, %v3816_v13, %v3815_v7  ;;  %v3909_v60 = vshrl.u32 %v8384_v25, %v3907_v20  ;;  %v3912_v48 = vadd.s32 127, %v3911_v47  ;;  %v3993_v40 = vmul.u32 %v8375_v54, %v3977_v49 }
 0x5cd   : > { %v8436_v33 = vand.u32 8388607, %v9712_v57  ;;  %vm3995_vm15 = vc.u32 %v8422_v23, %v8430_v2  ;;  %v4056_v14 = vsub.s32 32, %v4055_v63  ;;  %vm4073_vm3 = vcmp.lt.s32.totalorder %v8427_v52, 1 }
 0x5ce   : > { %v9714_v16 = vand.u32 2147483647, %v8155_v0  ;;  %v9715_v30 = vmov 0  ;;  %v3910_v7 = vor.u32 %v3909_v60, %v3908_v62  ;;  %v3913_v55 = vshll.u32 %v3912_v48, 23 }
 0x5cf   : > { %v4058_v61 = vshll.u32 %v9496_v37, %v4055_v63  ;;  %v4061_v25 = vshll.u32 %v9505_v19, %v4055_v63  ;;  %vm4074_vm9 = vcmp.lt.s32.totalorder %v8427_v52, 2  ;;  %v3996_v54 = vadd.s32 1, %v8431_v17 }
 0x5d0   : > { %vm8448_vm7 = vcmp.le.f32.partialorder %v9714_v16, 0.7853982  ;;  %v4059_v13 = vshrl.u32 %v9505_v19, %v4056_v14  ;;  %v4062_v32 = vshrl.u32 %v9488_v4, %v4056_v14  ;;  %v4064_v1 = vshll.u32 %v9488_v4, %v4055_v63 }
 0x5d1   : > { %v9716_v30 = vsel %vm8448_vm7, 4294967295, %v9715_v30  ;;  %v3914_v56 = vor.u32 4788187, %v3913_v55  ;;  %v4057_v38 = vshrl.u32 %v9496_v37, %v4056_v14  ;;  %v4065_v27 = vshrl.u32 %v9506_v31, %v4056_v14 }
 0x5d2   : > { %v4067_v41 = vshll.u32 %v9506_v31, %v4055_v63  ;;  %v3997_v20 = vsel %vm3995_vm15, %v3996_v54, %v8431_v17  ;;  %v4060_v47 = vor.u32 %v4059_v13, %v4058_v61  ;;  %v4063_v49 = vor.u32 %v4062_v32, %v4061_v25 }
 0x5d3   : > { %v4068_v57 = vshrl.u32 %v9508_v58, %v4056_v14  ;;  %v3915_v62 = vand.u32 2147483647, %v3914_v56  ;;  %v3917_v60 = vcvt.s32.f32 %v3910_v7  ;;  %v3998_v48 = vadd.s32 %v3997_v20, %v3993_v40 }
 0x5d4   : > { %v4066_v16 = vor.u32 %v4065_v27, %v4064_v1  ;;  %v4070_v18 = vshll.u32 %v9508_v58, %v4055_v63  ;;  %v4071_v21 = vshrl.u32 %v9489_v53, %v4056_v14  ;;  %vm4076_vm2 = vcmp.lt.s32.totalorder %v8427_v52, 4 }
 0x5d5   : > { %v4069_v55 = vor.u32 %v4068_v57, %v4067_v41  ;;  %v3918_v44 = vmul.f32 %v3917_v60, %v3915_v62  ;;  %v3999_v50 = vadd.s32 536870912, %v3998_v48  ;;  %vm4075_vm12 = vcmp.lt.s32.totalorder %v8427_v52, 3 }
 0x5d6   : > { %v4078_v17 = vsel %vm4076_vm2, %v4066_v16, 2102212464  ;;  %v4072_v61 = vor.u32 %v4071_v21, %v4070_v18  ;;  %v4077_v7 = vsel %vm4073_vm3, %v4057_v38, %v4060_v47  ;;  %v4081_v40 = vsel %vm4073_vm3, %v4060_v47, %v4063_v49 }
 0x5d7   : > { %v4082_v63 = vsel %vm4076_vm2, %v4069_v55, 920167782  ;;  %v3919_v14 = vxor.u32 2147483648, %v3918_v44  ;;  %v8480_v25 = vshrl.u32 %v3999_v50, 30  ;;  %v4079_v54 = vsel %vm4075_vm12, %v4063_v49, %v4078_v17 }
 0x5d8   : > { %v4083_v13 = vsel %vm4075_vm12, %v4066_v16, %v4082_v63  ;;  %v3820_v32 = vsel %vm8448_vm7, %v8155_v0, %v3817_v36  ;;  %v4085_v18 = vsel %vm4073_vm3, %v4063_v49, %v4066_v16  ;;  %v4086_v1 = vsel %vm4076_vm2, %v4072_v61, 1326507024 }
 0x5d9   : > { %9717 = vst [vmem:[#allocation133_spill] sm:$0xff] %v8480_v25  ;;  %v4084_v21 = vsel %vm4074_vm9, %v4081_v40, %v4083_v13  ;;  %v4001_v56 = vshll.u32 %v8480_v25, 30  ;;  %v4087_v38 = vsel %vm4075_vm12, %v4069_v55, %v4086_v1  ;;  %v4152_v50 = vor.u32 8388608, %v8436_v33 }
 0x5da   : > { %v4154_v27 = vadd.s32 1, %v8424_v43  ;;  %v4080_v41 = vsel %vm4074_vm9, %v4077_v7, %v4079_v54  ;;  %v4088_v36 = vsel %vm4074_vm9, %v4085_v18, %v4087_v38  ;;  %vm9718_vm15 = vcmp.lt.s32.totalorder %v8202_v28, 0 }
 0x5db   : > { %v8499_v20 = vmul.u32.u64.low %v8415_v35, %v4084_v21  ;;  %v8500_v47 = vmul.u32.u64.high %v8415_v35, %v4084_v21, %v8499_v20  ;;  %v3920_v49 = vsel %vm9718_vm15, %v3919_v14, %v3918_v44  ;;  %v8505_v57 = vsub.s32 %v3998_v48, %v4001_v56 }
 0x5dc   : > { %v8508_v33 = vmul.u32.u64.low %v8415_v35, %v4088_v36  ;;  %v8509_v62 = vmul.u32.u64.high %v8415_v35, %v4088_v36, %v8508_v33  ;;  %5498 = vcosq.f32 %v3820_v32  ;;  %v9719_v43 = vand.u32 2147483647, %v8202_v28 }
 0x5dd   : > { %v9720_v52 = vmov 0  ;;  %vm4155_vm9 = vcmp.gt.s32.totalorder %v4154_v27, 0  ;;  %v8519_v60 = vadd.f32 %v8016_v29, %v6076_v34  ;;  %5500 = vsinq.f32 %v3820_v32 }
 0x5de   : > { %vm8513_vm3 = vcmp.le.f32.partialorder %v9719_v43, 0.7853982  ;;  %v3994_v44 = vadd.s32 %v8430_v2, %v8422_v23  ;;  %v4004_v48 = vsub.s32 0, %v8505_v57  ;;  %v4156_v16 = vsel %vm4155_vm9, %v4154_v27, 0  ;;  %v9722_v23 = vld [vmem:[#allocation20_spill] sm:$0xff] }
 0x5df   : > { %v9721_v52 = vsel %vm8513_vm3, 4294967295, %v9720_v52  ;;  %v8527_v55 = vsel %vm8513_vm3, %v8202_v28, %v3920_v49  ;;  %v4096_v17 = vmul.u32 %v8415_v35, %v4080_v41  ;;  %v4099_v61 = vadd.s32 1, %v8500_v47 }
 0x5e0   : > { %v4158_v7 = vand.u32 31, %v4156_v16  ;;  %v4904_v34 = vmin.u32 %v4004_v48, %v8505_v57  ;;  %vm4098_vm12 = vc.u32 %v8509_v62, %v8499_v20  ;;  %v8534_v29 = vshll.u32 %v4152_v50, 8 }
 0x5e1   : > { %v4100_v40 = vsel %vm4098_vm12, %v4099_v61, %v8500_v47  ;;  %v4157_v63 = vshrl.u32 %v4156_v16, 5  ;;  %5502 = vcosq.f32 %v8527_v55 }
 0x5e2   : > { %v4159_v14 = vsub.s32 32, %v4158_v7  ;;  %v4006_v13 = vclz %v4904_v34  ;;  %v4101_v35 = vadd.s32 %v4100_v40, %v4096_v17  ;;  %v4161_v32 = vshll.u32 %v9496_v37, %v4158_v7 }
 0x5e3   : > { %v4164_v21 = vshll.u32 %v9505_v19, %v4158_v7  ;;  %v4167_v56 = vshll.u32 %v9488_v4, %v4158_v7  ;;  %v4170_v41 = vshll.u32 %v9506_v31, %v4158_v7  ;;  %v4173_v33 = vshll.u32 %v9508_v58, %v4158_v7 }
 0x5e4   : > { %v4162_v18 = vshrl.u32 %v9505_v19, %v4159_v14  ;;  %v4165_v1 = vshrl.u32 %v9488_v4, %v4159_v14  ;;  %v4168_v38 = vshrl.u32 %v9506_v31, %v4159_v14  ;;  %v4905_v50 = vadd.s32 4294967294, %v4006_v13 }
 0x5e5   : > { %v4102_v27 = vadd.s32 536870912, %v4101_v35  ;;  %v4171_v36 = vshrl.u32 %v9508_v58, %v4159_v14  ;;  %v4160_v47 = vshrl.u32 %v9496_v37, %v4159_v14  ;;  %v4174_v43 = vshrl.u32 %v9489_v53, %v4159_v14 }
 0x5e6   : > { %v4163_v49 = vor.u32 %v4162_v18, %v4161_v32  ;;  %vm4906_vm2 = vcmp.lt.s32.totalorder %v4905_v50, 0  ;;  %v4166_v16 = vor.u32 %v4165_v1, %v4164_v21  ;;  %v4169_v17 = vor.u32 %v4168_v38, %v4167_v56  ;;  %v8552_v61 = vpop.eup %5498 }
 0x5e7   : > { %v8550_v48 = vshrl.u32 %v4102_v27, 30  ;;  %9724 = vst [vmem:[#allocation134_spill] sm:$0xff] %v8552_v61  ;;  %v4009_v34 = vsel %vm4906_vm2, 0, %v4905_v50  ;;  %v4172_v40 = vor.u32 %v4171_v36, %v4170_v41  ;;  %v4175_v13 = vor.u32 %v4174_v43, %v4173_v33  ;;  %v8554_v2 = vpop.eup %5500 }
 0x5e8   : > { %vm4176_vm15 = vcmp.lt.s32.totalorder %v4157_v63, 1  ;;  %v4010_v54 = vsub.s32 32, %v4009_v34  ;;  %v4014_v25 = vsub.s32 4294967266, %v4009_v34  ;;  %vm4177_vm9 = vcmp.lt.s32.totalorder %v4157_v63, 2 }
 0x5e9   : > { %9723 = vst [vmem:[#allocation20_spill] sm:$0xff] %v8550_v48  ;;  %v4104_v32 = vshll.u32 %v8550_v48, 30  ;;  %v4011_v7 = vshll.u32 %v8505_v57, %v4009_v34  ;;  %vm4178_vm12 = vcmp.lt.s32.totalorder %v4157_v63, 3  ;;  %vm4179_vm7 = vcmp.lt.s32.totalorder %v4157_v63, 4 }
 0x5ea   : > { %v4180_v14 = vsel %vm4176_vm15, %v4160_v47, %v4163_v49  ;;  %v4012_v21 = vshrl.u32 %v3994_v44, %v4010_v54  ;;  %v4015_v18 = vadd.s32 127, %v4014_v25  ;;  %v4181_v56 = vsel %vm4179_vm7, %v4169_v17, 2102212464 }
 0x5eb   : > { %v8559_v1 = vsub.s32 %v4101_v35, %v4104_v32  ;;  %v4182_v38 = vsel %vm4178_vm12, %v4166_v16, %v4181_v56  ;;  %v4184_v50 = vsel %vm4176_vm15, %v4163_v49, %v4166_v16  ;;  %v4185_v27 = vsel %vm4179_vm7, %v4172_v40, 920167782 }
 0x5ec   : > { %v4189_v41 = vsel %vm4179_vm7, %v4175_v13, 1326507024  ;;  %v4013_v36 = vor.u32 %v4012_v21, %v4011_v7  ;;  %v4016_v33 = vshll.u32 %v4015_v18, 23  ;;  %v4188_v57 = vsel %vm4176_vm15, %v4166_v16, %v4169_v17 }
 0x5ed   : > { %v4107_v43 = vsub.s32 0, %v8559_v1  ;;  %v4183_v34 = vsel %vm4177_vm9, %v4180_v14, %v4182_v38  ;;  %v4186_v44 = vsel %vm4178_vm12, %v4169_v17, %v4185_v27  ;;  %v4190_v25 = vsel %vm4178_vm12, %v4172_v40, %v4189_v41 }
 0x5ee   : > { %v4250_v54 = vand.u32 2139095040, %v8519_v60  ;;  %v4017_v35 = vor.u32 4788187, %v4016_v33  ;;  %v4020_v47 = vcvt.s32.f32 %v4013_v36  ;;  %v4187_v13 = vsel %vm4177_vm9, %v4184_v50, %v4186_v44  ;;  %v9731_v36 = vld [vmem:[#allocation18_spill] sm:$0xff] }
 0x5ef   : > { %v4908_v49 = vmin.u32 %v4107_v43, %v8559_v1  ;;  %v4191_v32 = vsel %vm4177_vm9, %v4188_v57, %v4190_v25  ;;  %v8573_v7 = vmul.u32.u64.low %v8534_v29, %v4187_v13  ;;  %v8574_v21 = vmul.u32.u64.high %v8534_v29, %v4187_v13, %v8573_v7 }
 0x5f0   : > { %v4251_v16 = vshrl.u32 %v4250_v54, 23  ;;  %v4018_v14 = vand.u32 2147483647, %v4017_v35  ;;  %v8577_v17 = vmul.u32.u64.low %v8534_v29, %v4191_v32  ;;  %v8578_v40 = vmul.u32.u64.high %v8534_v29, %v4191_v32, %v8577_v17 }
 0x5f1   : > { %v4109_v18 = vclz %v4908_v49  ;;  %v9725_v56 = vand.u32 2147483647, %v8221_v8  ;;  %v9726_v38 = vmov 0  ;;  %v9729_v50 = vand.u32 2147483647, %v8519_v60 }
 0x5f2   : > { %v4915_v63 = vadd.s32 4294967169, %v4251_v16  ;;  %v9730_v41 = vsub.s32 4, %v9722_v23  ;;  %vm9732_vm2 = vcmp.lt.s32.totalorder %v9731_v36, 0  ;;  %5504 = vsinq.f32 %v8527_v55 }
 0x5f3   : > { %vm8583_vm7 = vcmp.le.f32.partialorder %v9725_v56, 0.7853982  ;;  %v4254_v27 = vand.u32 8388607, %v9729_v50  ;;  %vm9451_vm15 = vcmp.lt.s32.totalorder %v8221_v8, 0  ;;  %v4021_v43 = vmul.f32 %v4020_v47, %v4018_v14 }
 0x5f4   : > { %v9727_v38 = vsel %vm8583_vm7, 4294967295, %v9726_v38  ;;  %v1244_v33 = vsel %vm9732_vm2, %v9730_v41, %v9722_v23  ;;  %v4909_v57 = vadd.s32 4294967294, %v4109_v18  ;;  %v4097_v44 = vadd.s32 %v8499_v20, %v8509_v62  ;;  %v9734_v20 = vld [vmem:[#allocation36_spill] sm:$0xff] }
 0x5f5   : > { %9728 = vst [vmem:[#allocation135_spill] sm:$0xff] %v9727_v38  ;;  %v4199_v25 = vmul.u32 %v8534_v29, %v4183_v34  ;;  %v4202_v54 = vadd.s32 1, %v8574_v21  ;;  %v4257_v35 = vadd.s32 1, %v4915_v63  ;;  %v4022_v49 = vxor.u32 2147483648, %v4021_v43  ;;  %v9735_v29 = vld [vmem:[#allocation35_spill] sm:$0xff] }
 0x5f6   : > { %vm4910_vm9 = vcmp.lt.s32.totalorder %v4909_v57, 0  ;;  %vm4201_vm12 = vc.u32 %v8578_v40, %v8573_v7  ;;  %v1246_v23 = vsel %vm6443_vm14, 0, %v1244_v33  ;;  %v4255_v47 = vor.u32 8388608, %v4254_v27 }
 0x5f7   : > { %v4112_v55 = vsel %vm4910_vm9, 0, %v4909_v57  ;;  %v4203_v32 = vsel %vm4201_vm12, %v4202_v54, %v8574_v21  ;;  %vm4258_vm2 = vcmp.gt.s32.totalorder %v4257_v35, 0  ;;  %v4023_v18 = vsel %vm9451_vm15, %v4022_v49, %v4021_v43  ;;  %v8619_v49 = vpop.eup %5502 }
 0x5f8   : > { %v4113_v16 = vsub.s32 32, %v4112_v55  ;;  %v4117_v14 = vsub.s32 4294967266, %v4112_v55  ;;  %v4204_v17 = vadd.s32 %v4203_v32, %v4199_v25  ;;  %v4259_v56 = vsel %vm4258_vm2, %v4257_v35, 0 }
 0x5f9   : > { %v8608_v63 = vand.u32 3, %v1246_v23  ;;  %v4114_v50 = vshll.u32 %v8559_v1, %v4112_v55  ;;  %v4260_v21 = vshrl.u32 %v4259_v56, 5  ;;  %v8612_v27 = vadd.s32 %v8573_v7, %v8578_v40 }
 0x5fa   : > { %v4115_v41 = vshrl.u32 %v4097_v44, %v4113_v16  ;;  %v4118_v33 = vadd.s32 127, %v4117_v14  ;;  %v4205_v57 = vadd.s32 536870912, %v4204_v17  ;;  %v4261_v54 = vand.u32 31, %v4259_v56 }
 0x5fb   : > { %v8614_v13 = vshll.u32 %v4255_v47, 8  ;;  %v4026_v43 = vsel %vm8583_vm7, %v8221_v8, %v4023_v18  ;;  %vm4279_vm14 = vcmp.lt.s32.totalorder %v4260_v21, 1  ;;  %vm9457_vm9 = vcmp.lt.s32.totalorder %v8230_v59, 0 }
 0x5fc   : > { %v4116_v25 = vor.u32 %v4115_v41, %v4114_v50  ;;  %v4119_v35 = vshll.u32 %v4118_v33, 23  ;;  %v8622_v1 = vshrl.u32 %v4205_v57, 30  ;;  %v4262_v44 = vsub.s32 32, %v4261_v54  ;;  %v8626_v23 = vpop.eup %5504 }
 0x5fd   : > { %v4264_v7 = vshll.u32 %v9496_v37, %v4261_v54  ;;  %v4267_v40 = vshll.u32 %v9505_v19, %v4261_v54  ;;  %v4270_v47 = vshll.u32 %v9488_v4, %v4261_v54  ;;  %v4273_v16 = vshll.u32 %v9506_v31, %v4261_v54 }
 0x5fe   : > { %9736 = vst [vmem:[#allocation18_spill] sm:$0xff] %v8622_v1  ;;  %v4120_v55 = vor.u32 4788187, %v4119_v35  ;;  %v4123_v32 = vcvt.s32.f32 %v4116_v25  ;;  %v9737_v14 = vand.u32 2147483647, %v8230_v59  ;;  %v4207_v56 = vshll.u32 %v8622_v1, 30 }
 0x5ff   : > { %v4263_v50 = vshrl.u32 %v9496_v37, %v4262_v44  ;;  %v4265_v41 = vshrl.u32 %v9505_v19, %v4262_v44  ;;  %v4268_v33 = vshrl.u32 %v9488_v4, %v4262_v44  ;;  %v4271_v25 = vshrl.u32 %v9506_v31, %v4262_v44 }
 0x600   : > { %vm8632_vm2 = vcmp.le.f32.partialorder %v9737_v14, 0.7853982  ;;  %v4121_v57 = vand.u32 2147483647, %v4120_v55  ;;  %v4274_v35 = vshrl.u32 %v9508_v58, %v4262_v44  ;;  %v4276_v34 = vshll.u32 %v9508_v58, %v4261_v54 }
 0x601   : > { %v8643_v62 = vsub.s32 %v4204_v17, %v4207_v56  ;;  %v4266_v14 = vor.u32 %v4265_v41, %v4264_v7  ;;  %v4269_v38 = vor.u32 %v4268_v33, %v4267_v40  ;;  %v4277_v8 = vshrl.u32 %v9489_v53, %v4262_v44 }
 0x602   : > { %v4124_v1 = vmul.f32 %v4123_v32, %v4121_v57  ;;  %v4272_v48 = vor.u32 %v4271_v25, %v4270_v47  ;;  %v4275_v37 = vor.u32 %v4274_v35, %v4273_v16  ;;  %vm4281_vm15 = vcmp.lt.s32.totalorder %v4260_v21, 3 }
 0x603   : > { %v4210_v19 = vsub.s32 0, %v8643_v62  ;;  %v4278_v4 = vor.u32 %v4277_v8, %v4276_v34  ;;  %vm4282_vm12 = vcmp.lt.s32.totalorder %v4260_v21, 4  ;;  %v4283_v31 = vsel %vm4279_vm14, %v4263_v50, %v4266_v14 }
 0x604   : > { %v4125_v55 = vxor.u32 2147483648, %v4124_v1  ;;  %v4284_v61 = vsel %vm4282_vm12, %v4272_v48, 2102212464  ;;  %v4287_v58 = vsel %vm4279_vm14, %v4266_v14, %v4269_v38  ;;  %v4288_v17 = vsel %vm4282_vm12, %v4275_v37, 920167782 }
 0x605   : > { %v4912_v54 = vmin.u32 %v4210_v19, %v8643_v62  ;;  %v4285_v7 = vsel %vm4281_vm15, %v4269_v38, %v4284_v61  ;;  %v4289_v53 = vsel %vm4281_vm15, %v4272_v48, %v4288_v17  ;;  %v4291_v44 = vsel %vm4279_vm14, %v4269_v38, %v4272_v48  ;;  %v9747_v17 = vld [vmem:[#allocation17_spill] sm:$0xff] }
 0x606   : > { %v4126_v40 = vsel %vm9457_vm9, %v4125_v55, %v4124_v1  ;;  %vm9740_vm7 = vcmp.lt.s32.totalorder %v4260_v21, 2  ;;  %v4292_v34 = vsel %vm4282_vm12, %v4278_v4, 1326507024  ;;  %vm1251_vm3 = vcmp.lt.s32.totalorder %v8608_v63, 2  ;;  %v9744_v21 = vld [vmem:[#allocation23_spill] sm:$0xff] }
 0x607   : > { %v4290_v8 = vsel %vm9740_vm7, %v4287_v58, %v4289_v53  ;;  %5506 = vcosq.f32 %v4026_v43  ;;  %v4212_v32 = vclz %v4912_v54  ;;  %vm9741_vm5 = vmmov %vm9740_vm7  ;;  %v4293_v16 = vsel %vm4281_vm15, %v4275_v37, %v4292_v34 }
 0x608   : > { %v4286_v47 = vsel %vm9741_vm5, %v4283_v31, %v4285_v7  ;;  %vm1249_vm6 = vweird.f32 %v9731_v36  ;;  %v8663_v48 = vsel %vm8632_vm2, %v8230_v59, %v4126_v40  ;;  %vm9742_vm14 = vmmov %vm9741_vm5  ;;  %vm1252_vm5 = vcmp.eq.s32.totalorder %v8608_v63, 0  ;;  %v9749_v7 = vld [vmem:[#allocation48_spill] sm:$0xff]  ;;  %v9753_v36 = vld [vmem:[#allocation33_spill] sm:$0xff] }
 0x609   : > { %v4294_v61 = vsel %vm9742_vm14, %v4291_v44, %v4293_v16  ;;  %v8667_v38 = vmul.u32.u64.low %v8614_v13, %v4290_v8  ;;  %v8668_v1 = vmul.u32.u64.high %v8614_v13, %v4290_v8, %v8667_v38  ;;  %v4913_v56 = vadd.s32 4294967294, %v4212_v32 }
 0x60a   : > { %v8672_v50 = vmul.u32.u64.low %v8614_v13, %v4294_v61  ;;  %v8673_v41 = vmul.u32.u64.high %v8614_v13, %v4294_v61, %v8672_v50  ;;  %5508 = vsinq.f32 %v4026_v43  ;;  %v9743_v33 = vxor.u32 2147483648, %v9734_v20 }
 0x60b   : > { %vm1255_vm7 = vcmp.eq.s32.totalorder %v8608_v63, 2  ;;  %v1449_v25 = vsub.s32 4, %v9744_v21  ;;  %5510 = vcosq.f32 %v8663_v48  ;;  %vm4914_vm15 = vcmp.lt.s32.totalorder %v4913_v56, 0 }
 0x60c   : > { %v1254_v57 = vsel %vm1252_vm5, %v9735_v29, %v9743_v33  ;;  %v4302_v35 = vmul.u32 %v8614_v13, %v4286_v47  ;;  %v9745_v14 = vxor.u32 2147483648, %v9735_v29  ;;  %v4215_v19 = vsel %vm4914_vm15, 0, %v4913_v56  ;;  %v9750_v47 = vld [vmem:[#allocation51_spill] sm:$0xff] }
 0x60d   : > { %v4305_v43 = vadd.s32 1, %v8668_v1  ;;  %vm9746_vm12 = vcmp.lt.s32.totalorder %v6106_v3, 0  ;;  %vm1455_vm14 = vweird.f32 %v6106_v3  ;;  %v4216_v31 = vsub.s32 32, %v4215_v19 }
 0x60e   : > { %v1257_v37 = vsel %vm1255_vm7, %v9745_v14, %v9734_v20  ;;  %v1450_v4 = vsel %vm9746_vm12, %v1449_v25, %v9744_v21  ;;  %v4220_v55 = vsub.s32 4294967266, %v4215_v19  ;;  %v1459_v13 = vxor.u32 2147483648, %v6827_v10 }
 0x60f   : > { %v1258_v58 = vsel %vm1251_vm3, %v1254_v57, %v1257_v37  ;;  %v4217_v20 = vshll.u32 %v8643_v62, %v4215_v19  ;;  %vm4304_vm7 = vc.u32 %v8673_v41, %v8667_v38  ;;  %v1452_v54 = vsel %vm6626_vm10, 0, %v1450_v4  ;;  %v9751_v62 = vld [vmem:[#allocation34_spill] sm:$0xff] }
 0x610   : > { %v1462_v53 = vxor.u32 2147483648, %v9749_v7  ;;  %v4218_v44 = vshrl.u32 %v8612_v27, %v4216_v31  ;;  %v4221_v40 = vadd.s32 127, %v4220_v55  ;;  %v4306_v63 = vsel %vm4304_vm7, %v4305_v43, %v8668_v1  ;;  %v9752_v27 = vld [vmem:[#allocation19_spill] sm:$0xff] }
 0x611   : > { %v1456_v8 = vand.u32 3, %v1452_v54  ;;  %v4307_v34 = vadd.s32 %v4306_v63, %v4302_v35  ;;  %v1259_v32 = vsel %vm1249_vm6, nan, %v1258_v58  ;;  %vm1148_vm3 = vcmp.lt.s32.totalorder %v9750_v47, 2  ;;  %v8707_v61 = vpop.eup %5506  ;;  %v9759_v63 = vld [vmem:[#allocation42_spill] sm:$0xff] }
 0x612   : > { %v1150_v16 = vxor.u32 2147483648, %v9751_v62  ;;  %v4219_v56 = vor.u32 %v4218_v44, %v4217_v20  ;;  %v4222_v50 = vshll.u32 %v4221_v40, 23  ;;  %vm1149_vm15 = vcmp.eq.s32.totalorder %v9750_v47, 0  ;;  %v9757_v20 = vld [vmem:[#allocation46_spill] sm:$0xff] }
 0x613   : > { %vm1458_vm10 = vcmp.eq.s32.totalorder %v1456_v8, 0  ;;  %vm1352_vm12 = vweird.f32 %v9752_v27  ;;  %vm4146_vm7 = vcmp.lt.s32.totalorder %v8335_v12, 0  ;;  %v4308_v1 = vadd.s32 536870912, %v4307_v34 }
 0x614   : > { %v1460_v33 = vsel %vm1458_vm10, %v9749_v7, %v1459_v13  ;;  %vm1461_vm9 = vcmp.eq.s32.totalorder %v1456_v8, 2  ;;  %v1151_v57 = vsel %vm1149_vm15, %v9753_v36, %v1150_v16  ;;  %v4223_v21 = vor.u32 4788187, %v4222_v50  ;;  %v8716_v14 = vpop.eup %5508 }
 0x615   : > { %vm1457_vm6 = vcmp.lt.s32.totalorder %v1456_v8, 2  ;;  %v1463_v25 = vsel %vm1461_vm9, %v1462_v53, %v6827_v10  ;;  %v1153_v35 = vxor.u32 2147483648, %v9753_v36  ;;  %v9754_v37 = vand.u32 2147483647, %v8335_v12  ;;  %v8727_v55 = vpop.eup %5510  ;;  %v9762_v36 = vld [vmem:[#allocation22_spill] sm:$0xff] }
 0x616   : > { %v4226_v43 = vcvt.s32.f32 %v4219_v56  ;;  %v8724_v4 = vshrl.u32 %v4308_v1, 30  ;;  %v1464_v31 = vsel %vm1457_vm6, %v1460_v33, %v1463_v25  ;;  %vm1152_vm10 = vcmp.eq.s32.totalorder %v9750_v47, 2 }
 0x617   : > { %vm8720_vm5 = vcmp.le.f32.partialorder %v9754_v37, 0.7853982  ;;  %v4224_v58 = vand.u32 2147483647, %v4223_v21  ;;  %v1465_v10 = vsel %vm1455_vm14, nan, %v1464_v31  ;;  %v1154_v13 = vsel %vm1152_vm10, %v1153_v35, %v9751_v62  ;;  %v9766_v37 = vld [vmem:[#allocation28_spill] sm:$0xff] }
 0x618   : > { %v1356_v29 = vxor.u32 2147483648, %v9757_v20  ;;  %v4310_v54 = vshll.u32 %v8724_v4, 30  ;;  %v4351_v7 = vpack.c.bf16 %v1465_v10, %v1259_v32  ;;  %v1155_v53 = vsel %vm1148_vm3, %v1151_v57, %v1154_v13  ;;  %v9760_v32 = vld [vmem:[#allocation26_spill] sm:$0xff]  ;;  %v9768_v13 = vld [vmem:[#allocation55_spill] sm:$0xff] }
 0x619   : > { %vm1355_vm9 = vcmp.eq.s32.totalorder %v7326_v45, 0  ;;  %v4227_v44 = vmul.f32 %v4226_v43, %v4224_v58  ;;  %vm9758_vm15 = vweird.f32 %v9747_v17  ;;  %v1359_v3 = vxor.u32 2147483648, %v9759_v63  ;;  %v9761_v17 = vld [vmem:[#allocation38_spill] sm:$0xff] }
 0x61a   : > { %v1156_v40 = vsel %vm9758_vm15, nan, %v1155_v53  ;;  %v1357_v8 = vsel %vm1355_vm9, %v9759_v63, %v1356_v29  ;;  %5512 = vsinq.f32 %v8663_v48  ;;  %v8742_v62 = vsub.s32 %v4307_v34, %v4310_v54  ;;  %4526 = vmatprep.mubr.bf16.mxu1 %v4351_v7  ;;  %v9764_v34 = vld [vmem:[#allocation58_spill] sm:$0xff] }
 0x61b   : > { %vm1358_vm14 = vcmp.eq.s32.totalorder %v7326_v45, 2  ;;  %v1655_v47 = vsub.s32 4, %v9760_v32  ;;  %v4228_v16 = vxor.u32 2147483648, %v4227_v44  ;;  %vm1354_vm3 = vcmp.lt.s32.totalorder %v7326_v45, 2  ;;  %v9771_v63 = vld [vmem:[#allocation66_spill] sm:$0xff] }
 0x61c   : > { %v1360_v56 = vsel %vm1358_vm14, %v1359_v3, %v9757_v20  ;;  %v1861_v50 = vsub.s32 4, %v9761_v17  ;;  %v4313_v1 = vsub.s32 0, %v8742_v62  ;;  %vm9763_vm6 = vcmp.lt.s32.totalorder %v9762_v36, 0 }
 0x61d   : > { %v1361_v33 = vsel %vm1354_vm3, %v1357_v8, %v1360_v56  ;;  %v1656_v48 = vsel %vm9763_vm6, %v1655_v47, %v9760_v32  ;;  %v1665_v57 = vxor.u32 2147483648, %v9764_v34  ;;  %v4229_v21 = vsel %vm4146_vm7, %v4228_v16, %v4227_v44  ;;  %v9770_v44 = vld [vmem:[#allocation67_spill] sm:$0xff]  ;;  %v9772_v47 = vld [vmem:[#allocation25_spill] sm:$0xff] }
 0x61e   : > { %v1362_v25 = vsel %vm1352_vm12, nan, %v1361_v33  ;;  %v1658_v35 = vsel %vm6734_vm11, 0, %v1656_v48  ;;  %vm9767_vm10 = vcmp.lt.s32.totalorder %v9766_v37, 0  ;;  %v4916_v31 = vmin.u32 %v4313_v1, %v8742_v62 }
 0x61f   : > { %v1862_v43 = vsel %vm9767_vm10, %v1861_v50, %v9761_v17  ;;  %v4350_v58 = vpack.c.bf16 %v1362_v25, %v1156_v40  ;;  %v1662_v10 = vand.u32 3, %v1658_v35  ;;  %v1668_v20 = vxor.u32 2147483648, %v9768_v13 }
 0x620   : > { %v8768_v29 = vsel %vm8720_vm5, %v8335_v12, %v4229_v21  ;;  %v4303_v27 = vadd.s32 %v8667_v38, %v8673_v41  ;;  %vm1661_vm11 = vweird.f32 %v9762_v36  ;;  %v1864_v7 = vsel %vm6925_vm13, 0, %v1862_v43  ;;  %v9775_v21 = vld [vmem:[#allocation54_spill] sm:$0xff]  ;;  %v9779_v36 = vld [vmem:[#allocation24_spill] sm:$0xff] }
 0x621   : > { %v4315_v53 = vclz %v4916_v31  ;;  %4527 = vmatmul.mubr.bf16.vlgmr.msra.gmra.mrb[16].mxu1 %v4350_v58  ;;  %vm1664_vm12 = vcmp.eq.s32.totalorder %v1662_v10, 0  ;;  %v1871_v40 = vxor.u32 2147483648, %v9770_v44  ;;  %v1874_v8 = vxor.u32 2147483648, %v9771_v63 }
 0x622   : > { %v1666_v3 = vsel %vm1664_vm12, %v9768_v13, %v1665_v57  ;;  %vm1667_vm9 = vcmp.eq.s32.totalorder %v1662_v10, 2  ;;  %v1868_v32 = vand.u32 3, %v1864_v7  ;;  %v1552_v16 = vsub.s32 4, %v9772_v47  ;;  %v9773_v57 = vld [vmem:[#allocation21_spill] sm:$0xff]  ;;  %v9778_v7 = vld [vmem:[#allocation31_spill] sm:$0xff] }
 0x623   : > { %v4917_v56 = vadd.s32 4294967294, %v4315_v53  ;;  %vm1663_vm15 = vcmp.lt.s32.totalorder %v1662_v10, 2  ;;  %v1669_v38 = vsel %vm1667_vm9, %v1668_v20, %v9764_v34  ;;  %vm1867_vm14 = vweird.f32 %v9766_v37  ;;  %v9777_v20 = vld [vmem:[#allocation49_spill] sm:$0xff] }
 0x624   : > { %5514 = vcosq.f32 %v8768_v29  ;;  %v1670_v41 = vsel %vm1663_vm15, %v1666_v3, %v1669_v38  ;;  %vm1870_vm13 = vcmp.eq.s32.totalorder %v1868_v32, 0  ;;  %vm1873_vm3 = vcmp.eq.s32.totalorder %v1868_v32, 2  ;;  %v8782_v17 = vpop.eup %5512  ;;  %v9781_v3 = vld [vmem:[#allocation62_spill] sm:$0xff] }
 0x625   : > { %vm4918_vm6 = vcmp.lt.s32.totalorder %v4917_v56, 0  ;;  %vm1869_vm10 = vcmp.lt.s32.totalorder %v1868_v32, 2  ;;  %v1872_v50 = vsel %vm1870_vm13, %v9771_v63, %v1871_v40  ;;  %v1875_v1 = vsel %vm1873_vm3, %v1874_v8, %v9770_v44 }
 0x626   : > { %v4318_v33 = vsel %vm4918_vm6, 0, %v4917_v56  ;;  %v1876_v48 = vsel %vm1869_vm10, %v1872_v50, %v1875_v1  ;;  %vm9774_vm12 = vcmp.lt.s32.totalorder %v9773_v57, 0  ;;  %v1562_v25 = vxor.u32 2147483648, %v9775_v21 }
 0x627   : > { %v1553_v34 = vsel %vm9774_vm12, %v1552_v16, %v9772_v47  ;;  %v4319_v45 = vsub.s32 32, %v4318_v33  ;;  %v4323_v35 = vsub.s32 4294967266, %v4318_v33  ;;  %v1671_v43 = vsel %vm1661_vm11, nan, %v1670_v41  ;;  %v9782_v47 = vld [vmem:[#allocation47_spill] sm:$0xff]  ;;  %v9783_v41 = vld [vmem:[#allocation60_spill] sm:$0xff] }
 0x628   : > { %v1877_v31 = vsel %vm1867_vm14, nan, %v1876_v48  ;;  %v1555_v13 = vsel %vm6713_vm0, 0, %v1553_v34  ;;  %vm1558_vm9 = vweird.f32 %v9773_v57  ;;  %v1565_v54 = vxor.u32 2147483648, %v9777_v20  ;;  %v9793_v57 = vld [vmem:[#allocation45_spill] sm:$0xff] }
 0x629   : > { %v4353_v58 = vpack.c.bf16 %v1877_v31, %v1671_v43  ;;  %v1758_v53 = vsub.s32 4, %v9778_v7  ;;  %v4320_v44 = vshll.u32 %v8742_v62, %v4318_v33  ;;  %v4321_v40 = vshrl.u32 %v4303_v27, %v4319_v45  ;;  %v9785_v33 = vld [vmem:[#allocation32_spill] sm:$0xff]  ;;  %v9909_v45 = vld [vmem:[#allocation118_spill] sm:$0xff] }
 0x62a   : > { %v4324_v63 = vadd.s32 127, %v4323_v35  ;;  %v1559_v8 = vand.u32 3, %v1555_v13  ;;  %vm9780_vm11 = vcmp.lt.s32.totalorder %v9779_v36, 0  ;;  %vm1764_vm15 = vweird.f32 %v9779_v36  ;;  %v9796_v36 = vld [vmem:[#allocation78_spill] sm:$0xff] }
 0x62b   : > { %4534 = vmatprep.mubr.bf16.mxu1 %v4353_v58  ;;  %v1759_v37 = vsel %vm9780_vm11, %v1758_v53, %v9778_v7  ;;  %v1768_v32 = vxor.u32 2147483648, %v9781_v3  ;;  %v2067_v16 = vsub.s32 4, %v9782_v47  ;;  %v4322_v56 = vor.u32 %v4321_v40, %v4320_v44  ;;  %v9791_v44 = vld [vmem:[#allocation72_spill] sm:$0xff] }
 0x62c   : > { %v4325_v38 = vshll.u32 %v4324_v63, 23  ;;  %vm1561_vm0 = vcmp.eq.s32.totalorder %v1559_v8, 0  ;;  %v1771_v50 = vxor.u32 2147483648, %v9783_v41  ;;  %vm4249_vm14 = vcmp.lt.s32.totalorder %v8519_v60, 0 }
 0x62d   : > { %v1563_v62 = vsel %vm1561_vm0, %v9777_v20, %v1562_v25  ;;  %vm1564_vm13 = vcmp.eq.s32.totalorder %v1559_v8, 2  ;;  %v1761_v1 = vsel %vm6880_vm8, 0, %v1759_v37  ;;  %vm9786_vm3 = vcmp.lt.s32.totalorder %v9785_v33, 0 }
 0x62e   : > { %v2068_v48 = vsel %vm9786_vm3, %v2067_v16, %v9782_v47  ;;  %v9787_v34 = vand.u32 2147483647, %v8519_v60  ;;  %v4326_v35 = vor.u32 4788187, %v4325_v38  ;;  %vm1560_vm10 = vcmp.lt.s32.totalorder %v1559_v8, 2  ;;  %v8821_v25 = vpop.eup %5514 }
 0x62f   : > { %v1566_v43 = vsel %vm1564_vm13, %v1565_v54, %v9775_v21  ;;  %v1765_v31 = vand.u32 3, %v1761_v1  ;;  %v4329_v58 = vcvt.s32.f32 %v4322_v56  ;;  %v2070_v20 = vsel %vm7090_vm1, 0, %v2068_v48  ;;  %v9792_v54 = vld [vmem:[#allocation59_spill] sm:$0xff] }
 0x630   : > { %vm8816_vm6 = vcmp.le.f32.partialorder %v9787_v34, 0.7853982  ;;  %v1567_v10 = vsel %vm1560_vm10, %v1563_v62, %v1566_v43  ;;  %vm2073_vm8 = vweird.f32 %v9785_v33  ;;  %v4327_v7 = vand.u32 2147483647, %v4326_v35 }
 0x631   : > { %vm1767_vm12 = vcmp.eq.s32.totalorder %v1765_v31, 0  ;;  %v2077_v53 = vxor.u32 2147483648, %v7345_v24  ;;  %v2080_v40 = vxor.u32 2147483648, %v9791_v44  ;;  %vm1770_vm11 = vcmp.eq.s32.totalorder %v1765_v31, 2 }
 0x632   : > { %v1769_v63 = vsel %vm1767_vm12, %v9783_v41, %v1768_v32  ;;  %v2074_v21 = vand.u32 3, %v2070_v20  ;;  %v2273_v8 = vsub.s32 4, %v9792_v54  ;;  %v4330_v37 = vmul.f32 %v4329_v58, %v4327_v7  ;;  %v9798_v20 = vld [vmem:[#allocation30_spill] sm:$0xff] }
 0x633   : > { %v1568_v47 = vsel %vm1558_vm9, nan, %v1567_v10  ;;  %vm1766_vm0 = vcmp.lt.s32.totalorder %v1765_v31, 2  ;;  %v1772_v16 = vsel %vm1770_vm11, %v1771_v50, %v9781_v3  ;;  %vm9794_vm9 = vcmp.lt.s32.totalorder %v9793_v57, 0  ;;  %v9797_v31 = vld [vmem:[#allocation41_spill] sm:$0xff] }
 0x634   : > { %v1773_v56 = vsel %vm1766_vm0, %v1769_v63, %v1772_v16  ;;  %vm2075_vm1 = vcmp.lt.s32.totalorder %v2074_v21, 2  ;;  %vm2076_vm13 = vcmp.eq.s32.totalorder %v2074_v21, 0  ;;  %vm2079_vm3 = vcmp.eq.s32.totalorder %v2074_v21, 2  ;;  %v9802_v21 = vld [vmem:[#allocation68_spill] sm:$0xff] }
 0x635   : > { %v4331_v38 = vxor.u32 2147483648, %v4330_v37  ;;  %v1774_v62 = vsel %vm1764_vm15, nan, %v1773_v56  ;;  %v2078_v32 = vsel %vm2076_vm13, %v9791_v44, %v2077_v53  ;;  %v2081_v41 = vsel %vm2079_vm3, %v2080_v40, %v7345_v24  ;;  %v9800_v53 = vld [vmem:[#allocation70_spill] sm:$0xff]  ;;  %v9801_v40 = vld [vmem:[#allocation53_spill] sm:$0xff]  ;;  %v9805_v16 = vld [vmem:[#allocation40_spill] sm:$0xff] }
 0x636   : > { %v4352_v27 = vpack.c.bf16 %v1774_v62, %v1568_v47  ;;  %v2082_v1 = vsel %vm2075_vm1, %v2078_v32, %v2081_v41  ;;  %v2274_v48 = vsel %vm9794_vm9, %v2273_v8, %v9792_v54  ;;  %v2283_v3 = vxor.u32 2147483648, %v7536_v22  ;;  %v9807_v32 = vld [vmem:[#allocation73_spill] sm:$0xff] }
 0x637   : > { %v4332_v50 = vsel %vm4249_vm14, %v4331_v38, %v4330_v37  ;;  %v2276_v35 = vsel %vm7251_vm4, 0, %v2274_v48  ;;  %v2286_v43 = vxor.u32 2147483648, %v9796_v36  ;;  %v1964_v58 = vsub.s32 4, %v9797_v31  ;;  %v9803_v37 = vld [vmem:[#allocation61_spill] sm:$0xff] }
 0x638   : > { %v4335_v24 = vsel %vm8816_vm6, %v8519_v60, %v4332_v50  ;;  %4535 = vmatmul.mubr.bf16.gmra.mrb[20].mxu1 %v4352_v27  ;;  %v2083_v10 = vsel %vm2073_vm8, nan, %v2082_v1  ;;  %vm2279_vm15 = vweird.f32 %v9793_v57  ;;  %v2280_v13 = vand.u32 3, %v2276_v35  ;;  %v9809_v48 = vld [vmem:[#allocation77_spill] sm:$0xff] }
 0x639   : > { %vm9799_vm10 = vcmp.lt.s32.totalorder %v9798_v20, 0  ;;  %vm1970_vm4 = vweird.f32 %v9798_v20  ;;  %v1974_v44 = vxor.u32 2147483648, %v9800_v53  ;;  %v2170_v63 = vsub.s32 4, %v9801_v40 }
 0x63a   : > { %v1965_v7 = vsel %vm9799_vm10, %v1964_v58, %v9797_v31  ;;  %vm2281_vm12 = vcmp.lt.s32.totalorder %v2280_v13, 2  ;;  %vm2282_vm11 = vcmp.eq.s32.totalorder %v2280_v13, 0  ;;  %vm2285_vm0 = vcmp.eq.s32.totalorder %v2280_v13, 2  ;;  %v9811_v31 = vld [vmem:[#allocation65_spill] sm:$0xff] }
 0x63b   : > { %v1977_v54 = vxor.u32 2147483648, %v9802_v21  ;;  %v2284_v33 = vsel %vm2282_vm11, %v9796_v36, %v2283_v3  ;;  %v2287_v8 = vsel %vm2285_vm0, %v2286_v43, %v7536_v22  ;;  %vm9804_vm8 = vnez %v9803_v37  ;;  %v9810_v22 = vld [vmem:[#allocation76_spill] sm:$0xff] }
 0x63c   : > { %v1967_v47 = vsel %vm9804_vm8, 0, %v1965_v7  ;;  %vm9806_vm1 = vcmp.lt.s32.totalorder %v9805_v16, 0  ;;  %5516 = vcosq.f32 %v4335_v24  ;;  %v2288_v38 = vsel %vm2281_vm12, %v2284_v33, %v2287_v8  ;;  %v9812_v7 = vld [vmem:[#allocation57_spill] sm:$0xff]  ;;  %v9817_v33 = vld [vmem:[#allocation90_spill] sm:$0xff] }
 0x63d   : > { %v2171_v56 = vsel %vm9806_vm1, %v2170_v63, %v9801_v40  ;;  %v1971_v62 = vand.u32 3, %v1967_v47  ;;  %vm9808_vm13 = vnez %v9807_v32  ;;  %v2289_v27 = vsel %vm2279_vm15, nan, %v2288_v38  ;;  %v9820_v38 = vld [vmem:[#allocation91_spill] sm:$0xff] }
 0x63e   : > { %v2173_v41 = vsel %vm9808_vm13, 0, %v2171_v56  ;;  %v2180_v3 = vxor.u32 2147483648, %v9809_v48  ;;  %v2183_v50 = vxor.u32 2147483648, %v9810_v22  ;;  %5518 = vsinq.f32 %v4335_v24  ;;  %v9822_v32 = vld [vmem:[#allocation99_spill] sm:$0xff] }
 0x63f   : > { %v2177_v1 = vand.u32 3, %v2173_v41  ;;  %v4355_v34 = vpack.c.bf16 %v2289_v27, %v2083_v10  ;;  %vm1973_vm3 = vcmp.eq.s32.totalorder %v1971_v62, 0  ;;  %vm1976_vm9 = vcmp.eq.s32.totalorder %v1971_v62, 2  ;;  %v9823_v27 = vld [vmem:[#allocation97_spill] sm:$0xff] }
 0x640   : > { %vm1972_vm10 = vcmp.lt.s32.totalorder %v1971_v62, 2  ;;  %v1975_v35 = vsel %vm1973_vm3, %v9802_v21, %v1974_v44  ;;  %v1978_v36 = vsel %vm1976_vm9, %v1977_v54, %v9800_v53  ;;  %v2479_v58 = vsub.s32 4, %v9811_v31  ;;  %v9814_v44 = vld [vmem:[#allocation75_spill] sm:$0xff] }
 0x641   : > { %vm2179_vm12 = vcmp.eq.s32.totalorder %v2177_v1, 0  ;;  %4542 = vmatprep.mubr.bf16.mxu1 %v4355_v34  ;;  %v1979_v43 = vsel %vm1972_vm10, %v1975_v35, %v1978_v36  ;;  %vm2182_vm15 = vcmp.eq.s32.totalorder %v2177_v1, 2  ;;  %vm2176_vm11 = vweird.f32 %v9805_v16  ;;  %v9815_v21 = vld [vmem:[#allocation83_spill] sm:$0xff]  ;;  %v9818_v16 = vld [vmem:[#allocation37_spill] sm:$0xff]  ;;  %v9825_v34 = vld [vmem:[#allocation88_spill] sm:$0xff] }
 0x642   : > { %v2181_v57 = vsel %vm2179_vm12, %v9810_v22, %v2180_v3  ;;  %v1980_v13 = vsel %vm1970_vm4, nan, %v1979_v43  ;;  %vm2178_vm0 = vcmp.lt.s32.totalorder %v2177_v1, 2  ;;  %v2184_v24 = vsel %vm2182_vm15, %v2183_v50, %v9809_v48  ;;  %v9824_v48 = vld [vmem:[#allocation63_spill] sm:$0xff] }
 0x643   : > { %v2185_v10 = vsel %vm2178_vm0, %v2181_v57, %v2184_v24  ;;  %vm9813_vm8 = vcmp.lt.s32.totalorder %v9812_v7, 0  ;;  %vm2485_vm1 = vweird.f32 %v9812_v7  ;;  %v2685_v40 = vsub.s32 4, %v9814_v44  ;;  %v9826_v57 = vld [vmem:[#allocation50_spill] sm:$0xff]  ;;  %v9828_v24 = vld [vmem:[#allocation85_spill] sm:$0xff] }
 0x644   : > { %v2480_v53 = vsel %vm9813_vm8, %v2479_v58, %v9811_v31  ;;  %v2186_v63 = vsel %vm2176_vm11, nan, %v2185_v10  ;;  %vm9816_vm13 = vnez %v9815_v21  ;;  %v2489_v20 = vxor.u32 2147483648, %v7629_v9 }
 0x645   : > { %v2482_v54 = vsel %vm9816_vm13, 0, %v2480_v53  ;;  %v2492_v8 = vxor.u32 2147483648, %v9817_v33  ;;  %v4354_v37 = vpack.c.bf16 %v2186_v63, %v1980_v13  ;;  %vm9819_vm4 = vcmp.lt.s32.totalorder %v9818_v16, 0 }
 0x646   : > { %v2486_v47 = vand.u32 3, %v2482_v54  ;;  %v2686_v56 = vsel %vm9819_vm4, %v2685_v40, %v9814_v44  ;;  %vm2691_vm3 = vweird.f32 %v9818_v16  ;;  %vm9821_vm9 = vnez %v9820_v38  ;;  %v8899_v22 = vpop.eup %5516  ;;  %v9829_v40 = vld [vmem:[#allocation82_spill] sm:$0xff]  ;;  %v9831_v54 = vld [vmem:[#allocation71_spill] sm:$0xff] }
 0x647   : > { %v2688_v62 = vsel %vm9821_vm9, 0, %v2686_v56  ;;  %v2695_v41 = vxor.u32 2147483648, %v9822_v32  ;;  %v2698_v1 = vxor.u32 2147483648, %v9823_v27  ;;  %v2376_v3 = vsub.s32 4, %v9824_v48  ;;  %4543 = vmatmul.mubr.bf16.gmra.mrb[24].mxu1 %v4354_v37  ;;  %v9832_v37 = vld [vmem:[#allocation94_spill] sm:$0xff]  ;;  %v9833_v56 = vld [vmem:[#allocation84_spill] sm:$0xff] }
 0x648   : > { %vm2488_vm10 = vcmp.eq.s32.totalorder %v2486_v47, 0  ;;  %vm2491_vm12 = vcmp.eq.s32.totalorder %v2486_v47, 2  ;;  %v2692_v50 = vand.u32 3, %v2688_v62  ;;  %v2386_v35 = vxor.u32 2147483648, %v9825_v34  ;;  %v8907_v58 = vpop.eup %5518 }
 0x649   : > { %vm2487_vm15 = vcmp.lt.s32.totalorder %v2486_v47, 2  ;;  %v2490_v36 = vsel %vm2488_vm10, %v9817_v33, %v2489_v20  ;;  %v2493_v43 = vsel %vm2491_vm12, %v2492_v8, %v7629_v9  ;;  %vm9827_vm11 = vcmp.lt.s32.totalorder %v9826_v57, 0 }
 0x64a   : > { %v2377_v31 = vsel %vm9827_vm11, %v2376_v3, %v9824_v48  ;;  %v2494_v13 = vsel %vm2487_vm15, %v2490_v36, %v2493_v43  ;;  %vm2694_vm0 = vcmp.eq.s32.totalorder %v2692_v50, 0  ;;  %vm2697_vm8 = vcmp.eq.s32.totalorder %v2692_v50, 2  ;;  %v9837_v48 = vld [vmem:[#allocation86_spill] sm:$0xff] }
 0x64b   : > { %v2389_v10 = vxor.u32 2147483648, %v9828_v24  ;;  %vm2693_vm13 = vcmp.lt.s32.totalorder %v2692_v50, 2  ;;  %v2696_v53 = vsel %vm2694_vm0, %v9823_v27, %v2695_v41  ;;  %v2699_v44 = vsel %vm2697_vm8, %v2698_v1, %v9822_v32  ;;  %v9834_v27 = vld [vmem:[#allocation29_spill] sm:$0xff]  ;;  %v9839_v50 = vld [vmem:[#allocation92_spill] sm:$0xff] }
 0x64c   : > { %vm9830_vm4 = vnez %v9829_v40  ;;  %v2700_v9 = vsel %vm2693_vm13, %v2696_v53, %v2699_v44  ;;  %vm2382_vm9 = vweird.f32 %v9826_v57  ;;  %v2582_v20 = vsub.s32 4, %v9831_v54  ;;  %v9842_v53 = vld [vmem:[#allocation93_spill] sm:$0xff] }
 0x64d   : > { %v2379_v63 = vsel %vm9830_vm4, 0, %v2377_v31  ;;  %v2495_v33 = vsel %vm2485_vm1, nan, %v2494_v13  ;;  %v2701_v8 = vsel %vm2691_vm3, nan, %v2700_v9  ;;  %v2592_v47 = vxor.u32 2147483648, %v9832_v37 }
 0x64e   : > { %v2383_v21 = vand.u32 3, %v2379_v63  ;;  %v2891_v38 = vsub.s32 4, %v9833_v56  ;;  %v4357_v62 = vpack.c.bf16 %v2701_v8, %v2495_v33  ;;  %vm9835_vm11 = vcmp.lt.s32.totalorder %v9834_v27, 0  ;;  %v9845_v33 = vld [vmem:[#allocation103_spill] sm:$0xff] }
 0x64f   : > { %v2583_v7 = vsel %vm9835_vm11, %v2582_v20, %v9831_v54  ;;  %vm9836_vm1 = vcmp.lt.s32.totalorder %v7298_v42, 0  ;;  %vm9838_vm3 = vnez %v9837_v48  ;;  %v2595_v36 = vxor.u32 2147483648, %v9839_v50  ;;  %v9851_v48 = vld [vmem:[#allocation100_spill] sm:$0xff] }
 0x650   : > { %vm2384_vm10 = vcmp.lt.s32.totalorder %v2383_v21, 2  ;;  %vm2385_vm12 = vcmp.eq.s32.totalorder %v2383_v21, 0  ;;  %vm2388_vm15 = vcmp.eq.s32.totalorder %v2383_v21, 2  ;;  %v2892_v16 = vsel %vm9836_vm1, %v2891_v38, %v9833_v56  ;;  %4550 = vmatprep.mubr.bf16.mxu1 %v4357_v62 }
 0x651   : > { %v2387_v32 = vsel %vm2385_vm12, %v9828_v24, %v2386_v35  ;;  %v2390_v41 = vsel %vm2388_vm15, %v2389_v10, %v9825_v34  ;;  %v2585_v3 = vsel %vm9838_vm3, 0, %v2583_v7  ;;  %vm9840_vm0 = vnez %v9642_v39  ;;  %v9841_v24 = vld [vmem:[#allocation109_spill] sm:$0xff]  ;;  %v9843_v39 = vld [vmem:[#allocation80_spill] sm:$0xff] }
 0x652   : > { %v2391_v1 = vsel %vm2384_vm10, %v2387_v32, %v2390_v41  ;;  %v2894_v35 = vsel %vm9840_vm0, 0, %v2892_v16  ;;  %vm2588_vm8 = vweird.f32 %v9834_v27  ;;  %v2589_v34 = vand.u32 3, %v2585_v3  ;;  %v9849_v41 = vld [vmem:[#allocation81_spill] sm:$0xff]  ;;  %v9850_v16 = vld [vmem:[#allocation106_spill] sm:$0xff] }
 0x653   : > { %v2898_v43 = vand.u32 3, %v2894_v35  ;;  %v2901_v31 = vxor.u32 2147483648, %v7995_v51  ;;  %v2392_v13 = vsel %vm2382_vm9, nan, %v2391_v1  ;;  %vm2897_vm13 = vweird.f32 %v7298_v42 }
 0x654   : > { %v2904_v10 = vxor.u32 2147483648, %v9841_v24  ;;  %v3097_v44 = vsub.s32 4, %v9842_v53  ;;  %vm2590_vm4 = vcmp.lt.s32.totalorder %v2589_v34, 2  ;;  %vm2591_vm10 = vcmp.eq.s32.totalorder %v2589_v34, 0 }
 0x655   : > { %vm2594_vm12 = vcmp.eq.s32.totalorder %v2589_v34, 2  ;;  %vm3103_vm15 = vweird.f32 %v9843_v39  ;;  %v2593_v40 = vsel %vm2591_vm10, %v9839_v50, %v2592_v47  ;;  %vm2900_vm11 = vcmp.eq.s32.totalorder %v2898_v43, 0  ;;  %v9847_v47 = vld [vmem:[#allocation113_spill] sm:$0xff] }
 0x656   : > { %v2596_v63 = vsel %vm2594_vm12, %v2595_v36, %v9832_v37  ;;  %vm2903_vm1 = vcmp.eq.s32.totalorder %v2898_v43, 2  ;;  %v2902_v57 = vsel %vm2900_vm11, %v9841_v24, %v2901_v31  ;;  %vm9844_vm9 = vcmp.lt.s32.totalorder %v9843_v39, 0  ;;  %v9848_v37 = vld [vmem:[#allocation112_spill] sm:$0xff]  ;;  %v9852_v50 = vld [vmem:[#allocation89_spill] sm:$0xff]  ;;  %v9857_v24 = vld [vmem:[#allocation79_spill] sm:$0xff] }
 0x657   : > { %v2597_v9 = vsel %vm2590_vm4, %v2593_v40, %v2596_v63  ;;  %v2905_v21 = vsel %vm2903_vm1, %v2904_v10, %v7995_v51  ;;  %v3098_v54 = vsel %vm9844_vm9, %v3097_v44, %v9842_v53  ;;  %vm9846_vm3 = vnez %v9845_v33  ;;  %v9853_v36 = vld [vmem:[#allocation69_spill] sm:$0xff]  ;;  %v9855_v31 = vld [vmem:[#allocation96_spill] sm:$0xff]  ;;  %v9862_v33 = vld [vmem:[#allocation110_spill] sm:$0xff] }
 0x658   : > { %v2598_v20 = vsel %vm2588_vm8, nan, %v2597_v9  ;;  %v3100_v8 = vsel %vm9846_vm3, 0, %v3098_v54  ;;  %v3107_v56 = vxor.u32 2147483648, %v9847_v47  ;;  %v3110_v38 = vxor.u32 2147483648, %v9848_v37  ;;  %v9859_v63 = vld [vmem:[#allocation101_spill] sm:$0xff]  ;;  %v9861_v54 = vld [vmem:[#allocation111_spill] sm:$0xff] }
 0x659   : > { %v4356_v62 = vpack.c.bf16 %v2598_v20, %v2392_v13  ;;  %vm2899_vm0 = vcmp.lt.s32.totalorder %v2898_v43, 2  ;;  %v3104_v32 = vand.u32 3, %v3100_v8  ;;  %v2788_v7 = vsub.s32 4, %v9849_v41 }
 0x65a   : > { %v2906_v51 = vsel %vm2899_vm0, %v2902_v57, %v2905_v21  ;;  %v2798_v1 = vxor.u32 2147483648, %v9850_v16  ;;  %v2801_v3 = vxor.u32 2147483648, %v9851_v48  ;;  %v2994_v27 = vsub.s32 4, %v9852_v50 }
 0x65b   : > { %4551 = vmatmul.mubr.bf16.gmra.mrb[28].mxu1 %v4356_v62  ;;  %vm3105_vm8 = vcmp.lt.s32.totalorder %v3104_v32, 2  ;;  %vm3106_vm4 = vcmp.eq.s32.totalorder %v3104_v32, 0  ;;  %vm3109_vm10 = vcmp.eq.s32.totalorder %v3104_v32, 2  ;;  %vm9854_vm12 = vcmp.lt.s32.totalorder %v9853_v36, 0 }
 0x65c   : > { %v2789_v35 = vsel %vm9854_vm12, %v2788_v7, %v9849_v41  ;;  %v3108_v34 = vsel %vm3106_vm4, %v9848_v37, %v3107_v56  ;;  %v3111_v43 = vsel %vm3109_vm10, %v3110_v38, %v9847_v47  ;;  %vm9856_vm11 = vnez %v9855_v31  ;;  %v9863_v38 = vld [vmem:[#allocation102_spill] sm:$0xff]  ;;  %v9869_v31 = vld [vmem:[#allocation128_spill] sm:$0xff] }
 0x65d   : > { %v2791_v13 = vsel %vm9856_vm11, 0, %v2789_v35  ;;  %vm9858_vm1 = vcmp.lt.s32.totalorder %v9857_v24, 0  ;;  %v2907_v53 = vsel %vm2897_vm13, nan, %v2906_v51  ;;  %v3112_v44 = vsel %vm3105_vm8, %v3108_v34, %v3111_v43 }
 0x65e   : > { %v2995_v10 = vsel %vm9858_vm1, %v2994_v27, %v9852_v50  ;;  %v2795_v40 = vand.u32 3, %v2791_v13  ;;  %vm9860_vm9 = vnez %v9859_v63  ;;  %v3113_v57 = vsel %vm3103_vm15, nan, %v3112_v44  ;;  %v9866_v50 = vld [vmem:[#allocation120_spill] sm:$0xff] }
 0x65f   : > { %v2997_v9 = vsel %vm9860_vm9, 0, %v2995_v10  ;;  %v3004_v20 = vxor.u32 2147483648, %v9861_v54  ;;  %v3007_v8 = vxor.u32 2147483648, %v9862_v33  ;;  %v4359_v47 = vpack.c.bf16 %v3113_v57, %v2907_v53  ;;  %v9871_v10 = vld [vmem:[#allocation98_spill] sm:$0xff] }
 0x660   : > { %v3001_v21 = vand.u32 3, %v2997_v9  ;;  %vm2794_vm3 = vweird.f32 %v9853_v36  ;;  %vm2797_vm0 = vcmp.eq.s32.totalorder %v2795_v40, 0  ;;  %vm2800_vm4 = vcmp.eq.s32.totalorder %v2795_v40, 2 }
 0x661   : > { %vm2796_vm10 = vcmp.lt.s32.totalorder %v2795_v40, 2  ;;  %v2799_v42 = vsel %vm2797_vm0, %v9851_v48, %v2798_v1  ;;  %v2802_v56 = vsel %vm2800_vm4, %v2801_v3, %v9850_v16  ;;  %4558 = vmatprep.mubr.bf16.mxu1 %v4359_v47  ;;  %v3303_v62 = vsub.s32 4, %v9863_v38  ;;  %v9872_v40 = vld [vmem:[#allocation117_spill] sm:$0xff]  ;;  %v9876_v47 = vld [vmem:[#allocation104_spill] sm:$0xff] }
 0x662   : > { %vm3003_vm13 = vcmp.eq.s32.totalorder %v3001_v21, 0  ;;  %v2803_v37 = vsel %vm2796_vm10, %v2799_v42, %v2802_v56  ;;  %vm3006_vm15 = vcmp.eq.s32.totalorder %v3001_v21, 2  ;;  %vm3000_vm8 = vweird.f32 %v9857_v24  ;;  %v9870_v24 = vld [vmem:[#allocation127_spill] sm:$0xff] }
 0x663   : > { %v3005_v39 = vsel %vm3003_vm13, %v9862_v33, %v3004_v20  ;;  %v2804_v32 = vsel %vm2794_vm3, nan, %v2803_v37  ;;  %vm3002_vm12 = vcmp.lt.s32.totalorder %v3001_v21, 2  ;;  %v3008_v41 = vsel %vm3006_vm15, %v3007_v8, %v9861_v54  ;;  %v9875_v54 = vld [vmem:[#allocation116_spill] sm:$0xff]  ;;  %v9878_v37 = vld [vmem:[#allocation107_spill] sm:$0xff] }
 0x664   : > { %v3009_v7 = vsel %vm3002_vm12, %v3005_v39, %v3008_v41  ;;  %vm9864_vm11 = vcmp.lt.s32.totalorder %v7674_v15, 0  ;;  %vm3309_vm1 = vweird.f32 %v7674_v15  ;;  %v3509_v16 = vsub.s32 4, %v8056_v26 }
 0x665   : > { %v3304_v51 = vsel %vm9864_vm11, %v3303_v62, %v9863_v38  ;;  %v3010_v1 = vsel %vm3000_vm8, nan, %v3009_v7  ;;  %vm9865_vm9 = vnez %v9671_v46  ;;  %v3313_v3 = vxor.u32 2147483648, %v8241_v6  ;;  %v9880_v7 = vld [vmem:[#allocation119_spill] sm:$0xff] }
 0x666   : > { %v3306_v48 = vsel %vm9865_vm9, 0, %v3304_v51  ;;  %v3316_v27 = vxor.u32 2147483648, %v9866_v50  ;;  %v4358_v36 = vpack.c.bf16 %v3010_v1, %v2804_v32  ;;  %vm9867_vm3 = vcmp.lt.s32.totalorder %v7782_v11, 0  ;;  %v9879_v32 = vld [vmem:[#allocation122_spill] sm:$0xff] }
 0x667   : > { %v3310_v35 = vand.u32 3, %v3306_v48  ;;  %v3510_v34 = vsel %vm9867_vm3, %v3509_v16, %v8056_v26  ;;  %vm3515_vm0 = vweird.f32 %v7782_v11  ;;  %vm9868_vm4 = vnez %v9688_v5  ;;  %v9873_v5 = vld [vmem:[#allocation87_spill] sm:$0xff] }
 0x668   : > { %v3512_v43 = vsel %vm9868_vm4, 0, %v3510_v34  ;;  %v3519_v13 = vxor.u32 2147483648, %v9869_v31  ;;  %v3522_v46 = vxor.u32 2147483648, %v9870_v24  ;;  %v3200_v53 = vsub.s32 4, %v9871_v10  ;;  %4559 = vmatmul.mubr.bf16.gmra.mrb[32].mxu1 %v4358_v36  ;;  %v9885_v36 = vld [vmem:[#allocation114_spill] sm:$0xff]  ;;  %v9887_v34 = vld [vmem:[#allocation121_spill] sm:$0xff] }
 0x669   : > { %vm3312_vm10 = vcmp.eq.s32.totalorder %v3310_v35, 0  ;;  %vm3315_vm13 = vcmp.eq.s32.totalorder %v3310_v35, 2  ;;  %v3516_v44 = vand.u32 3, %v3512_v43  ;;  %v3210_v63 = vxor.u32 2147483648, %v9872_v40 }
 0x66a   : > { %vm3311_vm15 = vcmp.lt.s32.totalorder %v3310_v35, 2  ;;  %v3314_v26 = vsel %vm3312_vm10, %v9866_v50, %v3313_v3  ;;  %v3317_v9 = vsel %vm3315_vm13, %v3316_v27, %v8241_v6  ;;  %vm9874_vm8 = vcmp.lt.s32.totalorder %v9873_v5, 0  ;;  %v9881_v3 = vld [vmem:[#allocation95_spill] sm:$0xff]  ;;  %v9883_v50 = vld [vmem:[#allocation108_spill] sm:$0xff] }
 0x66b   : > { %v3201_v57 = vsel %vm9874_vm8, %v3200_v53, %v9871_v10  ;;  %v3318_v21 = vsel %vm3311_vm15, %v3314_v26, %v3317_v9  ;;  %vm3518_vm12 = vcmp.eq.s32.totalorder %v3516_v44, 0  ;;  %vm3521_vm11 = vcmp.eq.s32.totalorder %v3516_v44, 2  ;;  %v9890_v10 = vld [vmem:[#allocation132_spill] sm:$0xff]  ;;  %v9892_v26 = vld [vmem:[#allocation126_spill] sm:$0xff] }
 0x66c   : > { %v3213_v20 = vxor.u32 2147483648, %v9875_v54  ;;  %vm3517_vm9 = vcmp.lt.s32.totalorder %v3516_v44, 2  ;;  %v3520_v33 = vsel %vm3518_vm12, %v9870_v24, %v3519_v13  ;;  %v3523_v8 = vsel %vm3521_vm11, %v3522_v46, %v9869_v31  ;;  %v9888_v31 = vld [vmem:[#allocation125_spill] sm:$0xff] }
 0x66d   : > { %vm9877_vm3 = vnez %v9876_v47  ;;  %v3524_v56 = vsel %vm3517_vm9, %v3520_v33, %v3523_v8  ;;  %vm3206_vm4 = vweird.f32 %v9873_v5  ;;  %v3406_v39 = vsub.s32 4, %v9878_v37 }
 0x66e   : > { %v3203_v42 = vsel %vm9877_vm3, 0, %v3201_v57  ;;  %v3319_v38 = vsel %vm3309_vm1, nan, %v3318_v21  ;;  %v3525_v62 = vsel %vm3515_vm0, nan, %v3524_v56  ;;  %v3416_v41 = vxor.u32 2147483648, %v9879_v32 }
 0x66f   : > { %v3207_v6 = vand.u32 3, %v3203_v42  ;;  %v3715_v51 = vsub.s32 4, %v9880_v7  ;;  %v4361_v16 = vpack.c.bf16 %v3525_v62, %v3319_v38  ;;  %vm9882_vm8 = vcmp.lt.s32.totalorder %v9881_v3, 0 }
 0x670   : > { %v3407_v15 = vsel %vm9882_vm8, %v3406_v39, %v9878_v37  ;;  %vm9884_vm1 = vcmp.lt.s32.totalorder %v9883_v50, 0  ;;  %vm9886_vm0 = vnez %v9885_v36  ;;  %v3419_v43 = vxor.u32 2147483648, %v9887_v34  ;;  %v9895_v39 = vld [vmem:[#allocation115_spill] sm:$0xff] }
 0x671   : > { %vm3208_vm10 = vcmp.lt.s32.totalorder %v3207_v6, 2  ;;  %vm3209_vm13 = vcmp.eq.s32.totalorder %v3207_v6, 0  ;;  %vm3212_vm15 = vcmp.eq.s32.totalorder %v3207_v6, 2  ;;  %v3716_v11 = vsel %vm9884_vm1, %v3715_v51, %v9880_v7  ;;  %4566 = vmatprep.mubr.bf16.mxu1 %v4361_v16  ;;  %v9897_v7 = vld [vmem:[#allocation129_spill] sm:$0xff]  ;;  %v9898_v16 = vld [vmem:[#allocation123_spill] sm:$0xff] }
 0x672   : > { %v3211_v1 = vsel %vm3209_vm13, %v9875_v54, %v3210_v63  ;;  %v3214_v48 = vsel %vm3212_vm15, %v3213_v20, %v9872_v40  ;;  %v3409_v35 = vsel %vm9886_vm0, 0, %v3407_v15  ;;  %vm9889_vm12 = vnez %v9888_v31  ;;  %v9891_v40 = vld [vmem:[#allocation131_spill] sm:$0xff] }
 0x673   : > { %v3215_v27 = vsel %vm3208_vm10, %v3211_v1, %v3214_v48  ;;  %v3718_v13 = vsel %vm9889_vm12, 0, %v3716_v11  ;;  %vm3412_vm11 = vweird.f32 %v9881_v3  ;;  %v3413_v24 = vand.u32 3, %v3409_v35  ;;  %v9901_v11 = vld [vmem:[#allocation124_spill] sm:$0xff] }
 0x674   : > { %v3722_v46 = vand.u32 3, %v3718_v13  ;;  %v3725_v53 = vxor.u32 2147483648, %v9890_v10  ;;  %v3216_v44 = vsel %vm3206_vm4, nan, %v3215_v27  ;;  %vm3721_vm9 = vweird.f32 %v9883_v50 }
 0x675   : > { %v3728_v63 = vxor.u32 2147483648, %v9891_v40  ;;  %v3921_v9 = vsub.s32 4, %v9892_v26  ;;  %vm3414_vm3 = vcmp.lt.s32.totalorder %v3413_v24, 2  ;;  %vm3415_vm10 = vcmp.eq.s32.totalorder %v3413_v24, 0 }
 0x676   : > { %vm3418_vm13 = vcmp.eq.s32.totalorder %v3413_v24, 2  ;;  %vm3927_vm15 = vweird.f32 %v8202_v28  ;;  %v3417_v57 = vsel %vm3415_vm10, %v9887_v34, %v3416_v41  ;;  %vm3724_vm8 = vcmp.eq.s32.totalorder %v3722_v46, 0  ;;  %v9905_v24 = vld [vmem:[#allocation134_spill] sm:$0xff] }
 0x677   : > { %v3420_v21 = vsel %vm3418_vm13, %v3419_v43, %v9879_v32  ;;  %vm3727_vm1 = vcmp.eq.s32.totalorder %v3722_v46, 2  ;;  %v3726_v5 = vsel %vm3724_vm8, %v9891_v40, %v3725_v53  ;;  %vm9893_vm4 = vcmp.lt.s32.totalorder %v8202_v28, 0  ;;  %v9896_v32 = vld [vmem:[#allocation130_spill] sm:$0xff] }
 0x678   : > { %v3421_v54 = vsel %vm3414_vm3, %v3417_v57, %v3420_v21  ;;  %v3729_v20 = vsel %vm3727_vm1, %v3728_v63, %v9890_v10  ;;  %v3922_v33 = vsel %vm9893_vm4, %v3921_v9, %v9892_v26  ;;  %vm9894_vm0 = vnez %v9721_v52  ;;  %v9899_v52 = vld [vmem:[#allocation105_spill] sm:$0xff] }
 0x679   : > { %v3422_v8 = vsel %vm3412_vm11, nan, %v3421_v54  ;;  %v3924_v47 = vsel %vm9894_vm0, 0, %v3922_v33  ;;  %v3931_v42 = vxor.u32 2147483648, %v8626_v23  ;;  %v3934_v56 = vxor.u32 2147483648, %v8619_v49 }
 0x67a   : > { %v4360_v6 = vpack.c.bf16 %v3422_v8, %v3216_v44  ;;  %vm3723_vm12 = vcmp.lt.s32.totalorder %v3722_v46, 2  ;;  %v3928_v37 = vand.u32 3, %v3924_v47  ;;  %v3612_v38 = vsub.s32 4, %v9895_v39  ;;  %v9906_v44 = vld [vmem:[#allocation20_spill] sm:$0xff] }
 0x67b   : > { %v3730_v62 = vsel %vm3723_vm12, %v3726_v5, %v3729_v20  ;;  %v3622_v41 = vxor.u32 2147483648, %v9896_v32  ;;  %v3625_v51 = vxor.u32 2147483648, %v9897_v7  ;;  %v3818_v1 = vsub.s32 4, %v9898_v16 }
 0x67c   : > { %4567 = vmatmul.mubr.bf16.gmra.mrb[36].mxu1 %v4360_v6  ;;  %vm3929_vm11 = vcmp.lt.s32.totalorder %v3928_v37, 2  ;;  %vm3930_vm3 = vcmp.eq.s32.totalorder %v3928_v37, 0  ;;  %vm3933_vm10 = vcmp.eq.s32.totalorder %v3928_v37, 2  ;;  %vm9900_vm13 = vcmp.lt.s32.totalorder %v9899_v52, 0 }
 0x67d   : > { %v3613_v48 = vsel %vm9900_vm13, %v3612_v38, %v9895_v39  ;;  %v3932_v3 = vsel %vm3930_vm3, %v8619_v49, %v3931_v42  ;;  %v3935_v15 = vsel %vm3933_vm10, %v3934_v56, %v8626_v23  ;;  %vm9902_vm8 = vnez %v9901_v11  ;;  %v9908_v42 = vld [vmem:[#allocation133_spill] sm:$0xff] }
 0x67e   : > { %v3615_v27 = vsel %vm9902_vm8, 0, %v3613_v48  ;;  %vm9903_vm1 = vcmp.lt.s32.totalorder %v8155_v0, 0  ;;  %v3731_v35 = vsel %vm3721_vm9, nan, %v3730_v62  ;;  %v3936_v34 = vsel %vm3929_vm11, %v3932_v3, %v3935_v15 }
 0x67f   : > { %v3819_v36 = vsel %vm9903_vm1, %v3818_v1, %v9898_v16  ;;  %v3619_v43 = vand.u32 3, %v3615_v27  ;;  %vm9904_vm4 = vnez %v9716_v30  ;;  %v3937_v49 = vsel %vm3927_vm15, nan, %v3936_v34 }
 0x680   : > { %v3821_v31 = vsel %vm9904_vm4, 0, %v3819_v36  ;;  %v3828_v23 = vxor.u32 2147483648, %v8554_v2  ;;  %v3831_v46 = vxor.u32 2147483648, %v9905_v24  ;;  %5520 = vsinq.f32 %v8768_v29 }
 0x681   : > { %v3825_v13 = vand.u32 3, %v3821_v31  ;;  %v4363_v10 = vpack.c.bf16 %v3937_v49, %v3731_v35  ;;  %vm3621_vm0 = vcmp.eq.s32.totalorder %v3619_v43, 0  ;;  %vm3624_vm12 = vcmp.eq.s32.totalorder %v3619_v43, 2 }
 0x682   : > { %vm3620_vm3 = vcmp.lt.s32.totalorder %v3619_v43, 2  ;;  %v3623_v50 = vsel %vm3621_vm0, %v9897_v7, %v3622_v41  ;;  %v3626_v53 = vsel %vm3624_vm12, %v3625_v51, %v9896_v32  ;;  %v4127_v40 = vsub.s32 4, %v9906_v44  ;;  %v9911_v51 = vld [vmem:[#allocation135_spill] sm:$0xff] }
 0x683   : > { %vm3827_vm9 = vcmp.eq.s32.totalorder %v3825_v13, 0  ;;  %4574 = vmatprep.mubr.bf16.mxu1 %v4363_v10  ;;  %v3627_v30 = vsel %vm3620_vm3, %v3623_v50, %v3626_v53  ;;  %vm3830_vm15 = vcmp.eq.s32.totalorder %v3825_v13, 2  ;;  %vm3618_vm11 = vweird.f32 %v9899_v52  ;;  %v9913_v52 = vld [vmem:[#allocation18_spill] sm:$0xff] }
 0x684   : > { %v3829_v28 = vsel %vm3827_vm9, %v9905_v24, %v3828_v23  ;;  %vm3824_vm10 = vweird.f32 %v8155_v0  ;;  %vm3826_vm13 = vcmp.lt.s32.totalorder %v3825_v13, 2  ;;  %v3832_v29 = vsel %vm3830_vm15, %v3831_v46, %v8554_v2 }
 0x685   : > { %v3628_v63 = vsel %vm3618_vm11, nan, %v3627_v30  ;;  %v3833_v26 = vsel %vm3826_vm13, %v3829_v28, %v3832_v29  ;;  %vm9907_vm8 = vcmp.lt.s32.totalorder %v8230_v59, 0  ;;  %v4333_v57 = vsub.s32 4, %v8724_v4 }
 0x686   : > { %v4128_v9 = vsel %vm9907_vm8, %v4127_v40, %v9906_v44  ;;  %v3834_v21 = vsel %vm3824_vm10, nan, %v3833_v26  ;;  %v4137_v5 = vxor.u32 2147483648, %v8782_v17  ;;  %v4140_v20 = vxor.u32 2147483648, %v8727_v55 }
 0x687   : > { %v4130_v54 = vsel %vm8632_vm2, 0, %v4128_v9  ;;  %v4362_v0 = vpack.c.bf16 %v3834_v21, %v3628_v63  ;;  %vm4133_vm1 = vweird.f32 %v8230_v59  ;;  %v4334_v33 = vsel %vm4249_vm14, %v4333_v57, %v8724_v4 }
 0x688   : > { %v4134_v2 = vand.u32 3, %v4130_v54  ;;  %v4336_v8 = vsel %vm8816_vm6, 0, %v4334_v33  ;;  %v4343_v47 = vxor.u32 2147483648, %v8907_v58  ;;  %v4346_v18 = vxor.u32 2147483648, %v8899_v22 }
 0x689   : > { %v4024_v56 = vsub.s32 4, %v9908_v42  ;;  %4575 = vmatmul.mubr.bf16.gmra.mrb[40].mxu1 %v4362_v0  ;;  %vm4339_vm0 = vweird.f32 %v8519_v60  ;;  %v4340_v6 = vand.u32 3, %v4336_v8  ;;  %vm9910_vm14 = vcmp.lt.s32.totalorder %v9909_v45, 0 }
 0x68a   : > { %vm4136_vm2 = vcmp.eq.s32.totalorder %v4134_v2, 0  ;;  %vm4139_vm4 = vcmp.eq.s32.totalorder %v4134_v2, 2  ;;  %vm4135_vm12 = vcmp.lt.s32.totalorder %v4134_v2, 2  ;;  %v5521_v38 = vpop.eup %5520  ;;  %v4034_v32 = vxor.u32 2147483648, %v8716_v14 }
 0x68b   : > { %v4138_v37 = vsel %vm4136_vm2, %v8727_v55, %v4137_v5  ;;  %v4141_v4 = vsel %vm4139_vm4, %v4140_v20, %v8782_v17  ;;  %v4025_v39 = vsel %vm9910_vm14, %v4024_v56, %v9908_v42  ;;  %vm4342_vm6 = vcmp.eq.s32.totalorder %v4340_v6, 0 }
 0x68c   : > { %v4142_v62 = vsel %vm4135_vm12, %v4138_v37, %v4141_v4  ;;  %vm4345_vm3 = vcmp.eq.s32.totalorder %v4340_v6, 2  ;;  %vm4341_vm9 = vcmp.lt.s32.totalorder %v4340_v6, 2  ;;  %v4344_v41 = vsel %vm4342_vm6, %v8899_v22, %v4343_v47 }
 0x68d   : > { %v4347_v7 = vsel %vm4345_vm3, %v4346_v18, %v8907_v58  ;;  %vm9912_vm15 = vnez %v9911_v51  ;;  %v4037_v1 = vxor.u32 2147483648, %v8707_v61  ;;  %v4230_v48 = vsub.s32 4, %v9913_v52 }
 0x68e   : > { %v4027_v55 = vsel %vm9912_vm15, 0, %v4025_v39  ;;  %v4348_v16 = vsel %vm4341_vm9, %v4344_v41, %v4347_v7  ;;  %v4143_v3 = vsel %vm4133_vm1, nan, %v4142_v62  ;;  %v4240_v58 = vxor.u32 2147483648, %v5521_v38 }
 0x68f   : > { %v4031_v17 = vand.u32 3, %v4027_v55  ;;  %v4349_v15 = vsel %vm4339_vm0, nan, %v4348_v16  ;;  %v4231_v22 = vsel %vm4146_vm7, %v4230_v48, %v9913_v52  ;;  %v4243_v35 = vxor.u32 2147483648, %v8821_v25 }
 0x690   : > { %v4365_v11 = vpack.c.bf16 %v4349_v15, %v4143_v3  ;;  %v4233_v59 = vsel %vm8720_vm5, 0, %v4231_v22  ;;  %vm4030_vm7 = vweird.f32 %v9909_v45  ;;  %vm4236_vm4 = vweird.f32 %v8335_v12 }
 0x691   : > { %vm4033_vm11 = vcmp.eq.s32.totalorder %v4031_v17, 0  ;;  %vm4036_vm10 = vcmp.eq.s32.totalorder %v4031_v17, 2  ;;  %v4237_v60 = vand.u32 3, %v4233_v59  ;;  %vm4032_vm13 = vcmp.lt.s32.totalorder %v4031_v17, 2 }
 0x692   : > { %4582 = vmatprep.mubr.bf16.mxu1 %v4365_v11  ;;  %v4035_v27 = vsel %vm4033_vm11, %v8707_v61, %v4034_v32  ;;  %v4038_v36 = vsel %vm4036_vm10, %v4037_v1, %v8716_v14 }
 0x693   : > { %v4039_v34 = vsel %vm4032_vm13, %v4035_v27, %v4038_v36  ;;  %vm4239_vm8 = vcmp.eq.s32.totalorder %v4237_v60, 0  ;;  %vm4242_vm1 = vcmp.eq.s32.totalorder %v4237_v60, 2  ;;  %vm4238_vm2 = vcmp.lt.s32.totalorder %v4237_v60, 2 }
 0x694   : > { %v4241_v43 = vsel %vm4239_vm8, %v8821_v25, %v4240_v58  ;;  %v4244_v31 = vsel %vm4242_vm1, %v4243_v35, %v5521_v38  ;;  %v4040_v14 = vsel %vm4030_vm7, nan, %v4039_v34 }
 0x695   : > { %v4245_v61 = vsel %vm4238_vm2, %v4241_v43, %v4244_v31 }
 0x696   : > { %v4246_v19 = vsel %vm4236_vm4, nan, %v4245_v61 }
 0x697   : > { %v4364_v49 = vpack.c.bf16 %v4246_v19, %v4040_v14 }
 0x699   : > { %4583 = vmatmul.mubr.bf16.gmra.mrb[44].mxu1 %v4364_v49 }
 0x6f4   : > { %v4990_v13 = vpop.f32.mrb[16].mxu1 }
 0x6f5   : > { %v4991_v23 = vpop.f32.mrb[17].mxu1 }
 0x6f6   : > { %v4992_v24 = vadd.f32 %v4991_v23, %v4990_v13  ;;  %v4993_v46 = vpop.f32.mrb[18].mxu1 }
 0x6f7   : > { %v4994_v10 = vpop.f32.mrb[19].mxu1 }
 0x6f8   : > { %4591 = vst [vmem:[%s9132_s24] sm:$0xff] %v4992_v24  ;;  %v4995_v12 = vadd.f32 %v4994_v10, %v4993_v46 }
 0x6fa   : > { %4592 = vst [vmem:[%s9132_s24 + $0x8] sm:$0xff] %v4995_v12 }
 0x70b   : > { %v4996_v25 = vpop.f32.mrb[20].mxu1 }
 0x70c   : > { %v4997_v50 = vpop.f32.mrb[21].mxu1 }
 0x70d   : > { %v4998_v53 = vadd.f32 %v4997_v50, %v4996_v25  ;;  %v4999_v30 = vpop.f32.mrb[22].mxu1 }
 0x70e   : > { %v5000_v28 = vpop.f32.mrb[23].mxu1 }
 0x70f   : > { %4593 = vst [vmem:[%s9132_s24 + $0x10] sm:$0xff] %v4998_v53  ;;  %v5001_v44 = vadd.f32 %v5000_v28, %v4999_v30 }
 0x711   : > { %4594 = vst [vmem:[%s9132_s24 + $0x18] sm:$0xff] %v5001_v44 }
 0x71a   : > { %v5002_v40 = vpop.f32.mrb[24].mxu1 }
 0x71b   : > { %v5003_v29 = vpop.f32.mrb[25].mxu1 }
 0x71c   : > { %v5004_v63 = vadd.f32 %v5003_v29, %v5002_v40  ;;  %v5005_v26 = vpop.f32.mrb[26].mxu1 }
 0x71d   : > { %v5006_v9 = vpop.f32.mrb[27].mxu1 }
 0x71e   : > { %4595 = vst [vmem:[%s9132_s24 + $0x20] sm:$0xff] %v5004_v63  ;;  %v5007_v57 = vadd.f32 %v5006_v9, %v5005_v26 }
 0x720   : > { %4596 = vst [vmem:[%s9132_s24 + $0x28] sm:$0xff] %v5007_v57 }
 0x72e   : > { %v5008_v21 = vpop.f32.mrb[28].mxu1 }
 0x72f   : > { %v5009_v54 = vpop.f32.mrb[29].mxu1 }
 0x730   : > { %v5010_v5 = vadd.f32 %v5009_v54, %v5008_v21  ;;  %v5011_v20 = vpop.f32.mrb[30].mxu1 }
 0x731   : > { %v5012_v0 = vpop.f32.mrb[31].mxu1 }
 0x732   : > { %4597 = vst [vmem:[%s9132_s24 + $0x30] sm:$0xff] %v5010_v5  ;;  %v5013_v2 = vadd.f32 %v5012_v0, %v5011_v20 }
 0x734   : > { %4598 = vst [vmem:[%s9132_s24 + $0x38] sm:$0xff] %v5013_v2 }
 0x73b   : > { %v5014_v33 = vpop.f32.mrb[32].mxu1 }
 0x73c   : > { %v5015_v8 = vpop.f32.mrb[33].mxu1 }
 0x73d   : > { %v5016_v47 = vadd.f32 %v5015_v8, %v5014_v33  ;;  %v5017_v18 = vpop.f32.mrb[34].mxu1 }
 0x73e   : > { %v5018_v42 = vpop.f32.mrb[35].mxu1 }
 0x73f   : > { %4599 = vst [vmem:[%s9132_s24 + $0x40] sm:$0xff] %v5016_v47  ;;  %v5019_v56 = vadd.f32 %v5018_v42, %v5017_v18 }
 0x741   : > { %4600 = vst [vmem:[%s9132_s24 + $0x48] sm:$0xff] %v5019_v56 }
 0x74f   : > { %v5020_v6 = vpop.f32.mrb[36].mxu1 }
 0x750   : > { %v5021_v37 = vpop.f32.mrb[37].mxu1 }
 0x751   : > { %v5022_v4 = vadd.f32 %v5021_v37, %v5020_v6  ;;  %v5023_v45 = vpop.f32.mrb[38].mxu1 }
 0x752   : > { %v5024_v39 = vpop.f32.mrb[39].mxu1 }
 0x753   : > { %4601 = vst [vmem:[%s9132_s24 + $0x50] sm:$0xff] %v5022_v4  ;;  %v5025_v38 = vadd.f32 %v5024_v39, %v5023_v45 }
 0x755   : > { %4602 = vst [vmem:[%s9132_s24 + $0x58] sm:$0xff] %v5025_v38 }
 0x75c   : > { %v5026_v62 = vpop.f32.mrb[40].mxu1 }
 0x75d   : > { %v5027_v32 = vpop.f32.mrb[41].mxu1 }
 0x75e   : > { %v5028_v41 = vadd.f32 %v5027_v32, %v5026_v62  ;;  %v5029_v7 = vpop.f32.mrb[42].mxu1 }
 0x75f   : > { %v5030_v51 = vpop.f32.mrb[43].mxu1 }
 0x760   : > { %4603 = vst [vmem:[%s9132_s24 + $0x60] sm:$0xff] %v5028_v41  ;;  %v5031_v55 = vadd.f32 %v5030_v51, %v5029_v7 }
 0x762   : > { %4604 = vst [vmem:[%s9132_s24 + $0x68] sm:$0xff] %v5031_v55 }
 0x76c   : > { %v5032_v16 = vpop.f32.mrb[44].mxu1 }
 0x76d   : > { %v5033_v17 = vpop.f32.mrb[45].mxu1 }
 0x76e   : > { %v5034_v1 = vadd.f32 %v5033_v17, %v5032_v16  ;;  %v5035_v52 = vpop.f32.mrb[46].mxu1 }
 0x76f   : > { %v5036_v48 = vpop.f32.mrb[47].mxu1 }
 0x770   : > { %4605 = vst [vmem:[%s9132_s24 + $0x70] sm:$0xff] %v5034_v1  ;;  %v5037_v3 = vadd.f32 %v5036_v48, %v5035_v52 }
 0x772   : > { %4606 = vst [vmem:[%s9132_s24 + $0x78] sm:$0xff] %v5037_v3 }
 0x773   : > { %5677 = shalt.err (!%p5674_p13)
}
 0x774   : > { %s5678_s17 = scalar_lea.hbm %s9153_s23, 2048  ;;  %s5682_s12 = scalar_lea.hbm %s9209_s8, 4096 }
 0x775   : > { %p5679_p9 = scmp.ne.s32.totalorder %s9153_s23, %s5678_s17  ;;  %p5683_p6 = scmp.lt.u32.totalorder %s9153_s23, %s9209_s8 }
 0x776   : > { %p5684_p4 = scmp.lt.u32.totalorder %s5682_s12, %s5678_s17  ;;  %p5686_p10 = scmp.lt.u32.totalorder %s5678_s17, %s9153_s23 }
 0x777   : > { %p5680_p0 = pnand %p5679_p9, %p5979_p3 }
 0x778   : > { %p5685_p8 = por %p5684_p4, %p5683_p6 }
 0x779   : > { %p5681_p11 = pneg %p5680_p0 }
 0x77a   : > { %p5687_p5 = por %p5686_p10, %p5685_p8 }
 0x77c   : > { %p5688_p7 = pnand %p5687_p5, %p5681_p11 }
 0x77e   : > { %5691 = shalt.err (!%p5688_p7)
}
 0x77f   : > { %s5757_s20 = smov 128   ;;  %s5758_s15 = smov 8  }
 0x780   : > { %5248 = dma.vmem_to_hbm [thread:$0]  (%p5979_p3), %s9155_s26, 2048, %s9153_s23, %s4608_s25, %s5757_s20, %s5757_s20, %s5758_s15  }
 0x781 PF: > { %s9914_s9 = sld [smem:[#allocation16_spill]]  ;;  %s4636_s11 = sand.u32 1, %s5726_s27  }
 0x782   : > { %p9916_p1 = scmp.ge.s32.totalorder %s5738_s30, 2  ;;  %s4637_s13 = scalar_lea.sflag [#allocation4], %s4636_s11 }
 0x787   : > { %p9915_p12 = scmp.ne.s32.totalorder %s9914_s9, 0 }
 0x789   : > { %p5268_p2 = pnand %p9916_p1, %p9915_p12 }
 0x78b   : > { %5721 = dma.done.wait (!%p5268_p2), %s4637_s13, 2048  }
 0x78c   : > { %5723 = vsyncadd (!%p5268_p2), %s4637_s13, 4294965248  ;;  %p23_p13 = scmp.ge.s32.totalorder %s5966_s16, 4   ;;  %s9917_s27 = smov %s5730_s28 }
 0x78d   : > { %s9918_s28 = smov %s5734_s29  ;;  %s9919_s29 = smov %s5975_s21 }
 0x78e   : > { %s9920_s30 = smov %s5966_s16  ;;  %25 = sbr.rel (!%p23_p13) target bundleno = 9 (0x9), region = 113 }
 0x795   :  { %4642 = vsyncpa [#allocation3], 1 }
 0x796   :  { %4644 = vsyncpa [#allocation3 + $0x1], 1 }
 0x797   :  { %4645 = vsyncpa [#allocation6], 1 }
 0x798   :  { %4646 = vsyncpa [#allocation9], 1 }
 0x799   :  { %4647 = vsyncpa [#allocation4], 1 }
 0x79a   :  { %4649 = vsyncpa [#allocation4 + $0x1], 1 }

</bundles_post_ra>
